<compile_context>
chip_gen: v6e
topology: v6e:2x2x1
jax: 0.10.0
libtpu: 0.0.40
codegen_flags: <defaults>
</compile_context>

<pallas_src>
import functools

import jax
import jax.numpy as jnp
from jax import lax
from jax.experimental import pallas as pl
from jax.experimental.pallas import tpu as pltpu


_PARALLEL = pltpu.CompilerParams(dimension_semantics=("parallel",))


# ----------------------------------------------------------------------------
# Generic linear (weights pre-transposed to (din, dout))
# ----------------------------------------------------------------------------
def _matmul_kernel(x_ref, w_ref, o_ref):
    o_ref[...] = jnp.dot(x_ref[...], w_ref[...], preferred_element_type=jnp.float32)


def linear(x, wt):
    din = x.shape[-1]
    dout = wt.shape[1]
    lead = x.shape[:-1]
    x2 = x.reshape(-1, din).astype(jnp.float32)
    out = pl.pallas_call(
        _matmul_kernel,
        out_shape=jax.ShapeDtypeStruct((x2.shape[0], dout), jnp.float32),
    )(x2, wt)
    return out.reshape(*lead, dout)


# ----------------------------------------------------------------------------
# Highway-style embedding transform, fused single matmul with [WT | WH]:
#   proj = x @ [WT^T | WH^T];  t = sigmoid(proj[:, :E]);  h = leaky_relu(proj[:, E:])
#   out = h * t + (1 - t) * x
# ----------------------------------------------------------------------------
def _highway_kernel(x_ref, w_ref, o_ref):
    x = x_ref[...]
    E = x.shape[-1]
    proj = jnp.dot(x, w_ref[...], preferred_element_type=jnp.float32)   # (M, 2E)
    t = jax.nn.sigmoid(proj[:, 0:E])
    h = jax.nn.leaky_relu(proj[:, E:2 * E], negative_slope=0.01)
    o_ref[...] = h * t + (1.0 - t) * x


def highway(x, w_cat):
    B, L, E = x.shape
    x2 = x.reshape(B * L, E).astype(jnp.float32)
    out = pl.pallas_call(
        _highway_kernel,
        out_shape=jax.ShapeDtypeStruct((B * L, E), jnp.float32),
    )(x2, w_cat)
    return out.reshape(B, L, E)


# ----------------------------------------------------------------------------
# Bidirectional GRU (PyTorch gate conventions).  Kernel layout: x (T, B, D);
# wih = [Wih_f^T | Wih_b^T] (D, 6H); whh_* (H, 3H); biases (1, 6H)/(1, 3H).
# The input projection for all timesteps and both directions is one matmul
# done once up-front; only h @ Whh stays in the serial time loop.
# ----------------------------------------------------------------------------
def _bigru_kernel(x_ref, wih_ref, bih_ref, whh_f_ref, bhh_f_ref,
                  whh_b_ref, bhh_b_ref, of_ref, ob_ref,
                  gi_scr, hf_scr, hb_scr):
    T, B, D = x_ref.shape
    H = whh_f_ref.shape[0]

    # Hoisted input projection: (T*B, D) @ (D, 6H)  (fwd gates | bwd gates)
    x2 = x_ref[...].reshape(T * B, D)
    gi_all = jnp.dot(x2, wih_ref[...], preferred_element_type=jnp.float32) + bih_ref[...]
    gi_scr[...] = gi_all.reshape(T, B, 6 * H)

    # Hoisted recurrent weights / biases (read once, reused every step).
    whh_f = whh_f_ref[...]
    bhh_f = bhh_f_ref[...]
    whh_b = whh_b_ref[...]
    bhh_b = bhh_b_ref[...]

    hf_scr[...] = jnp.zeros_like(hf_scr)
    hb_scr[...] = jnp.zeros_like(hb_scr)

    def cell(gi, h, whh, bhh):
        gh = jnp.dot(h, whh, preferred_element_type=jnp.float32) + bhh
        r = jax.nn.sigmoid(gi[:, 0:H] + gh[:, 0:H])
        z = jax.nn.sigmoid(gi[:, H:2 * H] + gh[:, H:2 * H])
        n = jnp.tanh(gi[:, 2 * H:3 * H] + r * gh[:, 2 * H:3 * H])
        return (1.0 - z) * n + z * h

    def fwd(t, carry):
        gi = gi_scr[t]
        h = cell(gi[:, 0:3 * H], hf_scr[...], whh_f, bhh_f)
        hf_scr[...] = h
        of_ref[t] = h
        return carry

    lax.fori_loop(0, T, fwd, 0)

    def bwd(i, carry):
        t = T - 1 - i
        gi = gi_scr[t]
        h = cell(gi[:, 3 * H:6 * H], hb_scr[...], whh_b, bhh_b)
        hb_scr[...] = h
        ob_ref[t] = h
        return carry

    lax.fori_loop(0, T, bwd, 0)


def bigru(x, p):
    """x: (B, T, D) -> (B, T, 2H)."""
    B, T, D = x.shape
    H = p['whh_f'].shape[0]
    xt = jnp.transpose(x, (1, 0, 2)).astype(jnp.float32)
    of, ob = pl.pallas_call(
        _bigru_kernel,
        out_shape=(jax.ShapeDtypeStruct((T, B, H), jnp.float32),
                   jax.ShapeDtypeStruct((T, B, H), jnp.float32)),
        scratch_shapes=[pltpu.VMEM((T, B, 6 * H), jnp.float32),
                        pltpu.VMEM((B, H), jnp.float32),
                        pltpu.VMEM((B, H), jnp.float32)],
    )(xt, p['wih'], p['bih'], p['whh_f'], p['bhh_f'], p['whh_b'], p['bhh_b'])
    out = jnp.concatenate([of, ob], axis=-1)
    return jnp.transpose(out, (1, 0, 2))


# ----------------------------------------------------------------------------
# Attention pooling:  score = x . w ; softmax over sequence; pooled = sum p*x
# (used for the answer encoding: a_attention)
# ----------------------------------------------------------------------------
def _attn_pool_kernel(x_ref, w_ref, o_ref):
    x = x_ref[0]                                               # (L, E)
    s = jnp.sum(x * w_ref[...], axis=-1, keepdims=True)        # (L, 1)
    s = s - jnp.max(s, axis=0, keepdims=True)
    e = jnp.exp(s)
    p = e * pl.reciprocal(jnp.sum(e, axis=0, keepdims=True), approx=True)
    o_ref[0] = jnp.sum(p * x, axis=0, keepdims=True)           # (1, E)


def attn_pool(x, w):
    Bt, L, E = x.shape
    return pl.pallas_call(
        _attn_pool_kernel,
        grid=(Bt,),
        in_specs=[pl.BlockSpec((1, L, E), lambda i: (i, 0, 0)),
                  pl.BlockSpec((1, E), lambda i: (0, 0))],
        out_specs=pl.BlockSpec((1, 1, E), lambda i: (i, 0, 0)),
        out_shape=jax.ShapeDtypeStruct((Bt, 1, E), jnp.float32),
        compiler_params=_PARALLEL,
    )(x, w)


# ----------------------------------------------------------------------------
# Two-way additive attention (covers "concat" (+) and factored "minus" (-)):
#   t[i,j] = tanh(W1(hp)[j] + sign * W2(hq)[i]);  s = <t, v>;  softmax_j;  @ hp
# ----------------------------------------------------------------------------
def _make_twoway_attn_kernel(sign):
    def kernel(hq_ref, hp_ref, w1_ref, w2_ref, v_ref, o_ref):
        hq = hq_ref[0]
        hp = hp_ref[0]
        s1 = jnp.dot(hp, w1_ref[...], preferred_element_type=jnp.float32)  # (Lp, H)
        s2 = jnp.dot(hq, w2_ref[...], preferred_element_type=jnp.float32)  # (Lq, H)
        t = jnp.tanh(s1[None, :, :] + sign * s2[:, None, :])               # (Lq, Lp, H)
        s = jnp.sum(t * v_ref[...][None, :, :], axis=-1)                   # (Lq, Lp)
        s = s - jnp.max(s, axis=-1, keepdims=True)
        e = jnp.exp(s)
        p = e * pl.reciprocal(jnp.sum(e, axis=-1, keepdims=True), approx=True)
        o_ref[0] = jnp.dot(p, hp, preferred_element_type=jnp.float32)
    return kernel


_add_attn_kernel = _make_twoway_attn_kernel(1.0)
_sub_attn_kernel = _make_twoway_attn_kernel(-1.0)


def twoway_attention(hq, hp, w1, w2, v, sign):
    B, Lq, D2 = hq.shape
    _, Lp, _ = hp.shape
    H = w1.shape[1]
    kern = _add_attn_kernel if sign > 0 else _sub_attn_kernel
    return pl.pallas_call(
        kern,
        grid=(B,),
        in_specs=[pl.BlockSpec((1, Lq, D2), lambda i: (i, 0, 0)),
                  pl.BlockSpec((1, Lp, D2), lambda i: (i, 0, 0)),
                  pl.BlockSpec((D2, H), lambda i: (0, 0)),
                  pl.BlockSpec((D2, H), lambda i: (0, 0)),
                  pl.BlockSpec((1, H), lambda i: (0, 0))],
        out_specs=pl.BlockSpec((1, Lq, D2), lambda i: (i, 0, 0)),
        out_shape=jax.ShapeDtypeStruct((B, Lq, D2), jnp.float32),
        compiler_params=_PARALLEL,
    )(hq, hp, w1, w2, v)


# ----------------------------------------------------------------------------
# Bilinear attention:  softmax(hq @ (hp @ Wb)^T) @ hp
# ----------------------------------------------------------------------------
def _bilinear_attn_kernel(hq_ref, hp_ref, wb_ref, o_ref):
    hq = hq_ref[0]
    hp = hp_ref[0]
    proj = jnp.dot(hp, wb_ref[...], preferred_element_type=jnp.float32)   # (Lp, 2H)
    s = lax.dot_general(hq, proj, dimension_numbers=(((1,), (1,)), ((), ())),
                        preferred_element_type=jnp.float32)               # (Lq, Lp)
    s = s - jnp.max(s, axis=-1, keepdims=True)
    e = jnp.exp(s)
    p = e * pl.reciprocal(jnp.sum(e, axis=-1, keepdims=True), approx=True)
    o_ref[0] = jnp.dot(p, hp, preferred_element_type=jnp.float32)


def bilinear_attention(hq, hp, wb):
    B, Lq, D2 = hq.shape
    _, Lp, _ = hp.shape
    return pl.pallas_call(
        _bilinear_attn_kernel,
        grid=(B,),
        in_specs=[pl.BlockSpec((1, Lq, D2), lambda i: (i, 0, 0)),
                  pl.BlockSpec((1, Lp, D2), lambda i: (i, 0, 0)),
                  pl.BlockSpec((D2, D2), lambda i: (0, 0))],
        out_specs=pl.BlockSpec((1, Lq, D2), lambda i: (i, 0, 0)),
        out_shape=jax.ShapeDtypeStruct((B, Lq, D2), jnp.float32),
        compiler_params=_PARALLEL,
    )(hq, hp, wb)


# ----------------------------------------------------------------------------
# Elementwise-product ("dot" / "self") attention:
#   t = tanh((hp[j] * hq[i]) @ W);  s = <t, v>;  softmax_j;  @ hp
# ----------------------------------------------------------------------------
def _mul_attn_kernel(hq_ref, hp_ref, w_ref, v_ref, o_ref):
    hq = hq_ref[0]
    hp = hp_ref[0]
    x = hp[None, :, :] * hq[:, None, :]                                   # (Lq, Lp, 2H)
    lq, lp, d2 = x.shape
    t = jnp.tanh(jnp.dot(x.reshape(lq * lp, d2), w_ref[...],
                         preferred_element_type=jnp.float32)).reshape(lq, lp, -1)
    s = jnp.sum(t * v_ref[...][None, :, :], axis=-1)                      # (Lq, Lp)
    s = s - jnp.max(s, axis=-1, keepdims=True)
    e = jnp.exp(s)
    p = e * pl.reciprocal(jnp.sum(e, axis=-1, keepdims=True), approx=True)
    o_ref[0] = jnp.dot(p, hp, preferred_element_type=jnp.float32)


def mul_attention(hq, hp, w, v):
    B, Lq, D2 = hq.shape
    _, Lp, _ = hp.shape
    H = w.shape[1]
    return pl.pallas_call(
        _mul_attn_kernel,
        grid=(B,),
        in_specs=[pl.BlockSpec((1, Lq, D2), lambda i: (i, 0, 0)),
                  pl.BlockSpec((1, Lp, D2), lambda i: (i, 0, 0)),
                  pl.BlockSpec((D2, H), lambda i: (0, 0)),
                  pl.BlockSpec((1, H), lambda i: (0, 0))],
        out_specs=pl.BlockSpec((1, Lq, D2), lambda i: (i, 0, 0)),
        out_shape=jax.ShapeDtypeStruct((B, Lq, D2), jnp.float32),
        compiler_params=_PARALLEL,
    )(hq, hp, w, v)


# ----------------------------------------------------------------------------
# Fused mc_sim block:  mc = a @ b^T;  out = softmax(mc) @ b; also row max/mean.
# ----------------------------------------------------------------------------
def _mc_attn_kernel(a_ref, b_ref, o_ref, mx_ref, mn_ref):
    a = a_ref[0]
    b = b_ref[0]
    s = lax.dot_general(a, b, dimension_numbers=(((1,), (1,)), ((), ())),
                        preferred_element_type=jnp.float32)               # (La, Lb)
    row_max = jnp.max(s, axis=-1, keepdims=True)
    row_mean = jnp.mean(s, axis=-1, keepdims=True)
    e = jnp.exp(s - row_max)
    p = e * pl.reciprocal(jnp.sum(e, axis=-1, keepdims=True), approx=True)
    o_ref[0] = jnp.dot(p, b, preferred_element_type=jnp.float32)
    mx_ref[0] = row_max
    mn_ref[0] = row_mean


def mc_attention(a, b):
    B, La, D2 = a.shape
    _, Lb, _ = b.shape
    return pl.pallas_call(
        _mc_attn_kernel,
        grid=(B,),
        in_specs=[pl.BlockSpec((1, La, D2), lambda i: (i, 0, 0)),
                  pl.BlockSpec((1, Lb, D2), lambda i: (i, 0, 0))],
        out_specs=(pl.BlockSpec((1, La, D2), lambda i: (i, 0, 0)),
                   pl.BlockSpec((1, La, 1), lambda i: (i, 0, 0)),
                   pl.BlockSpec((1, La, 1), lambda i: (i, 0, 0))),
        out_shape=(jax.ShapeDtypeStruct((B, La, D2), jnp.float32),
                   jax.ShapeDtypeStruct((B, La, 1), jnp.float32),
                   jax.ShapeDtypeStruct((B, La, 1), jnp.float32)),
        compiler_params=_PARALLEL,
    )(a, b)


# ----------------------------------------------------------------------------
# Fused SLQA gating:  cat4 = [hq, sp, hq-sp, hq*sp];  proj = cat4 @ [Wo | Wg];
#   out = tanh(proj_o) * sigmoid(proj_g) + (1 - sigmoid(proj_g)) * sp
# ----------------------------------------------------------------------------
def _slqa_gate_kernel(hq_ref, sp_ref, w_ref, o_ref):
    hq = hq_ref[0]
    sp = sp_ref[0]
    D2 = hq.shape[-1]
    cat4 = jnp.concatenate([hq, sp, hq - sp, hq * sp], axis=-1)           # (Lq, 8H)
    proj = jnp.dot(cat4, w_ref[...], preferred_element_type=jnp.float32)  # (Lq, 4H)
    f = jnp.tanh(proj[:, 0:D2])
    g = jax.nn.sigmoid(proj[:, D2:2 * D2])
    o_ref[0] = f * g + (1.0 - g) * sp


def slqa_gate(hq, sp, w_og):
    B, Lq, D2 = hq.shape
    return pl.pallas_call(
        _slqa_gate_kernel,
        grid=(B,),
        in_specs=[pl.BlockSpec((1, Lq, D2), lambda i: (i, 0, 0)),
                  pl.BlockSpec((1, Lq, D2), lambda i: (i, 0, 0)),
                  pl.BlockSpec((4 * D2, 2 * D2), lambda i: (0, 0))],
        out_specs=pl.BlockSpec((1, Lq, D2), lambda i: (i, 0, 0)),
        out_shape=jax.ShapeDtypeStruct((B, Lq, D2), jnp.float32),
        compiler_params=_PARALLEL,
    )(hq, sp, w_og)


# ----------------------------------------------------------------------------
# Fused pooling over a projected score:
#   rq:  score = <tanh(x @ Wq), vq>;  rq = softmax(score) @ x
#   rp:  score = <agg @ Wp1 + rq @ Wp2, vp>;  rp = softmax(score) @ agg
# ----------------------------------------------------------------------------
def _proj_pool_kernel(x_ref, w_ref, v_ref, o_ref):
    x = x_ref[0]                                                          # (L, D)
    s = jnp.tanh(jnp.dot(x, w_ref[...], preferred_element_type=jnp.float32))
    sc = jnp.sum(s * v_ref[...], axis=-1, keepdims=True)                  # (L, 1)
    sc = sc - jnp.max(sc, axis=0, keepdims=True)
    e = jnp.exp(sc)
    p = e * pl.reciprocal(jnp.sum(e, axis=0, keepdims=True), approx=True)
    o_ref[0] = jnp.sum(p * x, axis=0, keepdims=True)                      # (1, D)


def proj_pool(x, w, v):
    B, L, D = x.shape
    H = w.shape[1]
    return pl.pallas_call(
        _proj_pool_kernel,
        grid=(B,),
        in_specs=[pl.BlockSpec((1, L, D), lambda i: (i, 0, 0)),
                  pl.BlockSpec((D, H), lambda i: (0, 0)),
                  pl.BlockSpec((1, H), lambda i: (0, 0))],
        out_specs=pl.BlockSpec((1, 1, D), lambda i: (i, 0, 0)),
        out_shape=jax.ShapeDtypeStruct((B, 1, D), jnp.float32),
        compiler_params=_PARALLEL,
    )(x, w, v)


def _rp_pool_kernel(agg_ref, rq_ref, w1_ref, w2_ref, v_ref, o_ref):
    agg = agg_ref[0]                                                      # (Lq, 2H)
    rq = rq_ref[0]                                                        # (1, Dq)
    s = (jnp.dot(agg, w1_ref[...], preferred_element_type=jnp.float32)
         + jnp.dot(rq, w2_ref[...], preferred_element_type=jnp.float32))  # (Lq, H)
    sc = jnp.sum(s * v_ref[...], axis=-1, keepdims=True)                  # (Lq, 1)
    sc = sc - jnp.max(sc, axis=0, keepdims=True)
    e = jnp.exp(sc)
    p = e * pl.reciprocal(jnp.sum(e, axis=0, keepdims=True), approx=True)
    o_ref[0] = jnp.sum(p * agg, axis=0, keepdims=True)                    # (1, 2H)


def rp_pool(agg, rq, w1, w2, v):
    B, Lq, D2 = agg.shape
    Dq = rq.shape[-1]
    H = w1.shape[1]
    return pl.pallas_call(
        _rp_pool_kernel,
        grid=(B,),
        in_specs=[pl.BlockSpec((1, Lq, D2), lambda i: (i, 0, 0)),
                  pl.BlockSpec((1, 1, Dq), lambda i: (i, 0, 0)),
                  pl.BlockSpec((D2, H), lambda i: (0, 0)),
                  pl.BlockSpec((Dq, H), lambda i: (0, 0)),
                  pl.BlockSpec((1, H), lambda i: (0, 0))],
        out_specs=pl.BlockSpec((1, 1, D2), lambda i: (i, 0, 0)),
        out_shape=jax.ShapeDtypeStruct((B, 1, D2), jnp.float32),
        compiler_params=_PARALLEL,
    )(agg, rq, w1, w2, v)


# ----------------------------------------------------------------------------
# Full forward pass (mirrors MwAN.forward, minus dead computations)
# ----------------------------------------------------------------------------
def mwan_forward(params, query, passage, answer, is_train=True):
    emb = params['embedding']
    q_e = emb[query]                     # (B, Lq, E)
    p_e = emb[passage]                   # (B, Lp, E)
    a_e = emb[answer]                    # (B, 3, La, E)
    B, Lq, E = q_e.shape
    La = a_e.shape[2]

    q_embedding = highway(q_e, params['qW'])
    p_embedding = highway(p_e, params['pW'])

    # answer encoding + attention pooling (fused score/softmax/weighted-sum)
    a_flat = a_e.reshape(B * 3, La, E)
    a_enc = bigru(a_flat, params['a_encoder'])                 # (B*3, La, E)
    a_embedding = attn_pool(a_enc, params['a_attention']).reshape(B, 3, E)

    hp = bigru(p_embedding, params['p_encoder'])               # (B, Lp, 2H)
    hq = bigru(q_embedding, params['q_encoder'])               # (B, Lq, 2H)
    # TODO(synk): F.dropout is stochastic; treated as identity (eval behavior).

    # multi-way attention (all fused kernels)
    qtc = twoway_attention(hq, hp, params['Wc1'], params['Wc2'], params['vc'], sign=+1.0)
    qtb = bilinear_attention(hq, hp, params['Wb'])
    qtd = mul_attention(hq, hp, params['Wd'], params['vd'])
    qtm = twoway_attention(hq, hp, params['Wm'], params['Wm'], params['vm'], sign=-1.0)
    qts = mul_attention(hq, hq, params['Ws'], params['vs'])

    # (reference BiDAF block S_/S_T/p2q/q2p is dead code — removed)

    slqa_p, q_rowmax, q_rowmean = mc_attention(hq, hp)
    q_intra, _, _ = mc_attention(hq, hq)
    slqa_out = slqa_gate(hq, slqa_p, params['Wog'])

    q_max = q_rowmax * hq
    q_mean = q_rowmean * hq
    q_align = slqa_p                    # identical to softmax(mc_sim) @ hp (dedup)

    # Thin (B, Lq, 1) feature columns: trivial reductions / rank-1 projections,
    # left to XLA (fused elementwise) instead of ~24 tiny pallas launches.
    def ssum(x):
        return jnp.sum(x, axis=2, keepdims=True)

    qfc, qfm, qfs = params['q_fc'], params['q_fm'], params['q_fs']

    def fc2(feat):
        return jnp.concatenate([feat, hq], axis=2) @ qfc

    def fm2(feat):
        return (feat * hq) @ qfm

    def fs2(feat):
        return (feat - hq) @ qfs

    hq_mc = jnp.concatenate(
        [hq,
         ssum(jnp.concatenate([q_max, hq], 2)), ssum(q_max * hq), ssum(q_max - hq),
         ssum(jnp.concatenate([q_mean, hq], 2)), ssum(q_mean * hq), ssum(q_mean - hq),
         ssum(jnp.concatenate([q_align, hq], 2)), ssum(q_align * hq), ssum(q_align - hq),
         ssum(jnp.concatenate([q_intra, hq], 2)), ssum(q_intra * hq),
         ssum(q_align - hq),            # reproduces the reference bug (uses q_align)
         fc2(q_max), fm2(q_max), fs2(q_max),
         fc2(q_mean), fm2(q_mean), fs2(q_mean),
         fc2(q_align), fm2(q_align), fs2(q_align),
         fc2(q_intra), fm2(q_intra), fs2(q_intra)], axis=2)    # (B, Lq, 2H+24)

    aggregation = jnp.concatenate([hq_mc, qts, qtc, qtd, qtb, qtm, slqa_out], axis=2)
    # TODO(synk): reference declares gru_agg with input 16*H+24 but the actual
    # concatenation is 14*H+24 (the reference would crash); GRU sized to 14*H+24.
    agg_rep = bigru(aggregation, params['gru_agg'])            # (B, Lq, 2H)

    rq = proj_pool(hq_mc, params['Wq'], params['vq'])          # (B, 1, 2H+24)
    rp = rp_pool(agg_rep, rq, params['Wp1'], params['Wp2'], params['vp'])   # (B, 1, 2H)
    encoder_output = jax.nn.leaky_relu(linear(rp, params['prediction']),
                                       negative_slope=0.01)    # (B, 1, E)

    logits = jnp.einsum('bke,be->bk', a_embedding, encoder_output[:, 0, :])
    score = jax.nn.softmax(logits, axis=1)                     # (B, 3)
    if not is_train:
        return jnp.argmax(score, axis=1)
    loss = -jnp.mean(jnp.log(score[:, 0]))
    return loss


# ----------------------------------------------------------------------------
# Deterministic parameter init (torch-convention shapes, mirrors MwAN.__init__)
# ----------------------------------------------------------------------------
def init_params(key, vocab_size=50, E=32, H=32):
    keys = iter(jax.random.split(key, 64))

    def w(shape, scale=0.1):
        return (scale * jax.random.normal(next(keys), shape)).astype(jnp.float32)

    def gru_params(din, h):
        return {'wih_f': w((3 * h, din)), 'whh_f': w((3 * h, h)),
                'bih_f': w((3 * h,)), 'bhh_f': w((3 * h,)),
                'wih_b': w((3 * h, din)), 'whh_b': w((3 * h, h)),
                'bih_b': w((3 * h,)), 'bhh_b': w((3 * h,))}

    return {
        'embedding': w((vocab_size, E), 1.0),
        'qWT': w((E, E)), 'qWH': w((E, E)),
        'pWT': w((E, E)), 'pWH': w((E, E)),
        'q_encoder': gru_params(E, H),
        'p_encoder': gru_params(E, H),
        'a_encoder': gru_params(E, E // 2),
        'Wc1': w((H, 2 * H)), 'Wc2': w((H, 2 * H)), 'vc': w((1, H)),
        'Wb': w((2 * H, 2 * H)),
        'Wd': w((H, 2 * H)), 'vd': w((1, H)),
        'Wm': w((H, 2 * H)), 'vm': w((1, H)),
        'Ws': w((H, 2 * H)), 'vs': w((1, H)),
        # Wqa1/Wqa2/Wqa3 only feed dead computation in the reference forward
        # (p2q/q2p never used); kept in init for parity but not used.
        'Wqa1': w((1, 2 * H)), 'Wqa2': w((1, 2 * H)), 'Wqa3': w((2 * H, 2 * H)),
        'q_fc': w((1, 4 * H)), 'q_fm': w((1, 2 * H)), 'q_fs': w((1, 2 * H)),
        'gru_agg': gru_params(14 * H + 24, H),
        'a_attention': w((1, E)),
        'Wq': w((H, 2 * H + 24)), 'vq': w((1, H)),
        'Wp1': w((H, 2 * H)), 'Wp2': w((H, 2 * H + 24)), 'vp': w((1, H)),
        'prediction': w((E, 2 * H)),
        # TODO(synk): Wa_o / Wa_g are used in the reference forward but never
        # defined in __init__; materialized as bias-free Linear(8H -> 2H).
        'Wa_o': w((2 * H, 8 * H)), 'Wa_g': w((2 * H, 8 * H)),
    }


def prepare_params(p):
    """One-time weight pre-transposition / fusion into kernel-friendly layouts."""
    t = lambda a: jnp.asarray(a, jnp.float32).T

    def gru_prep(g):
        return {
            'wih': jnp.concatenate([t(g['wih_f']), t(g['wih_b'])], axis=1),   # (D, 6H)
            'bih': jnp.concatenate([g['bih_f'], g['bih_b']])[None, :],        # (1, 6H)
            'whh_f': t(g['whh_f']), 'bhh_f': g['bhh_f'][None, :],
            'whh_b': t(g['whh_b']), 'bhh_b': g['bhh_b'][None, :],
        }

    return {
        'embedding': jnp.asarray(p['embedding'], jnp.float32),
        'qW': jnp.concatenate([t(p['qWT']), t(p['qWH'])], axis=1),            # (E, 2E)
        'pW': jnp.concatenate([t(p['pWT']), t(p['pWH'])], axis=1),
        'q_encoder': gru_prep(p['q_encoder']),
        'p_encoder': gru_prep(p['p_encoder']),
        'a_encoder': gru_prep(p['a_encoder']),
        'gru_agg': gru_prep(p['gru_agg']),
        'a_attention': jnp.asarray(p['a_attention'], jnp.float32),            # (1, E)
        'Wc1': t(p['Wc1']), 'Wc2': t(p['Wc2']), 'vc': jnp.asarray(p['vc'], jnp.float32),
        'Wb': t(p['Wb']),
        'Wd': t(p['Wd']), 'vd': jnp.asarray(p['vd'], jnp.float32),
        'Wm': t(p['Wm']), 'vm': jnp.asarray(p['vm'], jnp.float32),
        'Ws': t(p['Ws']), 'vs': jnp.asarray(p['vs'], jnp.float32),
        'Wog': jnp.concatenate([t(p['Wa_o']), t(p['Wa_g'])], axis=1),         # (8H, 4H)
        'q_fc': t(p['q_fc']), 'q_fm': t(p['q_fm']), 'q_fs': t(p['q_fs']),
        'Wq': t(p['Wq']), 'vq': jnp.asarray(p['vq'], jnp.float32),
        'Wp1': t(p['Wp1']), 'Wp2': t(p['Wp2']), 'vp': jnp.asarray(p['vp'], jnp.float32),
        'prediction': t(p['prediction']),                                     # (2H, E)
    }


if __name__ == "__main__":
    key = jax.random.PRNGKey(0)
    pkey, qkey, pskey, akey = jax.random.split(key, 4)

    vocab_size, E, H = 50, 32, 32
    B, Lq, Lp, La = 2, 8, 10, 6

    params = prepare_params(init_params(pkey, vocab_size, E, H))
    query = jax.random.randint(qkey, (B, Lq), 0, vocab_size)
    passage = jax.random.randint(pskey, (B, Lp), 0, vocab_size)
    answer = jax.random.randint(akey, (B, 3, La), 0, vocab_size)

    fwd = jax.jit(functools.partial(mwan_forward, params, is_train=True))
    loss = fwd(query, passage, answer)
    loss = jax.block_until_ready(loss)
    assert bool(jnp.isfinite(loss)), "loss is not finite"
    print("KERNEL_OK")
</pallas_src>

<mosaic_0001>
module attributes {stable_mosaic.version = 11 : i64} {
  func.func @_highway_kernel(%arg0: memref<16x32xf32, #tpu.memory_space<vmem>>, %arg1: memref<32x64xf32, #tpu.memory_space<vmem>>, %arg2: memref<16x32xf32, #tpu.memory_space<vmem>>) attributes {dimension_semantics = [], scalar_prefetch = 0 : i64, scratch_operands = 0 : i64, tpu.core_type = #tpu.core_type<tc>} {
    %c0 = arith.constant 0 : index
    %c0_0 = arith.constant 0 : index
    %0 = vector.load %arg0[%c0, %c0_0] : memref<16x32xf32, #tpu.memory_space<vmem>>, vector<16x32xf32>
    %c0_1 = arith.constant 0 : index
    %c0_2 = arith.constant 0 : index
    %1 = vector.load %arg1[%c0_1, %c0_2] : memref<32x64xf32, #tpu.memory_space<vmem>>, vector<32x64xf32>
    %cst = arith.constant dense<0.000000e+00> : vector<16x64xf32>
    %2 = tpu.matmul %0, %1, %cst {dimension_numbers = #tpu.dot_dimension_numbers<[1], [0], [0], [1], [0, 0, 1, 1], [], []>} : vector<16x32xf32>, vector<32x64xf32>, vector<16x64xf32> -> vector<16x64xf32>
    %3 = vector.extract_strided_slice %2 {offsets = [0, 0], sizes = [16, 32], strides = [1, 1]} : vector<16x64xf32> to vector<16x32xf32>
    %4 = arith.negf %3 : vector<16x32xf32>
    %5 = math.exp %4 : vector<16x32xf32>
    %cst_3 = arith.constant 1.000000e+00 : f32
    %6 = vector.broadcast %cst_3 : f32 to vector<16x32xf32>
    %7 = arith.addf %6, %5 : vector<16x32xf32>
    %8 = arith.divf %6, %7 : vector<16x32xf32>
    %9 = vector.extract_strided_slice %2 {offsets = [0, 32], sizes = [16, 32], strides = [1, 1]} : vector<16x64xf32> to vector<16x32xf32>
    %cst_4 = arith.constant 0.00999999977 : f32
    %cst_5 = arith.constant 0.000000e+00 : f32
    %10 = vector.broadcast %cst_5 : f32 to vector<16x32xf32>
    %11 = arith.cmpf oge, %9, %10 : vector<16x32xf32>
    %12 = vector.broadcast %cst_4 : f32 to vector<16x32xf32>
    %13 = arith.mulf %12, %9 : vector<16x32xf32>
    %14 = arith.select %11, %9, %13 : vector<16x32xi1>, vector<16x32xf32>
    %15 = arith.mulf %14, %8 : vector<16x32xf32>
    %cst_6 = arith.constant 1.000000e+00 : f32
    %16 = vector.broadcast %cst_6 : f32 to vector<16x32xf32>
    %17 = arith.subf %16, %8 : vector<16x32xf32>
    %18 = arith.mulf %17, %0 : vector<16x32xf32>
    %19 = arith.addf %15, %18 : vector<16x32xf32>
    %c0_7 = arith.constant 0 : index
    %c0_8 = arith.constant 0 : index
    %20 = vector.load %arg2[%c0_7, %c0_8] : memref<16x32xf32, #tpu.memory_space<vmem>>, vector<16x32xf32>
    tpu.vector_store %arg2[%c0_7, %c0_8], %19 {strides = array<i32>} : memref<16x32xf32, #tpu.memory_space<vmem>>, vector<16x32xf32>,
    return
  }
}

module attributes {stable_mosaic.version = 11 : i64} {
  func.func @_bigru_kernel(%arg0: memref<8x2x32xf32, #tpu.memory_space<vmem>>, %arg1: memref<32x192xf32, #tpu.memory_space<vmem>>, %arg2: memref<1x192xf32, #tpu.memory_space<vmem>>, %arg3: memref<32x96xf32, #tpu.memory_space<vmem>>, %arg4: memref<1x96xf32, #tpu.memory_space<vmem>>, %arg5: memref<32x96xf32, #tpu.memory_space<vmem>>, %arg6: memref<1x96xf32, #tpu.memory_space<vmem>>, %arg7: memref<8x2x32xf32, #tpu.memory_space<vmem>>, %arg8: memref<8x2x32xf32, #tpu.memory_space<vmem>>, %arg9: memref<8x2x192xf32, #tpu.memory_space<vmem>>, %arg10: memref<2x32xf32, #tpu.memory_space<vmem>>, %arg11: memref<2x32xf32, #tpu.memory_space<vmem>>) attributes {dimension_semantics = [], scalar_prefetch = 0 : i64, scratch_operands = 3 : i64, tpu.core_type = #tpu.core_type<tc>} {
    %c0 = arith.constant 0 : index
    %c0_0 = arith.constant 0 : index
    %c0_1 = arith.constant 0 : index
    %0 = vector.load %arg0[%c0, %c0_0, %c0_1] : memref<8x2x32xf32, #tpu.memory_space<vmem>>, vector<8x2x32xf32>
    %1 = vector.shape_cast %0 : vector<8x2x32xf32> to vector<16x32xf32>
    %c0_2 = arith.constant 0 : index
    %c0_3 = arith.constant 0 : index
    %2 = vector.load %arg1[%c0_2, %c0_3] : memref<32x192xf32, #tpu.memory_space<vmem>>, vector<32x192xf32>
    %cst = arith.constant dense<0.000000e+00> : vector<16x192xf32>
    %3 = tpu.matmul %1, %2, %cst {dimension_numbers = #tpu.dot_dimension_numbers<[1], [0], [0], [1], [0, 0, 1, 1], [], []>} : vector<16x32xf32>, vector<32x192xf32>, vector<16x192xf32> -> vector<16x192xf32>
    %c0_4 = arith.constant 0 : index
    %c0_5 = arith.constant 0 : index
    %4 = vector.load %arg2[%c0_4, %c0_5] : memref<1x192xf32, #tpu.memory_space<vmem>>, vector<1x192xf32>
    %5 = vector.broadcast %4 : vector<1x192xf32> to vector<16x192xf32>
    %6 = arith.addf %3, %5 : vector<16x192xf32>
    %7 = vector.shape_cast %6 : vector<16x192xf32> to vector<8x2x192xf32>
    %c0_6 = arith.constant 0 : index
    %c0_7 = arith.constant 0 : index
    %c0_8 = arith.constant 0 : index
    %8 = vector.load %arg9[%c0_6, %c0_7, %c0_8] : memref<8x2x192xf32, #tpu.memory_space<vmem>>, vector<8x2x192xf32>
    tpu.vector_store %arg9[%c0_6, %c0_7, %c0_8], %7 {strides = array<i32>} : memref<8x2x192xf32, #tpu.memory_space<vmem>>, vector<8x2x192xf32>,
    %c0_9 = arith.constant 0 : index
    %c0_10 = arith.constant 0 : index
    %9 = vector.load %arg3[%c0_9, %c0_10] : memref<32x96xf32, #tpu.memory_space<vmem>>, vector<32x96xf32>
    %c0_11 = arith.constant 0 : index
    %c0_12 = arith.constant 0 : index
    %10 = vector.load %arg4[%c0_11, %c0_12] : memref<1x96xf32, #tpu.memory_space<vmem>>, vector<1x96xf32>
    %c0_13 = arith.constant 0 : index
    %c0_14 = arith.constant 0 : index
    %11 = vector.load %arg5[%c0_13, %c0_14] : memref<32x96xf32, #tpu.memory_space<vmem>>, vector<32x96xf32>
    %c0_15 = arith.constant 0 : index
    %c0_16 = arith.constant 0 : index
    %12 = vector.load %arg6[%c0_15, %c0_16] : memref<1x96xf32, #tpu.memory_space<vmem>>, vector<1x96xf32>
    %cst_17 = arith.constant 0.000000e+00 : f32
    %13 = vector.broadcast %cst_17 : f32 to vector<2x32xf32>
    %c0_18 = arith.constant 0 : index
    %c0_19 = arith.constant 0 : index
    %14 = vector.load %arg10[%c0_18, %c0_19] : memref<2x32xf32, #tpu.memory_space<vmem>>, vector<2x32xf32>
    tpu.vector_store %arg10[%c0_18, %c0_19], %13 {strides = array<i32>} : memref<2x32xf32, #tpu.memory_space<vmem>>, vector<2x32xf32>,
    %cst_20 = arith.constant 0.000000e+00 : f32
    %15 = vector.broadcast %cst_20 : f32 to vector<2x32xf32>
    %c0_21 = arith.constant 0 : index
    %c0_22 = arith.constant 0 : index
    %16 = vector.load %arg11[%c0_21, %c0_22] : memref<2x32xf32, #tpu.memory_space<vmem>>, vector<2x32xf32>
    tpu.vector_store %arg11[%c0_21, %c0_22], %15 {strides = array<i32>} : memref<2x32xf32, #tpu.memory_space<vmem>>, vector<2x32xf32>,
    %c0_i32 = arith.constant 0 : i32
    %c8_i32 = arith.constant 8 : i32
    %17 = arith.addi %c0_i32, %c8_i32 : i32
    %c1_i32 = arith.constant 1 : i32
    scf.for %arg12 = %c0_i32 to %17 step %c1_i32  : i32 {
      %19 = arith.index_cast %arg12 : i32 to index
      %c0_28 = arith.constant 0 : index
      %c0_29 = arith.constant 0 : index
      %20 = vector.load %arg9[%19, %c0_28, %c0_29] : memref<8x2x192xf32, #tpu.memory_space<vmem>>, vector<1x2x192xf32>
      %21 = vector.shape_cast %20 : vector<1x2x192xf32> to vector<2x192xf32>
      %22 = vector.extract_strided_slice %21 {offsets = [0, 0], sizes = [2, 96], strides = [1, 1]} : vector<2x192xf32> to vector<2x96xf32>
      %c0_30 = arith.constant 0 : index
      %c0_31 = arith.constant 0 : index
      %23 = vector.load %arg10[%c0_30, %c0_31] : memref<2x32xf32, #tpu.memory_space<vmem>>, vector<2x32xf32>
      %cst_32 = arith.constant dense<0.000000e+00> : vector<2x96xf32>
      %24 = tpu.matmul %23, %9, %cst_32 {dimension_numbers = #tpu.dot_dimension_numbers<[1], [0], [0], [1], [0, 0, 1, 1], [], []>} : vector<2x32xf32>, vector<32x96xf32>, vector<2x96xf32> -> vector<2x96xf32>
      %25 = vector.broadcast %10 : vector<1x96xf32> to vector<2x96xf32>
      %26 = arith.addf %24, %25 : vector<2x96xf32>
      %27 = vector.extract_strided_slice %22 {offsets = [0, 0], sizes = [2, 32], strides = [1, 1]} : vector<2x96xf32> to vector<2x32xf32>
      %28 = vector.extract_strided_slice %26 {offsets = [0, 0], sizes = [2, 32], strides = [1, 1]} : vector<2x96xf32> to vector<2x32xf32>
      %29 = arith.addf %27, %28 : vector<2x32xf32>
      %30 = arith.negf %29 : vector<2x32xf32>
      %31 = math.exp %30 : vector<2x32xf32>
      %cst_33 = arith.constant 1.000000e+00 : f32
      %32 = vector.broadcast %cst_33 : f32 to vector<2x32xf32>
      %33 = arith.addf %32, %31 : vector<2x32xf32>
      %34 = arith.divf %32, %33 : vector<2x32xf32>
      %35 = vector.extract_strided_slice %22 {offsets = [0, 32], sizes = [2, 32], strides = [1, 1]} : vector<2x96xf32> to vector<2x32xf32>
      %36 = vector.extract_strided_slice %26 {offsets = [0, 32], sizes = [2, 32], strides = [1, 1]} : vector<2x96xf32> to vector<2x32xf32>
      %37 = arith.addf %35, %36 : vector<2x32xf32>
      %38 = arith.negf %37 : vector<2x32xf32>
      %39 = math.exp %38 : vector<2x32xf32>
      %cst_34 = arith.constant 1.000000e+00 : f32
      %40 = vector.broadcast %cst_34 : f32 to vector<2x32xf32>
      %41 = arith.addf %40, %39 : vector<2x32xf32>
      %42 = arith.divf %40, %41 : vector<2x32xf32>
      %43 = vector.extract_strided_slice %22 {offsets = [0, 64], sizes = [2, 32], strides = [1, 1]} : vector<2x96xf32> to vector<2x32xf32>
      %44 = vector.extract_strided_slice %26 {offsets = [0, 64], sizes = [2, 32], strides = [1, 1]} : vector<2x96xf32> to vector<2x32xf32>
      %45 = arith.mulf %34, %44 : vector<2x32xf32>
      %46 = arith.addf %43, %45 : vector<2x32xf32>
      %47 = math.tanh %46 : vector<2x32xf32>
      %cst_35 = arith.constant 1.000000e+00 : f32
      %48 = vector.broadcast %cst_35 : f32 to vector<2x32xf32>
      %49 = arith.subf %48, %42 : vector<2x32xf32>
      %50 = arith.mulf %49, %47 : vector<2x32xf32>
      %51 = arith.mulf %42, %23 : vector<2x32xf32>
      %52 = arith.addf %50, %51 : vector<2x32xf32>
      %c0_36 = arith.constant 0 : index
      %c0_37 = arith.constant 0 : index
      %53 = vector.load %arg10[%c0_36, %c0_37] : memref<2x32xf32, #tpu.memory_space<vmem>>, vector<2x32xf32>
      tpu.vector_store %arg10[%c0_36, %c0_37], %52 {strides = array<i32>} : memref<2x32xf32, #tpu.memory_space<vmem>>, vector<2x32xf32>,
      %54 = arith.index_cast %arg12 : i32 to index
      %c0_38 = arith.constant 0 : index
      %c0_39 = arith.constant 0 : index
      %55 = vector.load %arg7[%54, %c0_38, %c0_39] : memref<8x2x32xf32, #tpu.memory_space<vmem>>, vector<1x2x32xf32>
      %56 = vector.shape_cast %55 : vector<1x2x32xf32> to vector<2x32xf32>
      %57 = vector.shape_cast %52 : vector<2x32xf32> to vector<1x2x32xf32>
      tpu.vector_store %arg7[%54, %c0_38, %c0_39], %57 {strides = array<i32>} : memref<8x2x32xf32, #tpu.memory_space<vmem>>, vector<1x2x32xf32>,
    }
    %c8_i32_23 = arith.constant 8 : i32
    %c0_i32_24 = arith.constant 0 : i32
    %c8_i32_25 = arith.constant 8 : i32
    %18 = arith.addi %c0_i32_24, %c8_i32_25 : i32
    %c1_i32_26 = arith.constant 1 : i32
    scf.for %arg12 = %c0_i32_24 to %18 step %c1_i32_26  : i32 {
      %c7_i32 = arith.constant 7 : i32
      %19 = arith.subi %c7_i32, %arg12 : i32
      %20 = arith.index_cast %19 : i32 to index
      %c0_28 = arith.constant 0 : index
      %c0_29 = arith.constant 0 : index
      %21 = vector.load %arg9[%20, %c0_28, %c0_29] : memref<8x2x192xf32, #tpu.memory_space<vmem>>, vector<1x2x192xf32>
      %22 = vector.shape_cast %21 : vector<1x2x192xf32> to vector<2x192xf32>
      %23 = vector.extract_strided_slice %22 {offsets = [0, 96], sizes = [2, 96], strides = [1, 1]} : vector<2x192xf32> to vector<2x96xf32>
      %c0_30 = arith.constant 0 : index
      %c0_31 = arith.constant 0 : index
      %24 = vector.load %arg11[%c0_30, %c0_31] : memref<2x32xf32, #tpu.memory_space<vmem>>, vector<2x32xf32>
      %cst_32 = arith.constant dense<0.000000e+00> : vector<2x96xf32>
      %25 = tpu.matmul %24, %11, %cst_32 {dimension_numbers = #tpu.dot_dimension_numbers<[1], [0], [0], [1], [0, 0, 1, 1], [], []>} : vector<2x32xf32>, vector<32x96xf32>, vector<2x96xf32> -> vector<2x96xf32>
      %26 = vector.broadcast %12 : vector<1x96xf32> to vector<2x96xf32>
      %27 = arith.addf %25, %26 : vector<2x96xf32>
      %28 = vector.extract_strided_slice %23 {offsets = [0, 0], sizes = [2, 32], strides = [1, 1]} : vector<2x96xf32> to vector<2x32xf32>
      %29 = vector.extract_strided_slice %27 {offsets = [0, 0], sizes = [2, 32], strides = [1, 1]} : vector<2x96xf32> to vector<2x32xf32>
      %30 = arith.addf %28, %29 : vector<2x32xf32>
      %31 = arith.negf %30 : vector<2x32xf32>
      %32 = math.exp %31 : vector<2x32xf32>
      %cst_33 = arith.constant 1.000000e+00 : f32
      %33 = vector.broadcast %cst_33 : f32 to vector<2x32xf32>
      %34 = arith.addf %33, %32 : vector<2x32xf32>
      %35 = arith.divf %33, %34 : vector<2x32xf32>
      %36 = vector.extract_strided_slice %23 {offsets = [0, 32], sizes = [2, 32], strides = [1, 1]} : vector<2x96xf32> to vector<2x32xf32>
      %37 = vector.extract_strided_slice %27 {offsets = [0, 32], sizes = [2, 32], strides = [1, 1]} : vector<2x96xf32> to vector<2x32xf32>
      %38 = arith.addf %36, %37 : vector<2x32xf32>
      %39 = arith.negf %38 : vector<2x32xf32>
      %40 = math.exp %39 : vector<2x32xf32>
      %cst_34 = arith.constant 1.000000e+00 : f32
      %41 = vector.broadcast %cst_34 : f32 to vector<2x32xf32>
      %42 = arith.addf %41, %40 : vector<2x32xf32>
      %43 = arith.divf %41, %42 : vector<2x32xf32>
      %44 = vector.extract_strided_slice %23 {offsets = [0, 64], sizes = [2, 32], strides = [1, 1]} : vector<2x96xf32> to vector<2x32xf32>
      %45 = vector.extract_strided_slice %27 {offsets = [0, 64], sizes = [2, 32], strides = [1, 1]} : vector<2x96xf32> to vector<2x32xf32>
      %46 = arith.mulf %35, %45 : vector<2x32xf32>
      %47 = arith.addf %44, %46 : vector<2x32xf32>
      %48 = math.tanh %47 : vector<2x32xf32>
      %cst_35 = arith.constant 1.000000e+00 : f32
      %49 = vector.broadcast %cst_35 : f32 to vector<2x32xf32>
      %50 = arith.subf %49, %43 : vector<2x32xf32>
      %51 = arith.mulf %50, %48 : vector<2x32xf32>
      %52 = arith.mulf %43, %24 : vector<2x32xf32>
      %53 = arith.addf %51, %52 : vector<2x32xf32>
      %c0_36 = arith.constant 0 : index
      %c0_37 = arith.constant 0 : index
      %54 = vector.load %arg11[%c0_36, %c0_37] : memref<2x32xf32, #tpu.memory_space<vmem>>, vector<2x32xf32>
      tpu.vector_store %arg11[%c0_36, %c0_37], %53 {strides = array<i32>} : memref<2x32xf32, #tpu.memory_space<vmem>>, vector<2x32xf32>,
      %55 = arith.index_cast %19 : i32 to index
      %c0_38 = arith.constant 0 : index
      %c0_39 = arith.constant 0 : index
      %56 = vector.load %arg8[%55, %c0_38, %c0_39] : memref<8x2x32xf32, #tpu.memory_space<vmem>>, vector<1x2x32xf32>
      %57 = vector.shape_cast %56 : vector<1x2x32xf32> to vector<2x32xf32>
      %58 = vector.shape_cast %53 : vector<2x32xf32> to vector<1x2x32xf32>
      tpu.vector_store %arg8[%55, %c0_38, %c0_39], %58 {strides = array<i32>} : memref<8x2x32xf32, #tpu.memory_space<vmem>>, vector<1x2x32xf32>,
    }
    %c8_i32_27 = arith.constant 8 : i32
    return
  }
}

module attributes {stable_mosaic.version = 11 : i64} {
  func.func @_highway_kernel(%arg0: memref<20x32xf32, #tpu.memory_space<vmem>>, %arg1: memref<32x64xf32, #tpu.memory_space<vmem>>, %arg2: memref<20x32xf32, #tpu.memory_space<vmem>>) attributes {dimension_semantics = [], scalar_prefetch = 0 : i64, scratch_operands = 0 : i64, tpu.core_type = #tpu.core_type<tc>} {
    %c0 = arith.constant 0 : index
    %c0_0 = arith.constant 0 : index
    %0 = vector.load %arg0[%c0, %c0_0] : memref<20x32xf32, #tpu.memory_space<vmem>>, vector<20x32xf32>
    %c0_1 = arith.constant 0 : index
    %c0_2 = arith.constant 0 : index
    %1 = vector.load %arg1[%c0_1, %c0_2] : memref<32x64xf32, #tpu.memory_space<vmem>>, vector<32x64xf32>
    %cst = arith.constant dense<0.000000e+00> : vector<20x64xf32>
    %2 = tpu.matmul %0, %1, %cst {dimension_numbers = #tpu.dot_dimension_numbers<[1], [0], [0], [1], [0, 0, 1, 1], [], []>} : vector<20x32xf32>, vector<32x64xf32>, vector<20x64xf32> -> vector<20x64xf32>
    %3 = vector.extract_strided_slice %2 {offsets = [0, 0], sizes = [20, 32], strides = [1, 1]} : vector<20x64xf32> to vector<20x32xf32>
    %4 = arith.negf %3 : vector<20x32xf32>
    %5 = math.exp %4 : vector<20x32xf32>
    %cst_3 = arith.constant 1.000000e+00 : f32
    %6 = vector.broadcast %cst_3 : f32 to vector<20x32xf32>
    %7 = arith.addf %6, %5 : vector<20x32xf32>
    %8 = arith.divf %6, %7 : vector<20x32xf32>
    %9 = vector.extract_strided_slice %2 {offsets = [0, 32], sizes = [20, 32], strides = [1, 1]} : vector<20x64xf32> to vector<20x32xf32>
    %cst_4 = arith.constant 0.00999999977 : f32
    %cst_5 = arith.constant 0.000000e+00 : f32
    %10 = vector.broadcast %cst_5 : f32 to vector<20x32xf32>
    %11 = arith.cmpf oge, %9, %10 : vector<20x32xf32>
    %12 = vector.broadcast %cst_4 : f32 to vector<20x32xf32>
    %13 = arith.mulf %12, %9 : vector<20x32xf32>
    %14 = arith.select %11, %9, %13 : vector<20x32xi1>, vector<20x32xf32>
    %15 = arith.mulf %14, %8 : vector<20x32xf32>
    %cst_6 = arith.constant 1.000000e+00 : f32
    %16 = vector.broadcast %cst_6 : f32 to vector<20x32xf32>
    %17 = arith.subf %16, %8 : vector<20x32xf32>
    %18 = arith.mulf %17, %0 : vector<20x32xf32>
    %19 = arith.addf %15, %18 : vector<20x32xf32>
    %c0_7 = arith.constant 0 : index
    %c0_8 = arith.constant 0 : index
    %20 = vector.load %arg2[%c0_7, %c0_8] : memref<20x32xf32, #tpu.memory_space<vmem>>, vector<20x32xf32>
    tpu.vector_store %arg2[%c0_7, %c0_8], %19 {strides = array<i32>} : memref<20x32xf32, #tpu.memory_space<vmem>>, vector<20x32xf32>,
    return
  }
}

module attributes {stable_mosaic.version = 11 : i64} {
  func.func @_bigru_kernel(%arg0: memref<10x2x32xf32, #tpu.memory_space<vmem>>, %arg1: memref<32x192xf32, #tpu.memory_space<vmem>>, %arg2: memref<1x192xf32, #tpu.memory_space<vmem>>, %arg3: memref<32x96xf32, #tpu.memory_space<vmem>>, %arg4: memref<1x96xf32, #tpu.memory_space<vmem>>, %arg5: memref<32x96xf32, #tpu.memory_space<vmem>>, %arg6: memref<1x96xf32, #tpu.memory_space<vmem>>, %arg7: memref<10x2x32xf32, #tpu.memory_space<vmem>>, %arg8: memref<10x2x32xf32, #tpu.memory_space<vmem>>, %arg9: memref<10x2x192xf32, #tpu.memory_space<vmem>>, %arg10: memref<2x32xf32, #tpu.memory_space<vmem>>, %arg11: memref<2x32xf32, #tpu.memory_space<vmem>>) attributes {dimension_semantics = [], scalar_prefetch = 0 : i64, scratch_operands = 3 : i64, tpu.core_type = #tpu.core_type<tc>} {
    %c0 = arith.constant 0 : index
    %c0_0 = arith.constant 0 : index
    %c0_1 = arith.constant 0 : index
    %0 = vector.load %arg0[%c0, %c0_0, %c0_1] : memref<10x2x32xf32, #tpu.memory_space<vmem>>, vector<10x2x32xf32>
    %1 = vector.shape_cast %0 : vector<10x2x32xf32> to vector<20x32xf32>
    %c0_2 = arith.constant 0 : index
    %c0_3 = arith.constant 0 : index
    %2 = vector.load %arg1[%c0_2, %c0_3] : memref<32x192xf32, #tpu.memory_space<vmem>>, vector<32x192xf32>
    %cst = arith.constant dense<0.000000e+00> : vector<20x192xf32>
    %3 = tpu.matmul %1, %2, %cst {dimension_numbers = #tpu.dot_dimension_numbers<[1], [0], [0], [1], [0, 0, 1, 1], [], []>} : vector<20x32xf32>, vector<32x192xf32>, vector<20x192xf32> -> vector<20x192xf32>
    %c0_4 = arith.constant 0 : index
    %c0_5 = arith.constant 0 : index
    %4 = vector.load %arg2[%c0_4, %c0_5] : memref<1x192xf32, #tpu.memory_space<vmem>>, vector<1x192xf32>
    %5 = vector.broadcast %4 : vector<1x192xf32> to vector<20x192xf32>
    %6 = arith.addf %3, %5 : vector<20x192xf32>
    %7 = vector.shape_cast %6 : vector<20x192xf32> to vector<10x2x192xf32>
    %c0_6 = arith.constant 0 : index
    %c0_7 = arith.constant 0 : index
    %c0_8 = arith.constant 0 : index
    %8 = vector.load %arg9[%c0_6, %c0_7, %c0_8] : memref<10x2x192xf32, #tpu.memory_space<vmem>>, vector<10x2x192xf32>
    tpu.vector_store %arg9[%c0_6, %c0_7, %c0_8], %7 {strides = array<i32>} : memref<10x2x192xf32, #tpu.memory_space<vmem>>, vector<10x2x192xf32>,
    %c0_9 = arith.constant 0 : index
    %c0_10 = arith.constant 0 : index
    %9 = vector.load %arg3[%c0_9, %c0_10] : memref<32x96xf32, #tpu.memory_space<vmem>>, vector<32x96xf32>
    %c0_11 = arith.constant 0 : index
    %c0_12 = arith.constant 0 : index
    %10 = vector.load %arg4[%c0_11, %c0_12] : memref<1x96xf32, #tpu.memory_space<vmem>>, vector<1x96xf32>
    %c0_13 = arith.constant 0 : index
    %c0_14 = arith.constant 0 : index
    %11 = vector.load %arg5[%c0_13, %c0_14] : memref<32x96xf32, #tpu.memory_space<vmem>>, vector<32x96xf32>
    %c0_15 = arith.constant 0 : index
    %c0_16 = arith.constant 0 : index
    %12 = vector.load %arg6[%c0_15, %c0_16] : memref<1x96xf32, #tpu.memory_space<vmem>>, vector<1x96xf32>
    %cst_17 = arith.constant 0.000000e+00 : f32
    %13 = vector.broadcast %cst_17 : f32 to vector<2x32xf32>
    %c0_18 = arith.constant 0 : index
    %c0_19 = arith.constant 0 : index
    %14 = vector.load %arg10[%c0_18, %c0_19] : memref<2x32xf32, #tpu.memory_space<vmem>>, vector<2x32xf32>
    tpu.vector_store %arg10[%c0_18, %c0_19], %13 {strides = array<i32>} : memref<2x32xf32, #tpu.memory_space<vmem>>, vector<2x32xf32>,
    %cst_20 = arith.constant 0.000000e+00 : f32
    %15 = vector.broadcast %cst_20 : f32 to vector<2x32xf32>
    %c0_21 = arith.constant 0 : index
    %c0_22 = arith.constant 0 : index
    %16 = vector.load %arg11[%c0_21, %c0_22] : memref<2x32xf32, #tpu.memory_space<vmem>>, vector<2x32xf32>
    tpu.vector_store %arg11[%c0_21, %c0_22], %15 {strides = array<i32>} : memref<2x32xf32, #tpu.memory_space<vmem>>, vector<2x32xf32>,
    %c0_i32 = arith.constant 0 : i32
    %c10_i32 = arith.constant 10 : i32
    %17 = arith.addi %c0_i32, %c10_i32 : i32
    %c1_i32 = arith.constant 1 : i32
    scf.for %arg12 = %c0_i32 to %17 step %c1_i32  : i32 {
      %19 = arith.index_cast %arg12 : i32 to index
      %c0_28 = arith.constant 0 : index
      %c0_29 = arith.constant 0 : index
      %20 = vector.load %arg9[%19, %c0_28, %c0_29] : memref<10x2x192xf32, #tpu.memory_space<vmem>>, vector<1x2x192xf32>
      %21 = vector.shape_cast %20 : vector<1x2x192xf32> to vector<2x192xf32>
      %22 = vector.extract_strided_slice %21 {offsets = [0, 0], sizes = [2, 96], strides = [1, 1]} : vector<2x192xf32> to vector<2x96xf32>
      %c0_30 = arith.constant 0 : index
      %c0_31 = arith.constant 0 : index
      %23 = vector.load %arg10[%c0_30, %c0_31] : memref<2x32xf32, #tpu.memory_space<vmem>>, vector<2x32xf32>
      %cst_32 = arith.constant dense<0.000000e+00> : vector<2x96xf32>
      %24 = tpu.matmul %23, %9, %cst_32 {dimension_numbers = #tpu.dot_dimension_numbers<[1], [0], [0], [1], [0, 0, 1, 1], [], []>} : vector<2x32xf32>, vector<32x96xf32>, vector<2x96xf32> -> vector<2x96xf32>
      %25 = vector.broadcast %10 : vector<1x96xf32> to vector<2x96xf32>
      %26 = arith.addf %24, %25 : vector<2x96xf32>
      %27 = vector.extract_strided_slice %22 {offsets = [0, 0], sizes = [2, 32], strides = [1, 1]} : vector<2x96xf32> to vector<2x32xf32>
      %28 = vector.extract_strided_slice %26 {offsets = [0, 0], sizes = [2, 32], strides = [1, 1]} : vector<2x96xf32> to vector<2x32xf32>
      %29 = arith.addf %27, %28 : vector<2x32xf32>
      %30 = arith.negf %29 : vector<2x32xf32>
      %31 = math.exp %30 : vector<2x32xf32>
      %cst_33 = arith.constant 1.000000e+00 : f32
      %32 = vector.broadcast %cst_33 : f32 to vector<2x32xf32>
      %33 = arith.addf %32, %31 : vector<2x32xf32>
      %34 = arith.divf %32, %33 : vector<2x32xf32>
      %35 = vector.extract_strided_slice %22 {offsets = [0, 32], sizes = [2, 32], strides = [1, 1]} : vector<2x96xf32> to vector<2x32xf32>
      %36 = vector.extract_strided_slice %26 {offsets = [0, 32], sizes = [2, 32], strides = [1, 1]} : vector<2x96xf32> to vector<2x32xf32>
      %37 = arith.addf %35, %36 : vector<2x32xf32>
      %38 = arith.negf %37 : vector<2x32xf32>
      %39 = math.exp %38 : vector<2x32xf32>
      %cst_34 = arith.constant 1.000000e+00 : f32
      %40 = vector.broadcast %cst_34 : f32 to vector<2x32xf32>
      %41 = arith.addf %40, %39 : vector<2x32xf32>
      %42 = arith.divf %40, %41 : vector<2x32xf32>
      %43 = vector.extract_strided_slice %22 {offsets = [0, 64], sizes = [2, 32], strides = [1, 1]} : vector<2x96xf32> to vector<2x32xf32>
      %44 = vector.extract_strided_slice %26 {offsets = [0, 64], sizes = [2, 32], strides = [1, 1]} : vector<2x96xf32> to vector<2x32xf32>
      %45 = arith.mulf %34, %44 : vector<2x32xf32>
      %46 = arith.addf %43, %45 : vector<2x32xf32>
      %47 = math.tanh %46 : vector<2x32xf32>
      %cst_35 = arith.constant 1.000000e+00 : f32
      %48 = vector.broadcast %cst_35 : f32 to vector<2x32xf32>
      %49 = arith.subf %48, %42 : vector<2x32xf32>
      %50 = arith.mulf %49, %47 : vector<2x32xf32>
      %51 = arith.mulf %42, %23 : vector<2x32xf32>
      %52 = arith.addf %50, %51 : vector<2x32xf32>
      %c0_36 = arith.constant 0 : index
      %c0_37 = arith.constant 0 : index
      %53 = vector.load %arg10[%c0_36, %c0_37] : memref<2x32xf32, #tpu.memory_space<vmem>>, vector<2x32xf32>
      tpu.vector_store %arg10[%c0_36, %c0_37], %52 {strides = array<i32>} : memref<2x32xf32, #tpu.memory_space<vmem>>, vector<2x32xf32>,
      %54 = arith.index_cast %arg12 : i32 to index
      %c0_38 = arith.constant 0 : index
      %c0_39 = arith.constant 0 : index
      %55 = vector.load %arg7[%54, %c0_38, %c0_39] : memref<10x2x32xf32, #tpu.memory_space<vmem>>, vector<1x2x32xf32>
      %56 = vector.shape_cast %55 : vector<1x2x32xf32> to vector<2x32xf32>
      %57 = vector.shape_cast %52 : vector<2x32xf32> to vector<1x2x32xf32>
      tpu.vector_store %arg7[%54, %c0_38, %c0_39], %57 {strides = array<i32>} : memref<10x2x32xf32, #tpu.memory_space<vmem>>, vector<1x2x32xf32>,
    }
    %c10_i32_23 = arith.constant 10 : i32
    %c0_i32_24 = arith.constant 0 : i32
    %c10_i32_25 = arith.constant 10 : i32
    %18 = arith.addi %c0_i32_24, %c10_i32_25 : i32
    %c1_i32_26 = arith.constant 1 : i32
    scf.for %arg12 = %c0_i32_24 to %18 step %c1_i32_26  : i32 {
      %c9_i32 = arith.constant 9 : i32
      %19 = arith.subi %c9_i32, %arg12 : i32
      %20 = arith.index_cast %19 : i32 to index
      %c0_28 = arith.constant 0 : index
      %c0_29 = arith.constant 0 : index
      %21 = vector.load %arg9[%20, %c0_28, %c0_29] : memref<10x2x192xf32, #tpu.memory_space<vmem>>, vector<1x2x192xf32>
      %22 = vector.shape_cast %21 : vector<1x2x192xf32> to vector<2x192xf32>
      %23 = vector.extract_strided_slice %22 {offsets = [0, 96], sizes = [2, 96], strides = [1, 1]} : vector<2x192xf32> to vector<2x96xf32>
      %c0_30 = arith.constant 0 : index
      %c0_31 = arith.constant 0 : index
      %24 = vector.load %arg11[%c0_30, %c0_31] : memref<2x32xf32, #tpu.memory_space<vmem>>, vector<2x32xf32>
      %cst_32 = arith.constant dense<0.000000e+00> : vector<2x96xf32>
      %25 = tpu.matmul %24, %11, %cst_32 {dimension_numbers = #tpu.dot_dimension_numbers<[1], [0], [0], [1], [0, 0, 1, 1], [], []>} : vector<2x32xf32>, vector<32x96xf32>, vector<2x96xf32> -> vector<2x96xf32>
      %26 = vector.broadcast %12 : vector<1x96xf32> to vector<2x96xf32>
      %27 = arith.addf %25, %26 : vector<2x96xf32>
      %28 = vector.extract_strided_slice %23 {offsets = [0, 0], sizes = [2, 32], strides = [1, 1]} : vector<2x96xf32> to vector<2x32xf32>
      %29 = vector.extract_strided_slice %27 {offsets = [0, 0], sizes = [2, 32], strides = [1, 1]} : vector<2x96xf32> to vector<2x32xf32>
      %30 = arith.addf %28, %29 : vector<2x32xf32>
      %31 = arith.negf %30 : vector<2x32xf32>
      %32 = math.exp %31 : vector<2x32xf32>
      %cst_33 = arith.constant 1.000000e+00 : f32
      %33 = vector.broadcast %cst_33 : f32 to vector<2x32xf32>
      %34 = arith.addf %33, %32 : vector<2x32xf32>
      %35 = arith.divf %33, %34 : vector<2x32xf32>
      %36 = vector.extract_strided_slice %23 {offsets = [0, 32], sizes = [2, 32], strides = [1, 1]} : vector<2x96xf32> to vector<2x32xf32>
      %37 = vector.extract_strided_slice %27 {offsets = [0, 32], sizes = [2, 32], strides = [1, 1]} : vector<2x96xf32> to vector<2x32xf32>
      %38 = arith.addf %36, %37 : vector<2x32xf32>
      %39 = arith.negf %38 : vector<2x32xf32>
      %40 = math.exp %39 : vector<2x32xf32>
      %cst_34 = arith.constant 1.000000e+00 : f32
      %41 = vector.broadcast %cst_34 : f32 to vector<2x32xf32>
      %42 = arith.addf %41, %40 : vector<2x32xf32>
      %43 = arith.divf %41, %42 : vector<2x32xf32>
      %44 = vector.extract_strided_slice %23 {offsets = [0, 64], sizes = [2, 32], strides = [1, 1]} : vector<2x96xf32> to vector<2x32xf32>
      %45 = vector.extract_strided_slice %27 {offsets = [0, 64], sizes = [2, 32], strides = [1, 1]} : vector<2x96xf32> to vector<2x32xf32>
      %46 = arith.mulf %35, %45 : vector<2x32xf32>
      %47 = arith.addf %44, %46 : vector<2x32xf32>
      %48 = math.tanh %47 : vector<2x32xf32>
      %cst_35 = arith.constant 1.000000e+00 : f32
      %49 = vector.broadcast %cst_35 : f32 to vector<2x32xf32>
      %50 = arith.subf %49, %43 : vector<2x32xf32>
      %51 = arith.mulf %50, %48 : vector<2x32xf32>
      %52 = arith.mulf %43, %24 : vector<2x32xf32>
      %53 = arith.addf %51, %52 : vector<2x32xf32>
      %c0_36 = arith.constant 0 : index
      %c0_37 = arith.constant 0 : index
      %54 = vector.load %arg11[%c0_36, %c0_37] : memref<2x32xf32, #tpu.memory_space<vmem>>, vector<2x32xf32>
      tpu.vector_store %arg11[%c0_36, %c0_37], %53 {strides = array<i32>} : memref<2x32xf32, #tpu.memory_space<vmem>>, vector<2x32xf32>,
      %55 = arith.index_cast %19 : i32 to index
      %c0_38 = arith.constant 0 : index
      %c0_39 = arith.constant 0 : index
      %56 = vector.load %arg8[%55, %c0_38, %c0_39] : memref<10x2x32xf32, #tpu.memory_space<vmem>>, vector<1x2x32xf32>
      %57 = vector.shape_cast %56 : vector<1x2x32xf32> to vector<2x32xf32>
      %58 = vector.shape_cast %53 : vector<2x32xf32> to vector<1x2x32xf32>
      tpu.vector_store %arg8[%55, %c0_38, %c0_39], %58 {strides = array<i32>} : memref<10x2x32xf32, #tpu.memory_space<vmem>>, vector<1x2x32xf32>,
    }
    %c10_i32_27 = arith.constant 10 : i32
    return
  }
}

module attributes {stable_mosaic.version = 11 : i64} {
  func.func @_mc_attn_kernel(%arg0: i32, %arg1: memref<1x8x64xf32, #tpu.memory_space<vmem>>, %arg2: memref<1x10x64xf32, #tpu.memory_space<vmem>>, %arg3: memref<1x8x64xf32, #tpu.memory_space<vmem>>, %arg4: memref<1x8x1xf32, #tpu.memory_space<vmem>>, %arg5: memref<1x8x1xf32, #tpu.memory_space<vmem>>) attributes {dimension_semantics = [#tpu.dimension_semantics<parallel>], iteration_bounds = array<i64: 2>, scalar_prefetch = 0 : i64, scratch_operands = 0 : i64, tpu.core_type = #tpu.core_type<tc>, window_params = [{transform_indices = @transform_0, window_bounds = array<i64: 1, 8, 64>}, {transform_indices = @transform_1, window_bounds = array<i64: 1, 10, 64>}, {transform_indices = @transform_2, window_bounds = array<i64: 1, 8, 64>}, {transform_indices = @transform_3, window_bounds = array<i64: 1, 8, 1>}, {transform_indices = @transform_4, window_bounds = array<i64: 1, 8, 1>}]} {
    %c0 = arith.constant 0 : index
    %c0_0 = arith.constant 0 : index
    %c0_1 = arith.constant 0 : index
    %0 = vector.load %arg1[%c0, %c0_0, %c0_1] : memref<1x8x64xf32, #tpu.memory_space<vmem>>, vector<1x8x64xf32>
    %1 = vector.shape_cast %0 : vector<1x8x64xf32> to vector<8x64xf32>
    %c0_2 = arith.constant 0 : index
    %c0_3 = arith.constant 0 : index
    %c0_4 = arith.constant 0 : index
    %2 = vector.load %arg2[%c0_2, %c0_3, %c0_4] : memref<1x10x64xf32, #tpu.memory_space<vmem>>, vector<1x10x64xf32>
    %3 = vector.shape_cast %2 : vector<1x10x64xf32> to vector<10x64xf32>
    %cst = arith.constant dense<0.000000e+00> : vector<8x10xf32>
    %4 = tpu.matmul %1, %3, %cst {dimension_numbers = #tpu.dot_dimension_numbers<[1], [1], [0], [0], [0, 0, 1, 0], [], []>} : vector<8x64xf32>, vector<10x64xf32>, vector<8x10xf32> -> vector<8x10xf32>
    %cst_5 = arith.constant dense<0xFF800000> : vector<8xf32>
    %5 = vector.multi_reduction <maximumf>, %4, %cst_5 [1] : vector<8x10xf32> to vector<8xf32>
    %6 = vector.shape_cast %5 : vector<8xf32> to vector<8x1xf32>
    %cst_6 = arith.constant dense<0.000000e+00> : vector<8xf32>
    %7 = vector.multi_reduction <add>, %4, %cst_6 [1] : vector<8x10xf32> to vector<8xf32>
    %8 = vector.shape_cast %7 : vector<8xf32> to vector<8x1xf32>
    %cst_7 = arith.constant 1.000000e+01 : f32
    %9 = vector.broadcast %cst_7 : f32 to vector<8x1xf32>
    %10 = arith.divf %8, %9 : vector<8x1xf32>
    %11 = vector.broadcast %6 : vector<8x1xf32> to vector<8x10xf32>
    %12 = arith.subf %4, %11 : vector<8x10xf32>
    %13 = math.exp %12 : vector<8x10xf32>
    %cst_8 = arith.constant dense<0.000000e+00> : vector<8xf32>
    %14 = vector.multi_reduction <add>, %13, %cst_8 [1] : vector<8x10xf32> to vector<8xf32>
    %15 = vector.shape_cast %14 : vector<8xf32> to vector<8x1xf32>
    %16 = tpu.reciprocal %15 {approx = true} : vector<8x1xf32> -> vector<8x1xf32>
    %17 = vector.broadcast %16 : vector<8x1xf32> to vector<8x10xf32>
    %18 = arith.mulf %13, %17 : vector<8x10xf32>
    %cst_9 = arith.constant dense<0.000000e+00> : vector<8x64xf32>
    %19 = tpu.matmul %18, %3, %cst_9 {dimension_numbers = #tpu.dot_dimension_numbers<[1], [0], [0], [1], [0, 0, 1, 1], [], []>} : vector<8x10xf32>, vector<10x64xf32>, vector<8x64xf32> -> vector<8x64xf32>
    %c0_10 = arith.constant 0 : index
    %c0_11 = arith.constant 0 : index
    %c0_12 = arith.constant 0 : index
    %20 = vector.load %arg3[%c0_10, %c0_11, %c0_12] : memref<1x8x64xf32, #tpu.memory_space<vmem>>, vector<1x8x64xf32>
    %21 = vector.shape_cast %20 : vector<1x8x64xf32> to vector<8x64xf32>
    %22 = vector.shape_cast %19 : vector<8x64xf32> to vector<1x8x64xf32>
    tpu.vector_store %arg3[%c0_10, %c0_11, %c0_12], %22 {strides = array<i32>} : memref<1x8x64xf32, #tpu.memory_space<vmem>>, vector<1x8x64xf32>,
    %c0_13 = arith.constant 0 : index
    %c0_14 = arith.constant 0 : index
    %c0_15 = arith.constant 0 : index
    %23 = vector.load %arg4[%c0_13, %c0_14, %c0_15] : memref<1x8x1xf32, #tpu.memory_space<vmem>>, vector<1x8x1xf32>
    %24 = vector.shape_cast %23 : vector<1x8x1xf32> to vector<8x1xf32>
    %25 = vector.shape_cast %6 : vector<8x1xf32> to vector<1x8x1xf32>
    tpu.vector_store %arg4[%c0_13, %c0_14, %c0_15], %25 {strides = array<i32>} : memref<1x8x1xf32, #tpu.memory_space<vmem>>, vector<1x8x1xf32>,
    %c0_16 = arith.constant 0 : index
    %c0_17 = arith.constant 0 : index
    %c0_18 = arith.constant 0 : index
    %26 = vector.load %arg5[%c0_16, %c0_17, %c0_18] : memref<1x8x1xf32, #tpu.memory_space<vmem>>, vector<1x8x1xf32>
    %27 = vector.shape_cast %26 : vector<1x8x1xf32> to vector<8x1xf32>
    %28 = vector.shape_cast %10 : vector<8x1xf32> to vector<1x8x1xf32>
    tpu.vector_store %arg5[%c0_16, %c0_17, %c0_18], %28 {strides = array<i32>} : memref<1x8x1xf32, #tpu.memory_space<vmem>>, vector<1x8x1xf32>,
    return
  }
  func.func @transform_0(%arg0: i32) -> (i32, i32, i32) {
    %c0_i32 = arith.constant 0 : i32
    %c0_i32_0 = arith.constant 0 : i32
    %c0_i32_1 = arith.constant 0 : i32
    return %arg0, %c0_i32, %c0_i32_0 : i32, i32, i32
  }
  func.func @transform_1(%arg0: i32) -> (i32, i32, i32) {
    %c0_i32 = arith.constant 0 : i32
    %c0_i32_0 = arith.constant 0 : i32
    %c0_i32_1 = arith.constant 0 : i32
    return %arg0, %c0_i32, %c0_i32_0 : i32, i32, i32
  }
  func.func @transform_2(%arg0: i32) -> (i32, i32, i32) {
    %c0_i32 = arith.constant 0 : i32
    %c0_i32_0 = arith.constant 0 : i32
    %c0_i32_1 = arith.constant 0 : i32
    return %arg0, %c0_i32, %c0_i32_0 : i32, i32, i32
  }
  func.func @transform_3(%arg0: i32) -> (i32, i32, i32) {
    %c0_i32 = arith.constant 0 : i32
    %c0_i32_0 = arith.constant 0 : i32
    %c0_i32_1 = arith.constant 0 : i32
    return %arg0, %c0_i32, %c0_i32_0 : i32, i32, i32
  }
  func.func @transform_4(%arg0: i32) -> (i32, i32, i32) {
    %c0_i32 = arith.constant 0 : i32
    %c0_i32_0 = arith.constant 0 : i32
    %c0_i32_1 = arith.constant 0 : i32
    return %arg0, %c0_i32, %c0_i32_0 : i32, i32, i32
  }
}

module attributes {stable_mosaic.version = 11 : i64} {
  func.func @_mc_attn_kernel(%arg0: i32, %arg1: memref<1x8x64xf32, #tpu.memory_space<vmem>>, %arg2: memref<1x8x64xf32, #tpu.memory_space<vmem>>, %arg3: memref<1x8x64xf32, #tpu.memory_space<vmem>>, %arg4: memref<1x8x1xf32, #tpu.memory_space<vmem>>, %arg5: memref<1x8x1xf32, #tpu.memory_space<vmem>>) attributes {dimension_semantics = [#tpu.dimension_semantics<parallel>], iteration_bounds = array<i64: 2>, scalar_prefetch = 0 : i64, scratch_operands = 0 : i64, tpu.core_type = #tpu.core_type<tc>, window_params = [{transform_indices = @transform_0, window_bounds = array<i64: 1, 8, 64>}, {transform_indices = @transform_1, window_bounds = array<i64: 1, 8, 64>}, {transform_indices = @transform_2, window_bounds = array<i64: 1, 8, 64>}, {transform_indices = @transform_3, window_bounds = array<i64: 1, 8, 1>}, {transform_indices = @transform_4, window_bounds = array<i64: 1, 8, 1>}]} {
    %c0 = arith.constant 0 : index
    %c0_0 = arith.constant 0 : index
    %c0_1 = arith.constant 0 : index
    %0 = vector.load %arg1[%c0, %c0_0, %c0_1] : memref<1x8x64xf32, #tpu.memory_space<vmem>>, vector<1x8x64xf32>
    %1 = vector.shape_cast %0 : vector<1x8x64xf32> to vector<8x64xf32>
    %c0_2 = arith.constant 0 : index
    %c0_3 = arith.constant 0 : index
    %c0_4 = arith.constant 0 : index
    %2 = vector.load %arg2[%c0_2, %c0_3, %c0_4] : memref<1x8x64xf32, #tpu.memory_space<vmem>>, vector<1x8x64xf32>
    %3 = vector.shape_cast %2 : vector<1x8x64xf32> to vector<8x64xf32>
    %cst = arith.constant dense<0.000000e+00> : vector<8x8xf32>
    %4 = tpu.matmul %1, %3, %cst {dimension_numbers = #tpu.dot_dimension_numbers<[1], [1], [0], [0], [0, 0, 1, 0], [], []>} : vector<8x64xf32>, vector<8x64xf32>, vector<8x8xf32> -> vector<8x8xf32>
    %cst_5 = arith.constant dense<0xFF800000> : vector<8xf32>
    %5 = vector.multi_reduction <maximumf>, %4, %cst_5 [1] : vector<8x8xf32> to vector<8xf32>
    %6 = vector.shape_cast %5 : vector<8xf32> to vector<8x1xf32>
    %cst_6 = arith.constant dense<0.000000e+00> : vector<8xf32>
    %7 = vector.multi_reduction <add>, %4, %cst_6 [1] : vector<8x8xf32> to vector<8xf32>
    %8 = vector.shape_cast %7 : vector<8xf32> to vector<8x1xf32>
    %cst_7 = arith.constant 8.000000e+00 : f32
    %9 = vector.broadcast %cst_7 : f32 to vector<8x1xf32>
    %10 = arith.divf %8, %9 : vector<8x1xf32>
    %11 = vector.broadcast %6 : vector<8x1xf32> to vector<8x8xf32>
    %12 = arith.subf %4, %11 : vector<8x8xf32>
    %13 = math.exp %12 : vector<8x8xf32>
    %cst_8 = arith.constant dense<0.000000e+00> : vector<8xf32>
    %14 = vector.multi_reduction <add>, %13, %cst_8 [1] : vector<8x8xf32> to vector<8xf32>
    %15 = vector.shape_cast %14 : vector<8xf32> to vector<8x1xf32>
    %16 = tpu.reciprocal %15 {approx = true} : vector<8x1xf32> -> vector<8x1xf32>
    %17 = vector.broadcast %16 : vector<8x1xf32> to vector<8x8xf32>
    %18 = arith.mulf %13, %17 : vector<8x8xf32>
    %cst_9 = arith.constant dense<0.000000e+00> : vector<8x64xf32>
    %19 = tpu.matmul %18, %3, %cst_9 {dimension_numbers = #tpu.dot_dimension_numbers<[1], [0], [0], [1], [0, 0, 1, 1], [], []>} : vector<8x8xf32>, vector<8x64xf32>, vector<8x64xf32> -> vector<8x64xf32>
    %c0_10 = arith.constant 0 : index
    %c0_11 = arith.constant 0 : index
    %c0_12 = arith.constant 0 : index
    %20 = vector.load %arg3[%c0_10, %c0_11, %c0_12] : memref<1x8x64xf32, #tpu.memory_space<vmem>>, vector<1x8x64xf32>
    %21 = vector.shape_cast %20 : vector<1x8x64xf32> to vector<8x64xf32>
    %22 = vector.shape_cast %19 : vector<8x64xf32> to vector<1x8x64xf32>
    tpu.vector_store %arg3[%c0_10, %c0_11, %c0_12], %22 {strides = array<i32>} : memref<1x8x64xf32, #tpu.memory_space<vmem>>, vector<1x8x64xf32>,
    %c0_13 = arith.constant 0 : index
    %c0_14 = arith.constant 0 : index
    %c0_15 = arith.constant 0 : index
    %23 = vector.load %arg4[%c0_13, %c0_14, %c0_15] : memref<1x8x1xf32, #tpu.memory_space<vmem>>, vector<1x8x1xf32>
    %24 = vector.shape_cast %23 : vector<1x8x1xf32> to vector<8x1xf32>
    %25 = vector.shape_cast %6 : vector<8x1xf32> to vector<1x8x1xf32>
    tpu.vector_store %arg4[%c0_13, %c0_14, %c0_15], %25 {strides = array<i32>} : memref<1x8x1xf32, #tpu.memory_space<vmem>>, vector<1x8x1xf32>,
    %c0_16 = arith.constant 0 : index
    %c0_17 = arith.constant 0 : index
    %c0_18 = arith.constant 0 : index
    %26 = vector.load %arg5[%c0_16, %c0_17, %c0_18] : memref<1x8x1xf32, #tpu.memory_space<vmem>>, vector<1x8x1xf32>
    %27 = vector.shape_cast %26 : vector<1x8x1xf32> to vector<8x1xf32>
    %28 = vector.shape_cast %10 : vector<8x1xf32> to vector<1x8x1xf32>
    tpu.vector_store %arg5[%c0_16, %c0_17, %c0_18], %28 {strides = array<i32>} : memref<1x8x1xf32, #tpu.memory_space<vmem>>, vector<1x8x1xf32>,
    return
  }
  func.func @transform_0(%arg0: i32) -> (i32, i32, i32) {
    %c0_i32 = arith.constant 0 : i32
    %c0_i32_0 = arith.constant 0 : i32
    %c0_i32_1 = arith.constant 0 : i32
    return %arg0, %c0_i32, %c0_i32_0 : i32, i32, i32
  }
  func.func @transform_1(%arg0: i32) -> (i32, i32, i32) {
    %c0_i32 = arith.constant 0 : i32
    %c0_i32_0 = arith.constant 0 : i32
    %c0_i32_1 = arith.constant 0 : i32
    return %arg0, %c0_i32, %c0_i32_0 : i32, i32, i32
  }
  func.func @transform_2(%arg0: i32) -> (i32, i32, i32) {
    %c0_i32 = arith.constant 0 : i32
    %c0_i32_0 = arith.constant 0 : i32
    %c0_i32_1 = arith.constant 0 : i32
    return %arg0, %c0_i32, %c0_i32_0 : i32, i32, i32
  }
  func.func @transform_3(%arg0: i32) -> (i32, i32, i32) {
    %c0_i32 = arith.constant 0 : i32
    %c0_i32_0 = arith.constant 0 : i32
    %c0_i32_1 = arith.constant 0 : i32
    return %arg0, %c0_i32, %c0_i32_0 : i32, i32, i32
  }
  func.func @transform_4(%arg0: i32) -> (i32, i32, i32) {
    %c0_i32 = arith.constant 0 : i32
    %c0_i32_0 = arith.constant 0 : i32
    %c0_i32_1 = arith.constant 0 : i32
    return %arg0, %c0_i32, %c0_i32_0 : i32, i32, i32
  }
}

module attributes {stable_mosaic.version = 11 : i64} {
  func.func @_slqa_gate_kernel(%arg0: i32, %arg1: memref<1x8x64xf32, #tpu.memory_space<vmem>>, %arg2: memref<1x8x64xf32, #tpu.memory_space<vmem>>, %arg3: memref<256x128xf32, #tpu.memory_space<vmem>>, %arg4: memref<1x8x64xf32, #tpu.memory_space<vmem>>) attributes {dimension_semantics = [#tpu.dimension_semantics<parallel>], iteration_bounds = array<i64: 2>, scalar_prefetch = 0 : i64, scratch_operands = 0 : i64, tpu.core_type = #tpu.core_type<tc>, window_params = [{transform_indices = @transform_0, window_bounds = array<i64: 1, 8, 64>}, {transform_indices = @transform_1, window_bounds = array<i64: 1, 8, 64>}, {pipeline_mode = #tpu.pipeline_mode<synchronous>, transform_indices = @transform_2, window_bounds = array<i64: 256, 128>}, {transform_indices = @transform_3, window_bounds = array<i64: 1, 8, 64>}]} {
    %c0 = arith.constant 0 : index
    %c0_0 = arith.constant 0 : index
    %c0_1 = arith.constant 0 : index
    %0 = vector.load %arg1[%c0, %c0_0, %c0_1] : memref<1x8x64xf32, #tpu.memory_space<vmem>>, vector<1x8x64xf32>
    %1 = vector.shape_cast %0 : vector<1x8x64xf32> to vector<8x64xf32>
    %c0_2 = arith.constant 0 : index
    %c0_3 = arith.constant 0 : index
    %c0_4 = arith.constant 0 : index
    %2 = vector.load %arg2[%c0_2, %c0_3, %c0_4] : memref<1x8x64xf32, #tpu.memory_space<vmem>>, vector<1x8x64xf32>
    %3 = vector.shape_cast %2 : vector<1x8x64xf32> to vector<8x64xf32>
    %4 = arith.subf %1, %3 : vector<8x64xf32>
    %5 = arith.mulf %1, %3 : vector<8x64xf32>
    %6 = tpu.concatenate %1, %3, %4, %5 in 1 : vector<8x64xf32>, vector<8x64xf32>, vector<8x64xf32>, vector<8x64xf32> -> vector<8x256xf32>
    %c0_5 = arith.constant 0 : index
    %c0_6 = arith.constant 0 : index
    %7 = vector.load %arg3[%c0_5, %c0_6] : memref<256x128xf32, #tpu.memory_space<vmem>>, vector<256x128xf32>
    %cst = arith.constant dense<0.000000e+00> : vector<8x128xf32>
    %8 = tpu.matmul %6, %7, %cst {dimension_numbers = #tpu.dot_dimension_numbers<[1], [0], [0], [1], [0, 0, 1, 1], [], []>} : vector<8x256xf32>, vector<256x128xf32>, vector<8x128xf32> -> vector<8x128xf32>
    %9 = vector.extract_strided_slice %8 {offsets = [0, 0], sizes = [8, 64], strides = [1, 1]} : vector<8x128xf32> to vector<8x64xf32>
    %10 = math.tanh %9 : vector<8x64xf32>
    %11 = vector.extract_strided_slice %8 {offsets = [0, 64], sizes = [8, 64], strides = [1, 1]} : vector<8x128xf32> to vector<8x64xf32>
    %12 = arith.negf %11 : vector<8x64xf32>
    %13 = math.exp %12 : vector<8x64xf32>
    %cst_7 = arith.constant 1.000000e+00 : f32
    %14 = vector.broadcast %cst_7 : f32 to vector<8x64xf32>
    %15 = arith.addf %14, %13 : vector<8x64xf32>
    %16 = arith.divf %14, %15 : vector<8x64xf32>
    %17 = arith.mulf %10, %16 : vector<8x64xf32>
    %cst_8 = arith.constant 1.000000e+00 : f32
    %18 = vector.broadcast %cst_8 : f32 to vector<8x64xf32>
    %19 = arith.subf %18, %16 : vector<8x64xf32>
    %20 = arith.mulf %19, %3 : vector<8x64xf32>
    %21 = arith.addf %17, %20 : vector<8x64xf32>
    %c0_9 = arith.constant 0 : index
    %c0_10 = arith.constant 0 : index
    %c0_11 = arith.constant 0 : index
    %22 = vector.load %arg4[%c0_9, %c0_10, %c0_11] : memref<1x8x64xf32, #tpu.memory_space<vmem>>, vector<1x8x64xf32>
    %23 = vector.shape_cast %22 : vector<1x8x64xf32> to vector<8x64xf32>
    %24 = vector.shape_cast %21 : vector<8x64xf32> to vector<1x8x64xf32>
    tpu.vector_store %arg4[%c0_9, %c0_10, %c0_11], %24 {strides = array<i32>} : memref<1x8x64xf32, #tpu.memory_space<vmem>>, vector<1x8x64xf32>,
    return
  }
  func.func @transform_0(%arg0: i32) -> (i32, i32, i32) {
    %c0_i32 = arith.constant 0 : i32
    %c0_i32_0 = arith.constant 0 : i32
    %c0_i32_1 = arith.constant 0 : i32
    return %arg0, %c0_i32, %c0_i32_0 : i32, i32, i32
  }
  func.func @transform_1(%arg0: i32) -> (i32, i32, i32) {
    %c0_i32 = arith.constant 0 : i32
    %c0_i32_0 = arith.constant 0 : i32
    %c0_i32_1 = arith.constant 0 : i32
    return %arg0, %c0_i32, %c0_i32_0 : i32, i32, i32
  }
  func.func @transform_2(%arg0: i32) -> (i32, i32) {
    %c0_i32 = arith.constant 0 : i32
    %c0_i32_0 = arith.constant 0 : i32
    %c0_i32_1 = arith.constant 0 : i32
    return %c0_i32, %c0_i32_0 : i32, i32
  }
  func.func @transform_3(%arg0: i32) -> (i32, i32, i32) {
    %c0_i32 = arith.constant 0 : i32
    %c0_i32_0 = arith.constant 0 : i32
    %c0_i32_1 = arith.constant 0 : i32
    return %arg0, %c0_i32, %c0_i32_0 : i32, i32, i32
  }
}

module attributes {stable_mosaic.version = 11 : i64} {
  func.func @_proj_pool_kernel(%arg0: i32, %arg1: memref<1x8x88xf32, #tpu.memory_space<vmem>>, %arg2: memref<88x32xf32, #tpu.memory_space<vmem>>, %arg3: memref<1x32xf32, #tpu.memory_space<vmem>>, %arg4: memref<1x1x88xf32, #tpu.memory_space<vmem>>) attributes {dimension_semantics = [#tpu.dimension_semantics<parallel>], iteration_bounds = array<i64: 2>, scalar_prefetch = 0 : i64, scratch_operands = 0 : i64, tpu.core_type = #tpu.core_type<tc>, window_params = [{transform_indices = @transform_0, window_bounds = array<i64: 1, 8, 88>}, {pipeline_mode = #tpu.pipeline_mode<synchronous>, transform_indices = @transform_1, window_bounds = array<i64: 88, 32>}, {pipeline_mode = #tpu.pipeline_mode<synchronous>, transform_indices = @transform_2, window_bounds = array<i64: 1, 32>}, {transform_indices = @transform_3, window_bounds = array<i64: 1, 1, 88>}]} {
    %c0 = arith.constant 0 : index
    %c0_0 = arith.constant 0 : index
    %c0_1 = arith.constant 0 : index
    %0 = vector.load %arg1[%c0, %c0_0, %c0_1] : memref<1x8x88xf32, #tpu.memory_space<vmem>>, vector<1x8x88xf32>
    %1 = vector.shape_cast %0 : vector<1x8x88xf32> to vector<8x88xf32>
    %c0_2 = arith.constant 0 : index
    %c0_3 = arith.constant 0 : index
    %2 = vector.load %arg2[%c0_2, %c0_3] : memref<88x32xf32, #tpu.memory_space<vmem>>, vector<88x32xf32>
    %cst = arith.constant dense<0.000000e+00> : vector<8x32xf32>
    %3 = tpu.matmul %1, %2, %cst {dimension_numbers = #tpu.dot_dimension_numbers<[1], [0], [0], [1], [0, 0, 1, 1], [], []>} : vector<8x88xf32>, vector<88x32xf32>, vector<8x32xf32> -> vector<8x32xf32>
    %4 = math.tanh %3 : vector<8x32xf32>
    %c0_4 = arith.constant 0 : index
    %c0_5 = arith.constant 0 : index
    %5 = vector.load %arg3[%c0_4, %c0_5] : memref<1x32xf32, #tpu.memory_space<vmem>>, vector<1x32xf32>
    %6 = vector.broadcast %5 : vector<1x32xf32> to vector<8x32xf32>
    %7 = arith.mulf %4, %6 : vector<8x32xf32>
    %cst_6 = arith.constant dense<0.000000e+00> : vector<8xf32>
    %8 = vector.multi_reduction <add>, %7, %cst_6 [1] : vector<8x32xf32> to vector<8xf32>
    %9 = vector.shape_cast %8 : vector<8xf32> to vector<8x1xf32>
    %cst_7 = arith.constant dense<0xFF800000> : vector<1xf32>
    %10 = vector.multi_reduction <maximumf>, %9, %cst_7 [0] : vector<8x1xf32> to vector<1xf32>
    %11 = vector.shape_cast %10 : vector<1xf32> to vector<1x1xf32>
    %12 = vector.broadcast %11 : vector<1x1xf32> to vector<8x1xf32>
    %13 = arith.subf %9, %12 : vector<8x1xf32>
    %14 = math.exp %13 : vector<8x1xf32>
    %cst_8 = arith.constant dense<0.000000e+00> : vector<1xf32>
    %15 = vector.multi_reduction <add>, %14, %cst_8 [0] : vector<8x1xf32> to vector<1xf32>
    %16 = vector.shape_cast %15 : vector<1xf32> to vector<1x1xf32>
    %17 = tpu.reciprocal %16 {approx = true} : vector<1x1xf32> -> vector<1x1xf32>
    %18 = vector.broadcast %17 : vector<1x1xf32> to vector<8x1xf32>
    %19 = arith.mulf %14, %18 : vector<8x1xf32>
    %20 = vector.broadcast %19 : vector<8x1xf32> to vector<8x88xf32>
    %21 = arith.mulf %20, %1 : vector<8x88xf32>
    %cst_9 = arith.constant dense<0.000000e+00> : vector<88xf32>
    %22 = vector.multi_reduction <add>, %21, %cst_9 [0] : vector<8x88xf32> to vector<88xf32>
    %23 = vector.shape_cast %22 : vector<88xf32> to vector<1x88xf32>
    %c0_10 = arith.constant 0 : index
    %c0_11 = arith.constant 0 : index
    %c0_12 = arith.constant 0 : index
    %24 = vector.load %arg4[%c0_10, %c0_11, %c0_12] : memref<1x1x88xf32, #tpu.memory_space<vmem>>, vector<1x1x88xf32>
    %25 = vector.shape_cast %24 : vector<1x1x88xf32> to vector<1x88xf32>
    %26 = vector.shape_cast %23 : vector<1x88xf32> to vector<1x1x88xf32>
    tpu.vector_store %arg4[%c0_10, %c0_11, %c0_12], %26 {strides = array<i32>} : memref<1x1x88xf32, #tpu.memory_space<vmem>>, vector<1x1x88xf32>,
    return
  }
  func.func @transform_0(%arg0: i32) -> (i32, i32, i32) {
    %c0_i32 = arith.constant 0 : i32
    %c0_i32_0 = arith.constant 0 : i32
    %c0_i32_1 = arith.constant 0 : i32
    return %arg0, %c0_i32, %c0_i32_0 : i32, i32, i32
  }
  func.func @transform_1(%arg0: i32) -> (i32, i32) {
    %c0_i32 = arith.constant 0 : i32
    %c0_i32_0 = arith.constant 0 : i32
    %c0_i32_1 = arith.constant 0 : i32
    return %c0_i32, %c0_i32_0 : i32, i32
  }
  func.func @transform_2(%arg0: i32) -> (i32, i32) {
    %c0_i32 = arith.constant 0 : i32
    %c0_i32_0 = arith.constant 0 : i32
    %c0_i32_1 = arith.constant 0 : i32
    return %c0_i32, %c0_i32_0 : i32, i32
  }
  func.func @transform_3(%arg0: i32) -> (i32, i32, i32) {
    %c0_i32 = arith.constant 0 : i32
    %c0_i32_0 = arith.constant 0 : i32
    %c0_i32_1 = arith.constant 0 : i32
    return %arg0, %c0_i32, %c0_i32_0 : i32, i32, i32
  }
}

module attributes {stable_mosaic.version = 11 : i64} {
  func.func @kernel(%arg0: i32, %arg1: memref<1x8x64xf32, #tpu.memory_space<vmem>>, %arg2: memref<1x10x64xf32, #tpu.memory_space<vmem>>, %arg3: memref<64x32xf32, #tpu.memory_space<vmem>>, %arg4: memref<64x32xf32, #tpu.memory_space<vmem>>, %arg5: memref<1x32xf32, #tpu.memory_space<vmem>>, %arg6: memref<1x8x64xf32, #tpu.memory_space<vmem>>) attributes {dimension_semantics = [#tpu.dimension_semantics<parallel>], iteration_bounds = array<i64: 2>, scalar_prefetch = 0 : i64, scratch_operands = 0 : i64, tpu.core_type = #tpu.core_type<tc>, window_params = [{transform_indices = @transform_0, window_bounds = array<i64: 1, 8, 64>}, {transform_indices = @transform_1, window_bounds = array<i64: 1, 10, 64>}, {pipeline_mode = #tpu.pipeline_mode<synchronous>, transform_indices = @transform_2, window_bounds = array<i64: 64, 32>}, {pipeline_mode = #tpu.pipeline_mode<synchronous>, transform_indices = @transform_3, window_bounds = array<i64: 64, 32>}, {pipeline_mode = #tpu.pipeline_mode<synchronous>, transform_indices = @transform_4, window_bounds = array<i64: 1, 32>}, {transform_indices = @transform_5, window_bounds = array<i64: 1, 8, 64>}]} {
    %c0 = arith.constant 0 : index
    %c0_0 = arith.constant 0 : index
    %c0_1 = arith.constant 0 : index
    %0 = vector.load %arg1[%c0, %c0_0, %c0_1] : memref<1x8x64xf32, #tpu.memory_space<vmem>>, vector<1x8x64xf32>
    %1 = vector.shape_cast %0 : vector<1x8x64xf32> to vector<8x64xf32>
    %c0_2 = arith.constant 0 : index
    %c0_3 = arith.constant 0 : index
    %c0_4 = arith.constant 0 : index
    %2 = vector.load %arg2[%c0_2, %c0_3, %c0_4] : memref<1x10x64xf32, #tpu.memory_space<vmem>>, vector<1x10x64xf32>
    %3 = vector.shape_cast %2 : vector<1x10x64xf32> to vector<10x64xf32>
    %c0_5 = arith.constant 0 : index
    %c0_6 = arith.constant 0 : index
    %4 = vector.load %arg3[%c0_5, %c0_6] : memref<64x32xf32, #tpu.memory_space<vmem>>, vector<64x32xf32>
    %cst = arith.constant dense<0.000000e+00> : vector<10x32xf32>
    %5 = tpu.matmul %3, %4, %cst {dimension_numbers = #tpu.dot_dimension_numbers<[1], [0], [0], [1], [0, 0, 1, 1], [], []>} : vector<10x64xf32>, vector<64x32xf32>, vector<10x32xf32> -> vector<10x32xf32>
    %c0_7 = arith.constant 0 : index
    %c0_8 = arith.constant 0 : index
    %6 = vector.load %arg4[%c0_7, %c0_8] : memref<64x32xf32, #tpu.memory_space<vmem>>, vector<64x32xf32>
    %cst_9 = arith.constant dense<0.000000e+00> : vector<8x32xf32>
    %7 = tpu.matmul %1, %6, %cst_9 {dimension_numbers = #tpu.dot_dimension_numbers<[1], [0], [0], [1], [0, 0, 1, 1], [], []>} : vector<8x64xf32>, vector<64x32xf32>, vector<8x32xf32> -> vector<8x32xf32>
    %8 = vector.shape_cast %5 : vector<10x32xf32> to vector<1x10x32xf32>
    %9 = vector.shape_cast %7 : vector<8x32xf32> to vector<8x1x32xf32>
    %cst_10 = arith.constant 1.000000e+00 : f32
    %10 = vector.broadcast %cst_10 : f32 to vector<8x1x32xf32>
    %11 = arith.mulf %10, %9 : vector<8x1x32xf32>
    %12 = vector.broadcast %8 : vector<1x10x32xf32> to vector<8x10x32xf32>
    %13 = vector.broadcast %11 : vector<8x1x32xf32> to vector<8x10x32xf32>
    %14 = arith.addf %12, %13 : vector<8x10x32xf32>
    %15 = math.tanh %14 : vector<8x10x32xf32>
    %c0_11 = arith.constant 0 : index
    %c0_12 = arith.constant 0 : index
    %16 = vector.load %arg5[%c0_11, %c0_12] : memref<1x32xf32, #tpu.memory_space<vmem>>, vector<1x32xf32>
    %17 = vector.shape_cast %16 : vector<1x32xf32> to vector<1x1x32xf32>
    %18 = vector.broadcast %17 : vector<1x1x32xf32> to vector<8x10x32xf32>
    %19 = arith.mulf %15, %18 : vector<8x10x32xf32>
    %cst_13 = arith.constant dense<0.000000e+00> : vector<8x10xf32>
    %20 = vector.multi_reduction <add>, %19, %cst_13 [2] : vector<8x10x32xf32> to vector<8x10xf32>
    %cst_14 = arith.constant dense<0xFF800000> : vector<8xf32>
    %21 = vector.multi_reduction <maximumf>, %20, %cst_14 [1] : vector<8x10xf32> to vector<8xf32>
    %22 = vector.shape_cast %21 : vector<8xf32> to vector<8x1xf32>
    %23 = vector.broadcast %22 : vector<8x1xf32> to vector<8x10xf32>
    %24 = arith.subf %20, %23 : vector<8x10xf32>
    %25 = math.exp %24 : vector<8x10xf32>
    %cst_15 = arith.constant dense<0.000000e+00> : vector<8xf32>
    %26 = vector.multi_reduction <add>, %25, %cst_15 [1] : vector<8x10xf32> to vector<8xf32>
    %27 = vector.shape_cast %26 : vector<8xf32> to vector<8x1xf32>
    %28 = tpu.reciprocal %27 {approx = true} : vector<8x1xf32> -> vector<8x1xf32>
    %29 = vector.broadcast %28 : vector<8x1xf32> to vector<8x10xf32>
    %30 = arith.mulf %25, %29 : vector<8x10xf32>
    %cst_16 = arith.constant dense<0.000000e+00> : vector<8x64xf32>
    %31 = tpu.matmul %30, %3, %cst_16 {dimension_numbers = #tpu.dot_dimension_numbers<[1], [0], [0], [1], [0, 0, 1, 1], [], []>} : vector<8x10xf32>, vector<10x64xf32>, vector<8x64xf32> -> vector<8x64xf32>
    %c0_17 = arith.constant 0 : index
    %c0_18 = arith.constant 0 : index
    %c0_19 = arith.constant 0 : index
    %32 = vector.load %arg6[%c0_17, %c0_18, %c0_19] : memref<1x8x64xf32, #tpu.memory_space<vmem>>, vector<1x8x64xf32>
    %33 = vector.shape_cast %32 : vector<1x8x64xf32> to vector<8x64xf32>
    %34 = vector.shape_cast %31 : vector<8x64xf32> to vector<1x8x64xf32>
    tpu.vector_store %arg6[%c0_17, %c0_18, %c0_19], %34 {strides = array<i32>} : memref<1x8x64xf32, #tpu.memory_space<vmem>>, vector<1x8x64xf32>,
    return
  }
  func.func @transform_0(%arg0: i32) -> (i32, i32, i32) {
    %c0_i32 = arith.constant 0 : i32
    %c0_i32_0 = arith.constant 0 : i32
    %c0_i32_1 = arith.constant 0 : i32
    return %arg0, %c0_i32, %c0_i32_0 : i32, i32, i32
  }
  func.func @transform_1(%arg0: i32) -> (i32, i32, i32) {
    %c0_i32 = arith.constant 0 : i32
    %c0_i32_0 = arith.constant 0 : i32
    %c0_i32_1 = arith.constant 0 : i32
    return %arg0, %c0_i32, %c0_i32_0 : i32, i32, i32
  }
  func.func @transform_2(%arg0: i32) -> (i32, i32) {
    %c0_i32 = arith.constant 0 : i32
    %c0_i32_0 = arith.constant 0 : i32
    %c0_i32_1 = arith.constant 0 : i32
    return %c0_i32, %c0_i32_0 : i32, i32
  }
  func.func @transform_3(%arg0: i32) -> (i32, i32) {
    %c0_i32 = arith.constant 0 : i32
    %c0_i32_0 = arith.constant 0 : i32
    %c0_i32_1 = arith.constant 0 : i32
    return %c0_i32, %c0_i32_0 : i32, i32
  }
  func.func @transform_4(%arg0: i32) -> (i32, i32) {
    %c0_i32 = arith.constant 0 : i32
    %c0_i32_0 = arith.constant 0 : i32
    %c0_i32_1 = arith.constant 0 : i32
    return %c0_i32, %c0_i32_0 : i32, i32
  }
  func.func @transform_5(%arg0: i32) -> (i32, i32, i32) {
    %c0_i32 = arith.constant 0 : i32
    %c0_i32_0 = arith.constant 0 : i32
    %c0_i32_1 = arith.constant 0 : i32
    return %arg0, %c0_i32, %c0_i32_0 : i32, i32, i32
  }
}

module attributes {stable_mosaic.version = 11 : i64} {
  func.func @_bilinear_attn_kernel(%arg0: i32, %arg1: memref<1x8x64xf32, #tpu.memory_space<vmem>>, %arg2: memref<1x10x64xf32, #tpu.memory_space<vmem>>, %arg3: memref<64x64xf32, #tpu.memory_space<vmem>>, %arg4: memref<1x8x64xf32, #tpu.memory_space<vmem>>) attributes {dimension_semantics = [#tpu.dimension_semantics<parallel>], iteration_bounds = array<i64: 2>, scalar_prefetch = 0 : i64, scratch_operands = 0 : i64, tpu.core_type = #tpu.core_type<tc>, window_params = [{transform_indices = @transform_0, window_bounds = array<i64: 1, 8, 64>}, {transform_indices = @transform_1, window_bounds = array<i64: 1, 10, 64>}, {pipeline_mode = #tpu.pipeline_mode<synchronous>, transform_indices = @transform_2, window_bounds = array<i64: 64, 64>}, {transform_indices = @transform_3, window_bounds = array<i64: 1, 8, 64>}]} {
    %c0 = arith.constant 0 : index
    %c0_0 = arith.constant 0 : index
    %c0_1 = arith.constant 0 : index
    %0 = vector.load %arg1[%c0, %c0_0, %c0_1] : memref<1x8x64xf32, #tpu.memory_space<vmem>>, vector<1x8x64xf32>
    %1 = vector.shape_cast %0 : vector<1x8x64xf32> to vector<8x64xf32>
    %c0_2 = arith.constant 0 : index
    %c0_3 = arith.constant 0 : index
    %c0_4 = arith.constant 0 : index
    %2 = vector.load %arg2[%c0_2, %c0_3, %c0_4] : memref<1x10x64xf32, #tpu.memory_space<vmem>>, vector<1x10x64xf32>
    %3 = vector.shape_cast %2 : vector<1x10x64xf32> to vector<10x64xf32>
    %c0_5 = arith.constant 0 : index
    %c0_6 = arith.constant 0 : index
    %4 = vector.load %arg3[%c0_5, %c0_6] : memref<64x64xf32, #tpu.memory_space<vmem>>, vector<64x64xf32>
    %cst = arith.constant dense<0.000000e+00> : vector<10x64xf32>
    %5 = tpu.matmul %3, %4, %cst {dimension_numbers = #tpu.dot_dimension_numbers<[1], [0], [0], [1], [0, 0, 1, 1], [], []>} : vector<10x64xf32>, vector<64x64xf32>, vector<10x64xf32> -> vector<10x64xf32>
    %cst_7 = arith.constant dense<0.000000e+00> : vector<8x10xf32>
    %6 = tpu.matmul %1, %5, %cst_7 {dimension_numbers = #tpu.dot_dimension_numbers<[1], [1], [0], [0], [0, 0, 1, 0], [], []>} : vector<8x64xf32>, vector<10x64xf32>, vector<8x10xf32> -> vector<8x10xf32>
    %cst_8 = arith.constant dense<0xFF800000> : vector<8xf32>
    %7 = vector.multi_reduction <maximumf>, %6, %cst_8 [1] : vector<8x10xf32> to vector<8xf32>
    %8 = vector.shape_cast %7 : vector<8xf32> to vector<8x1xf32>
    %9 = vector.broadcast %8 : vector<8x1xf32> to vector<8x10xf32>
    %10 = arith.subf %6, %9 : vector<8x10xf32>
    %11 = math.exp %10 : vector<8x10xf32>
    %cst_9 = arith.constant dense<0.000000e+00> : vector<8xf32>
    %12 = vector.multi_reduction <add>, %11, %cst_9 [1] : vector<8x10xf32> to vector<8xf32>
    %13 = vector.shape_cast %12 : vector<8xf32> to vector<8x1xf32>
    %14 = tpu.reciprocal %13 {approx = true} : vector<8x1xf32> -> vector<8x1xf32>
    %15 = vector.broadcast %14 : vector<8x1xf32> to vector<8x10xf32>
    %16 = arith.mulf %11, %15 : vector<8x10xf32>
    %cst_10 = arith.constant dense<0.000000e+00> : vector<8x64xf32>
    %17 = tpu.matmul %16, %3, %cst_10 {dimension_numbers = #tpu.dot_dimension_numbers<[1], [0], [0], [1], [0, 0, 1, 1], [], []>} : vector<8x10xf32>, vector<10x64xf32>, vector<8x64xf32> -> vector<8x64xf32>
    %c0_11 = arith.constant 0 : index
    %c0_12 = arith.constant 0 : index
    %c0_13 = arith.constant 0 : index
    %18 = vector.load %arg4[%c0_11, %c0_12, %c0_13] : memref<1x8x64xf32, #tpu.memory_space<vmem>>, vector<1x8x64xf32>
    %19 = vector.shape_cast %18 : vector<1x8x64xf32> to vector<8x64xf32>
    %20 = vector.shape_cast %17 : vector<8x64xf32> to vector<1x8x64xf32>
    tpu.vector_store %arg4[%c0_11, %c0_12, %c0_13], %20 {strides = array<i32>} : memref<1x8x64xf32, #tpu.memory_space<vmem>>, vector<1x8x64xf32>,
    return
  }
  func.func @transform_0(%arg0: i32) -> (i32, i32, i32) {
    %c0_i32 = arith.constant 0 : i32
    %c0_i32_0 = arith.constant 0 : i32
    %c0_i32_1 = arith.constant 0 : i32
    return %arg0, %c0_i32, %c0_i32_0 : i32, i32, i32
  }
  func.func @transform_1(%arg0: i32) -> (i32, i32, i32) {
    %c0_i32 = arith.constant 0 : i32
    %c0_i32_0 = arith.constant 0 : i32
    %c0_i32_1 = arith.constant 0 : i32
    return %arg0, %c0_i32, %c0_i32_0 : i32, i32, i32
  }
  func.func @transform_2(%arg0: i32) -> (i32, i32) {
    %c0_i32 = arith.constant 0 : i32
    %c0_i32_0 = arith.constant 0 : i32
    %c0_i32_1 = arith.constant 0 : i32
    return %c0_i32, %c0_i32_0 : i32, i32
  }
  func.func @transform_3(%arg0: i32) -> (i32, i32, i32) {
    %c0_i32 = arith.constant 0 : i32
    %c0_i32_0 = arith.constant 0 : i32
    %c0_i32_1 = arith.constant 0 : i32
    return %arg0, %c0_i32, %c0_i32_0 : i32, i32, i32
  }
}

module attributes {stable_mosaic.version = 11 : i64} {
  func.func @_mul_attn_kernel(%arg0: i32, %arg1: memref<1x8x64xf32, #tpu.memory_space<vmem>>, %arg2: memref<1x10x64xf32, #tpu.memory_space<vmem>>, %arg3: memref<64x32xf32, #tpu.memory_space<vmem>>, %arg4: memref<1x32xf32, #tpu.memory_space<vmem>>, %arg5: memref<1x8x64xf32, #tpu.memory_space<vmem>>) attributes {dimension_semantics = [#tpu.dimension_semantics<parallel>], iteration_bounds = array<i64: 2>, scalar_prefetch = 0 : i64, scratch_operands = 0 : i64, tpu.core_type = #tpu.core_type<tc>, window_params = [{transform_indices = @transform_0, window_bounds = array<i64: 1, 8, 64>}, {transform_indices = @transform_1, window_bounds = array<i64: 1, 10, 64>}, {pipeline_mode = #tpu.pipeline_mode<synchronous>, transform_indices = @transform_2, window_bounds = array<i64: 64, 32>}, {pipeline_mode = #tpu.pipeline_mode<synchronous>, transform_indices = @transform_3, window_bounds = array<i64: 1, 32>}, {transform_indices = @transform_4, window_bounds = array<i64: 1, 8, 64>}]} {
    %c0 = arith.constant 0 : index
    %c0_0 = arith.constant 0 : index
    %c0_1 = arith.constant 0 : index
    %0 = vector.load %arg1[%c0, %c0_0, %c0_1] : memref<1x8x64xf32, #tpu.memory_space<vmem>>, vector<1x8x64xf32>
    %1 = vector.shape_cast %0 : vector<1x8x64xf32> to vector<8x64xf32>
    %c0_2 = arith.constant 0 : index
    %c0_3 = arith.constant 0 : index
    %c0_4 = arith.constant 0 : index
    %2 = vector.load %arg2[%c0_2, %c0_3, %c0_4] : memref<1x10x64xf32, #tpu.memory_space<vmem>>, vector<1x10x64xf32>
    %3 = vector.shape_cast %2 : vector<1x10x64xf32> to vector<10x64xf32>
    %4 = vector.shape_cast %3 : vector<10x64xf32> to vector<1x10x64xf32>
    %5 = vector.shape_cast %1 : vector<8x64xf32> to vector<8x1x64xf32>
    %6 = vector.broadcast %4 : vector<1x10x64xf32> to vector<8x10x64xf32>
    %7 = vector.broadcast %5 : vector<8x1x64xf32> to vector<8x10x64xf32>
    %8 = arith.mulf %6, %7 : vector<8x10x64xf32>
    %9 = vector.shape_cast %8 : vector<8x10x64xf32> to vector<80x64xf32>
    %c0_5 = arith.constant 0 : index
    %c0_6 = arith.constant 0 : index
    %10 = vector.load %arg3[%c0_5, %c0_6] : memref<64x32xf32, #tpu.memory_space<vmem>>, vector<64x32xf32>
    %cst = arith.constant dense<0.000000e+00> : vector<80x32xf32>
    %11 = tpu.matmul %9, %10, %cst {dimension_numbers = #tpu.dot_dimension_numbers<[1], [0], [0], [1], [0, 0, 1, 1], [], []>} : vector<80x64xf32>, vector<64x32xf32>, vector<80x32xf32> -> vector<80x32xf32>
    %12 = math.tanh %11 : vector<80x32xf32>
    %13 = vector.shape_cast %12 : vector<80x32xf32> to vector<8x10x32xf32>
    %c0_7 = arith.constant 0 : index
    %c0_8 = arith.constant 0 : index
    %14 = vector.load %arg4[%c0_7, %c0_8] : memref<1x32xf32, #tpu.memory_space<vmem>>, vector<1x32xf32>
    %15 = vector.shape_cast %14 : vector<1x32xf32> to vector<1x1x32xf32>
    %16 = vector.broadcast %15 : vector<1x1x32xf32> to vector<8x10x32xf32>
    %17 = arith.mulf %13, %16 : vector<8x10x32xf32>
    %cst_9 = arith.constant dense<0.000000e+00> : vector<8x10xf32>
    %18 = vector.multi_reduction <add>, %17, %cst_9 [2] : vector<8x10x32xf32> to vector<8x10xf32>
    %cst_10 = arith.constant dense<0xFF800000> : vector<8xf32>
    %19 = vector.multi_reduction <maximumf>, %18, %cst_10 [1] : vector<8x10xf32> to vector<8xf32>
    %20 = vector.shape_cast %19 : vector<8xf32> to vector<8x1xf32>
    %21 = vector.broadcast %20 : vector<8x1xf32> to vector<8x10xf32>
    %22 = arith.subf %18, %21 : vector<8x10xf32>
    %23 = math.exp %22 : vector<8x10xf32>
    %cst_11 = arith.constant dense<0.000000e+00> : vector<8xf32>
    %24 = vector.multi_reduction <add>, %23, %cst_11 [1] : vector<8x10xf32> to vector<8xf32>
    %25 = vector.shape_cast %24 : vector<8xf32> to vector<8x1xf32>
    %26 = tpu.reciprocal %25 {approx = true} : vector<8x1xf32> -> vector<8x1xf32>
    %27 = vector.broadcast %26 : vector<8x1xf32> to vector<8x10xf32>
    %28 = arith.mulf %23, %27 : vector<8x10xf32>
    %cst_12 = arith.constant dense<0.000000e+00> : vector<8x64xf32>
    %29 = tpu.matmul %28, %3, %cst_12 {dimension_numbers = #tpu.dot_dimension_numbers<[1], [0], [0], [1], [0, 0, 1, 1], [], []>} : vector<8x10xf32>, vector<10x64xf32>, vector<8x64xf32> -> vector<8x64xf32>
    %c0_13 = arith.constant 0 : index
    %c0_14 = arith.constant 0 : index
    %c0_15 = arith.constant 0 : index
    %30 = vector.load %arg5[%c0_13, %c0_14, %c0_15] : memref<1x8x64xf32, #tpu.memory_space<vmem>>, vector<1x8x64xf32>
    %31 = vector.shape_cast %30 : vector<1x8x64xf32> to vector<8x64xf32>
    %32 = vector.shape_cast %29 : vector<8x64xf32> to vector<1x8x64xf32>
    tpu.vector_store %arg5[%c0_13, %c0_14, %c0_15], %32 {strides = array<i32>} : memref<1x8x64xf32, #tpu.memory_space<vmem>>, vector<1x8x64xf32>,
    return
  }
  func.func @transform_0(%arg0: i32) -> (i32, i32, i32) {
    %c0_i32 = arith.constant 0 : i32
    %c0_i32_0 = arith.constant 0 : i32
    %c0_i32_1 = arith.constant 0 : i32
    return %arg0, %c0_i32, %c0_i32_0 : i32, i32, i32
  }
  func.func @transform_1(%arg0: i32) -> (i32, i32, i32) {
    %c0_i32 = arith.constant 0 : i32
    %c0_i32_0 = arith.constant 0 : i32
    %c0_i32_1 = arith.constant 0 : i32
    return %arg0, %c0_i32, %c0_i32_0 : i32, i32, i32
  }
  func.func @transform_2(%arg0: i32) -> (i32, i32) {
    %c0_i32 = arith.constant 0 : i32
    %c0_i32_0 = arith.constant 0 : i32
    %c0_i32_1 = arith.constant 0 : i32
    return %c0_i32, %c0_i32_0 : i32, i32
  }
  func.func @transform_3(%arg0: i32) -> (i32, i32) {
    %c0_i32 = arith.constant 0 : i32
    %c0_i32_0 = arith.constant 0 : i32
    %c0_i32_1 = arith.constant 0 : i32
    return %c0_i32, %c0_i32_0 : i32, i32
  }
  func.func @transform_4(%arg0: i32) -> (i32, i32, i32) {
    %c0_i32 = arith.constant 0 : i32
    %c0_i32_0 = arith.constant 0 : i32
    %c0_i32_1 = arith.constant 0 : i32
    return %arg0, %c0_i32, %c0_i32_0 : i32, i32, i32
  }
}

module attributes {stable_mosaic.version = 11 : i64} {
  func.func @kernel(%arg0: i32, %arg1: memref<1x8x64xf32, #tpu.memory_space<vmem>>, %arg2: memref<1x10x64xf32, #tpu.memory_space<vmem>>, %arg3: memref<64x32xf32, #tpu.memory_space<vmem>>, %arg4: memref<64x32xf32, #tpu.memory_space<vmem>>, %arg5: memref<1x32xf32, #tpu.memory_space<vmem>>, %arg6: memref<1x8x64xf32, #tpu.memory_space<vmem>>) attributes {dimension_semantics = [#tpu.dimension_semantics<parallel>], iteration_bounds = array<i64: 2>, scalar_prefetch = 0 : i64, scratch_operands = 0 : i64, tpu.core_type = #tpu.core_type<tc>, window_params = [{transform_indices = @transform_0, window_bounds = array<i64: 1, 8, 64>}, {transform_indices = @transform_1, window_bounds = array<i64: 1, 10, 64>}, {pipeline_mode = #tpu.pipeline_mode<synchronous>, transform_indices = @transform_2, window_bounds = array<i64: 64, 32>}, {pipeline_mode = #tpu.pipeline_mode<synchronous>, transform_indices = @transform_3, window_bounds = array<i64: 64, 32>}, {pipeline_mode = #tpu.pipeline_mode<synchronous>, transform_indices = @transform_4, window_bounds = array<i64: 1, 32>}, {transform_indices = @transform_5, window_bounds = array<i64: 1, 8, 64>}]} {
    %c0 = arith.constant 0 : index
    %c0_0 = arith.constant 0 : index
    %c0_1 = arith.constant 0 : index
    %0 = vector.load %arg1[%c0, %c0_0, %c0_1] : memref<1x8x64xf32, #tpu.memory_space<vmem>>, vector<1x8x64xf32>
    %1 = vector.shape_cast %0 : vector<1x8x64xf32> to vector<8x64xf32>
    %c0_2 = arith.constant 0 : index
    %c0_3 = arith.constant 0 : index
    %c0_4 = arith.constant 0 : index
    %2 = vector.load %arg2[%c0_2, %c0_3, %c0_4] : memref<1x10x64xf32, #tpu.memory_space<vmem>>, vector<1x10x64xf32>
    %3 = vector.shape_cast %2 : vector<1x10x64xf32> to vector<10x64xf32>
    %c0_5 = arith.constant 0 : index
    %c0_6 = arith.constant 0 : index
    %4 = vector.load %arg3[%c0_5, %c0_6] : memref<64x32xf32, #tpu.memory_space<vmem>>, vector<64x32xf32>
    %cst = arith.constant dense<0.000000e+00> : vector<10x32xf32>
    %5 = tpu.matmul %3, %4, %cst {dimension_numbers = #tpu.dot_dimension_numbers<[1], [0], [0], [1], [0, 0, 1, 1], [], []>} : vector<10x64xf32>, vector<64x32xf32>, vector<10x32xf32> -> vector<10x32xf32>
    %c0_7 = arith.constant 0 : index
    %c0_8 = arith.constant 0 : index
    %6 = vector.load %arg4[%c0_7, %c0_8] : memref<64x32xf32, #tpu.memory_space<vmem>>, vector<64x32xf32>
    %cst_9 = arith.constant dense<0.000000e+00> : vector<8x32xf32>
    %7 = tpu.matmul %1, %6, %cst_9 {dimension_numbers = #tpu.dot_dimension_numbers<[1], [0], [0], [1], [0, 0, 1, 1], [], []>} : vector<8x64xf32>, vector<64x32xf32>, vector<8x32xf32> -> vector<8x32xf32>
    %8 = vector.shape_cast %5 : vector<10x32xf32> to vector<1x10x32xf32>
    %9 = vector.shape_cast %7 : vector<8x32xf32> to vector<8x1x32xf32>
    %cst_10 = arith.constant -1.000000e+00 : f32
    %10 = vector.broadcast %cst_10 : f32 to vector<8x1x32xf32>
    %11 = arith.mulf %10, %9 : vector<8x1x32xf32>
    %12 = vector.broadcast %8 : vector<1x10x32xf32> to vector<8x10x32xf32>
    %13 = vector.broadcast %11 : vector<8x1x32xf32> to vector<8x10x32xf32>
    %14 = arith.addf %12, %13 : vector<8x10x32xf32>
    %15 = math.tanh %14 : vector<8x10x32xf32>
    %c0_11 = arith.constant 0 : index
    %c0_12 = arith.constant 0 : index
    %16 = vector.load %arg5[%c0_11, %c0_12] : memref<1x32xf32, #tpu.memory_space<vmem>>, vector<1x32xf32>
    %17 = vector.shape_cast %16 : vector<1x32xf32> to vector<1x1x32xf32>
    %18 = vector.broadcast %17 : vector<1x1x32xf32> to vector<8x10x32xf32>
    %19 = arith.mulf %15, %18 : vector<8x10x32xf32>
    %cst_13 = arith.constant dense<0.000000e+00> : vector<8x10xf32>
    %20 = vector.multi_reduction <add>, %19, %cst_13 [2] : vector<8x10x32xf32> to vector<8x10xf32>
    %cst_14 = arith.constant dense<0xFF800000> : vector<8xf32>
    %21 = vector.multi_reduction <maximumf>, %20, %cst_14 [1] : vector<8x10xf32> to vector<8xf32>
    %22 = vector.shape_cast %21 : vector<8xf32> to vector<8x1xf32>
    %23 = vector.broadcast %22 : vector<8x1xf32> to vector<8x10xf32>
    %24 = arith.subf %20, %23 : vector<8x10xf32>
    %25 = math.exp %24 : vector<8x10xf32>
    %cst_15 = arith.constant dense<0.000000e+00> : vector<8xf32>
    %26 = vector.multi_reduction <add>, %25, %cst_15 [1] : vector<8x10xf32> to vector<8xf32>
    %27 = vector.shape_cast %26 : vector<8xf32> to vector<8x1xf32>
    %28 = tpu.reciprocal %27 {approx = true} : vector<8x1xf32> -> vector<8x1xf32>
    %29 = vector.broadcast %28 : vector<8x1xf32> to vector<8x10xf32>
    %30 = arith.mulf %25, %29 : vector<8x10xf32>
    %cst_16 = arith.constant dense<0.000000e+00> : vector<8x64xf32>
    %31 = tpu.matmul %30, %3, %cst_16 {dimension_numbers = #tpu.dot_dimension_numbers<[1], [0], [0], [1], [0, 0, 1, 1], [], []>} : vector<8x10xf32>, vector<10x64xf32>, vector<8x64xf32> -> vector<8x64xf32>
    %c0_17 = arith.constant 0 : index
    %c0_18 = arith.constant 0 : index
    %c0_19 = arith.constant 0 : index
    %32 = vector.load %arg6[%c0_17, %c0_18, %c0_19] : memref<1x8x64xf32, #tpu.memory_space<vmem>>, vector<1x8x64xf32>
    %33 = vector.shape_cast %32 : vector<1x8x64xf32> to vector<8x64xf32>
    %34 = vector.shape_cast %31 : vector<8x64xf32> to vector<1x8x64xf32>
    tpu.vector_store %arg6[%c0_17, %c0_18, %c0_19], %34 {strides = array<i32>} : memref<1x8x64xf32, #tpu.memory_space<vmem>>, vector<1x8x64xf32>,
    return
  }
  func.func @transform_0(%arg0: i32) -> (i32, i32, i32) {
    %c0_i32 = arith.constant 0 : i32
    %c0_i32_0 = arith.constant 0 : i32
    %c0_i32_1 = arith.constant 0 : i32
    return %arg0, %c0_i32, %c0_i32_0 : i32, i32, i32
  }
  func.func @transform_1(%arg0: i32) -> (i32, i32, i32) {
    %c0_i32 = arith.constant 0 : i32
    %c0_i32_0 = arith.constant 0 : i32
    %c0_i32_1 = arith.constant 0 : i32
    return %arg0, %c0_i32, %c0_i32_0 : i32, i32, i32
  }
  func.func @transform_2(%arg0: i32) -> (i32, i32) {
    %c0_i32 = arith.constant 0 : i32
    %c0_i32_0 = arith.constant 0 : i32
    %c0_i32_1 = arith.constant 0 : i32
    return %c0_i32, %c0_i32_0 : i32, i32
  }
  func.func @transform_3(%arg0: i32) -> (i32, i32) {
    %c0_i32 = arith.constant 0 : i32
    %c0_i32_0 = arith.constant 0 : i32
    %c0_i32_1 = arith.constant 0 : i32
    return %c0_i32, %c0_i32_0 : i32, i32
  }
  func.func @transform_4(%arg0: i32) -> (i32, i32) {
    %c0_i32 = arith.constant 0 : i32
    %c0_i32_0 = arith.constant 0 : i32
    %c0_i32_1 = arith.constant 0 : i32
    return %c0_i32, %c0_i32_0 : i32, i32
  }
  func.func @transform_5(%arg0: i32) -> (i32, i32, i32) {
    %c0_i32 = arith.constant 0 : i32
    %c0_i32_0 = arith.constant 0 : i32
    %c0_i32_1 = arith.constant 0 : i32
    return %arg0, %c0_i32, %c0_i32_0 : i32, i32, i32
  }
}

module attributes {stable_mosaic.version = 11 : i64} {
  func.func @_mul_attn_kernel(%arg0: i32, %arg1: memref<1x8x64xf32, #tpu.memory_space<vmem>>, %arg2: memref<1x8x64xf32, #tpu.memory_space<vmem>>, %arg3: memref<64x32xf32, #tpu.memory_space<vmem>>, %arg4: memref<1x32xf32, #tpu.memory_space<vmem>>, %arg5: memref<1x8x64xf32, #tpu.memory_space<vmem>>) attributes {dimension_semantics = [#tpu.dimension_semantics<parallel>], iteration_bounds = array<i64: 2>, scalar_prefetch = 0 : i64, scratch_operands = 0 : i64, tpu.core_type = #tpu.core_type<tc>, window_params = [{transform_indices = @transform_0, window_bounds = array<i64: 1, 8, 64>}, {transform_indices = @transform_1, window_bounds = array<i64: 1, 8, 64>}, {pipeline_mode = #tpu.pipeline_mode<synchronous>, transform_indices = @transform_2, window_bounds = array<i64: 64, 32>}, {pipeline_mode = #tpu.pipeline_mode<synchronous>, transform_indices = @transform_3, window_bounds = array<i64: 1, 32>}, {transform_indices = @transform_4, window_bounds = array<i64: 1, 8, 64>}]} {
    %c0 = arith.constant 0 : index
    %c0_0 = arith.constant 0 : index
    %c0_1 = arith.constant 0 : index
    %0 = vector.load %arg1[%c0, %c0_0, %c0_1] : memref<1x8x64xf32, #tpu.memory_space<vmem>>, vector<1x8x64xf32>
    %1 = vector.shape_cast %0 : vector<1x8x64xf32> to vector<8x64xf32>
    %c0_2 = arith.constant 0 : index
    %c0_3 = arith.constant 0 : index
    %c0_4 = arith.constant 0 : index
    %2 = vector.load %arg2[%c0_2, %c0_3, %c0_4] : memref<1x8x64xf32, #tpu.memory_space<vmem>>, vector<1x8x64xf32>
    %3 = vector.shape_cast %2 : vector<1x8x64xf32> to vector<8x64xf32>
    %4 = vector.shape_cast %3 : vector<8x64xf32> to vector<1x8x64xf32>
    %5 = vector.shape_cast %1 : vector<8x64xf32> to vector<8x1x64xf32>
    %6 = vector.broadcast %4 : vector<1x8x64xf32> to vector<8x8x64xf32>
    %7 = vector.broadcast %5 : vector<8x1x64xf32> to vector<8x8x64xf32>
    %8 = arith.mulf %6, %7 : vector<8x8x64xf32>
    %9 = vector.shape_cast %8 : vector<8x8x64xf32> to vector<64x64xf32>
    %c0_5 = arith.constant 0 : index
    %c0_6 = arith.constant 0 : index
    %10 = vector.load %arg3[%c0_5, %c0_6] : memref<64x32xf32, #tpu.memory_space<vmem>>, vector<64x32xf32>
    %cst = arith.constant dense<0.000000e+00> : vector<64x32xf32>
    %11 = tpu.matmul %9, %10, %cst {dimension_numbers = #tpu.dot_dimension_numbers<[1], [0], [0], [1], [0, 0, 1, 1], [], []>} : vector<64x64xf32>, vector<64x32xf32>, vector<64x32xf32> -> vector<64x32xf32>
    %12 = math.tanh %11 : vector<64x32xf32>
    %13 = vector.shape_cast %12 : vector<64x32xf32> to vector<8x8x32xf32>
    %c0_7 = arith.constant 0 : index
    %c0_8 = arith.constant 0 : index
    %14 = vector.load %arg4[%c0_7, %c0_8] : memref<1x32xf32, #tpu.memory_space<vmem>>, vector<1x32xf32>
    %15 = vector.shape_cast %14 : vector<1x32xf32> to vector<1x1x32xf32>
    %16 = vector.broadcast %15 : vector<1x1x32xf32> to vector<8x8x32xf32>
    %17 = arith.mulf %13, %16 : vector<8x8x32xf32>
    %cst_9 = arith.constant dense<0.000000e+00> : vector<8x8xf32>
    %18 = vector.multi_reduction <add>, %17, %cst_9 [2] : vector<8x8x32xf32> to vector<8x8xf32>
    %cst_10 = arith.constant dense<0xFF800000> : vector<8xf32>
    %19 = vector.multi_reduction <maximumf>, %18, %cst_10 [1] : vector<8x8xf32> to vector<8xf32>
    %20 = vector.shape_cast %19 : vector<8xf32> to vector<8x1xf32>
    %21 = vector.broadcast %20 : vector<8x1xf32> to vector<8x8xf32>
    %22 = arith.subf %18, %21 : vector<8x8xf32>
    %23 = math.exp %22 : vector<8x8xf32>
    %cst_11 = arith.constant dense<0.000000e+00> : vector<8xf32>
    %24 = vector.multi_reduction <add>, %23, %cst_11 [1] : vector<8x8xf32> to vector<8xf32>
    %25 = vector.shape_cast %24 : vector<8xf32> to vector<8x1xf32>
    %26 = tpu.reciprocal %25 {approx = true} : vector<8x1xf32> -> vector<8x1xf32>
    %27 = vector.broadcast %26 : vector<8x1xf32> to vector<8x8xf32>
    %28 = arith.mulf %23, %27 : vector<8x8xf32>
    %cst_12 = arith.constant dense<0.000000e+00> : vector<8x64xf32>
    %29 = tpu.matmul %28, %3, %cst_12 {dimension_numbers = #tpu.dot_dimension_numbers<[1], [0], [0], [1], [0, 0, 1, 1], [], []>} : vector<8x8xf32>, vector<8x64xf32>, vector<8x64xf32> -> vector<8x64xf32>
    %c0_13 = arith.constant 0 : index
    %c0_14 = arith.constant 0 : index
    %c0_15 = arith.constant 0 : index
    %30 = vector.load %arg5[%c0_13, %c0_14, %c0_15] : memref<1x8x64xf32, #tpu.memory_space<vmem>>, vector<1x8x64xf32>
    %31 = vector.shape_cast %30 : vector<1x8x64xf32> to vector<8x64xf32>
    %32 = vector.shape_cast %29 : vector<8x64xf32> to vector<1x8x64xf32>
    tpu.vector_store %arg5[%c0_13, %c0_14, %c0_15], %32 {strides = array<i32>} : memref<1x8x64xf32, #tpu.memory_space<vmem>>, vector<1x8x64xf32>,
    return
  }
  func.func @transform_0(%arg0: i32) -> (i32, i32, i32) {
    %c0_i32 = arith.constant 0 : i32
    %c0_i32_0 = arith.constant 0 : i32
    %c0_i32_1 = arith.constant 0 : i32
    return %arg0, %c0_i32, %c0_i32_0 : i32, i32, i32
  }
  func.func @transform_1(%arg0: i32) -> (i32, i32, i32) {
    %c0_i32 = arith.constant 0 : i32
    %c0_i32_0 = arith.constant 0 : i32
    %c0_i32_1 = arith.constant 0 : i32
    return %arg0, %c0_i32, %c0_i32_0 : i32, i32, i32
  }
  func.func @transform_2(%arg0: i32) -> (i32, i32) {
    %c0_i32 = arith.constant 0 : i32
    %c0_i32_0 = arith.constant 0 : i32
    %c0_i32_1 = arith.constant 0 : i32
    return %c0_i32, %c0_i32_0 : i32, i32
  }
  func.func @transform_3(%arg0: i32) -> (i32, i32) {
    %c0_i32 = arith.constant 0 : i32
    %c0_i32_0 = arith.constant 0 : i32
    %c0_i32_1 = arith.constant 0 : i32
    return %c0_i32, %c0_i32_0 : i32, i32
  }
  func.func @transform_4(%arg0: i32) -> (i32, i32, i32) {
    %c0_i32 = arith.constant 0 : i32
    %c0_i32_0 = arith.constant 0 : i32
    %c0_i32_1 = arith.constant 0 : i32
    return %arg0, %c0_i32, %c0_i32_0 : i32, i32, i32
  }
}

module attributes {stable_mosaic.version = 11 : i64} {
  func.func @_bigru_kernel(%arg0: memref<8x2x472xf32, #tpu.memory_space<vmem>>, %arg1: memref<472x192xf32, #tpu.memory_space<vmem>>, %arg2: memref<1x192xf32, #tpu.memory_space<vmem>>, %arg3: memref<32x96xf32, #tpu.memory_space<vmem>>, %arg4: memref<1x96xf32, #tpu.memory_space<vmem>>, %arg5: memref<32x96xf32, #tpu.memory_space<vmem>>, %arg6: memref<1x96xf32, #tpu.memory_space<vmem>>, %arg7: memref<8x2x32xf32, #tpu.memory_space<vmem>>, %arg8: memref<8x2x32xf32, #tpu.memory_space<vmem>>, %arg9: memref<8x2x192xf32, #tpu.memory_space<vmem>>, %arg10: memref<2x32xf32, #tpu.memory_space<vmem>>, %arg11: memref<2x32xf32, #tpu.memory_space<vmem>>) attributes {dimension_semantics = [], scalar_prefetch = 0 : i64, scratch_operands = 3 : i64, tpu.core_type = #tpu.core_type<tc>} {
    %c0 = arith.constant 0 : index
    %c0_0 = arith.constant 0 : index
    %c0_1 = arith.constant 0 : index
    %0 = vector.load %arg0[%c0, %c0_0, %c0_1] : memref<8x2x472xf32, #tpu.memory_space<vmem>>, vector<8x2x472xf32>
    %1 = vector.shape_cast %0 : vector<8x2x472xf32> to vector<16x472xf32>
    %c0_2 = arith.constant 0 : index
    %c0_3 = arith.constant 0 : index
    %2 = vector.load %arg1[%c0_2, %c0_3] : memref<472x192xf32, #tpu.memory_space<vmem>>, vector<472x192xf32>
    %cst = arith.constant dense<0.000000e+00> : vector<16x192xf32>
    %3 = tpu.matmul %1, %2, %cst {dimension_numbers = #tpu.dot_dimension_numbers<[1], [0], [0], [1], [0, 0, 1, 1], [], []>} : vector<16x472xf32>, vector<472x192xf32>, vector<16x192xf32> -> vector<16x192xf32>
    %c0_4 = arith.constant 0 : index
    %c0_5 = arith.constant 0 : index
    %4 = vector.load %arg2[%c0_4, %c0_5] : memref<1x192xf32, #tpu.memory_space<vmem>>, vector<1x192xf32>
    %5 = vector.broadcast %4 : vector<1x192xf32> to vector<16x192xf32>
    %6 = arith.addf %3, %5 : vector<16x192xf32>
    %7 = vector.shape_cast %6 : vector<16x192xf32> to vector<8x2x192xf32>
    %c0_6 = arith.constant 0 : index
    %c0_7 = arith.constant 0 : index
    %c0_8 = arith.constant 0 : index
    %8 = vector.load %arg9[%c0_6, %c0_7, %c0_8] : memref<8x2x192xf32, #tpu.memory_space<vmem>>, vector<8x2x192xf32>
    tpu.vector_store %arg9[%c0_6, %c0_7, %c0_8], %7 {strides = array<i32>} : memref<8x2x192xf32, #tpu.memory_space<vmem>>, vector<8x2x192xf32>,
    %c0_9 = arith.constant 0 : index
    %c0_10 = arith.constant 0 : index
    %9 = vector.load %arg3[%c0_9, %c0_10] : memref<32x96xf32, #tpu.memory_space<vmem>>, vector<32x96xf32>
    %c0_11 = arith.constant 0 : index
    %c0_12 = arith.constant 0 : index
    %10 = vector.load %arg4[%c0_11, %c0_12] : memref<1x96xf32, #tpu.memory_space<vmem>>, vector<1x96xf32>
    %c0_13 = arith.constant 0 : index
    %c0_14 = arith.constant 0 : index
    %11 = vector.load %arg5[%c0_13, %c0_14] : memref<32x96xf32, #tpu.memory_space<vmem>>, vector<32x96xf32>
    %c0_15 = arith.constant 0 : index
    %c0_16 = arith.constant 0 : index
    %12 = vector.load %arg6[%c0_15, %c0_16] : memref<1x96xf32, #tpu.memory_space<vmem>>, vector<1x96xf32>
    %cst_17 = arith.constant 0.000000e+00 : f32
    %13 = vector.broadcast %cst_17 : f32 to vector<2x32xf32>
    %c0_18 = arith.constant 0 : index
    %c0_19 = arith.constant 0 : index
    %14 = vector.load %arg10[%c0_18, %c0_19] : memref<2x32xf32, #tpu.memory_space<vmem>>, vector<2x32xf32>
    tpu.vector_store %arg10[%c0_18, %c0_19], %13 {strides = array<i32>} : memref<2x32xf32, #tpu.memory_space<vmem>>, vector<2x32xf32>,
    %cst_20 = arith.constant 0.000000e+00 : f32
    %15 = vector.broadcast %cst_20 : f32 to vector<2x32xf32>
    %c0_21 = arith.constant 0 : index
    %c0_22 = arith.constant 0 : index
    %16 = vector.load %arg11[%c0_21, %c0_22] : memref<2x32xf32, #tpu.memory_space<vmem>>, vector<2x32xf32>
    tpu.vector_store %arg11[%c0_21, %c0_22], %15 {strides = array<i32>} : memref<2x32xf32, #tpu.memory_space<vmem>>, vector<2x32xf32>,
    %c0_i32 = arith.constant 0 : i32
    %c8_i32 = arith.constant 8 : i32
    %17 = arith.addi %c0_i32, %c8_i32 : i32
    %c1_i32 = arith.constant 1 : i32
    scf.for %arg12 = %c0_i32 to %17 step %c1_i32  : i32 {
      %19 = arith.index_cast %arg12 : i32 to index
      %c0_28 = arith.constant 0 : index
      %c0_29 = arith.constant 0 : index
      %20 = vector.load %arg9[%19, %c0_28, %c0_29] : memref<8x2x192xf32, #tpu.memory_space<vmem>>, vector<1x2x192xf32>
      %21 = vector.shape_cast %20 : vector<1x2x192xf32> to vector<2x192xf32>
      %22 = vector.extract_strided_slice %21 {offsets = [0, 0], sizes = [2, 96], strides = [1, 1]} : vector<2x192xf32> to vector<2x96xf32>
      %c0_30 = arith.constant 0 : index
      %c0_31 = arith.constant 0 : index
      %23 = vector.load %arg10[%c0_30, %c0_31] : memref<2x32xf32, #tpu.memory_space<vmem>>, vector<2x32xf32>
      %cst_32 = arith.constant dense<0.000000e+00> : vector<2x96xf32>
      %24 = tpu.matmul %23, %9, %cst_32 {dimension_numbers = #tpu.dot_dimension_numbers<[1], [0], [0], [1], [0, 0, 1, 1], [], []>} : vector<2x32xf32>, vector<32x96xf32>, vector<2x96xf32> -> vector<2x96xf32>
      %25 = vector.broadcast %10 : vector<1x96xf32> to vector<2x96xf32>
      %26 = arith.addf %24, %25 : vector<2x96xf32>
      %27 = vector.extract_strided_slice %22 {offsets = [0, 0], sizes = [2, 32], strides = [1, 1]} : vector<2x96xf32> to vector<2x32xf32>
      %28 = vector.extract_strided_slice %26 {offsets = [0, 0], sizes = [2, 32], strides = [1, 1]} : vector<2x96xf32> to vector<2x32xf32>
      %29 = arith.addf %27, %28 : vector<2x32xf32>
      %30 = arith.negf %29 : vector<2x32xf32>
      %31 = math.exp %30 : vector<2x32xf32>
      %cst_33 = arith.constant 1.000000e+00 : f32
      %32 = vector.broadcast %cst_33 : f32 to vector<2x32xf32>
      %33 = arith.addf %32, %31 : vector<2x32xf32>
      %34 = arith.divf %32, %33 : vector<2x32xf32>
      %35 = vector.extract_strided_slice %22 {offsets = [0, 32], sizes = [2, 32], strides = [1, 1]} : vector<2x96xf32> to vector<2x32xf32>
      %36 = vector.extract_strided_slice %26 {offsets = [0, 32], sizes = [2, 32], strides = [1, 1]} : vector<2x96xf32> to vector<2x32xf32>
      %37 = arith.addf %35, %36 : vector<2x32xf32>
      %38 = arith.negf %37 : vector<2x32xf32>
      %39 = math.exp %38 : vector<2x32xf32>
      %cst_34 = arith.constant 1.000000e+00 : f32
      %40 = vector.broadcast %cst_34 : f32 to vector<2x32xf32>
      %41 = arith.addf %40, %39 : vector<2x32xf32>
      %42 = arith.divf %40, %41 : vector<2x32xf32>
      %43 = vector.extract_strided_slice %22 {offsets = [0, 64], sizes = [2, 32], strides = [1, 1]} : vector<2x96xf32> to vector<2x32xf32>
      %44 = vector.extract_strided_slice %26 {offsets = [0, 64], sizes = [2, 32], strides = [1, 1]} : vector<2x96xf32> to vector<2x32xf32>
      %45 = arith.mulf %34, %44 : vector<2x32xf32>
      %46 = arith.addf %43, %45 : vector<2x32xf32>
      %47 = math.tanh %46 : vector<2x32xf32>
      %cst_35 = arith.constant 1.000000e+00 : f32
      %48 = vector.broadcast %cst_35 : f32 to vector<2x32xf32>
      %49 = arith.subf %48, %42 : vector<2x32xf32>
      %50 = arith.mulf %49, %47 : vector<2x32xf32>
      %51 = arith.mulf %42, %23 : vector<2x32xf32>
      %52 = arith.addf %50, %51 : vector<2x32xf32>
      %c0_36 = arith.constant 0 : index
      %c0_37 = arith.constant 0 : index
      %53 = vector.load %arg10[%c0_36, %c0_37] : memref<2x32xf32, #tpu.memory_space<vmem>>, vector<2x32xf32>
      tpu.vector_store %arg10[%c0_36, %c0_37], %52 {strides = array<i32>} : memref<2x32xf32, #tpu.memory_space<vmem>>, vector<2x32xf32>,
      %54 = arith.index_cast %arg12 : i32 to index
      %c0_38 = arith.constant 0 : index
      %c0_39 = arith.constant 0 : index
      %55 = vector.load %arg7[%54, %c0_38, %c0_39] : memref<8x2x32xf32, #tpu.memory_space<vmem>>, vector<1x2x32xf32>
      %56 = vector.shape_cast %55 : vector<1x2x32xf32> to vector<2x32xf32>
      %57 = vector.shape_cast %52 : vector<2x32xf32> to vector<1x2x32xf32>
      tpu.vector_store %arg7[%54, %c0_38, %c0_39], %57 {strides = array<i32>} : memref<8x2x32xf32, #tpu.memory_space<vmem>>, vector<1x2x32xf32>,
    }
    %c8_i32_23 = arith.constant 8 : i32
    %c0_i32_24 = arith.constant 0 : i32
    %c8_i32_25 = arith.constant 8 : i32
    %18 = arith.addi %c0_i32_24, %c8_i32_25 : i32
    %c1_i32_26 = arith.constant 1 : i32
    scf.for %arg12 = %c0_i32_24 to %18 step %c1_i32_26  : i32 {
      %c7_i32 = arith.constant 7 : i32
      %19 = arith.subi %c7_i32, %arg12 : i32
      %20 = arith.index_cast %19 : i32 to index
      %c0_28 = arith.constant 0 : index
      %c0_29 = arith.constant 0 : index
      %21 = vector.load %arg9[%20, %c0_28, %c0_29] : memref<8x2x192xf32, #tpu.memory_space<vmem>>, vector<1x2x192xf32>
      %22 = vector.shape_cast %21 : vector<1x2x192xf32> to vector<2x192xf32>
      %23 = vector.extract_strided_slice %22 {offsets = [0, 96], sizes = [2, 96], strides = [1, 1]} : vector<2x192xf32> to vector<2x96xf32>
      %c0_30 = arith.constant 0 : index
      %c0_31 = arith.constant 0 : index
      %24 = vector.load %arg11[%c0_30, %c0_31] : memref<2x32xf32, #tpu.memory_space<vmem>>, vector<2x32xf32>
      %cst_32 = arith.constant dense<0.000000e+00> : vector<2x96xf32>
      %25 = tpu.matmul %24, %11, %cst_32 {dimension_numbers = #tpu.dot_dimension_numbers<[1], [0], [0], [1], [0, 0, 1, 1], [], []>} : vector<2x32xf32>, vector<32x96xf32>, vector<2x96xf32> -> vector<2x96xf32>
      %26 = vector.broadcast %12 : vector<1x96xf32> to vector<2x96xf32>
      %27 = arith.addf %25, %26 : vector<2x96xf32>
      %28 = vector.extract_strided_slice %23 {offsets = [0, 0], sizes = [2, 32], strides = [1, 1]} : vector<2x96xf32> to vector<2x32xf32>
      %29 = vector.extract_strided_slice %27 {offsets = [0, 0], sizes = [2, 32], strides = [1, 1]} : vector<2x96xf32> to vector<2x32xf32>
      %30 = arith.addf %28, %29 : vector<2x32xf32>
      %31 = arith.negf %30 : vector<2x32xf32>
      %32 = math.exp %31 : vector<2x32xf32>
      %cst_33 = arith.constant 1.000000e+00 : f32
      %33 = vector.broadcast %cst_33 : f32 to vector<2x32xf32>
      %34 = arith.addf %33, %32 : vector<2x32xf32>
      %35 = arith.divf %33, %34 : vector<2x32xf32>
      %36 = vector.extract_strided_slice %23 {offsets = [0, 32], sizes = [2, 32], strides = [1, 1]} : vector<2x96xf32> to vector<2x32xf32>
      %37 = vector.extract_strided_slice %27 {offsets = [0, 32], sizes = [2, 32], strides = [1, 1]} : vector<2x96xf32> to vector<2x32xf32>
      %38 = arith.addf %36, %37 : vector<2x32xf32>
      %39 = arith.negf %38 : vector<2x32xf32>
      %40 = math.exp %39 : vector<2x32xf32>
      %cst_34 = arith.constant 1.000000e+00 : f32
      %41 = vector.broadcast %cst_34 : f32 to vector<2x32xf32>
      %42 = arith.addf %41, %40 : vector<2x32xf32>
      %43 = arith.divf %41, %42 : vector<2x32xf32>
      %44 = vector.extract_strided_slice %23 {offsets = [0, 64], sizes = [2, 32], strides = [1, 1]} : vector<2x96xf32> to vector<2x32xf32>
      %45 = vector.extract_strided_slice %27 {offsets = [0, 64], sizes = [2, 32], strides = [1, 1]} : vector<2x96xf32> to vector<2x32xf32>
      %46 = arith.mulf %35, %45 : vector<2x32xf32>
      %47 = arith.addf %44, %46 : vector<2x32xf32>
      %48 = math.tanh %47 : vector<2x32xf32>
      %cst_35 = arith.constant 1.000000e+00 : f32
      %49 = vector.broadcast %cst_35 : f32 to vector<2x32xf32>
      %50 = arith.subf %49, %43 : vector<2x32xf32>
      %51 = arith.mulf %50, %48 : vector<2x32xf32>
      %52 = arith.mulf %43, %24 : vector<2x32xf32>
      %53 = arith.addf %51, %52 : vector<2x32xf32>
      %c0_36 = arith.constant 0 : index
      %c0_37 = arith.constant 0 : index
      %54 = vector.load %arg11[%c0_36, %c0_37] : memref<2x32xf32, #tpu.memory_space<vmem>>, vector<2x32xf32>
      tpu.vector_store %arg11[%c0_36, %c0_37], %53 {strides = array<i32>} : memref<2x32xf32, #tpu.memory_space<vmem>>, vector<2x32xf32>,
      %55 = arith.index_cast %19 : i32 to index
      %c0_38 = arith.constant 0 : index
      %c0_39 = arith.constant 0 : index
      %56 = vector.load %arg8[%55, %c0_38, %c0_39] : memref<8x2x32xf32, #tpu.memory_space<vmem>>, vector<1x2x32xf32>
      %57 = vector.shape_cast %56 : vector<1x2x32xf32> to vector<2x32xf32>
      %58 = vector.shape_cast %53 : vector<2x32xf32> to vector<1x2x32xf32>
      tpu.vector_store %arg8[%55, %c0_38, %c0_39], %58 {strides = array<i32>} : memref<8x2x32xf32, #tpu.memory_space<vmem>>, vector<1x2x32xf32>,
    }
    %c8_i32_27 = arith.constant 8 : i32
    return
  }
}

module attributes {stable_mosaic.version = 11 : i64} {
  func.func @_matmul_kernel(%arg0: memref<2x64xf32, #tpu.memory_space<vmem>>, %arg1: memref<64x32xf32, #tpu.memory_space<vmem>>, %arg2: memref<2x32xf32, #tpu.memory_space<vmem>>) attributes {dimension_semantics = [], scalar_prefetch = 0 : i64, scratch_operands = 0 : i64, tpu.core_type = #tpu.core_type<tc>} {
    %c0 = arith.constant 0 : index
    %c0_0 = arith.constant 0 : index
    %0 = vector.load %arg0[%c0, %c0_0] : memref<2x64xf32, #tpu.memory_space<vmem>>, vector<2x64xf32>
    %c0_1 = arith.constant 0 : index
    %c0_2 = arith.constant 0 : index
    %1 = vector.load %arg1[%c0_1, %c0_2] : memref<64x32xf32, #tpu.memory_space<vmem>>, vector<64x32xf32>
    %cst = arith.constant dense<0.000000e+00> : vector<2x32xf32>
    %2 = tpu.matmul %0, %1, %cst {dimension_numbers = #tpu.dot_dimension_numbers<[1], [0], [0], [1], [0, 0, 1, 1], [], []>} : vector<2x64xf32>, vector<64x32xf32>, vector<2x32xf32> -> vector<2x32xf32>
    %c0_3 = arith.constant 0 : index
    %c0_4 = arith.constant 0 : index
    %3 = vector.load %arg2[%c0_3, %c0_4] : memref<2x32xf32, #tpu.memory_space<vmem>>, vector<2x32xf32>
    tpu.vector_store %arg2[%c0_3, %c0_4], %2 {strides = array<i32>} : memref<2x32xf32, #tpu.memory_space<vmem>>, vector<2x32xf32>,
    return
  }
}

module attributes {stable_mosaic.version = 11 : i64} {
  func.func @_rp_pool_kernel(%arg0: i32, %arg1: memref<1x8x64xf32, #tpu.memory_space<vmem>>, %arg2: memref<1x1x88xf32, #tpu.memory_space<vmem>>, %arg3: memref<64x32xf32, #tpu.memory_space<vmem>>, %arg4: memref<88x32xf32, #tpu.memory_space<vmem>>, %arg5: memref<1x32xf32, #tpu.memory_space<vmem>>, %arg6: memref<1x1x64xf32, #tpu.memory_space<vmem>>) attributes {dimension_semantics = [#tpu.dimension_semantics<parallel>], iteration_bounds = array<i64: 2>, scalar_prefetch = 0 : i64, scratch_operands = 0 : i64, tpu.core_type = #tpu.core_type<tc>, window_params = [{transform_indices = @transform_0, window_bounds = array<i64: 1, 8, 64>}, {transform_indices = @transform_1, window_bounds = array<i64: 1, 1, 88>}, {pipeline_mode = #tpu.pipeline_mode<synchronous>, transform_indices = @transform_2, window_bounds = array<i64: 64, 32>}, {pipeline_mode = #tpu.pipeline_mode<synchronous>, transform_indices = @transform_3, window_bounds = array<i64: 88, 32>}, {pipeline_mode = #tpu.pipeline_mode<synchronous>, transform_indices = @transform_4, window_bounds = array<i64: 1, 32>}, {transform_indices = @transform_5, window_bounds = array<i64: 1, 1, 64>}]} {
    %c0 = arith.constant 0 : index
    %c0_0 = arith.constant 0 : index
    %c0_1 = arith.constant 0 : index
    %0 = vector.load %arg1[%c0, %c0_0, %c0_1] : memref<1x8x64xf32, #tpu.memory_space<vmem>>, vector<1x8x64xf32>
    %1 = vector.shape_cast %0 : vector<1x8x64xf32> to vector<8x64xf32>
    %c0_2 = arith.constant 0 : index
    %c0_3 = arith.constant 0 : index
    %c0_4 = arith.constant 0 : index
    %2 = vector.load %arg2[%c0_2, %c0_3, %c0_4] : memref<1x1x88xf32, #tpu.memory_space<vmem>>, vector<1x1x88xf32>
    %3 = vector.shape_cast %2 : vector<1x1x88xf32> to vector<1x88xf32>
    %c0_5 = arith.constant 0 : index
    %c0_6 = arith.constant 0 : index
    %4 = vector.load %arg3[%c0_5, %c0_6] : memref<64x32xf32, #tpu.memory_space<vmem>>, vector<64x32xf32>
    %cst = arith.constant dense<0.000000e+00> : vector<8x32xf32>
    %5 = tpu.matmul %1, %4, %cst {dimension_numbers = #tpu.dot_dimension_numbers<[1], [0], [0], [1], [0, 0, 1, 1], [], []>} : vector<8x64xf32>, vector<64x32xf32>, vector<8x32xf32> -> vector<8x32xf32>
    %c0_7 = arith.constant 0 : index
    %c0_8 = arith.constant 0 : index
    %6 = vector.load %arg4[%c0_7, %c0_8] : memref<88x32xf32, #tpu.memory_space<vmem>>, vector<88x32xf32>
    %cst_9 = arith.constant dense<0.000000e+00> : vector<1x32xf32>
    %7 = tpu.matmul %3, %6, %cst_9 {dimension_numbers = #tpu.dot_dimension_numbers<[1], [0], [0], [1], [0, 0, 1, 1], [], []>} : vector<1x88xf32>, vector<88x32xf32>, vector<1x32xf32> -> vector<1x32xf32>
    %8 = vector.broadcast %7 : vector<1x32xf32> to vector<8x32xf32>
    %9 = arith.addf %5, %8 : vector<8x32xf32>
    %c0_10 = arith.constant 0 : index
    %c0_11 = arith.constant 0 : index
    %10 = vector.load %arg5[%c0_10, %c0_11] : memref<1x32xf32, #tpu.memory_space<vmem>>, vector<1x32xf32>
    %11 = vector.broadcast %10 : vector<1x32xf32> to vector<8x32xf32>
    %12 = arith.mulf %9, %11 : vector<8x32xf32>
    %cst_12 = arith.constant dense<0.000000e+00> : vector<8xf32>
    %13 = vector.multi_reduction <add>, %12, %cst_12 [1] : vector<8x32xf32> to vector<8xf32>
    %14 = vector.shape_cast %13 : vector<8xf32> to vector<8x1xf32>
    %cst_13 = arith.constant dense<0xFF800000> : vector<1xf32>
    %15 = vector.multi_reduction <maximumf>, %14, %cst_13 [0] : vector<8x1xf32> to vector<1xf32>
    %16 = vector.shape_cast %15 : vector<1xf32> to vector<1x1xf32>
    %17 = vector.broadcast %16 : vector<1x1xf32> to vector<8x1xf32>
    %18 = arith.subf %14, %17 : vector<8x1xf32>
    %19 = math.exp %18 : vector<8x1xf32>
    %cst_14 = arith.constant dense<0.000000e+00> : vector<1xf32>
    %20 = vector.multi_reduction <add>, %19, %cst_14 [0] : vector<8x1xf32> to vector<1xf32>
    %21 = vector.shape_cast %20 : vector<1xf32> to vector<1x1xf32>
    %22 = tpu.reciprocal %21 {approx = true} : vector<1x1xf32> -> vector<1x1xf32>
    %23 = vector.broadcast %22 : vector<1x1xf32> to vector<8x1xf32>
    %24 = arith.mulf %19, %23 : vector<8x1xf32>
    %25 = vector.broadcast %24 : vector<8x1xf32> to vector<8x64xf32>
    %26 = arith.mulf %25, %1 : vector<8x64xf32>
    %cst_15 = arith.constant dense<0.000000e+00> : vector<64xf32>
    %27 = vector.multi_reduction <add>, %26, %cst_15 [0] : vector<8x64xf32> to vector<64xf32>
    %28 = vector.shape_cast %27 : vector<64xf32> to vector<1x64xf32>
    %c0_16 = arith.constant 0 : index
    %c0_17 = arith.constant 0 : index
    %c0_18 = arith.constant 0 : index
    %29 = vector.load %arg6[%c0_16, %c0_17, %c0_18] : memref<1x1x64xf32, #tpu.memory_space<vmem>>, vector<1x1x64xf32>
    %30 = vector.shape_cast %29 : vector<1x1x64xf32> to vector<1x64xf32>
    %31 = vector.shape_cast %28 : vector<1x64xf32> to vector<1x1x64xf32>
    tpu.vector_store %arg6[%c0_16, %c0_17, %c0_18], %31 {strides = array<i32>} : memref<1x1x64xf32, #tpu.memory_space<vmem>>, vector<1x1x64xf32>,
    return
  }
  func.func @transform_0(%arg0: i32) -> (i32, i32, i32) {
    %c0_i32 = arith.constant 0 : i32
    %c0_i32_0 = arith.constant 0 : i32
    %c0_i32_1 = arith.constant 0 : i32
    return %arg0, %c0_i32, %c0_i32_0 : i32, i32, i32
  }
  func.func @transform_1(%arg0: i32) -> (i32, i32, i32) {
    %c0_i32 = arith.constant 0 : i32
    %c0_i32_0 = arith.constant 0 : i32
    %c0_i32_1 = arith.constant 0 : i32
    return %arg0, %c0_i32, %c0_i32_0 : i32, i32, i32
  }
  func.func @transform_2(%arg0: i32) -> (i32, i32) {
    %c0_i32 = arith.constant 0 : i32
    %c0_i32_0 = arith.constant 0 : i32
    %c0_i32_1 = arith.constant 0 : i32
    return %c0_i32, %c0_i32_0 : i32, i32
  }
  func.func @transform_3(%arg0: i32) -> (i32, i32) {
    %c0_i32 = arith.constant 0 : i32
    %c0_i32_0 = arith.constant 0 : i32
    %c0_i32_1 = arith.constant 0 : i32
    return %c0_i32, %c0_i32_0 : i32, i32
  }
  func.func @transform_4(%arg0: i32) -> (i32, i32) {
    %c0_i32 = arith.constant 0 : i32
    %c0_i32_0 = arith.constant 0 : i32
    %c0_i32_1 = arith.constant 0 : i32
    return %c0_i32, %c0_i32_0 : i32, i32
  }
  func.func @transform_5(%arg0: i32) -> (i32, i32, i32) {
    %c0_i32 = arith.constant 0 : i32
    %c0_i32_0 = arith.constant 0 : i32
    %c0_i32_1 = arith.constant 0 : i32
    return %arg0, %c0_i32, %c0_i32_0 : i32, i32, i32
  }
}

module attributes {stable_mosaic.version = 11 : i64} {
  func.func @_attn_pool_kernel(%arg0: i32, %arg1: memref<1x6x32xf32, #tpu.memory_space<vmem>>, %arg2: memref<1x32xf32, #tpu.memory_space<vmem>>, %arg3: memref<1x1x32xf32, #tpu.memory_space<vmem>>) attributes {dimension_semantics = [#tpu.dimension_semantics<parallel>], iteration_bounds = array<i64: 6>, scalar_prefetch = 0 : i64, scratch_operands = 0 : i64, tpu.core_type = #tpu.core_type<tc>, window_params = [{transform_indices = @transform_0, window_bounds = array<i64: 1, 6, 32>}, {pipeline_mode = #tpu.pipeline_mode<synchronous>, transform_indices = @transform_1, window_bounds = array<i64: 1, 32>}, {transform_indices = @transform_2, window_bounds = array<i64: 1, 1, 32>}]} {
    %c0 = arith.constant 0 : index
    %c0_0 = arith.constant 0 : index
    %c0_1 = arith.constant 0 : index
    %0 = vector.load %arg1[%c0, %c0_0, %c0_1] : memref<1x6x32xf32, #tpu.memory_space<vmem>>, vector<1x6x32xf32>
    %1 = vector.shape_cast %0 : vector<1x6x32xf32> to vector<6x32xf32>
    %c0_2 = arith.constant 0 : index
    %c0_3 = arith.constant 0 : index
    %2 = vector.load %arg2[%c0_2, %c0_3] : memref<1x32xf32, #tpu.memory_space<vmem>>, vector<1x32xf32>
    %3 = vector.broadcast %2 : vector<1x32xf32> to vector<6x32xf32>
    %4 = arith.mulf %1, %3 : vector<6x32xf32>
    %cst = arith.constant dense<0.000000e+00> : vector<6xf32>
    %5 = vector.multi_reduction <add>, %4, %cst [1] : vector<6x32xf32> to vector<6xf32>
    %6 = vector.shape_cast %5 : vector<6xf32> to vector<6x1xf32>
    %cst_4 = arith.constant dense<0xFF800000> : vector<1xf32>
    %7 = vector.multi_reduction <maximumf>, %6, %cst_4 [0] : vector<6x1xf32> to vector<1xf32>
    %8 = vector.shape_cast %7 : vector<1xf32> to vector<1x1xf32>
    %9 = vector.broadcast %8 : vector<1x1xf32> to vector<6x1xf32>
    %10 = arith.subf %6, %9 : vector<6x1xf32>
    %11 = math.exp %10 : vector<6x1xf32>
    %cst_5 = arith.constant dense<0.000000e+00> : vector<1xf32>
    %12 = vector.multi_reduction <add>, %11, %cst_5 [0] : vector<6x1xf32> to vector<1xf32>
    %13 = vector.shape_cast %12 : vector<1xf32> to vector<1x1xf32>
    %14 = tpu.reciprocal %13 {approx = true} : vector<1x1xf32> -> vector<1x1xf32>
    %15 = vector.broadcast %14 : vector<1x1xf32> to vector<6x1xf32>
    %16 = arith.mulf %11, %15 : vector<6x1xf32>
    %17 = vector.broadcast %16 : vector<6x1xf32> to vector<6x32xf32>
    %18 = arith.mulf %17, %1 : vector<6x32xf32>
    %cst_6 = arith.constant dense<0.000000e+00> : vector<32xf32>
    %19 = vector.multi_reduction <add>, %18, %cst_6 [0] : vector<6x32xf32> to vector<32xf32>
    %20 = vector.shape_cast %19 : vector<32xf32> to vector<1x32xf32>
    %c0_7 = arith.constant 0 : index
    %c0_8 = arith.constant 0 : index
    %c0_9 = arith.constant 0 : index
    %21 = vector.load %arg3[%c0_7, %c0_8, %c0_9] : memref<1x1x32xf32, #tpu.memory_space<vmem>>, vector<1x1x32xf32>
    %22 = vector.shape_cast %21 : vector<1x1x32xf32> to vector<1x32xf32>
    %23 = vector.shape_cast %20 : vector<1x32xf32> to vector<1x1x32xf32>
    tpu.vector_store %arg3[%c0_7, %c0_8, %c0_9], %23 {strides = array<i32>} : memref<1x1x32xf32, #tpu.memory_space<vmem>>, vector<1x1x32xf32>,
    return
  }
  func.func @transform_0(%arg0: i32) -> (i32, i32, i32) {
    %c0_i32 = arith.constant 0 : i32
    %c0_i32_0 = arith.constant 0 : i32
    %c0_i32_1 = arith.constant 0 : i32
    return %arg0, %c0_i32, %c0_i32_0 : i32, i32, i32
  }
  func.func @transform_1(%arg0: i32) -> (i32, i32) {
    %c0_i32 = arith.constant 0 : i32
    %c0_i32_0 = arith.constant 0 : i32
    %c0_i32_1 = arith.constant 0 : i32
    return %c0_i32, %c0_i32_0 : i32, i32
  }
  func.func @transform_2(%arg0: i32) -> (i32, i32, i32) {
    %c0_i32 = arith.constant 0 : i32
    %c0_i32_0 = arith.constant 0 : i32
    %c0_i32_1 = arith.constant 0 : i32
    return %arg0, %c0_i32, %c0_i32_0 : i32, i32, i32
  }
}

module attributes {stable_mosaic.version = 11 : i64} {
  func.func @_bigru_kernel(%arg0: memref<6x6x32xf32, #tpu.memory_space<vmem>>, %arg1: memref<32x96xf32, #tpu.memory_space<vmem>>, %arg2: memref<1x96xf32, #tpu.memory_space<vmem>>, %arg3: memref<16x48xf32, #tpu.memory_space<vmem>>, %arg4: memref<1x48xf32, #tpu.memory_space<vmem>>, %arg5: memref<16x48xf32, #tpu.memory_space<vmem>>, %arg6: memref<1x48xf32, #tpu.memory_space<vmem>>, %arg7: memref<6x6x16xf32, #tpu.memory_space<vmem>>, %arg8: memref<6x6x16xf32, #tpu.memory_space<vmem>>, %arg9: memref<6x6x96xf32, #tpu.memory_space<vmem>>, %arg10: memref<6x16xf32, #tpu.memory_space<vmem>>, %arg11: memref<6x16xf32, #tpu.memory_space<vmem>>) attributes {dimension_semantics = [], scalar_prefetch = 0 : i64, scratch_operands = 3 : i64, tpu.core_type = #tpu.core_type<tc>} {
    %c0 = arith.constant 0 : index
    %c0_0 = arith.constant 0 : index
    %c0_1 = arith.constant 0 : index
    %0 = vector.load %arg0[%c0, %c0_0, %c0_1] : memref<6x6x32xf32, #tpu.memory_space<vmem>>, vector<6x6x32xf32>
    %1 = vector.shape_cast %0 : vector<6x6x32xf32> to vector<36x32xf32>
    %c0_2 = arith.constant 0 : index
    %c0_3 = arith.constant 0 : index
    %2 = vector.load %arg1[%c0_2, %c0_3] : memref<32x96xf32, #tpu.memory_space<vmem>>, vector<32x96xf32>
    %cst = arith.constant dense<0.000000e+00> : vector<36x96xf32>
    %3 = tpu.matmul %1, %2, %cst {dimension_numbers = #tpu.dot_dimension_numbers<[1], [0], [0], [1], [0, 0, 1, 1], [], []>} : vector<36x32xf32>, vector<32x96xf32>, vector<36x96xf32> -> vector<36x96xf32>
    %c0_4 = arith.constant 0 : index
    %c0_5 = arith.constant 0 : index
    %4 = vector.load %arg2[%c0_4, %c0_5] : memref<1x96xf32, #tpu.memory_space<vmem>>, vector<1x96xf32>
    %5 = vector.broadcast %4 : vector<1x96xf32> to vector<36x96xf32>
    %6 = arith.addf %3, %5 : vector<36x96xf32>
    %7 = vector.shape_cast %6 : vector<36x96xf32> to vector<6x6x96xf32>
    %c0_6 = arith.constant 0 : index
    %c0_7 = arith.constant 0 : index
    %c0_8 = arith.constant 0 : index
    %8 = vector.load %arg9[%c0_6, %c0_7, %c0_8] : memref<6x6x96xf32, #tpu.memory_space<vmem>>, vector<6x6x96xf32>
    tpu.vector_store %arg9[%c0_6, %c0_7, %c0_8], %7 {strides = array<i32>} : memref<6x6x96xf32, #tpu.memory_space<vmem>>, vector<6x6x96xf32>,
    %c0_9 = arith.constant 0 : index
    %c0_10 = arith.constant 0 : index
    %9 = vector.load %arg3[%c0_9, %c0_10] : memref<16x48xf32, #tpu.memory_space<vmem>>, vector<16x48xf32>
    %c0_11 = arith.constant 0 : index
    %c0_12 = arith.constant 0 : index
    %10 = vector.load %arg4[%c0_11, %c0_12] : memref<1x48xf32, #tpu.memory_space<vmem>>, vector<1x48xf32>
    %c0_13 = arith.constant 0 : index
    %c0_14 = arith.constant 0 : index
    %11 = vector.load %arg5[%c0_13, %c0_14] : memref<16x48xf32, #tpu.memory_space<vmem>>, vector<16x48xf32>
    %c0_15 = arith.constant 0 : index
    %c0_16 = arith.constant 0 : index
    %12 = vector.load %arg6[%c0_15, %c0_16] : memref<1x48xf32, #tpu.memory_space<vmem>>, vector<1x48xf32>
    %cst_17 = arith.constant 0.000000e+00 : f32
    %13 = vector.broadcast %cst_17 : f32 to vector<6x16xf32>
    %c0_18 = arith.constant 0 : index
    %c0_19 = arith.constant 0 : index
    %14 = vector.load %arg10[%c0_18, %c0_19] : memref<6x16xf32, #tpu.memory_space<vmem>>, vector<6x16xf32>
    tpu.vector_store %arg10[%c0_18, %c0_19], %13 {strides = array<i32>} : memref<6x16xf32, #tpu.memory_space<vmem>>, vector<6x16xf32>,
    %cst_20 = arith.constant 0.000000e+00 : f32
    %15 = vector.broadcast %cst_20 : f32 to vector<6x16xf32>
    %c0_21 = arith.constant 0 : index
    %c0_22 = arith.constant 0 : index
    %16 = vector.load %arg11[%c0_21, %c0_22] : memref<6x16xf32, #tpu.memory_space<vmem>>, vector<6x16xf32>
    tpu.vector_store %arg11[%c0_21, %c0_22], %15 {strides = array<i32>} : memref<6x16xf32, #tpu.memory_space<vmem>>, vector<6x16xf32>,
    %c0_i32 = arith.constant 0 : i32
    %c6_i32 = arith.constant 6 : i32
    %17 = arith.addi %c0_i32, %c6_i32 : i32
    %c1_i32 = arith.constant 1 : i32
    scf.for %arg12 = %c0_i32 to %17 step %c1_i32  : i32 {
      %19 = arith.index_cast %arg12 : i32 to index
      %c0_28 = arith.constant 0 : index
      %c0_29 = arith.constant 0 : index
      %20 = vector.load %arg9[%19, %c0_28, %c0_29] : memref<6x6x96xf32, #tpu.memory_space<vmem>>, vector<1x6x96xf32>
      %21 = vector.shape_cast %20 : vector<1x6x96xf32> to vector<6x96xf32>
      %22 = vector.extract_strided_slice %21 {offsets = [0, 0], sizes = [6, 48], strides = [1, 1]} : vector<6x96xf32> to vector<6x48xf32>
      %c0_30 = arith.constant 0 : index
      %c0_31 = arith.constant 0 : index
      %23 = vector.load %arg10[%c0_30, %c0_31] : memref<6x16xf32, #tpu.memory_space<vmem>>, vector<6x16xf32>
      %cst_32 = arith.constant dense<0.000000e+00> : vector<6x48xf32>
      %24 = tpu.matmul %23, %9, %cst_32 {dimension_numbers = #tpu.dot_dimension_numbers<[1], [0], [0], [1], [0, 0, 1, 1], [], []>} : vector<6x16xf32>, vector<16x48xf32>, vector<6x48xf32> -> vector<6x48xf32>
      %25 = vector.broadcast %10 : vector<1x48xf32> to vector<6x48xf32>
      %26 = arith.addf %24, %25 : vector<6x48xf32>
      %27 = vector.extract_strided_slice %22 {offsets = [0, 0], sizes = [6, 16], strides = [1, 1]} : vector<6x48xf32> to vector<6x16xf32>
      %28 = vector.extract_strided_slice %26 {offsets = [0, 0], sizes = [6, 16], strides = [1, 1]} : vector<6x48xf32> to vector<6x16xf32>
      %29 = arith.addf %27, %28 : vector<6x16xf32>
      %30 = arith.negf %29 : vector<6x16xf32>
      %31 = math.exp %30 : vector<6x16xf32>
      %cst_33 = arith.constant 1.000000e+00 : f32
      %32 = vector.broadcast %cst_33 : f32 to vector<6x16xf32>
      %33 = arith.addf %32, %31 : vector<6x16xf32>
      %34 = arith.divf %32, %33 : vector<6x16xf32>
      %35 = vector.extract_strided_slice %22 {offsets = [0, 16], sizes = [6, 16], strides = [1, 1]} : vector<6x48xf32> to vector<6x16xf32>
      %36 = vector.extract_strided_slice %26 {offsets = [0, 16], sizes = [6, 16], strides = [1, 1]} : vector<6x48xf32> to vector<6x16xf32>
      %37 = arith.addf %35, %36 : vector<6x16xf32>
      %38 = arith.negf %37 : vector<6x16xf32>
      %39 = math.exp %38 : vector<6x16xf32>
      %cst_34 = arith.constant 1.000000e+00 : f32
      %40 = vector.broadcast %cst_34 : f32 to vector<6x16xf32>
      %41 = arith.addf %40, %39 : vector<6x16xf32>
      %42 = arith.divf %40, %41 : vector<6x16xf32>
      %43 = vector.extract_strided_slice %22 {offsets = [0, 32], sizes = [6, 16], strides = [1, 1]} : vector<6x48xf32> to vector<6x16xf32>
      %44 = vector.extract_strided_slice %26 {offsets = [0, 32], sizes = [6, 16], strides = [1, 1]} : vector<6x48xf32> to vector<6x16xf32>
      %45 = arith.mulf %34, %44 : vector<6x16xf32>
      %46 = arith.addf %43, %45 : vector<6x16xf32>
      %47 = math.tanh %46 : vector<6x16xf32>
      %cst_35 = arith.constant 1.000000e+00 : f32
      %48 = vector.broadcast %cst_35 : f32 to vector<6x16xf32>
      %49 = arith.subf %48, %42 : vector<6x16xf32>
      %50 = arith.mulf %49, %47 : vector<6x16xf32>
      %51 = arith.mulf %42, %23 : vector<6x16xf32>
      %52 = arith.addf %50, %51 : vector<6x16xf32>
      %c0_36 = arith.constant 0 : index
      %c0_37 = arith.constant 0 : index
      %53 = vector.load %arg10[%c0_36, %c0_37] : memref<6x16xf32, #tpu.memory_space<vmem>>, vector<6x16xf32>
      tpu.vector_store %arg10[%c0_36, %c0_37], %52 {strides = array<i32>} : memref<6x16xf32, #tpu.memory_space<vmem>>, vector<6x16xf32>,
      %54 = arith.index_cast %arg12 : i32 to index
      %c0_38 = arith.constant 0 : index
      %c0_39 = arith.constant 0 : index
      %55 = vector.load %arg7[%54, %c0_38, %c0_39] : memref<6x6x16xf32, #tpu.memory_space<vmem>>, vector<1x6x16xf32>
      %56 = vector.shape_cast %55 : vector<1x6x16xf32> to vector<6x16xf32>
      %57 = vector.shape_cast %52 : vector<6x16xf32> to vector<1x6x16xf32>
      tpu.vector_store %arg7[%54, %c0_38, %c0_39], %57 {strides = array<i32>} : memref<6x6x16xf32, #tpu.memory_space<vmem>>, vector<1x6x16xf32>,
    }
    %c6_i32_23 = arith.constant 6 : i32
    %c0_i32_24 = arith.constant 0 : i32
    %c6_i32_25 = arith.constant 6 : i32
    %18 = arith.addi %c0_i32_24, %c6_i32_25 : i32
    %c1_i32_26 = arith.constant 1 : i32
    scf.for %arg12 = %c0_i32_24 to %18 step %c1_i32_26  : i32 {
      %c5_i32 = arith.constant 5 : i32
      %19 = arith.subi %c5_i32, %arg12 : i32
      %20 = arith.index_cast %19 : i32 to index
      %c0_28 = arith.constant 0 : index
      %c0_29 = arith.constant 0 : index
      %21 = vector.load %arg9[%20, %c0_28, %c0_29] : memref<6x6x96xf32, #tpu.memory_space<vmem>>, vector<1x6x96xf32>
      %22 = vector.shape_cast %21 : vector<1x6x96xf32> to vector<6x96xf32>
      %23 = vector.extract_strided_slice %22 {offsets = [0, 48], sizes = [6, 48], strides = [1, 1]} : vector<6x96xf32> to vector<6x48xf32>
      %c0_30 = arith.constant 0 : index
      %c0_31 = arith.constant 0 : index
      %24 = vector.load %arg11[%c0_30, %c0_31] : memref<6x16xf32, #tpu.memory_space<vmem>>, vector<6x16xf32>
      %cst_32 = arith.constant dense<0.000000e+00> : vector<6x48xf32>
      %25 = tpu.matmul %24, %11, %cst_32 {dimension_numbers = #tpu.dot_dimension_numbers<[1], [0], [0], [1], [0, 0, 1, 1], [], []>} : vector<6x16xf32>, vector<16x48xf32>, vector<6x48xf32> -> vector<6x48xf32>
      %26 = vector.broadcast %12 : vector<1x48xf32> to vector<6x48xf32>
      %27 = arith.addf %25, %26 : vector<6x48xf32>
      %28 = vector.extract_strided_slice %23 {offsets = [0, 0], sizes = [6, 16], strides = [1, 1]} : vector<6x48xf32> to vector<6x16xf32>
      %29 = vector.extract_strided_slice %27 {offsets = [0, 0], sizes = [6, 16], strides = [1, 1]} : vector<6x48xf32> to vector<6x16xf32>
      %30 = arith.addf %28, %29 : vector<6x16xf32>
      %31 = arith.negf %30 : vector<6x16xf32>
      %32 = math.exp %31 : vector<6x16xf32>
      %cst_33 = arith.constant 1.000000e+00 : f32
      %33 = vector.broadcast %cst_33 : f32 to vector<6x16xf32>
      %34 = arith.addf %33, %32 : vector<6x16xf32>
      %35 = arith.divf %33, %34 : vector<6x16xf32>
      %36 = vector.extract_strided_slice %23 {offsets = [0, 16], sizes = [6, 16], strides = [1, 1]} : vector<6x48xf32> to vector<6x16xf32>
      %37 = vector.extract_strided_slice %27 {offsets = [0, 16], sizes = [6, 16], strides = [1, 1]} : vector<6x48xf32> to vector<6x16xf32>
      %38 = arith.addf %36, %37 : vector<6x16xf32>
      %39 = arith.negf %38 : vector<6x16xf32>
      %40 = math.exp %39 : vector<6x16xf32>
      %cst_34 = arith.constant 1.000000e+00 : f32
      %41 = vector.broadcast %cst_34 : f32 to vector<6x16xf32>
      %42 = arith.addf %41, %40 : vector<6x16xf32>
      %43 = arith.divf %41, %42 : vector<6x16xf32>
      %44 = vector.extract_strided_slice %23 {offsets = [0, 32], sizes = [6, 16], strides = [1, 1]} : vector<6x48xf32> to vector<6x16xf32>
      %45 = vector.extract_strided_slice %27 {offsets = [0, 32], sizes = [6, 16], strides = [1, 1]} : vector<6x48xf32> to vector<6x16xf32>
      %46 = arith.mulf %35, %45 : vector<6x16xf32>
      %47 = arith.addf %44, %46 : vector<6x16xf32>
      %48 = math.tanh %47 : vector<6x16xf32>
      %cst_35 = arith.constant 1.000000e+00 : f32
      %49 = vector.broadcast %cst_35 : f32 to vector<6x16xf32>
      %50 = arith.subf %49, %43 : vector<6x16xf32>
      %51 = arith.mulf %50, %48 : vector<6x16xf32>
      %52 = arith.mulf %43, %24 : vector<6x16xf32>
      %53 = arith.addf %51, %52 : vector<6x16xf32>
      %c0_36 = arith.constant 0 : index
      %c0_37 = arith.constant 0 : index
      %54 = vector.load %arg11[%c0_36, %c0_37] : memref<6x16xf32, #tpu.memory_space<vmem>>, vector<6x16xf32>
      tpu.vector_store %arg11[%c0_36, %c0_37], %53 {strides = array<i32>} : memref<6x16xf32, #tpu.memory_space<vmem>>, vector<6x16xf32>,
      %55 = arith.index_cast %19 : i32 to index
      %c0_38 = arith.constant 0 : index
      %c0_39 = arith.constant 0 : index
      %56 = vector.load %arg8[%55, %c0_38, %c0_39] : memref<6x6x16xf32, #tpu.memory_space<vmem>>, vector<1x6x16xf32>
      %57 = vector.shape_cast %56 : vector<1x6x16xf32> to vector<6x16xf32>
      %58 = vector.shape_cast %53 : vector<6x16xf32> to vector<1x6x16xf32>
      tpu.vector_store %arg8[%55, %c0_38, %c0_39], %58 {strides = array<i32>} : memref<6x6x16xf32, #tpu.memory_space<vmem>>, vector<1x6x16xf32>,
    }
    %c6_i32_27 = arith.constant 6 : i32
    return
  }
}

</mosaic_0001>

<bundles_post_ra>
// kernel: mwan_forward.18
= control target key start
LH: loop header
LB: loop body
LE: loop exit
PB: predicated region body
PF: predicated region fallthrough
CT: control target
= control target key end

     0   :  { %vm17_vm0 = vcmask 261120   ;;  %s231_s1 = inlined_call_operand.vmem [shape: f32[32,64], index: 1, kind: input, shape index: {}]   ;;  %s232_s0 = inlined_call_operand.vmem [shape: f32[16,32], index: 0, kind: input, shape index: {}]   ;;  %s233_s2 = inlined_call_operand.vmem [shape: f32[16,32], index: 2, kind: output, shape index: {}]  }
   0x1   :  { %v16_v0 = vld [vmem:[%s231_s1 + $0x18] sm:$0xff]  ;;  %v15_v1 = vld [vmem:[%s231_s1 + $0x10] sm:$0xff]  ;;  %v11_v2 = vld [vmem:[%s232_s0] sm:$0xff] }
   0x2   :  { %165 = vmatprep.subr.mxu0 %v16_v0  ;;  %v14_v3 = vld [vmem:[%s231_s1 + $0x8] sm:$0xff]  ;;  %173 = vmatprep.mubr.msk.f32.mxu0 %vm17_vm0, %v11_v2  ;;  %v13_v4 = vld [vmem:[%s231_s1] sm:$0xff]  ;;  %s186_s1 = smov 32  }
   0x3   :  { %166 = vmatpush3.msra.mxu0 %v16_v0  ;;  %v12_v5 = vld [vmem:[%s232_s0 + $0x8] sm:$0xff]  ;;  %s187_s0 = smov 96  }
   0x4   :  { %167 = vmatprep.subr.mxu0 %v15_v1 }
   0x5   :  { %168 = vmatpush3.msra.mxu0 %v15_v1 }
   0x6   :  { %169 = vmatprep.subr.mxu0 %v14_v3 }
   0x7   :  { %170 = vmatpush3.msra.mxu0 %v14_v3 }
   0x8   :  { %171 = vmatprep.subr.mxu0 %v13_v4 }
   0x9   :  { %172 = vmatpush3.msra.mxu0 %v13_v4 }
   0xa   :  { %174 = vmatmul.mubr.msk.f32.vlgmr.msra.gmra.mxu0 %vm17_vm0, %v12_v5 }
  0xca   :  { %v175_v6 = vpop.f32.mrf.mxu0 }
  0xcb   :  { %v158_v7 = vmul.f32 -1.442695, %v175_v6  ;;  %v114_v22 = vmul.f32 0.01, %v175_v6  ;;  %vm112_vm2 = vcmp.ge.f32.partialorder %v175_v6, 0.0 }
  0xcc   :  { %v90_v8 = vpop.f32.mrf.mxu0 }
  0xcd   :  { %178 = vpow2.f32 %v158_v7  ;;  %v157_v9 = vmul.f32 -1.442695, %v90_v8  ;;  %v113_v20 = vmul.f32 0.01, %v90_v8  ;;  %vm111_vm1 = vcmp.ge.f32.partialorder %v90_v8, 0.0 }
  0xce   :  { %v116_v28 = vsel %vm112_vm2, %v175_v6, %v114_v22 }
  0xcf   :  { %180 = vpow2.f32 %v157_v9  ;;  %v115_v23 = vsel %vm111_vm1, %v90_v8, %v113_v20 }
  0xda   :  { %v179_v10 = vpop.eup %178 }
  0xdb   :  { %v106_v11 = vadd.f32 1.0, %v179_v10 }
  0xdc   :  { %v181_v12 = vpop.eup %180 }
  0xdd   :  { %v105_v13 = vadd.f32 1.0, %v181_v12  ;;  %182 = vrcp.f32 %v106_v11 }
  0xdf   :  { %184 = vrcp.f32 %v105_v13 }
  0xea   :  { %v183_v14 = vpop.eup %182 }
  0xeb   :  { %v128_v18 = vsub.f32 1.0, %v183_v14 }
  0xec   :  { %v185_v15 = vpop.eup %184 }
  0xed   :  { %119 = vrot.lane.b32.xlu0 %v185_v15, %s186_s1  ;;  %v127_v16 = vsub.f32 1.0, %v185_v15  ;;  %v130_v19 = vmul.f32 %v128_v18, %v12_v5 }
  0xef   :  { %v129_v17 = vmul.f32 %v127_v16, %v11_v2 }
  0xf1   :  { %121 = vrot.lane.b32.xlu0 %v183_v14, %s186_s1  ;;  %133 = vrot.lane.b32.xlu1 %v129_v17, %s186_s1 }
  0xf5   :  { %135 = vrot.lane.b32.xlu1 %v130_v19, %s186_s1 }
 0x15f   :  { %v120_v21 = vpop.permute.xlu0 %119 }
 0x160   :  { %v125_v24 = vmul.f32 %v120_v21, %v115_v23 }
 0x163   :  { %v122_v25 = vpop.permute.xlu0 %121  ;;  %v134_v26 = vpop.permute.xlu1 %133 }
 0x164   :  { %v139_v27 = vadd.f32 %v134_v26, %v125_v24  ;;  %v126_v29 = vmul.f32 %v122_v25, %v116_v28 }
 0x166   :  { %143 = vrot.lane.b32.xlu0 %v139_v27, %s187_s0 }
 0x167   :  { %v136_v30 = vpop.permute.xlu1 %135 }
 0x168   :  { %v140_v31 = vadd.f32 %v136_v30, %v126_v29 }
 0x16a   :  { %145 = vrot.lane.b32.xlu1 %v140_v31, %s187_s0 }
 0x1d8   :  { %v144_v32 = vpop.permute.xlu0 %143 }
 0x1d9   :  { %149 = vst.msk [vmem:[%s233_s2] sm:$0xff] %vm17_vm0, %v144_v32 }
 0x1dc   :  { %v146_v33 = vpop.permute.xlu1 %145 }
 0x1dd   :  { %150 = vst.msk [vmem:[%s233_s2 + $0x8] sm:$0xff] %vm17_vm0, %v146_v33 }

// kernel: mwan_forward.19
= control target key start
LH: loop header
LB: loop body
LE: loop exit
PB: predicated region body
PF: predicated region fallthrough
CT: control target
= control target key end

     0   :  { %v245_v0 = vmov 0.0   ;;  %vm18_vm0 = vcmask 261120   ;;  %vm246_vm1 = vmmov 0   ;;  %s248_s22 = smov 96   ;;  %vm185_vm5 = vcmask 257024   ;;  %s299_s1 = inlined_call_operand.vmem [shape: f32[32,64], index: 1, kind: input, shape index: {}]   ;;  %s300_s0 = inlined_call_operand.vmem [shape: f32[20,32], index: 0, kind: input, shape index: {}]   ;;  %s301_s2 = inlined_call_operand.vmem [shape: f32[20,32], index: 2, kind: output, shape index: {}]  }
   0x1   :  { %204 = vmatprep.subr.mxu0 %v245_v0  ;;  %221 = vmatprep.subr.mxu1 %v245_v0  ;;  %v17_v1 = vld [vmem:[%s299_s1 + $0x18] sm:$0xff]  ;;  %v16_v2 = vld [vmem:[%s299_s1 + $0x10] sm:$0xff]  ;;  %v15_v3 = vld [vmem:[%s299_s1 + $0x8] sm:$0xff] }
   0x2   :  { %205 = vmatpush3.msra.mxu0 %v17_v1  ;;  %225 = vmatpush3.msra.mxu1 %v17_v1  ;;  %v14_v4 = vld [vmem:[%s299_s1] sm:$0xff]  ;;  %v12_v6 = vld [vmem:[%s300_s0 + $0x8] sm:$0xff]  ;;  %v13_v7 = vld [vmem:[%s300_s0 + $0x10] sm:$0xf] }
   0x3   :  { %206 = vmatprep.subr.mxu0 %v245_v0  ;;  %222 = vmatprep.subr.mxu1 %v245_v0  ;;  %v11_v5 = vld [vmem:[%s300_s0] sm:$0xff]  ;;  %s247_s0 = smov 32  }
   0x4   :  { %207 = vmatpush3.msra.mxu0 %v16_v2  ;;  %226 = vmatpush3.msra.mxu1 %v16_v2 }
   0x5   :  { %208 = vmatprep.subr.mxu0 %v245_v0  ;;  %223 = vmatprep.subr.mxu1 %v245_v0 }
   0x6   :  { %209 = vmatpush3.msra.mxu0 %v15_v3  ;;  %227 = vmatpush3.msra.mxu1 %v15_v3 }
   0x7   :  { %210 = vmatprep.subr.mxu0 %v245_v0  ;;  %224 = vmatprep.subr.mxu1 %v245_v0 }
   0x8   :  { %211 = vmatpush3.msra.mxu0 %v14_v4  ;;  %228 = vmatpush3.msra.mxu1 %v14_v4 }
   0x9   :  { %212 = vmatprep.mubr.msk.f32.mxu0 %vm246_vm1, %v245_v0  ;;  %215 = vmatprep.mubr.msk.f32.mxu1 %vm246_vm1, %v245_v0 }
   0xa   :  { %213 = vmatmul.mubr.msk.f32.vlgmr.msra.gmra.mxu0 %vm18_vm0, %v11_v5  ;;  %216 = vmatmul.mubr.msk.f32.vlgmr.msra.gmra.mxu1 %vm18_vm0, %v12_v6 }
   0xb   :  { %218 = vmatprep.mubr.msk.f32.mxu1 %vm246_vm1, %v245_v0 }
   0xe   :  { %219 = vmatmul.mubr.msk.f32.gmra.mxu1 %vm18_vm0, %v13_v7 }
  0xca   :  { %v94_v8 = vpop.f32.mrf.mxu0  ;;  %v99_v9 = vpop.f32.mrf.mxu1 }
  0xcb   :  { %v194_v10 = vmul.f32 -1.442695, %v94_v8  ;;  %v195_v11 = vmul.f32 -1.442695, %v99_v9  ;;  %v129_v33 = vmul.f32 0.01, %v94_v8 }
  0xcc   :  { %v217_v12 = vpop.f32.mrf.mxu1  ;;  %v214_v13 = vpop.f32.mrf.mxu0  ;;  %v130_v34 = vmul.f32 0.01, %v99_v9  ;;  %vm126_vm2 = vcmp.ge.f32.partialorder %v94_v8, 0.0  ;;  %vm127_vm3 = vcmp.ge.f32.partialorder %v99_v9, 0.0 }
  0xcd   :  { %233 = vpow2.f32 %v194_v10  ;;  %v132_v38 = vsel %vm126_vm2, %v94_v8, %v129_v33 }
  0xce   :  { %235 = vpow2.f32 %v195_v11  ;;  %v104_v14 = vpop.f32.mrf.mxu1  ;;  %v133_v39 = vsel %vm127_vm3, %v99_v9, %v130_v34 }
  0xcf   :  { %v196_v15 = vmul.f32 -1.442695, %v104_v14  ;;  %v131_v37 = vmul.f32 0.01, %v104_v14  ;;  %vm128_vm4 = vcmp.ge.f32.partialorder %v104_v14, 0.0 }
  0xd0   :  { %v220_v16 = vpop.f32.mrf.mxu1 }
  0xd1   :  { %237 = vpow2.f32 %v196_v15  ;;  %v134_v46 = vsel %vm128_vm4, %v104_v14, %v131_v37 }
  0xda   :  { %v234_v17 = vpop.eup %233 }
  0xdb   :  { %v236_v18 = vpop.eup %235  ;;  %v117_v19 = vadd.f32 1.0, %v234_v17 }
  0xdc   :  { %v118_v20 = vadd.f32 1.0, %v236_v18 }
  0xdd   :  { %239 = vrcp.f32 %v117_v19 }
  0xde   :  { %v238_v21 = vpop.eup %237  ;;  %241 = vrcp.f32 %v118_v20 }
  0xdf   :  { %v119_v22 = vadd.f32 1.0, %v238_v21 }
  0xe1   :  { %243 = vrcp.f32 %v119_v22 }
  0xea   :  { %v240_v23 = vpop.eup %239 }
  0xeb   :  { %v242_v24 = vpop.eup %241  ;;  %138 = vrot.lane.b32.xlu0 %v240_v23, %s247_s0  ;;  %v150_v25 = vsub.f32 1.0, %v240_v23 }
  0xec   :  { %v151_v26 = vsub.f32 1.0, %v242_v24 }
  0xed   :  { %v153_v28 = vmul.f32 %v150_v25, %v11_v5 }
  0xee   :  { %v244_v27 = vpop.eup %243  ;;  %v154_v29 = vmul.f32 %v151_v26, %v12_v6 }
  0xef   :  { %142 = vrot.lane.b32.xlu1 %v244_v27, %s247_s0  ;;  %140 = vrot.lane.b32.xlu0 %v242_v24, %s247_s0  ;;  %v152_v30 = vsub.f32 1.0, %v244_v27 }
  0xf1   :  { %v155_v31 = vmul.f32 %v152_v30, %v13_v7 }
  0xf3   :  { %161 = vrot.lane.b32.xlu0 %v154_v29, %s247_s0  ;;  %159 = vrot.lane.b32.xlu1 %v153_v28, %s247_s0 }
  0xf7   :  { %163 = vrot.lane.b32.xlu1 %v155_v31, %s247_s0 }
 0x15d   :  { %v139_v32 = vpop.permute.xlu0 %138 }
 0x15e   :  { %v147_v40 = vmul.f32 %v139_v32, %v132_v38 }
 0x161   :  { %v143_v35 = vpop.permute.xlu1 %142  ;;  %v141_v36 = vpop.permute.xlu0 %140 }
 0x162   :  { %v148_v41 = vmul.f32 %v141_v36, %v133_v39  ;;  %v149_v47 = vmul.f32 %v143_v35, %v134_v46 }
 0x165   :  { %v162_v42 = vpop.permute.xlu0 %161  ;;  %v160_v43 = vpop.permute.xlu1 %159 }
 0x166   :  { %v169_v44 = vadd.f32 %v162_v42, %v148_v41  ;;  %v168_v45 = vadd.f32 %v160_v43, %v147_v40 }
 0x168   :  { %176 = vrot.lane.b32.xlu1 %v169_v44, %s248_s22  ;;  %174 = vrot.lane.b32.xlu0 %v168_v45, %s248_s22 }
 0x169   :  { %v164_v48 = vpop.permute.xlu1 %163 }
 0x16a   :  { %v170_v49 = vadd.f32 %v164_v48, %v149_v47 }
 0x16c   :  { %178 = vrot.lane.b32.xlu0 %v170_v49, %s248_s22 }
 0x1da   :  { %v175_v50 = vpop.permute.xlu0 %174  ;;  %v177_v51 = vpop.permute.xlu1 %176 }
 0x1db   :  { %183 = vst.msk [vmem:[%s301_s2] sm:$0xff] %vm18_vm0, %v175_v50  ;;  %184 = vst.msk [vmem:[%s301_s2 + $0x8] sm:$0xff] %vm18_vm0, %v177_v51 }
 0x1de   :  { %v179_v52 = vpop.permute.xlu0 %178 }
 0x1df   :  { %186 = vst.msk [vmem:[%s301_s2 + $0x10] sm:$0xf] %vm185_vm5, %v179_v52 }

// kernel: mwan_forward.22
= control target key start
LH: loop header
LB: loop body
LE: loop exit
PB: predicated region body
PF: predicated region fallthrough
CT: control target
= control target key end

     0   :  { %vm284_vm0 = vcmask 254976   ;;  %v48_v0 = vlaneseq  ;;  %v715_v4 = vmov 0.0   ;;  %v716_v5 = vmov 1983009808   ;;  %s973_s1 = inlined_call_operand.vmem [shape: f32[32,192], index: 1, kind: input, shape index: {}]   ;;  %s974_s7 = inlined_call_operand.vmem [shape: f32[10,2,32], index: 7, kind: output, shape index: {0}]   ;;  %s975_s8 = inlined_call_operand.vmem [shape: f32[10,2,32], index: 8, kind: output, shape index: {1}]   ;;  %s976_s0 = inlined_call_operand.vmem [shape: f32[10,2,32], index: 0, kind: input, shape index: {}]   ;;  %s977_s3 = inlined_call_operand.vmem [shape: f32[32,96], index: 3, kind: input, shape index: {}]   ;;  %s978_s4 = inlined_call_operand.vmem [shape: f32[1,96], index: 4, kind: input, shape index: {}]   ;;  %s979_s5 = inlined_call_operand.vmem [shape: f32[32,96], index: 5, kind: input, shape index: {}]   ;;  %s980_s6 = inlined_call_operand.vmem [shape: f32[1,96], index: 6, kind: input, shape index: {}]   ;;  %s981_s2 = inlined_call_operand.vmem [shape: f32[1,192], index: 2, kind: input, shape index: {}]  }
   0x1   :  { %v45_v1 = vld [vmem:[%s973_s1 + $0x38] sm:$0xff]  ;;  %v44_v2 = vld [vmem:[%s973_s1 + $0x30] sm:$0xff]  ;;  %v43_v3 = vld [vmem:[%s973_s1 + $0x28] sm:$0xff]  ;;  %187 = vmatprep.mubr.f32.mxu1 %v715_v4  ;;  %285 = vst.msk [vmem:[#allocation3] sm:$0x3] %vm284_vm0, %v715_v4  ;;  %v71_v6 = vunpack.c.l.s4 %v716_v5  ;;  %181 = vmatprep.mubr.f32.mxu0 %v715_v4  ;;  %vm110_vm1 = vcmask 261120  }
   0x2   :  { %286 = vst.msk [vmem:[#allocation4] sm:$0x3] %vm284_vm0, %v715_v4  ;;  %648 = vmatprep.subr.mxu1 %v45_v1  ;;  %141 = vmatprep.subr.mxu0 %v45_v1  ;;  %v42_v7 = vld [vmem:[%s973_s1 + $0x20] sm:$0xff]  ;;  %v41_v8 = vld [vmem:[%s973_s1 + $0x18] sm:$0xff]  ;;  %v788_v9 = vshrl.u32 %v48_v0, 7  ;;  %v40_v10 = vld [vmem:[%s973_s1 + $0x10] sm:$0xff] }
   0x3   :  { %652 = vmatpush1.msra.mxu1 %v44_v2  ;;  %142 = vmatpush1.msra.mxu0 %v44_v2  ;;  %v39_v11 = vld [vmem:[%s973_s1 + $0x8] sm:$0xff]  ;;  %v72_v13 = vunpack.c.0.s8 %v71_v6  ;;  %v38_v14 = vld [vmem:[%s973_s1] sm:$0xff]  ;;  %v36_v26 = vld [vmem:[%s976_s0 + $0x10] sm:$0x3]  ;;  %vm261_vm2 = vcmask 1041408   ;;  %vm262_vm3 = vcmask 519170  }
   0x4   :  { %v32_v12 = vld [vmem:[%s976_s0 + $0x8] sm:$0x3]  ;;  %649 = vmatprep.subr.mxu1 %v43_v3  ;;  %143 = vmatprep.subr.mxu0 %v43_v3  ;;  %v33_v15 = vld [vmem:[%s976_s0 + $0xa] sm:$0x3]  ;;  %v34_v16 = vld [vmem:[%s976_s0 + $0xc] sm:$0x3] }
   0x5   :  { %v35_v17 = vld [vmem:[%s976_s0 + $0xe] sm:$0x3]  ;;  %653 = vmatpush1.msra.mxu1 %v42_v7  ;;  %144 = vmatpush1.msra.mxu0 %v42_v7  ;;  %v812_v18 = vsub.s32 %v72_v13, %v788_v9  ;;  %v85_v19 = vcombine.low %v32_v12, %v33_v15  ;;  %v28_v21 = vld [vmem:[%s976_s0] sm:$0x3]  ;;  %v29_v22 = vld [vmem:[%s976_s0 + $0x2] sm:$0x3] }
   0x6   :  { %v86_v20 = vcombine.low %v34_v16, %v35_v17  ;;  %v30_v23 = vld [vmem:[%s976_s0 + $0x4] sm:$0x3]  ;;  %650 = vmatprep.subr.mxu1 %v41_v8  ;;  %145 = vmatprep.subr.mxu0 %v41_v8  ;;  %v31_v24 = vld [vmem:[%s976_s0 + $0x6] sm:$0x3]  ;;  %v68_v25 = vcombine.low %v28_v21, %v29_v22  ;;  %v37_v27 = vld [vmem:[%s976_s0 + $0x12] sm:$0x3] }
   0x7   :  { %654 = vmatpush1.msra.mxu1 %v40_v10  ;;  %146 = vmatpush1.msra.mxu0 %v40_v10  ;;  %v93_v28 = vrot.slane %v85_v19, %v812_v18  ;;  %v69_v30 = vcombine.low %v30_v23, %v31_v24  ;;  %v102_v32 = vcombine.low %v36_v26, %v37_v27  ;;  %v843_v37 = vld [vmem:[%s977_s3] sm:$0xff]  ;;  %v848_v38 = vld [vmem:[%s977_s3 + $0x8] sm:$0xff]  ;;  %v853_v39 = vld [vmem:[%s977_s3 + $0x10] sm:$0xff]  ;;  %v50_v47 = vsub.s32 0, %v788_v9 }
   0x8   :  { %v100_v29 = vrot.slane %v86_v20, %v812_v18  ;;  %651 = vmatprep.subr.mxu1 %v39_v11  ;;  %147 = vmatprep.subr.mxu0 %v39_v11  ;;  %v76_v31 = vrot.slane %v68_v25, %v812_v18  ;;  %v858_v40 = vld [vmem:[%s977_s3 + $0x18] sm:$0xff]  ;;  %v863_v41 = vld [vmem:[%s978_s4] ss:$0 sm:$0xff]  ;;  %v873_v43 = vld [vmem:[%s979_s5 + $0x8] sm:$0xff]  ;;  %v54_v48 = vsub.s32 1, %v788_v9 }
   0x9   :  { %655 = vmatpush1.msra.mxu1 %v38_v14  ;;  %148 = vmatpush1.msra.mxu0 %v38_v14  ;;  %v83_v34 = vrot.slane %v69_v30, %v812_v18  ;;  %v109_v36 = vrot.slane %v102_v32, %v812_v18  ;;  %v868_v42 = vld [vmem:[%s979_s5] sm:$0xff]  ;;  %v878_v44 = vld [vmem:[%s979_s5 + $0x10] sm:$0xff]  ;;  %v883_v45 = vld [vmem:[%s979_s5 + $0x18] sm:$0xff] }
   0xa   :  { %v101_v33 = vcombine.low %v93_v28, %v100_v29  ;;  %v888_v46 = vld [vmem:[%s980_s6] ss:$0 sm:$0xff]  ;;  %vm895_vm4 = vmor %vm262_vm3, %vm261_vm2 }
   0xb   :  { %v84_v35 = vcombine.low %v76_v31, %v83_v34  ;;  %v46_v49 = vld [vmem:[%s981_s2] sm:$0x3]  ;;  %s924_s2 = smov 0  }
   0xc   :  { %601 = vmatmul.mubr.msk.f32.vlgmr.msra.gmra.mxu1 %vm110_vm1, %v101_v33  ;;  %v51_v50 = vrot.slane %v46_v49, %v50_v47  ;;  %v55_v51 = vrot.slane %v46_v49, %v54_v48 }
   0xd   :  { %193 = vmatprep.mubr.f32.mxu1 %v715_v4  ;;  %600 = vmatmul.mubr.msk.f32.vlgmr.msra.gmra.mxu0 %vm110_vm1, %v84_v35 }
  0x10   :  { %602 = vmatmul.mubr.msk.f32.gmra.mxu1 %vm110_vm1, %v109_v36 }
  0xcc   :  { %v189_v52 = vpop.f32.mrf.mxu1 }
  0xcd   :  { %v183_v53 = vpop.f32.mrf.mxu0  ;;  %v190_v55 = vadd.f32 %v189_v52, %v51_v50 }
  0xce   :  { %v191_v54 = vpop.f32.mrf.mxu1  ;;  %v184_v56 = vadd.f32 %v183_v53, %v51_v50 }
  0xcf   :  { %v192_v57 = vadd.f32 %v191_v54, %v55_v51  ;;  %v185_v58 = vpop.f32.mrf.mxu0 }
  0xd0   :  { %v195_v59 = vpop.f32.mrf.mxu1  ;;  %v186_v62 = vadd.f32 %v185_v58, %v55_v51 }
  0xd1   :  { %v224_v60 = vcombine.low %v190_v55, %v192_v57  ;;  %v225_v61 = vcombine.high %v190_v55, %v192_v57  ;;  %v196_v5 = vadd.f32 %v195_v59, %v51_v50 }
  0xd2   :  { %v197_v0 = vpop.f32.mrf.mxu1  ;;  %v206_v3 = vcombine.low %v184_v56, %v186_v62  ;;  %v207_v4 = vcombine.high %v184_v56, %v186_v62 }
  0xd3   :  { %v232_v1 = vrot.slane %v224_v60, %v812_v18  ;;  %v239_v2 = vrot.slane %v225_v61, %v812_v18  ;;  %v198_v6 = vadd.f32 %v197_v0, %v55_v51 }
  0xd4   :  { %v214_v9 = vrot.slane %v206_v3, %v812_v18  ;;  %v221_v10 = vrot.slane %v207_v4, %v812_v18 }
  0xd5   :  { %v240_v7 = vcombine.high %v232_v1, %v232_v1  ;;  %v241_v8 = vcombine.high %v239_v2, %v239_v2  ;;  %268 = vst.msk [vmem:[#allocation2 + $0x10] sm:$0xf] %vm895_vm4, %v232_v1  ;;  %270 = vst.msk [vmem:[#allocation2 + $0x18] sm:$0xf] %vm895_vm4, %v239_v2  ;;  %v242_v11 = vcombine.low %v196_v5, %v198_v6 }
  0xd6   :  { %v222_v12 = vcombine.high %v214_v9, %v214_v9  ;;  %v223_v13 = vcombine.high %v221_v10, %v221_v10  ;;  %264 = vst.msk [vmem:[#allocation2] sm:$0xf] %vm895_vm4, %v214_v9  ;;  %266 = vst.msk [vmem:[#allocation2 + $0x8] sm:$0xf] %vm895_vm4, %v221_v10 }
  0xd7   :  { %269 = vst.msk [vmem:[#allocation2 + $0x14] sm:$0xf] %vm895_vm4, %v240_v7  ;;  %271 = vst.msk [vmem:[#allocation2 + $0x1c] sm:$0xf] %vm895_vm4, %v241_v8  ;;  %v249_v14 = vrot.slane %v242_v11, %v812_v18 }
  0xd8   :  { %265 = vst.msk [vmem:[#allocation2 + $0x4] sm:$0xf] %vm895_vm4, %v222_v12  ;;  %267 = vst.msk [vmem:[#allocation2 + $0xc] sm:$0xf] %vm895_vm4, %v223_v13 }
  0xd9   :  { %v250_v15 = vcombine.high %v249_v14, %v249_v14  ;;  %272 = vst.msk [vmem:[#allocation2 + $0x20] sm:$0xf] %vm895_vm4, %v249_v14 }
  0xdb   :  { %273 = vst.msk [vmem:[#allocation2 + $0x24] sm:$0xf] %vm895_vm4, %v250_v15 }
  0xdc LB: > { %v717_v16 = vmov 0.0   ;;  %vm718_vm5 = vmmov 0   ;;  %v297_v17 = vld [vmem:[#allocation3] sm:$0x3]  ;;  %s719_s5 = smov 64   ;;  %s614_s6 = sshll.u32 %s709_s2, 2  ;;  %s709_s2 = sphi %s924_s2, %s292_s2  }
  0xdd   : > { %626 = vmatprep.subr.mxu0 %v717_v16  ;;  %634 = vmatprep.mubr.msk.f32.mxu0 %vm718_vm5, %v717_v16  ;;  %s295_s14 = scalar_lea.vmem [#allocation2], %s614_s6  ;;  %s720_s15 = smov 96   ;;  %v414_v34 = vrot.slane %v297_v17, %v812_v18 }
  0xde   : > { %627 = vmatpush3.msra.mxu0 %v858_v40  ;;  %s721_s16 = smov 32   ;;  %s603_s17 = sshll.u32 %s709_s2, 1 }
  0xdf   : > { %628 = vmatprep.subr.mxu0 %v717_v16  ;;  %s432_s19 = scalar_lea.vmem %s974_s7, %s603_s17  ;;  %s292_s2 = sadd.s32 1, %s709_s2  }
  0xe0   : > { %629 = vmatpush3.msra.mxu0 %v853_v39  ;;  %p289_p0 = scmp.ge.s32.totalorder %s292_s2, 10  }
  0xe1   : > { %630 = vmatprep.subr.mxu0 %v717_v16  ;;  %s948_s20 = smov (%p289_p0), 0  }
  0xe2   : > { %631 = vmatpush3.msra.mxu0 %v848_v38  ;;  %v296_v23 = vld [vmem:[%s295_s14] sm:$0xf] }
  0xe3   : > { %632 = vmatprep.subr.mxu0 %v717_v16 }
  0xe4   : > { %633 = vmatpush3.msra.mxu0 %v843_v37 }
  0xe5   : > { %635 = vmatmul.mubr.msk.f32.vlgmr.msra.gmra.mxu0 %vm110_vm1, %v297_v17 }
 0x1a5   : > { %v373_v19 = vpop.f32.mrf.mxu0 }
 0x1a6   : > { %v374_v20 = vadd.f32 %v863_v41, %v373_v19 }
 0x1a7   : > { %v636_v21 = vpop.f32.mrf.mxu0 }
 0x1a8   : > { %v391_v22 = vrot.slane %v374_v20, %v812_v18  ;;  %v377_v24 = vadd.f32 %v374_v20, %v296_v23 }
 0x1aa   : > { %392 = vrot.lane.b32.xlu0 %v391_v22, %s719_s5  ;;  %v607_v25 = vmul.f32 -1.442695, %v377_v24 }
 0x1ac   : > { %683 = vpow2.f32 %v607_v25 }
 0x1b9   : > { %v684_v26 = vpop.eup %683 }
 0x1ba   : > { %v381_v27 = vadd.f32 1.0, %v684_v26 }
 0x1bc   : > { %685 = vrcp.f32 %v381_v27 }
 0x1c9   : > { %v686_v28 = vpop.eup %685 }
 0x1ca   : > { %v402_v36 = vsub.f32 1.0, %v686_v28 }
 0x21c   : > { %v393_v29 = vpop.permute.xlu0 %392 }
 0x21d   : > { %v395_v30 = vmul.f32 %v686_v28, %v393_v29 }
 0x21f   : > { %397 = vrot.lane.b32.xlu0 %v395_v30, %s719_s5 }
 0x291   : > { %v398_v31 = vpop.permute.xlu0 %397 }
 0x292   : > { %v400_v32 = vadd.f32 %v398_v31, %v296_v23 }
 0x294   : > { %687 = vtanh.f32 %v400_v32 }
 0x2a1   : > { %v688_v33 = vpop.eup %687 }
 0x2a2   : > { %404 = vrot.lane.b32.xlu1 %v688_v33, %s720_s15 }
 0x2a6   : > { %415 = vrot.lane.b32.xlu1 %v414_v34, %s721_s16 }
 0x314   : > { %v405_v35 = vpop.permute.xlu1 %404 }
 0x315   : > { %v407_v48 = vmul.f32 %v405_v35, %v402_v36 }
 0x318   : > { %v416_v47 = vpop.permute.xlu1 %415 }
 0x319   : > { %v418_v49 = vmul.f32 %v686_v28, %v416_v47 }
 0x31b   : > { %v419_v50 = vadd.f32 %v418_v49, %v407_v48 }
 0x31d   : > { %v427_v51 = vrot.slane %v419_v50, %v812_v18 }
 0x31f   : > { %428 = vrot.lane.b32.xlu0 %v427_v51, %s720_s15 }
 0x38e   :  { %291 = sbr.rel (!%p289_p0) target bundleno = 220 (0xdc), region = 74 }
 0x391   : > { %v429_v52 = vpop.permute.xlu0 %428 }
 0x392   : > { %431 = vst.msk [vmem:[#allocation3] sm:$0x3] %vm284_vm0, %v429_v52  ;;  %433 = vst.msk [vmem:[%s432_s19] sm:$0x3] %vm284_vm0, %v429_v52 }
 0x393 LB: > { %v722_v53 = vmov 0.0   ;;  %vm723_vm6 = vmmov 0   ;;  %v445_v37 = vld [vmem:[#allocation4] sm:$0x3]  ;;  %s440_s7 = ssub.s32 9, %s713_s20  ;;  %s724_s23 = smov 96   ;;  %s713_s20 = sphi %s948_s20, %s439_s20  }
 0x394   : > { %637 = vmatprep.subr.mxu0 %v722_v53  ;;  %645 = vmatprep.mubr.msk.f32.mxu0 %vm723_vm6, %v722_v53  ;;  %s615_s21 = sshll.u32 %s440_s7, 2  ;;  %s725_s24 = smov 32  }
 0x395   : > { %638 = vmatpush3.msra.mxu0 %v883_v45  ;;  %s443_s22 = scalar_lea.vmem [#allocation2], %s615_s21  ;;  %s608_s25 = sshll.u32 %s440_s7, 1 }
 0x396   : > { %639 = vmatprep.subr.mxu0 %v722_v53  ;;  %v444_v38 = vld [vmem:[%s443_s22] sm:$0xf]  ;;  %s572_s28 = scalar_lea.vmem %s975_s8, %s608_s25  ;;  %s439_s20 = sadd.s32 1, %s713_s20  }
 0x397   : > { %640 = vmatpush3.msra.mxu0 %v878_v44  ;;  %557 = vrot.lane.b32.xlu1 %v444_v38, %s724_s23  ;;  %v544_v63 = vrot.slane %v444_v38, 2  ;;  %p436_p1 = scmp.ge.s32.totalorder %s439_s20, 10  }
 0x398   : > { %641 = vmatprep.subr.mxu0 %v722_v53 }
 0x399   : > { %642 = vmatpush3.msra.mxu0 %v873_v43 }
 0x39a   : > { %643 = vmatprep.subr.mxu0 %v722_v53 }
 0x39b   : > { %644 = vmatpush3.msra.mxu0 %v868_v42 }
 0x39c   : > { %646 = vmatmul.mubr.msk.f32.vlgmr.msra.gmra.mxu0 %vm110_vm1, %v445_v37 }
 0x409   : > { %v558_v3 = vpop.permute.xlu1 %557 }
 0x40a   : > { %v559_v5 = vrot.slane %v558_v3, 2 }
 0x45c   : > { %v521_v39 = vpop.f32.mrf.mxu0 }
 0x45d   : > { %v522_v40 = vadd.f32 %v888_v46, %v521_v39 }
 0x45e   : > { %v647_v41 = vpop.f32.mrf.mxu0 }
 0x45f   : > { %v532_v54 = vrot.slane %v522_v40, %v812_v18 }
 0x461   : > { %533 = vrot.lane.b32.xlu0 %v532_v54, %s724_s23 }
 0x465   : > { %553 = vrot.lane.b32.xlu0 %v532_v54, %s725_s24 }
 0x4d3   : > { %v534_v55 = vpop.permute.xlu0 %533 }
 0x4d4   : > { %v536_v56 = vadd.f32 %v534_v55, %v444_v38  ;;  %v546_v0 = vadd.f32 %v544_v63, %v534_v55 }
 0x4d6   : > { %v612_v57 = vmul.f32 -1.442695, %v536_v56  ;;  %v613_v1 = vmul.f32 -1.442695, %v546_v0 }
 0x4d7   : > { %v554_v61 = vpop.permute.xlu0 %553 }
 0x4d8   : > { %689 = vpow2.f32 %v612_v57 }
 0x4e5   : > { %v690_v58 = vpop.eup %689 }
 0x4e6   : > { %v540_v59 = vadd.f32 1.0, %v690_v58 }
 0x4e8   : > { %691 = vrcp.f32 %v540_v59 }
 0x4e9   : > { %693 = vpow2.f32 %v613_v1 }
 0x4f5   : > { %v692_v60 = vpop.eup %691 }
 0x4f6   : > { %v556_v62 = vmul.f32 %v692_v60, %v554_v61  ;;  %v694_v2 = vpop.eup %693 }
 0x4f7   : > { %v550_v4 = vadd.f32 1.0, %v694_v2 }
 0x4f8   : > { %562 = vrot.lane.b32.xlu1 %v556_v62, %s725_s24 }
 0x4f9   : > { %695 = vrcp.f32 %v550_v4 }
 0x506   : > { %v696_v8 = vpop.eup %695 }
 0x507   : > { %v567_v9 = vsub.f32 1.0, %v696_v8  ;;  %v569_v11 = vmul.f32 %v696_v8, %v445_v37 }
 0x56a   : > { %v563_v6 = vpop.permute.xlu1 %562 }
 0x56b   : > { %v565_v7 = vadd.f32 %v563_v6, %v559_v5 }
 0x56d   : > { %697 = vtanh.f32 %v565_v7 }
 0x57a   : > { %v698_v10 = vpop.eup %697 }
 0x57b   : > { %v568_v12 = vmul.f32 %v698_v10, %v567_v9  ;;  %438 = sbr.rel (!%p436_p1) target bundleno = 915 (0x393), region = 85 }
 0x57d   : > { %v570_v13 = vadd.f32 %v569_v11, %v568_v12 }
 0x57f   : > { %571 = vst.msk [vmem:[#allocation4] sm:$0x3] %vm284_vm0, %v570_v13  ;;  %573 = vst.msk [vmem:[%s572_s28] sm:$0x3] %vm284_vm0, %v570_v13 }

// kernel: mwan_forward.23
= control target key start
LH: loop header
LB: loop body
LE: loop exit
PB: predicated region body
PF: predicated region fallthrough
CT: control target
= control target key end

     0   :  { %vm249_vm0 = vcmask 254976   ;;  %v46_v0 = vlaneseq  ;;  %v679_v4 = vmov 0.0   ;;  %v680_v5 = vmov 1983009808   ;;  %s919_s1 = inlined_call_operand.vmem [shape: f32[32,192], index: 1, kind: input, shape index: {}]   ;;  %s920_s7 = inlined_call_operand.vmem [shape: f32[8,2,32], index: 7, kind: output, shape index: {0}]   ;;  %s921_s8 = inlined_call_operand.vmem [shape: f32[8,2,32], index: 8, kind: output, shape index: {1}]   ;;  %s922_s0 = inlined_call_operand.vmem [shape: f32[8,2,32], index: 0, kind: input, shape index: {}]   ;;  %s923_s3 = inlined_call_operand.vmem [shape: f32[32,96], index: 3, kind: input, shape index: {}]   ;;  %s924_s4 = inlined_call_operand.vmem [shape: f32[1,96], index: 4, kind: input, shape index: {}]   ;;  %s925_s5 = inlined_call_operand.vmem [shape: f32[32,96], index: 5, kind: input, shape index: {}]   ;;  %s926_s6 = inlined_call_operand.vmem [shape: f32[1,96], index: 6, kind: input, shape index: {}]   ;;  %s927_s2 = inlined_call_operand.vmem [shape: f32[1,192], index: 2, kind: input, shape index: {}]  }
   0x1   :  { %v43_v1 = vld [vmem:[%s919_s1 + $0x38] sm:$0xff]  ;;  %v42_v2 = vld [vmem:[%s919_s1 + $0x30] sm:$0xff]  ;;  %v41_v3 = vld [vmem:[%s919_s1 + $0x28] sm:$0xff]  ;;  %167 = vmatprep.mubr.f32.mxu0 %v679_v4  ;;  %250 = vst.msk [vmem:[#allocation3] sm:$0x3] %vm249_vm0, %v679_v4  ;;  %173 = vmatprep.mubr.f32.mxu1 %v679_v4  ;;  %v67_v6 = vunpack.c.l.s4 %v680_v5  ;;  %vm98_vm1 = vcmask 261120  }
   0x2   :  { %251 = vst.msk [vmem:[#allocation4] sm:$0x3] %vm249_vm0, %v679_v4  ;;  %127 = vmatprep.subr.mxu0 %v43_v1  ;;  %612 = vmatprep.subr.mxu1 %v43_v1  ;;  %v40_v7 = vld [vmem:[%s919_s1 + $0x20] sm:$0xff]  ;;  %v39_v8 = vld [vmem:[%s919_s1 + $0x18] sm:$0xff]  ;;  %v47_v9 = vshrl.u32 %v46_v0, 7  ;;  %v38_v10 = vld [vmem:[%s919_s1 + $0x10] sm:$0xff] }
   0x3   :  { %128 = vmatpush1.msra.mxu0 %v42_v2  ;;  %616 = vmatpush1.msra.mxu1 %v42_v2  ;;  %v37_v11 = vld [vmem:[%s919_s1 + $0x8] sm:$0xff]  ;;  %v28_v12 = vld [vmem:[%s922_s0] sm:$0x3]  ;;  %v68_v13 = vunpack.c.0.s8 %v67_v6  ;;  %v29_v14 = vld [vmem:[%s922_s0 + $0x2] sm:$0x3]  ;;  %vm228_vm2 = vcmask 1041408  }
   0x4   :  { %129 = vmatprep.subr.mxu0 %v41_v3  ;;  %613 = vmatprep.subr.mxu1 %v41_v3  ;;  %v30_v15 = vld [vmem:[%s922_s0 + $0x4] sm:$0x3]  ;;  %v31_v16 = vld [vmem:[%s922_s0 + $0x6] sm:$0x3]  ;;  %v64_v17 = vcombine.low %v28_v12, %v29_v14  ;;  %v32_v20 = vld [vmem:[%s922_s0 + $0x8] sm:$0x3] }
   0x5   :  { %130 = vmatpush1.msra.mxu0 %v40_v7  ;;  %617 = vmatpush1.msra.mxu1 %v40_v7  ;;  %v65_v18 = vcombine.low %v30_v15, %v31_v16  ;;  %v770_v19 = vsub.s32 %v68_v13, %v47_v9  ;;  %v33_v21 = vld [vmem:[%s922_s0 + $0xa] sm:$0x3]  ;;  %v34_v22 = vld [vmem:[%s922_s0 + $0xc] sm:$0x3]  ;;  %v36_v23 = vld [vmem:[%s919_s1] sm:$0xff]  ;;  %v48_v43 = vsub.s32 0, %v47_v9 }
   0x6   :  { %131 = vmatprep.subr.mxu0 %v39_v8  ;;  %614 = vmatprep.subr.mxu1 %v39_v8  ;;  %v35_v24 = vld [vmem:[%s922_s0 + $0xe] sm:$0x3]  ;;  %v81_v25 = vcombine.low %v32_v20, %v33_v21  ;;  %v796_v33 = vld [vmem:[%s923_s3] sm:$0xff]  ;;  %v806_v35 = vld [vmem:[%s923_s3 + $0x10] sm:$0xff]  ;;  %v52_v44 = vsub.s32 1, %v47_v9  ;;  %vm229_vm3 = vcmask 519170  }
   0x7   :  { %132 = vmatpush1.msra.mxu0 %v38_v10  ;;  %618 = vmatpush1.msra.mxu1 %v38_v10  ;;  %v72_v26 = vrot.slane %v64_v17, %v770_v19  ;;  %v79_v27 = vrot.slane %v65_v18, %v770_v19  ;;  %v82_v28 = vcombine.low %v34_v22, %v35_v24  ;;  %v801_v34 = vld [vmem:[%s923_s3 + $0x8] sm:$0xff]  ;;  %v811_v36 = vld [vmem:[%s923_s3 + $0x18] sm:$0xff]  ;;  %v816_v37 = vld [vmem:[%s924_s4] ss:$0 sm:$0xff] }
   0x8   :  { %133 = vmatprep.subr.mxu0 %v37_v11  ;;  %615 = vmatprep.subr.mxu1 %v37_v11  ;;  %v89_v29 = vrot.slane %v81_v25, %v770_v19  ;;  %v821_v38 = vld [vmem:[%s925_s5] sm:$0xff]  ;;  %v826_v39 = vld [vmem:[%s925_s5 + $0x8] sm:$0xff]  ;;  %v831_v40 = vld [vmem:[%s925_s5 + $0x10] sm:$0xff] }
   0x9   :  { %134 = vmatpush1.msra.mxu0 %v36_v23  ;;  %619 = vmatpush1.msra.mxu1 %v36_v23  ;;  %v80_v30 = vcombine.low %v72_v26, %v79_v27  ;;  %v96_v31 = vrot.slane %v82_v28, %v770_v19  ;;  %v836_v41 = vld [vmem:[%s925_s5 + $0x18] sm:$0xff]  ;;  %v841_v42 = vld [vmem:[%s926_s6] ss:$0 sm:$0xff]  ;;  %vm846_vm4 = vmor %vm229_vm3, %vm228_vm2 }
   0xa   :  { %v44_v45 = vld [vmem:[%s927_s2] sm:$0x3]  ;;  %s870_s2 = smov 0  }
   0xb   :  { %565 = vmatmul.mubr.msk.f32.vlgmr.msra.gmra.mxu0 %vm98_vm1, %v80_v30  ;;  %v97_v32 = vcombine.low %v89_v29, %v96_v31  ;;  %v49_v46 = vrot.slane %v44_v45, %v48_v43  ;;  %v53_v47 = vrot.slane %v44_v45, %v52_v44 }
   0xd   :  { %566 = vmatmul.mubr.msk.f32.vlgmr.msra.gmra.mxu1 %vm98_vm1, %v97_v32 }
  0xcb   :  { %v169_v48 = vpop.f32.mrf.mxu0 }
  0xcc   :  { %v170_v51 = vadd.f32 %v169_v48, %v49_v46 }
  0xcd   :  { %v175_v49 = vpop.f32.mrf.mxu1  ;;  %v171_v50 = vpop.f32.mrf.mxu0 }
  0xce   :  { %v172_v52 = vadd.f32 %v171_v50, %v53_v47  ;;  %v176_v54 = vadd.f32 %v175_v49, %v49_v46 }
  0xcf   :  { %v177_v53 = vpop.f32.mrf.mxu1 }
  0xd0   :  { %v184_v55 = vcombine.low %v170_v51, %v172_v52  ;;  %v185_v56 = vcombine.high %v170_v51, %v172_v52  ;;  %v178_v57 = vadd.f32 %v177_v53, %v53_v47 }
  0xd2   :  { %v192_v59 = vrot.slane %v184_v55, %v770_v19  ;;  %v199_v60 = vrot.slane %v185_v56, %v770_v19  ;;  %v202_v61 = vcombine.low %v176_v54, %v178_v57  ;;  %v203_v62 = vcombine.high %v176_v54, %v178_v57 }
  0xd4   :  { %v200_v63 = vcombine.high %v192_v59, %v192_v59  ;;  %v201_v0 = vcombine.high %v199_v60, %v199_v60  ;;  %231 = vst.msk [vmem:[#allocation2] sm:$0xf] %vm846_vm4, %v192_v59  ;;  %233 = vst.msk [vmem:[#allocation2 + $0x8] sm:$0xf] %vm846_vm4, %v199_v60  ;;  %v210_v1 = vrot.slane %v202_v61, %v770_v19 }
  0xd5   :  { %v217_v2 = vrot.slane %v203_v62, %v770_v19 }
  0xd6   :  { %232 = vst.msk [vmem:[#allocation2 + $0x4] sm:$0xf] %vm846_vm4, %v200_v63  ;;  %234 = vst.msk [vmem:[#allocation2 + $0xc] sm:$0xf] %vm846_vm4, %v201_v0  ;;  %v218_v3 = vcombine.high %v210_v1, %v210_v1 }
  0xd7   :  { %v219_v4 = vcombine.high %v217_v2, %v217_v2  ;;  %235 = vst.msk [vmem:[#allocation2 + $0x10] sm:$0xf] %vm846_vm4, %v210_v1  ;;  %237 = vst.msk [vmem:[#allocation2 + $0x18] sm:$0xf] %vm846_vm4, %v217_v2 }
  0xd8   :  { %236 = vst.msk [vmem:[#allocation2 + $0x14] sm:$0xf] %vm846_vm4, %v218_v3 }
  0xd9   :  { %238 = vst.msk [vmem:[#allocation2 + $0x1c] sm:$0xf] %vm846_vm4, %v219_v4 }
  0xda LB: > { %v681_v5 = vmov 0.0   ;;  %vm682_vm5 = vmmov 0   ;;  %v262_v6 = vld [vmem:[#allocation3] sm:$0x3]  ;;  %s683_s5 = smov 64   ;;  %s578_s6 = sshll.u32 %s673_s2, 2  ;;  %s673_s2 = sphi %s870_s2, %s257_s2  }
  0xdb   : > { %590 = vmatprep.subr.mxu0 %v681_v5  ;;  %598 = vmatprep.mubr.msk.f32.mxu0 %vm682_vm5, %v681_v5  ;;  %s260_s11 = scalar_lea.vmem [#allocation2], %s578_s6  ;;  %s684_s12 = smov 96   ;;  %v379_v23 = vrot.slane %v262_v6, %v770_v19 }
  0xdc   : > { %591 = vmatpush3.msra.mxu0 %v811_v36  ;;  %s685_s13 = smov 32   ;;  %s567_s14 = sshll.u32 %s673_s2, 1 }
  0xdd   : > { %592 = vmatprep.subr.mxu0 %v681_v5  ;;  %s397_s15 = scalar_lea.vmem %s920_s7, %s567_s14  ;;  %s257_s2 = sadd.s32 1, %s673_s2  }
  0xde   : > { %593 = vmatpush3.msra.mxu0 %v806_v35  ;;  %p254_p0 = scmp.ge.s32.totalorder %s257_s2, 8  }
  0xdf   : > { %594 = vmatprep.subr.mxu0 %v681_v5  ;;  %s894_s16 = smov (%p254_p0), 0  }
  0xe0   : > { %595 = vmatpush3.msra.mxu0 %v801_v34  ;;  %v261_v11 = vld [vmem:[%s260_s11] sm:$0xf] }
  0xe1   : > { %596 = vmatprep.subr.mxu0 %v681_v5 }
  0xe2   : > { %597 = vmatpush3.msra.mxu0 %v796_v33 }
  0xe3   : > { %599 = vmatmul.mubr.msk.f32.vlgmr.msra.gmra.mxu0 %vm98_vm1, %v262_v6 }
 0x1a3   : > { %v338_v7 = vpop.f32.mrf.mxu0 }
 0x1a4   : > { %v339_v8 = vadd.f32 %v816_v37, %v338_v7 }
 0x1a5   : > { %v600_v9 = vpop.f32.mrf.mxu0 }
 0x1a6   : > { %v356_v10 = vrot.slane %v339_v8, %v770_v19  ;;  %v342_v12 = vadd.f32 %v339_v8, %v261_v11 }
 0x1a8   : > { %357 = vrot.lane.b32.xlu0 %v356_v10, %s683_s5  ;;  %v571_v13 = vmul.f32 -1.442695, %v342_v12 }
 0x1aa   : > { %647 = vpow2.f32 %v571_v13 }
 0x1b7   : > { %v648_v14 = vpop.eup %647 }
 0x1b8   : > { %v346_v15 = vadd.f32 1.0, %v648_v14 }
 0x1ba   : > { %649 = vrcp.f32 %v346_v15 }
 0x1c7   : > { %v650_v16 = vpop.eup %649 }
 0x1c8   : > { %v367_v25 = vsub.f32 1.0, %v650_v16 }
 0x21a   : > { %v358_v17 = vpop.permute.xlu0 %357 }
 0x21b   : > { %v360_v18 = vmul.f32 %v650_v16, %v358_v17 }
 0x21d   : > { %362 = vrot.lane.b32.xlu0 %v360_v18, %s683_s5 }
 0x28f   : > { %v363_v20 = vpop.permute.xlu0 %362 }
 0x290   : > { %v365_v21 = vadd.f32 %v363_v20, %v261_v11 }
 0x292   : > { %651 = vtanh.f32 %v365_v21 }
 0x29f   : > { %v652_v22 = vpop.eup %651 }
 0x2a0   : > { %369 = vrot.lane.b32.xlu1 %v652_v22, %s684_s12 }
 0x2a4   : > { %380 = vrot.lane.b32.xlu1 %v379_v23, %s685_s13 }
 0x312   : > { %v370_v24 = vpop.permute.xlu1 %369 }
 0x313   : > { %v372_v27 = vmul.f32 %v370_v24, %v367_v25 }
 0x316   : > { %v381_v26 = vpop.permute.xlu1 %380 }
 0x317   : > { %v383_v28 = vmul.f32 %v650_v16, %v381_v26 }
 0x319   : > { %v384_v29 = vadd.f32 %v383_v28, %v372_v27 }
 0x31b   : > { %v392_v30 = vrot.slane %v384_v29, %v770_v19 }
 0x31d   : > { %393 = vrot.lane.b32.xlu0 %v392_v30, %s684_s12 }
 0x38c   :  { %256 = sbr.rel (!%p254_p0) target bundleno = 218 (0xda), region = 74 }
 0x38f   : > { %v394_v31 = vpop.permute.xlu0 %393 }
 0x390   : > { %396 = vst.msk [vmem:[#allocation3] sm:$0x3] %vm249_vm0, %v394_v31  ;;  %398 = vst.msk [vmem:[%s397_s15] sm:$0x3] %vm249_vm0, %v394_v31 }
 0x391 LB: > { %v686_v32 = vmov 0.0   ;;  %vm687_vm6 = vmmov 0   ;;  %v410_v33 = vld [vmem:[#allocation4] sm:$0x3]  ;;  %s405_s7 = ssub.s32 7, %s677_s16  ;;  %s688_s19 = smov 96   ;;  %s677_s16 = sphi %s894_s16, %s404_s16  }
 0x392   : > { %601 = vmatprep.subr.mxu0 %v686_v32  ;;  %609 = vmatprep.mubr.msk.f32.mxu0 %vm687_vm6, %v686_v32  ;;  %s579_s17 = sshll.u32 %s405_s7, 2  ;;  %s689_s20 = smov 32  }
 0x393   : > { %602 = vmatpush3.msra.mxu0 %v836_v41  ;;  %s408_s18 = scalar_lea.vmem [#allocation2], %s579_s17  ;;  %s572_s21 = sshll.u32 %s405_s7, 1 }
 0x394   : > { %603 = vmatprep.subr.mxu0 %v686_v32  ;;  %v409_v34 = vld [vmem:[%s408_s18] sm:$0xf]  ;;  %s537_s24 = scalar_lea.vmem %s921_s8, %s572_s21  ;;  %s404_s16 = sadd.s32 1, %s677_s16  }
 0x395   : > { %604 = vmatpush3.msra.mxu0 %v831_v40  ;;  %522 = vrot.lane.b32.xlu1 %v409_v34, %s688_s19  ;;  %v509_v52 = vrot.slane %v409_v34, 2  ;;  %p401_p1 = scmp.ge.s32.totalorder %s404_s16, 8  }
 0x396   : > { %605 = vmatprep.subr.mxu0 %v686_v32 }
 0x397   : > { %606 = vmatpush3.msra.mxu0 %v826_v39 }
 0x398   : > { %607 = vmatprep.subr.mxu0 %v686_v32 }
 0x399   : > { %608 = vmatpush3.msra.mxu0 %v821_v38 }
 0x39a   : > { %610 = vmatmul.mubr.msk.f32.vlgmr.msra.gmra.mxu0 %vm98_vm1, %v410_v33 }
 0x407   : > { %v523_v56 = vpop.permute.xlu1 %522 }
 0x408   : > { %v524_v58 = vrot.slane %v523_v56, 2 }
 0x45a   : > { %v486_v35 = vpop.f32.mrf.mxu0 }
 0x45b   : > { %v487_v36 = vadd.f32 %v841_v42, %v486_v35 }
 0x45c   : > { %v611_v37 = vpop.f32.mrf.mxu0 }
 0x45d   : > { %v497_v43 = vrot.slane %v487_v36, %v770_v19 }
 0x45f   : > { %498 = vrot.lane.b32.xlu0 %v497_v43, %s688_s19 }
 0x463   : > { %518 = vrot.lane.b32.xlu0 %v497_v43, %s689_s20 }
 0x4d1   : > { %v499_v44 = vpop.permute.xlu0 %498 }
 0x4d2   : > { %v501_v45 = vadd.f32 %v499_v44, %v409_v34  ;;  %v511_v53 = vadd.f32 %v509_v52, %v499_v44 }
 0x4d4   : > { %v576_v46 = vmul.f32 -1.442695, %v501_v45  ;;  %v577_v54 = vmul.f32 -1.442695, %v511_v53 }
 0x4d5   : > { %v519_v50 = vpop.permute.xlu0 %518 }
 0x4d6   : > { %653 = vpow2.f32 %v576_v46 }
 0x4e3   : > { %v654_v47 = vpop.eup %653 }
 0x4e4   : > { %v505_v48 = vadd.f32 1.0, %v654_v47 }
 0x4e6   : > { %655 = vrcp.f32 %v505_v48 }
 0x4e7   : > { %657 = vpow2.f32 %v577_v54 }
 0x4f3   : > { %v656_v49 = vpop.eup %655 }
 0x4f4   : > { %v521_v51 = vmul.f32 %v656_v49, %v519_v50  ;;  %v658_v55 = vpop.eup %657 }
 0x4f5   : > { %v515_v57 = vadd.f32 1.0, %v658_v55 }
 0x4f6   : > { %527 = vrot.lane.b32.xlu1 %v521_v51, %s689_s20 }
 0x4f7   : > { %659 = vrcp.f32 %v515_v57 }
 0x504   : > { %v660_v61 = vpop.eup %659 }
 0x505   : > { %v532_v62 = vsub.f32 1.0, %v660_v61  ;;  %v534_v0 = vmul.f32 %v660_v61, %v410_v33 }
 0x568   : > { %v528_v59 = vpop.permute.xlu1 %527 }
 0x569   : > { %v530_v60 = vadd.f32 %v528_v59, %v524_v58 }
 0x56b   : > { %661 = vtanh.f32 %v530_v60 }
 0x578   : > { %v662_v63 = vpop.eup %661 }
 0x579   : > { %v533_v1 = vmul.f32 %v662_v63, %v532_v62  ;;  %403 = sbr.rel (!%p401_p1) target bundleno = 913 (0x391), region = 85 }
 0x57b   : > { %v535_v2 = vadd.f32 %v534_v0, %v533_v1 }
 0x57d   : > { %536 = vst.msk [vmem:[#allocation4] sm:$0x3] %vm249_vm0, %v535_v2  ;;  %538 = vst.msk [vmem:[%s537_s24] sm:$0x3] %vm249_vm0, %v535_v2 }

// kernel: mwan_forward.29
= control target key start
LH: loop header
LB: loop body
LE: loop exit
PB: predicated region body
PF: predicated region fallthrough
CT: control target
= control target key end

     0   :  { %s629_s15 = smov 0   ;;  %s669_s0 = inlined_call_operand.vmem [shape: f32[2,8,64], index: 0, kind: input, shape index: {}]   ;;  %s670_s1 = inlined_call_operand.vmem [shape: f32[2,10,64], index: 1, kind: input, shape index: {}]   ;;  %s671_s2 = inlined_call_operand.vmem [shape: f32[2,8,64], index: 2, kind: output, shape index: {0}]   ;;  %s672_s3 = inlined_call_operand.vmem [shape: f32[2,8,1], index: 3, kind: output, shape index: {1}]   ;;  %s673_s4 = inlined_call_operand.vmem [shape: f32[2,8,1], index: 4, kind: output, shape index: {2}]  }
   0x1 LB: > { %s541_s16 = sadd.s32 4294967295, %s600_s15   ;;  %p545_p0 = scmp.ge.s32.totalorder %s600_s15, 1  ;;  %s600_s15 = sphi %s629_s15, %s15_s15  }
   0x2   : > { %p176_p1 = scmp.lt.s32.totalorder %s600_s15, 3 }
   0x4   : > { %p177_p2 = pnand %p545_p0, %p176_p1 }
   0x5   : > { %p213_p3 = scmp.lt.s32.totalorder (!%p177_p2), %s541_s16, 1 }
   0x6   : > { %180 = sbr.rel (%p177_p2) target bundleno = 722 (0x2d2), region = 28 }
   0xb   : > { %v602_v0 = vmov 0.0   ;;  %vm603_vm0 = vmmov 0   ;;  %s675_s16 = smov (!%p213_p3, %s541_s16), 1  ;;  %vm237_vm1 = vcmask 523264   ;;  %vm317_vm2 = vcmask 80896  }
   0xc   : > { %566 = vmatprep.subr.mxu0 %v602_v0  ;;  %570 = vmatprep.mubr.msk.f32.mxu0 %vm603_vm0, %v602_v0  ;;  %s559_s17 = sshll.u32 %s675_s16, 4  ;;  %s637_s18 = sshll.u32 %s675_s16, 3  ;;  %vm411_vm3 = vcmask 7168   ;;  %vm337_vm4 = vcmask 1041408  }
   0xd   : > { %573 = vmatprep.subr.mxu1 %v602_v0  ;;  %577 = vmatprep.mubr.msk.f32.mxu1 %vm603_vm0, %v602_v0  ;;  %s221_s21 = scalar_lea.vmem %s670_s1, %s559_s17  ;;  %s216_s24 = scalar_lea.vmem %s669_s0, %s637_s18 }
   0xe   : > { %v236_v1 = vld [vmem:[%s221_s21 + $0x8] sm:$0x3]  ;;  %v235_v2 = vld [vmem:[%s221_s21] sm:$0xff]  ;;  %s229_s27 = scalar_lea.vmem %s672_s3, %s637_s18  ;;  %s233_s30 = scalar_lea.vmem %s673_s4, %s637_s18 }
   0xf   : > { %567 = vmatpush3.xpose.msk.msra.mxu0 %vm237_vm1, %v236_v1  ;;  %v234_v3 = vld [vmem:[%s216_s24] sm:$0xff]  ;;  %574 = vmatpush3.msk.msra.mxu1 %vm337_vm4, %v236_v1  ;;  %s225_s7 = scalar_lea.vmem %s671_s2, %s637_s18 }
  0x10   : > { %568 = vmatprep.subr.mxu0 %v602_v0  ;;  %575 = vmatprep.subr.mxu1 %v602_v0 }
  0x11   : > { %576 = vmatpush3.msra.mxu1 %v235_v2 }
  0x13   : > { %569 = vmatpush3.xpose.msk.msra.mxu0 %vm237_vm1, %v235_v2 }
  0x16   : > { %571 = vmatmul.mubr.msk.f32.vlgmr.msra.gmra.mxu0 %vm237_vm1, %v234_v3 }
  0xd6   : > { %v313_v4 = vpop.f32.mrf.mxu0 }
  0xd7   : > { %v321_v5 = vsel %vm317_vm2, %v313_v4, 0.0  ;;  %v318_v6 = vsel %vm317_vm2, %v313_v4, -inf }
  0xd8   : > { %322 = vadd.xlane.f32.xlu1 %v321_v5  ;;  %319 = vmax.xlane.f32.xlu0 %v318_v6  ;;  %v572_v7 = vpop.f32.mrf.mxu0 }
 0x161   : > { %v323_v8 = vpop.xlane.xlu1 %322  ;;  %v320_v9 = vpop.xlane.xlu0 %319 }
 0x162   : > { %v325_v10 = vmul.f32 0.1, %v323_v8  ;;  %v326_v11 = vsub.f32 %v313_v4, %v320_v9  ;;  %412 = vst.msk [vmem:[%s229_s27] sm:$0xff] %vm411_vm3, %v320_v9 }
 0x164   : > { %413 = vst.msk [vmem:[%s233_s30] sm:$0xff] %vm411_vm3, %v325_v10  ;;  %v327_v12 = vmul.f32 1.442695, %v326_v11 }
 0x166   : > { %590 = vpow2.f32 %v327_v12 }
 0x173   : > { %v591_v13 = vpop.eup %590 }
 0x174   : > { %v329_v14 = vsel %vm317_vm2, %v591_v13, 0.0 }
 0x175   : > { %330 = vadd.xlane.f32.xlu0 %v329_v14 }
 0x1fe   : > { %v331_v15 = vpop.xlane.xlu0 %330 }
 0x1ff   : > { %592 = vrcp.f32 %v331_v15 }
 0x20c   : > { %v593_v16 = vpop.eup %592 }
 0x20d   : > { %v333_v17 = vmul.f32 %v593_v16, %v591_v13 }
 0x20f   : > { %578 = vmatmul.mubr.msk.f32.vlgmr.msra.gmra.mxu1 %vm317_vm2, %v333_v17 }
 0x2cf   : > { %v406_v18 = vpop.f32.mrf.mxu1 }
 0x2d0   : > { %410 = vst.msk [vmem:[%s225_s7] sm:$0xff] %vm237_vm1, %v406_v18 }
 0x2d1   : > { %v579_v19 = vpop.f32.mrf.mxu1 }
 0x2d2 PF: > { %s15_s15 = sadd.s32 1, %s600_s15  }
 0x2d3   : > { %p12_p4 = scmp.ge.s32.totalorder %s15_s15, 4  }
 0x2d5   :  { %14 = sbr.rel (!%p12_p4) target bundleno = 1 (0x1), region = 85 }

// kernel: mwan_forward.30
= control target key start
LH: loop header
LB: loop body
LE: loop exit
PB: predicated region body
PF: predicated region fallthrough
CT: control target
= control target key end

     0   :  { %10 = vsyncpa [#allocation3], 0  ;;  %s906_s0 = inlined_call_operand.vmem [shape: f32[2,8,64], index: 0, kind: input, shape index: {}, may-alias: {0,1}]   ;;  %s907_s1 = inlined_call_operand.vmem [shape: f32[2,8,64], index: 1, kind: input, shape index: {}, may-alias: {0,1}]   ;;  %s908_s2 = inlined_call_operand.vmem [shape: f32[2,8,64], index: 2, kind: output, shape index: {0}]   ;;  %s909_s3 = inlined_call_operand.hbm [shape: f32[2,8,1], index: 3, kind: output, shape index: {1}]   ;;  %s910_s4 = inlined_call_operand.hbm [shape: f32[2,8,1], index: 4, kind: output, shape index: {2}]  }
   0x1   :  { %12 = vsyncpa [#allocation3 + $0x1], 0 }
   0x2   :  { %13 = vsyncpa [#allocation5], 0 }
   0x3   :  { %15 = vsyncpa [#allocation5 + $0x1], 0  ;;  %s773_s15 = smov 0   ;;  %s775_s16 = smov 0  }
   0x4   :  { %s777_s17 = smov 0   ;;  %s779_s18 = smov 0  }
   0x5 LB: > { %s794_s19 = sadd.s32 4294967295, %s742_s18   ;;  %s570_s20 = sadd.s32 4294967294, %s742_s18   ;;  %s742_s18 = sphi %s779_s18, %s916_s18   ;;  %s738_s17 = sphi %s777_s17, %s915_s17   ;;  %s734_s16 = sphi %s775_s16, %s914_s16   ;;  %s730_s15 = sphi %s773_s15, %s913_s15  }
   0x6   : > { %s798_s21 = sadd.s32 1, %s742_s18   ;;  %s106_s22 = sadd.s32 1, %s738_s17 }
   0x7   : > { %s103_s23 = ssub.s32 %s742_s18, %s798_s21  ;;  %p116_p0 = scmp.ne.s32.totalorder %s738_s17, %s734_s16 }
   0x8   : > { %p104_p1 = scmp.eq.s32.totalorder %s103_s23, 0  ;;  %p117_p2 = scmp.eq.s32.totalorder %s794_s19, 1 }
   0x9   : > { %p122_p3 = scmp.ne.s32.totalorder %s734_s16, %s730_s15  ;;  %p123_p4 = scmp.eq.s32.totalorder %s570_s20, 1 }
   0xa   : > { %s809_s24 = scalar_select %p104_p1, %s738_s17, %s106_s22  }
   0xb   : > { %p811_p5 = por %p117_p2, %p116_p0  ;;  %p815_p6 = por %p123_p4, %p122_p3 }
   0xc   : > { %p573_p7 = scmp.ge.s32.totalorder %s742_s18, 1  ;;  %p181_p8 = scmp.lt.s32.totalorder %s742_s18, 3 }
   0xe   : > { %p182_p9 = pnand %p573_p7, %p181_p8 }
   0xf   : > { %p219_p10 = scmp.lt.s32.totalorder (!%p182_p9), %s794_s19, 1  ;;  %s838_s9 = sand.u32 (!%p182_p9), 1, %s734_s16  }
  0x10   : > { %185 = sbr.rel (%p182_p9) target bundleno = 729 (0x2d9), region = 28  ;;  %s574_s10 = sshll.u32 (!%p182_p9), %s838_s9, 3 }
  0x11   : > { %s211_s11 = scalar_lea.vmem (!%p182_p9), [#allocation2], %s574_s10  ;;  %s841_s12 = scalar_lea.vmem (!%p182_p9), [#allocation4], %s574_s10 }
  0x12   : > { %s584_s13 = sshll.u32 (!%p182_p9), %s794_s19, 7  ;;  %s430_s14 = sshll.u32 (!%p182_p9), %s211_s11, 4  ;;  %s431_s14 = int_to_ptr.vmem [resolvable:$true] %s430_s14 }
  0x13   : > { %s428_s23 = scalar_lea.hbm (!%p182_p9), %s909_s3, %s584_s13  ;;  %s652_s29 = scalar_lea.vmem (!%p182_p9), %s431_s14, 128 }
  0x14   : > { %p653_p11 = scmp.ne.s32.totalorder (!%p182_p9), %s431_s14, %s652_s29  ;;  %s746_s30 = smov (!%p182_p9), [#allocation2]  }
  0x15   : > { %v744_v0 = vmov 0.0   ;;  %vm745_vm0 = vmmov 0   ;;  %s220_s27 = scalar_select %p219_p10, %s794_s19, 1  ;;  %vm233_vm1 = vcmask 523264   ;;  %vm310_vm2 = vcmask 64512  }
  0x16   : > { %592 = vmatprep.subr.mxu0 %v744_v0  ;;  %594 = vmatprep.mubr.msk.f32.mxu0 %vm745_vm0, %v744_v0  ;;  %vm401_vm3 = vcmask 7168   ;;  %p654_p12 = pnand %p653_p11, %p811_p5 }
  0x17   : > { %597 = vmatprep.subr.mxu1 %v744_v0  ;;  %599 = vmatprep.mubr.msk.f32.mxu1 %vm745_vm0, %v744_v0  ;;  %s823_s28 = sshll.u32 %s220_s27, 3  ;;  %s409_s27 = scalar_lea.sflag [#allocation3], %s838_s9 }
  0x18   : > { %s226_s5 = scalar_lea.vmem %s907_s1, %s823_s28  ;;  %s222_s8 = scalar_lea.vmem %s906_s0, %s823_s28 }
  0x19   : > { %v232_v1 = vld [vmem:[%s226_s5] sm:$0xff]  ;;  %p655_p13 = pneg %p654_p12  ;;  %s656_s5 = sshll.u32 %s746_s30, 4  ;;  %s657_s5 = int_to_ptr.vmem [resolvable:$false] %s656_s5 }
  0x1a   : > { %593 = vmatpush3.xpose.msk.msra.mxu0 %vm233_vm1, %v232_v1  ;;  %v231_v2 = vld [vmem:[%s222_s8] sm:$0xff]  ;;  %598 = vmatpush3.msra.mxu1 %v232_v1  ;;  %s658_s6 = scalar_lea.vmem %s657_s5, 256  ;;  %p659_p0 = scmp.lt.s32.totalorder %s431_s14, %s657_s5 }
  0x1b   : > { %p660_p1 = scmp.lt.s32.totalorder %s658_s6, %s652_s29 }
  0x1d   : > { %595 = vmatmul.mubr.msk.f32.vlgmr.msra.gmra.mxu0 %vm233_vm1, %v231_v2  ;;  %p661_p2 = por %p660_p1, %p659_p0 }
  0x1f   : > { %p662_p3 = pnand %p661_p2, %p655_p13 }
  0xdd   : > { %v306_v3 = vpop.f32.mrf.mxu0 }
  0xde   : > { %v314_v4 = vsel %vm310_vm2, %v306_v3, 0.0  ;;  %v311_v5 = vsel %vm310_vm2, %v306_v3, -inf }
  0xdf   : > { %315 = vadd.xlane.f32.xlu1 %v314_v4  ;;  %312 = vmax.xlane.f32.xlu0 %v311_v5  ;;  %v596_v6 = vpop.f32.mrf.mxu0 }
 0x168   : > { %v316_v7 = vpop.xlane.xlu1 %315  ;;  %v313_v8 = vpop.xlane.xlu0 %312 }
 0x169   : > { %v318_v9 = vmul.f32 0.125, %v316_v7  ;;  %v319_v10 = vsub.f32 %v306_v3, %v313_v8  ;;  %402 = vst.msk [vmem:[%s211_s11] sm:$0xff] %vm401_vm3, %v313_v8 }
 0x16b   : > { %v320_v11 = vmul.f32 1.442695, %v319_v10  ;;  %403 = vst.msk [vmem:[%s841_s12] sm:$0xff] %vm401_vm3, %v318_v9 }
 0x16d   : > { %648 = vpow2.f32 %v320_v11 }
 0x17a   : > { %v649_v12 = vpop.eup %648 }
 0x17b   : > { %v322_v13 = vsel %vm310_vm2, %v649_v12, 0.0 }
 0x17c   : > { %323 = vadd.xlane.f32.xlu0 %v322_v13 }
 0x205   : > { %v324_v14 = vpop.xlane.xlu0 %323 }
 0x206   : > { %650 = vrcp.f32 %v324_v14 }
 0x213   : > { %v651_v15 = vpop.eup %650 }
 0x214   : > { %v326_v16 = vmul.f32 %v651_v15, %v649_v12 }
 0x216   : > { %600 = vmatmul.mubr.msk.f32.vlgmr.msra.gmra.mxu1 %vm310_vm2, %v326_v16 }
 0x217   : > { %665 = shalt.err (!%p662_p3)
}
 0x218   : > { %s666_s7 = scalar_lea.hbm %s428_s23, 128  ;;  %s670_s11 = scalar_lea.hbm %s909_s3, 256 }
 0x219   : > { %p667_p4 = scmp.ne.s32.totalorder %s428_s23, %s666_s7  ;;  %p671_p9 = scmp.lt.s32.totalorder %s428_s23, %s909_s3 }
 0x21a   : > { %p672_p10 = scmp.lt.s32.totalorder %s670_s11, %s666_s7 }
 0x21b   : > { %p668_p7 = pnand %p667_p4, %p811_p5 }
 0x21c   : > { %p673_p11 = por %p672_p10, %p671_p9 }
 0x21d   : > { %p669_p8 = pneg %p668_p7 }
 0x21f   : > { %p674_p12 = pnand %p673_p11, %p669_p8 }
 0x221   : > { %677 = shalt.err (!%p674_p12)
}
 0x222   : > { %602 = dma.vmem_to_hbm [thread:$0]  (%p811_p5), %s431_s14, 128, %s428_s23, %s409_s27  }
 0x223   : > { %s441_s5 = scalar_lea.hbm %s910_s4, %s584_s13  ;;  %s443_s6 = sshll.u32 %s841_s12, 4  ;;  %s444_s6 = int_to_ptr.vmem [resolvable:$true] %s443_s6 }
 0x224   : > { %s414_s8 = scalar_lea.sflag [#allocation5], %s838_s9  ;;  %s678_s10 = scalar_lea.vmem %s444_s6, 128 }
 0x225   : > { %p679_p13 = scmp.ne.s32.totalorder %s444_s6, %s678_s10  ;;  %s747_s7 = smov [#allocation4]  }
 0x226   : > { %s682_s11 = sshll.u32 %s747_s7, 4  ;;  %s683_s11 = int_to_ptr.vmem [resolvable:$false] %s682_s11 }
 0x227   : > { %p680_p0 = pnand %p679_p13, %p811_p5  ;;  %s684_s20 = scalar_lea.vmem %s683_s11, 256 }
 0x228   : > { %p685_p2 = scmp.lt.s32.totalorder %s444_s6, %s683_s11  ;;  %p686_p3 = scmp.lt.s32.totalorder %s684_s20, %s678_s10 }
 0x229   : > { %p681_p1 = pneg %p680_p0 }
 0x22a   : > { %p687_p4 = por %p686_p3, %p685_p2 }
 0x22c   : > { %p688_p7 = pnand %p687_p4, %p681_p1 }
 0x22e   : > { %691 = shalt.err (!%p688_p7)
}
 0x22f   : > { %s692_s19 = scalar_lea.hbm %s441_s5, 128  ;;  %s696_s13 = scalar_lea.hbm %s910_s4, 256 }
 0x230   : > { %p693_p8 = scmp.ne.s32.totalorder %s441_s5, %s692_s19  ;;  %p697_p11 = scmp.lt.s32.totalorder %s441_s5, %s910_s4 }
 0x231   : > { %p698_p12 = scmp.lt.s32.totalorder %s696_s13, %s692_s19 }
 0x232   : > { %p694_p9 = pnand %p693_p8, %p811_p5 }
 0x233   : > { %p699_p13 = por %p698_p12, %p697_p11 }
 0x234   : > { %p695_p10 = pneg %p694_p9 }
 0x236   : > { %p700_p0 = pnand %p699_p13, %p695_p10 }
 0x238   : > { %703 = shalt.err (!%p700_p0)
}
 0x239   : > { %603 = dma.vmem_to_hbm [thread:$0]  (%p811_p5), %s444_s6, 128, %s441_s5, %s414_s8  }
 0x23a   : > { %s230_s29 = scalar_lea.vmem %s908_s2, %s823_s28 }
 0x2d6   : > { %v396_v17 = vpop.f32.mrf.mxu1 }
 0x2d7   : > { %400 = vst.msk [vmem:[%s230_s29] sm:$0xff] %vm233_vm1, %v396_v17 }
 0x2d8   : > { %v601_v18 = vpop.f32.mrf.mxu1 }
 0x2d9 PF: > { %p613_p1 = scmp.ge.s32.totalorder %s742_s18, 2  ;;  %s462_s30 = sand.u32 1, %s730_s15  }
 0x2da   : > { %s463_s25 = scalar_lea.sflag [#allocation3], %s462_s30 }
 0x2db   : > { %p607_p2 = pnand %p613_p1, %p815_p6 }
 0x2dd   : > { %p608_p3 = pneg %p607_p2 }
 0x2df   : > { %721 = dma.done.wait (%p608_p3), %s463_s25, 128  }
 0x2e0   : > { %723 = vsyncadd (%p608_p3), %s463_s25, 4294967168  ;;  %s472_s5 = scalar_lea.sflag [#allocation5], %s462_s30 }
 0x2e1   : > { %725 = dma.done.wait (%p608_p3), %s472_s5, 128  }
 0x2e2   : > { %727 = vsyncadd (%p608_p3), %s472_s5, 4294967168  ;;  %p18_p5 = scmp.ge.s32.totalorder %s798_s21, 4   ;;  %s913_s15 = smov %s734_s16 }
 0x2e3   : > { %s914_s16 = smov %s738_s17  ;;  %s915_s17 = smov %s809_s24 }
 0x2e4   : > { %s916_s18 = smov %s798_s21  ;;  %20 = sbr.rel (!%p18_p5) target bundleno = 5 (0x5), region = 95 }
 0x2e9   :  { %477 = vsyncpa [#allocation3], 1 }
 0x2ea   :  { %479 = vsyncpa [#allocation3 + $0x1], 1 }
 0x2eb   :  { %480 = vsyncpa [#allocation5], 1 }
 0x2ec   :  { %482 = vsyncpa [#allocation5 + $0x1], 1 }

// kernel: mwan_forward.33
= control target key start
LH: loop header
LB: loop body
LE: loop exit
PB: predicated region body
PF: predicated region fallthrough
CT: control target
= control target key end

     0   :  { %s430_s12 = smov 0   ;;  %s489_s0 = inlined_call_operand.vmem [shape: f32[2,8,88], index: 0, kind: input, shape index: {}]   ;;  %s490_s1 = inlined_call_operand.vmem [shape: f32[88,32], index: 1, kind: input, shape index: {}]   ;;  %s491_s2 = inlined_call_operand.vmem [shape: f32[1,32], index: 2, kind: input, shape index: {}]   ;;  %s492_s3 = inlined_call_operand.vmem [shape: f32[2,1,88], index: 3, kind: output, shape index: {}]  }
   0x1 LB: > { %s337_s13 = sadd.s32 4294967295, %s406_s12   ;;  %p341_p0 = scmp.ge.s32.totalorder %s406_s12, 1  ;;  %s406_s12 = sphi %s430_s12, %s13_s12  }
   0x2   : > { %p136_p1 = scmp.lt.s32.totalorder %s406_s12, 3 }
   0x4   : > { %p137_p2 = pnand %p341_p0, %p136_p1 }
   0x5   : > { %p157_p3 = scmp.lt.s32.totalorder (!%p137_p2), %s337_s13, 1 }
   0x6   : > { %140 = sbr.rel (%p137_p2) target bundleno = 456 (0x1c8), region = 32 }
   0xb   : > { %v175_v0 = vld [vmem:[%s490_s1 + $0x50] sm:$0xff]  ;;  %v408_v1 = vmov 0.0   ;;  %v174_v2 = vld [vmem:[%s490_s1 + $0x48] sm:$0xff]  ;;  %vm409_vm0 = vmmov 0   ;;  %v173_v3 = vld [vmem:[%s490_s1 + $0x40] sm:$0xff]  ;;  %s494_s13 = smov (!%p157_p3, %s337_s13), 1 }
   0xc   : > { %359 = vmatprep.subr.mxu0 %v408_v1  ;;  %381 = vmatprep.mubr.msk.f32.mxu0 %vm409_vm0, %v408_v1  ;;  %v172_v4 = vld [vmem:[%s490_s1 + $0x38] sm:$0xff]  ;;  %v171_v5 = vld [vmem:[%s490_s1 + $0x30] sm:$0xff]  ;;  %v170_v6 = vld [vmem:[%s490_s1 + $0x28] sm:$0xff]  ;;  %s342_s30 = sshll.u32 %s494_s13, 3  ;;  %vm176_vm1 = vcmask 719872   ;;  %vm259_vm2 = vcmask 261120   ;;  %s163_s19 = scalar_lea.vmem %s492_s3, %s494_s13 }
   0xd   : > { %360 = vmatpush3.msra.mxu0 %v175_v0  ;;  %v169_v7 = vld [vmem:[%s490_s1 + $0x20] sm:$0xff]  ;;  %v168_v8 = vld [vmem:[%s490_s1 + $0x18] sm:$0xff]  ;;  %v167_v9 = vld [vmem:[%s490_s1 + $0x10] sm:$0xff]  ;;  %s160_s10 = scalar_lea.vmem %s489_s0, %s342_s30  ;;  %vm288_vm3 = vcmask 712704  }
   0xe   : > { %361 = vmatprep.subr.mxu0 %v408_v1  ;;  %v166_v10 = vld [vmem:[%s490_s1 + $0x8] sm:$0xff]  ;;  %v165_v11 = vld [vmem:[%s490_s1] sm:$0xff] }
   0xf   : > { %362 = vmatpush3.msra.mxu0 %v174_v2  ;;  %v164_v12 = vld [vmem:[%s160_s10] sm:$0xff] }
  0x10   : > { %363 = vmatprep.subr.mxu0 %v408_v1  ;;  %v344_v15 = vld [vmem:[%s491_s2] ss:$0 sm:$0xff] }
  0x11   : > { %364 = vmatpush3.msra.mxu0 %v173_v3 }
  0x12   : > { %365 = vmatprep.subr.mxu0 %v408_v1 }
  0x13   : > { %366 = vmatpush3.msra.mxu0 %v172_v4 }
  0x14   : > { %367 = vmatprep.subr.mxu0 %v408_v1 }
  0x15   : > { %368 = vmatpush3.msra.mxu0 %v171_v5 }
  0x16   : > { %369 = vmatprep.subr.mxu0 %v408_v1 }
  0x17   : > { %370 = vmatpush3.msra.mxu0 %v170_v6 }
  0x18   : > { %371 = vmatprep.subr.mxu0 %v408_v1 }
  0x19   : > { %372 = vmatpush3.msra.mxu0 %v169_v7 }
  0x1a   : > { %373 = vmatprep.subr.mxu0 %v408_v1 }
  0x1b   : > { %374 = vmatpush3.msra.mxu0 %v168_v8 }
  0x1c   : > { %375 = vmatprep.subr.mxu0 %v408_v1 }
  0x1d   : > { %376 = vmatpush3.msra.mxu0 %v167_v9 }
  0x1e   : > { %377 = vmatprep.subr.mxu0 %v408_v1 }
  0x1f   : > { %378 = vmatpush3.msra.mxu0 %v166_v10 }
  0x20   : > { %379 = vmatprep.subr.mxu0 %v408_v1 }
  0x21   : > { %380 = vmatpush3.msra.mxu0 %v165_v11 }
  0x22   : > { %382 = vmatmul.mubr.msk.f32.vlgmr.msra.gmra.mxu0 %vm176_vm1, %v164_v12 }
  0xe2   : > { %v246_v13 = vpop.f32.mrf.mxu0 }
  0xe3   : > { %394 = vtanh.f32 %v246_v13 }
  0xe4   : > { %v383_v14 = vpop.f32.mrf.mxu0 }
  0xf0   : > { %v395_v16 = vpop.eup %394 }
  0xf1   : > { %v258_v17 = vmul.f32 %v395_v16, %v344_v15 }
  0xf3   : > { %v260_v18 = vsel %vm259_vm2, %v258_v17, 0.0 }
  0xf4   : > { %261 = vadd.xlane.f32.xlu0 %v260_v18 }
 0x17d   : > { %v262_v19 = vpop.xlane.xlu0 %261 }
 0x17e   : > { %v263_v20 = vrot.slane %v262_v19, 4 }
 0x180   : > { %v264_v21 = vmax.f32 %v262_v19, %v263_v20 }
 0x182   : > { %v265_v22 = vrot.slane %v264_v21, 2 }
 0x184   : > { %v266_v23 = vmax.f32 %v264_v21, %v265_v22 }
 0x186   : > { %v267_v24 = vrot.slane %v266_v23, 1 }
 0x188   : > { %v268_v25 = vmax.f32 %v266_v23, %v267_v24 }
 0x18a   : > { %v269_v26 = vsub.f32 %v262_v19, %v268_v25 }
 0x18c   : > { %v270_v27 = vmul.f32 1.442695, %v269_v26 }
 0x18e   : > { %396 = vpow2.f32 %v270_v27 }
 0x19b   : > { %v397_v28 = vpop.eup %396 }
 0x19c   : > { %v272_v29 = vrot.slane %v397_v28, 4 }
 0x19e   : > { %v273_v30 = vadd.f32 %v397_v28, %v272_v29 }
 0x1a0   : > { %v274_v31 = vrot.slane %v273_v30, 2 }
 0x1a2   : > { %v275_v32 = vadd.f32 %v274_v31, %v273_v30 }
 0x1a4   : > { %v276_v33 = vrot.slane %v275_v32, 1 }
 0x1a6   : > { %v277_v34 = vadd.f32 %v276_v33, %v275_v32 }
 0x1a8   : > { %398 = vrcp.f32 %v277_v34 }
 0x1b5   : > { %v399_v35 = vpop.eup %398 }
 0x1b6   : > { %v279_v36 = vmul.f32 %v399_v35, %v397_v28 }
 0x1b8   : > { %v280_v37 = vmul.f32 %v279_v36, %v164_v12 }
 0x1ba   : > { %v281_v38 = vsel %vm176_vm1, %v280_v37, 0.0 }
 0x1bb   : > { %v282_v39 = vrot.slane %v281_v38, 4 }
 0x1bd   : > { %v283_v40 = vadd.f32 %v282_v39, %v281_v38 }
 0x1bf   : > { %v284_v41 = vrot.slane %v283_v40, 2 }
 0x1c1   : > { %v285_v42 = vadd.f32 %v284_v41, %v283_v40 }
 0x1c3   : > { %v286_v43 = vrot.slane %v285_v42, 1 }
 0x1c5   : > { %v287_v44 = vadd.f32 %v286_v43, %v285_v42 }
 0x1c7   : > { %289 = vst.msk [vmem:[%s163_s19] sm:$0x1] %vm288_vm3, %v287_v44 }
 0x1c8 PF: > { %s13_s12 = sadd.s32 1, %s406_s12  }
 0x1c9   : > { %p10_p4 = scmp.ge.s32.totalorder %s13_s12, 4  }
 0x1cb   :  { %12 = sbr.rel (!%p10_p4) target bundleno = 1 (0x1), region = 62 }

// kernel: mwan_forward.31
= control target key start
LH: loop header
LB: loop body
LE: loop exit
PB: predicated region body
PF: predicated region fallthrough
CT: control target
= control target key end

     0   :  { %s475_s12 = smov 0   ;;  %s608_s0 = inlined_call_operand.vmem [shape: f32[2,8,64], index: 0, kind: input, shape index: {}]   ;;  %s609_s1 = inlined_call_operand.vmem [shape: f32[2,8,64], index: 1, kind: input, shape index: {}]   ;;  %s610_s2 = inlined_call_operand.vmem [shape: f32[256,128], index: 2, kind: input, shape index: {}]   ;;  %s611_s3 = inlined_call_operand.vmem [shape: f32[2,8,64], index: 3, kind: output, shape index: {}]  }
   0x1 LB: > { %s385_s13 = sadd.s32 4294967295, %s452_s12   ;;  %p389_p0 = scmp.ge.s32.totalorder %s452_s12, 1  ;;  %s452_s12 = sphi %s475_s12, %s13_s12  }
   0x2   : > { %p145_p1 = scmp.lt.s32.totalorder %s452_s12, 3 }
   0x4   : > { %p146_p2 = pnand %p389_p0, %p145_p1 }
   0x5   : > { %p171_p3 = scmp.lt.s32.totalorder (!%p146_p2), %s385_s13, 1  ;;  %s454_s17 = smov (!%p146_p2), 64  }
   0x6   : > { %149 = sbr.rel (%p146_p2) target bundleno = 490 (0x1ea), region = 32 }
   0xb   : > { %v229_v0 = vld [vmem:[%s610_s2 + $0xf8] sm:$0xff]  ;;  %v228_v2 = vld [vmem:[%s610_s2 + $0xf0] sm:$0xff]  ;;  %s613_s13 = smov (!%p171_p3, %s385_s13), 1  ;;  %v227_v4 = vld [vmem:[%s610_s2 + $0xe8] sm:$0xff]  ;;  %vm195_vm0 = vcmask 523264  }
   0xc   : > { %v213_v1 = vld [vmem:[%s610_s2 + $0x78] sm:$0xff]  ;;  %396 = vmatprep.subr.mxu0 %v229_v0  ;;  %v212_v3 = vld [vmem:[%s610_s2 + $0x70] sm:$0xff]  ;;  %v211_v5 = vld [vmem:[%s610_s2 + $0x68] sm:$0xff]  ;;  %s501_s26 = sshll.u32 %s613_s13, 3 }
   0xd   : > { %397 = vmatpush3.msra.mxu0 %v213_v1  ;;  %v226_v6 = vld [vmem:[%s610_s2 + $0xe0] sm:$0xff]  ;;  %s174_s4 = scalar_lea.vmem %s608_s0, %s501_s26  ;;  %s178_s7 = scalar_lea.vmem %s609_s1, %s501_s26  ;;  %v225_v10 = vld [vmem:[%s610_s2 + $0xd8] sm:$0xff]  ;;  %v224_v13 = vld [vmem:[%s610_s2 + $0xd0] sm:$0xff] }
   0xe   : > { %398 = vmatprep.subr.mxu0 %v228_v2  ;;  %v210_v7 = vld [vmem:[%s610_s2 + $0x60] sm:$0xff]  ;;  %v209_v12 = vld [vmem:[%s610_s2 + $0x58] sm:$0xff]  ;;  %v208_v14 = vld [vmem:[%s610_s2 + $0x50] sm:$0xff]  ;;  %s182_s13 = scalar_lea.vmem %s611_s3, %s501_s26 }
   0xf   : > { %399 = vmatpush3.msra.mxu0 %v212_v3  ;;  %v517_v8 = vld [vmem:[%s174_s4] sm:$0xff]  ;;  %v223_v15 = vld [vmem:[%s610_s2 + $0xc8] sm:$0xff]  ;;  %v221_v19 = vld [vmem:[%s610_s2 + $0xb8] sm:$0xff] }
  0x10   : > { %400 = vmatprep.subr.mxu0 %v227_v4  ;;  %v184_v9 = vld [vmem:[%s178_s7] sm:$0xff]  ;;  %v207_v16 = vld [vmem:[%s610_s2 + $0x48] sm:$0xff]  ;;  %v205_v20 = vld [vmem:[%s610_s2 + $0x38] sm:$0xff] }
  0x11   : > { %401 = vmatpush3.msra.mxu0 %v211_v5  ;;  %v186_v11 = vmul.f32 %v184_v9, %v517_v8  ;;  %v222_v17 = vld [vmem:[%s610_s2 + $0xc0] sm:$0xff]  ;;  %v220_v21 = vld [vmem:[%s610_s2 + $0xb0] sm:$0xff]  ;;  %v219_v23 = vld [vmem:[%s610_s2 + $0xa8] sm:$0xff]  ;;  %v185_v35 = vsub.f32 %v517_v8, %v184_v9 }
  0x12   : > { %402 = vmatprep.subr.mxu0 %v226_v6  ;;  %v206_v18 = vld [vmem:[%s610_s2 + $0x40] sm:$0xff]  ;;  %v204_v22 = vld [vmem:[%s610_s2 + $0x30] sm:$0xff]  ;;  %v203_v24 = vld [vmem:[%s610_s2 + $0x28] sm:$0xff] }
  0x13   : > { %403 = vmatpush3.msra.mxu0 %v210_v7  ;;  %192 = vrot.lane.b32.xlu0 %v186_v11, %s454_s17  ;;  %v218_v25 = vld [vmem:[%s610_s2 + $0xa0] sm:$0xff]  ;;  %v217_v27 = vld [vmem:[%s610_s2 + $0x98] sm:$0xff]  ;;  %v216_v29 = vld [vmem:[%s610_s2 + $0x90] sm:$0xff] }
  0x14   : > { %404 = vmatprep.subr.mxu0 %v225_v10  ;;  %v202_v26 = vld [vmem:[%s610_s2 + $0x20] sm:$0xff]  ;;  %v201_v28 = vld [vmem:[%s610_s2 + $0x18] sm:$0xff]  ;;  %v200_v30 = vld [vmem:[%s610_s2 + $0x10] sm:$0xff] }
  0x15   : > { %405 = vmatpush3.msra.mxu0 %v209_v12  ;;  %v215_v31 = vld [vmem:[%s610_s2 + $0x88] sm:$0xff]  ;;  %v214_v33 = vld [vmem:[%s610_s2 + $0x80] sm:$0xff] }
  0x16   : > { %406 = vmatprep.subr.mxu0 %v224_v13  ;;  %v199_v32 = vld [vmem:[%s610_s2 + $0x8] sm:$0xff]  ;;  %v198_v34 = vld [vmem:[%s610_s2] sm:$0xff] }
  0x17   : > { %407 = vmatpush3.msra.mxu0 %v208_v14  ;;  %188 = vrot.lane.b32.xlu0 %v184_v9, %s454_s17 }
  0x18   : > { %408 = vmatprep.subr.mxu0 %v223_v15 }
  0x19   : > { %409 = vmatpush3.msra.mxu0 %v207_v16 }
  0x1a   : > { %410 = vmatprep.subr.mxu0 %v222_v17 }
  0x1b   : > { %411 = vmatpush3.msra.mxu0 %v206_v18 }
  0x1c   : > { %412 = vmatprep.subr.mxu0 %v221_v19 }
  0x1d   : > { %413 = vmatpush3.msra.mxu0 %v205_v20 }
  0x1e   : > { %414 = vmatprep.subr.mxu0 %v220_v21 }
  0x1f   : > { %415 = vmatpush3.msra.mxu0 %v204_v22 }
  0x20   : > { %416 = vmatprep.subr.mxu0 %v219_v23 }
  0x21   : > { %417 = vmatpush3.msra.mxu0 %v203_v24 }
  0x22   : > { %418 = vmatprep.subr.mxu0 %v218_v25 }
  0x23   : > { %419 = vmatpush3.msra.mxu0 %v202_v26 }
  0x24   : > { %420 = vmatprep.subr.mxu0 %v217_v27 }
  0x25   : > { %421 = vmatpush3.msra.mxu0 %v201_v28 }
  0x26   : > { %422 = vmatprep.subr.mxu0 %v216_v29 }
  0x27   : > { %423 = vmatpush3.msra.mxu0 %v200_v30 }
  0x28   : > { %424 = vmatprep.subr.mxu0 %v215_v31 }
  0x29   : > { %425 = vmatpush3.msra.mxu0 %v199_v32 }
  0x2a   : > { %426 = vmatprep.subr.mxu0 %v214_v33 }
  0x2b   : > { %427 = vmatpush3.msra.mxu0 %v198_v34 }
  0x85   : > { %v193_v36 = vpop.permute.xlu0 %192 }
  0x86   : > { %v197_v37 = vsel %vm195_vm0, %v185_v35, %v193_v36 }
  0x87   : > { %294 = vmatprep.mubr.f32.mxu0 %v197_v37 }
  0x89   : > { %v189_v38 = vpop.permute.xlu0 %188 }
  0x8a   : > { %v196_v39 = vsel %vm195_vm0, %v517_v8, %v189_v38 }
  0x8b   : > { %295 = vmatmul.mubr.f32.vlgmr.msra.gmra.mxu0 %v196_v39 }
 0x14b   : > { %v428_v40 = vpop.f32.mrf.mxu0 }
 0x14d   : > { %v429_v41 = vpop.f32.mrf.mxu0 }
 0x14e   : > { %v430_v42 = vadd.f32 %v429_v41, %v428_v40 }
 0x150   : > { %v393_v43 = vmul.f32 -1.442695, %v430_v42 }
 0x152   : > { %440 = vpow2.f32 %v393_v43 }
 0x15f   : > { %v441_v44 = vpop.eup %440 }
 0x160   : > { %v304_v45 = vadd.f32 1.0, %v441_v44 }
 0x162   : > { %442 = vrcp.f32 %v304_v45 }
 0x163   : > { %444 = vtanh.f32 %v430_v42 }
 0x16f   : > { %v443_v46 = vpop.eup %442 }
 0x170   : > { %308 = vrot.lane.b32.xlu1 %v443_v46, %s454_s17  ;;  %v312_v47 = vsub.f32 1.0, %v443_v46  ;;  %v445_v50 = vpop.eup %444 }
 0x172   : > { %v313_v48 = vmul.f32 %v312_v47, %v189_v38 }
 0x174   : > { %315 = vrot.lane.b32.xlu1 %v313_v48, %s454_s17 }
 0x1e2   : > { %v309_v49 = vpop.permute.xlu1 %308 }
 0x1e3   : > { %v311_v51 = vmul.f32 %v445_v50, %v309_v49 }
 0x1e6   : > { %v316_v52 = vpop.permute.xlu1 %315 }
 0x1e7   : > { %v318_v53 = vadd.f32 %v316_v52, %v311_v51 }
 0x1e9   : > { %319 = vst.msk [vmem:[%s182_s13] sm:$0xff] %vm195_vm0, %v318_v53 }
 0x1ea PF: > { %s13_s12 = sadd.s32 1, %s452_s12  }
 0x1eb   : > { %p10_p4 = scmp.ge.s32.totalorder %s13_s12, 4  }
 0x1ed   :  { %12 = sbr.rel (!%p10_p4) target bundleno = 1 (0x1), region = 65 }

// kernel: mwan_forward.25
= control target key start
LH: loop header
LB: loop body
LE: loop exit
PB: predicated region body
PF: predicated region fallthrough
CT: control target
= control target key end

     0   :  { %s624_s12 = smov 0   ;;  %s685_s0 = inlined_call_operand.vmem [shape: f32[2,8,64], index: 0, kind: input, shape index: {}]   ;;  %s686_s1 = inlined_call_operand.vmem [shape: f32[2,10,64], index: 1, kind: input, shape index: {}]   ;;  %s687_s2 = inlined_call_operand.vmem [shape: f32[64,64], index: 2, kind: input, shape index: {}]   ;;  %s688_s3 = inlined_call_operand.vmem [shape: f32[2,8,64], index: 3, kind: output, shape index: {}]  }
   0x1 LB: > { %s512_s13 = sadd.s32 4294967295, %s600_s12   ;;  %p516_p0 = scmp.ge.s32.totalorder %s600_s12, 1  ;;  %s600_s12 = sphi %s624_s12, %s13_s12  }
   0x2   : > { %p146_p1 = scmp.lt.s32.totalorder %s600_s12, 3 }
   0x4   : > { %p147_p2 = pnand %p516_p0, %p146_p1 }
   0x5   : > { %p173_p3 = scmp.lt.s32.totalorder (!%p147_p2), %s512_s13, 1 }
   0x6   : > { %150 = sbr.rel (%p147_p2) target bundleno = 928 (0x3a0), region = 32 }
   0xb   : > { %v196_v0 = vld [vmem:[%s687_s2 + $0x38] sm:$0xff]  ;;  %v195_v1 = vld [vmem:[%s687_s2 + $0x30] sm:$0xff]  ;;  %v194_v2 = vld [vmem:[%s687_s2 + $0x28] sm:$0xff]  ;;  %s690_s13 = smov (!%p173_p3, %s512_s13), 1  ;;  %vm197_vm0 = vcmask 523264   ;;  %v602_v10 = vmov 0.0  }
   0xc   : > { %547 = vmatprep.subr.mxu0 %v196_v0  ;;  %v193_v3 = vld [vmem:[%s687_s2 + $0x20] sm:$0xff]  ;;  %s530_s22 = sshll.u32 %s690_s13, 4  ;;  %v192_v4 = vld [vmem:[%s687_s2 + $0x18] sm:$0xff]  ;;  %v191_v6 = vld [vmem:[%s687_s2 + $0x10] sm:$0xff]  ;;  %566 = vmatprep.subr.mxu1 %v602_v10  ;;  %vm603_vm1 = vmmov 0   ;;  %s517_s7 = sshll.u32 %s690_s13, 3 }
   0xd   : > { %548 = vmatpush3.msra.mxu0 %v196_v0  ;;  %s181_s25 = scalar_lea.vmem %s686_s1, %s530_s22  ;;  %v190_v7 = vld [vmem:[%s687_s2 + $0x8] sm:$0xff]  ;;  %v189_v8 = vld [vmem:[%s687_s2] sm:$0xff]  ;;  %570 = vmatprep.mubr.msk.f32.mxu1 %vm603_vm1, %v602_v10  ;;  %s176_s10 = scalar_lea.vmem %s685_s0, %s517_s7  ;;  %vm358_vm2 = vcmask 80896   ;;  %vm373_vm3 = vcmask 1041408  }
   0xe   : > { %549 = vmatprep.subr.mxu0 %v195_v1  ;;  %v187_v5 = vld [vmem:[%s181_s25] sm:$0xff]  ;;  %v188_v9 = vld [vmem:[%s181_s25 + $0x8] sm:$0x3]  ;;  %s185_s15 = scalar_lea.vmem %s688_s3, %s517_s7 }
   0xf   : > { %550 = vmatpush3.msra.mxu0 %v195_v1  ;;  %563 = vmatprep.mubr.msk.f32.mxu0 %vm197_vm0, %v187_v5  ;;  %v186_v13 = vld [vmem:[%s176_s10] sm:$0xff] }
  0x10   : > { %551 = vmatprep.subr.mxu0 %v194_v2 }
  0x11   : > { %552 = vmatpush3.msra.mxu0 %v194_v2 }
  0x12   : > { %553 = vmatprep.subr.mxu0 %v193_v3 }
  0x13   : > { %554 = vmatpush3.msra.mxu0 %v193_v3 }
  0x14   : > { %555 = vmatprep.subr.mxu0 %v192_v4 }
  0x15   : > { %556 = vmatpush3.msra.mxu0 %v192_v4 }
  0x16   : > { %557 = vmatprep.subr.mxu0 %v191_v6 }
  0x17   : > { %558 = vmatpush3.msra.mxu0 %v191_v6 }
  0x18   : > { %559 = vmatprep.subr.mxu0 %v190_v7 }
  0x19   : > { %560 = vmatpush3.msra.mxu0 %v190_v7 }
  0x1a   : > { %561 = vmatprep.subr.mxu0 %v189_v8 }
  0x1b   : > { %562 = vmatpush3.msra.mxu0 %v189_v8 }
  0x1c   : > { %564 = vmatmul.mubr.msk.f32.vlgmr.msra.gmra.mxu0 %vm197_vm0, %v188_v9 }
  0xdc   : > { %v565_v11 = vpop.f32.mrf.mxu0 }
  0xdd   : > { %567 = vmatpush3.xpose.msk.msra.mxu1 %vm197_vm0, %v565_v11 }
  0xde   : > { %568 = vmatprep.subr.mxu1 %v602_v10  ;;  %v270_v12 = vpop.f32.mrf.mxu0 }
  0xe1   : > { %569 = vmatpush3.xpose.msk.msra.mxu1 %vm197_vm0, %v270_v12 }
  0xe2   : > { %573 = vmatprep.subr.mxu1 %v602_v10 }
  0xe4   : > { %571 = vmatmul.mubr.msk.f32.vlgmr.msra.gmra.mxu1 %vm197_vm0, %v186_v13 }
  0xe5   : > { %577 = vmatprep.mubr.msk.f32.mxu1 %vm603_vm1, %v602_v10  ;;  %574 = vmatpush3.msk.msra.mxu1 %vm373_vm3, %v188_v9 }
  0xe6   : > { %575 = vmatprep.subr.mxu1 %v602_v10 }
  0xe7   : > { %576 = vmatpush3.msra.mxu1 %v187_v5 }
 0x1a4   : > { %v354_v14 = vpop.f32.mrf.mxu1 }
 0x1a5   : > { %v359_v15 = vsel %vm358_vm2, %v354_v14, -inf }
 0x1a6   : > { %360 = vmax.xlane.f32.xlu0 %v359_v15  ;;  %v572_v16 = vpop.f32.mrf.mxu1 }
 0x22f   : > { %v361_v17 = vpop.xlane.xlu0 %360 }
 0x230   : > { %v362_v18 = vsub.f32 %v354_v14, %v361_v17 }
 0x232   : > { %v363_v19 = vmul.f32 1.442695, %v362_v18 }
 0x234   : > { %590 = vpow2.f32 %v363_v19 }
 0x241   : > { %v591_v20 = vpop.eup %590 }
 0x242   : > { %v365_v21 = vsel %vm358_vm2, %v591_v20, 0.0 }
 0x243   : > { %366 = vadd.xlane.f32.xlu0 %v365_v21 }
 0x2cc   : > { %v367_v22 = vpop.xlane.xlu0 %366 }
 0x2cd   : > { %592 = vrcp.f32 %v367_v22 }
 0x2da   : > { %v593_v23 = vpop.eup %592 }
 0x2db   : > { %v369_v24 = vmul.f32 %v593_v23, %v591_v20 }
 0x2dd   : > { %578 = vmatmul.mubr.msk.f32.vlgmr.msra.gmra.mxu1 %vm358_vm2, %v369_v24 }
 0x39d   : > { %v442_v25 = vpop.f32.mrf.mxu1 }
 0x39e   : > { %446 = vst.msk [vmem:[%s185_s15] sm:$0xff] %vm197_vm0, %v442_v25 }
 0x39f   : > { %v579_v26 = vpop.f32.mrf.mxu1 }
 0x3a0 PF: > { %s13_s12 = sadd.s32 1, %s600_s12  }
 0x3a1   : > { %p10_p4 = scmp.ge.s32.totalorder %s13_s12, 4  }
 0x3a3   :  { %12 = sbr.rel (!%p10_p4) target bundleno = 1 (0x1), region = 65 }

// kernel: mwan_forward.24
= control target key start
LH: loop header
LB: loop body
LE: loop exit
PB: predicated region body
PF: predicated region fallthrough
CT: control target
= control target key end

     0   :  { %s1505_s18 = smov 0   ;;  %s1947_s0 = inlined_call_operand.vmem [shape: f32[2,8,64], index: 0, kind: input, shape index: {}]   ;;  %s1948_s1 = inlined_call_operand.vmem [shape: f32[2,10,64], index: 1, kind: input, shape index: {}]   ;;  %s1949_s2 = inlined_call_operand.vmem [shape: f32[64,32], index: 2, kind: input, shape index: {}]   ;;  %s1950_s3 = inlined_call_operand.vmem [shape: f32[64,32], index: 3, kind: input, shape index: {}]   ;;  %s1951_s4 = inlined_call_operand.vmem [shape: f32[1,32], index: 4, kind: input, shape index: {}]   ;;  %s1952_s5 = inlined_call_operand.vmem [shape: f32[2,8,64], index: 5, kind: output, shape index: {}]  }
   0x1 LB: > { %s1298_s19 = sadd.s32 4294967295, %s1469_s18   ;;  %p1302_p0 = scmp.ge.s32.totalorder %s1469_s18, 1  ;;  %s1469_s18 = sphi %s1505_s18, %s15_s18  }
   0x2   : > { %p196_p1 = scmp.lt.s32.totalorder %s1469_s18, 3 }
   0x4   : > { %p197_p2 = pnand %p1302_p0, %p196_p1 }
   0x5   : > { %p1519_p3 = scmp.lt.s32.totalorder (!%p197_p2), %s1298_s19, 1 }
   0x6   : > { %200 = sbr.rel (%p197_p2) target bundleno = 1281 (0x501), region = 40 }
   0xb   : > { %v340_v0 = vld [vmem:[%s1950_s3 + $0x38] sm:$0xff]  ;;  %v1471_v2 = vmov 0.0   ;;  %v339_v3 = vld [vmem:[%s1950_s3 + $0x30] sm:$0xff]  ;;  %v248_v5 = vld [vmem:[%s1949_s2 + $0x28] sm:$0xff]  ;;  %s1955_s19 = smov (!%p1519_p3, %s1298_s19), 1  ;;  %vm1472_vm0 = vmmov 0   ;;  %v419_v22 = vlaneseq }
   0xc   : > { %v250_v1 = vld [vmem:[%s1949_s2 + $0x38] sm:$0xff]  ;;  %1357 = vmatprep.subr.mxu1 %v1471_v2  ;;  %v249_v4 = vld [vmem:[%s1949_s2 + $0x30] sm:$0xff]  ;;  %v338_v6 = vld [vmem:[%s1950_s3 + $0x28] sm:$0xff]  ;;  %s1303_s20 = sshll.u32 %s1955_s19, 3  ;;  %s1315_s23 = sshll.u32 %s1955_s19, 4  ;;  %1373 = vmatprep.mubr.msk.f32.mxu1 %vm1472_vm0, %v1471_v2  ;;  %vm251_vm1 = vcmask 523264  }
   0xd   : > { %1338 = vmatprep.subr.mxu0 %v250_v1  ;;  %1358 = vmatpush3.msra.mxu1 %v340_v0  ;;  %v247_v7 = vld [vmem:[%s1949_s2 + $0x20] sm:$0xff]  ;;  %v246_v9 = vld [vmem:[%s1949_s2 + $0x18] sm:$0xff]  ;;  %v245_v11 = vld [vmem:[%s1949_s2 + $0x10] sm:$0xff]  ;;  %s230_s30 = scalar_lea.vmem %s1947_s0, %s1303_s20  ;;  %s235_s8 = scalar_lea.vmem %s1948_s1, %s1315_s23  ;;  %v1473_v20 = vmov 1966171168   ;;  %v1602_v24 = vshrl.u32 %v419_v22, 7 }
   0xe   : > { %1339 = vmatpush3.msra.mxu0 %v250_v1  ;;  %1359 = vmatprep.subr.mxu1 %v1471_v2  ;;  %v337_v8 = vld [vmem:[%s1950_s3 + $0x20] sm:$0xff]  ;;  %v336_v10 = vld [vmem:[%s1950_s3 + $0x18] sm:$0xff]  ;;  %v335_v12 = vld [vmem:[%s1950_s3 + $0x10] sm:$0xff]  ;;  %v417_v21 = vunpack.c.l.s4 %v1473_v20  ;;  %vm559_vm2 = vcmask 261120   ;;  %vm563_vm3 = vcmask 254976   ;;  %vm636_vm4 = vcmask 130112   ;;  %s239_s17 = scalar_lea.vmem %s1952_s5, %s1303_s20 }
   0xf   : > { %1340 = vmatprep.subr.mxu0 %v249_v4  ;;  %1360 = vmatpush3.msra.mxu1 %v339_v3  ;;  %v334_v13 = vld [vmem:[%s1950_s3 + $0x8] sm:$0xff]  ;;  %v333_v15 = vld [vmem:[%s1950_s3] sm:$0xff]  ;;  %v1606_v29 = vsub.s32 0, %v1602_v24  ;;  %vm701_vm5 = vcmask 1041409   ;;  %vm703_vm6 = vcmask 1042434   ;;  %vm705_vm7 = vcmask 1043459  }
  0x10   : > { %1341 = vmatpush3.msra.mxu0 %v249_v4  ;;  %1361 = vmatprep.subr.mxu1 %v1471_v2  ;;  %v244_v14 = vld [vmem:[%s1949_s2 + $0x8] sm:$0xff]  ;;  %v243_v16 = vld [vmem:[%s1949_s2] sm:$0xff]  ;;  %v418_v23 = vunpack.c.0.s8 %v417_v21  ;;  %vm707_vm8 = vcmask 1044484   ;;  %vm709_vm9 = vcmask 1045509   ;;  %vm711_vm10 = vcmask 1046534  }
  0x11   : > { %1342 = vmatprep.subr.mxu0 %v248_v5  ;;  %1362 = vmatpush3.msra.mxu1 %v338_v6  ;;  %v240_v17 = vld [vmem:[%s230_s30] sm:$0xff]  ;;  %v1591_v19 = vld [vmem:[%s235_s8 + $0x8] sm:$0x3]  ;;  %vm713_vm11 = vcmask 1047559   ;;  %vm716_vm12 = vcmask 80896   ;;  %vm1159_vm13 = vcmask 1041408  }
  0x12   : > { %1343 = vmatpush3.msra.mxu0 %v248_v5  ;;  %1363 = vmatprep.subr.mxu1 %v1471_v2  ;;  %v1589_v18 = vld [vmem:[%s235_s8] sm:$0xff]  ;;  %v421_v25 = vsub.s32 %v418_v23, %v1602_v24 }
  0x13   : > { %1344 = vmatprep.subr.mxu0 %v247_v7  ;;  %1364 = vmatpush3.msra.mxu1 %v337_v8  ;;  %v1625_v61 = vld [vmem:[%s1951_s4] ss:$0 sm:$0xff] }
  0x14   : > { %1345 = vmatpush3.msra.mxu0 %v247_v7  ;;  %1365 = vmatprep.subr.mxu1 %v1471_v2 }
  0x15   : > { %1346 = vmatprep.subr.mxu0 %v246_v9  ;;  %1366 = vmatpush3.msra.mxu1 %v336_v10 }
  0x16   : > { %1347 = vmatpush3.msra.mxu0 %v246_v9  ;;  %1367 = vmatprep.subr.mxu1 %v1471_v2 }
  0x17   : > { %1348 = vmatprep.subr.mxu0 %v245_v11  ;;  %1368 = vmatpush3.msra.mxu1 %v335_v12 }
  0x18   : > { %1349 = vmatpush3.msra.mxu0 %v245_v11  ;;  %1369 = vmatprep.subr.mxu1 %v1471_v2 }
  0x19   : > { %1370 = vmatpush3.msra.mxu1 %v334_v13  ;;  %1350 = vmatprep.subr.mxu0 %v244_v14 }
  0x1a   : > { %1371 = vmatprep.subr.mxu1 %v1471_v2  ;;  %1351 = vmatpush3.msra.mxu0 %v244_v14 }
  0x1b   : > { %1372 = vmatpush3.msra.mxu1 %v333_v15  ;;  %1352 = vmatprep.subr.mxu0 %v243_v16 }
  0x1c   : > { %1374 = vmatmul.mubr.msk.f32.vlgmr.msra.gmra.mxu1 %vm251_vm1, %v240_v17  ;;  %1353 = vmatpush3.msra.mxu0 %v243_v16 }
  0x1d   : > { %1354 = vmatprep.mubr.msk.f32.mxu0 %vm251_vm1, %v1589_v18  ;;  %1376 = vmatprep.subr.mxu0 %v1471_v2 }
  0x1e   : > { %1355 = vmatmul.mubr.msk.f32.vlgmr.msra.gmra.mxu0 %vm251_vm1, %v1591_v19 }
  0x1f   : > { %1380 = vmatprep.mubr.msk.f32.mxu0 %vm1472_vm0, %v1471_v2  ;;  %1377 = vmatpush3.msk.msra.mxu0 %vm1159_vm13, %v1591_v19 }
  0x20   : > { %1378 = vmatprep.subr.mxu0 %v1471_v2 }
  0x21   : > { %1379 = vmatpush3.msra.mxu0 %v1589_v18 }
  0xdc   : > { %v410_v26 = vpop.f32.mrf.mxu1 }
  0xdd   : > { %v415_v27 = vcombine.high %v410_v26, %v410_v26  ;;  %v422_v28 = vrot.slane %v410_v26, %v421_v25 }
  0xde   : > { %v1375_v30 = vpop.f32.mrf.mxu1  ;;  %v1608_v31 = vpop.f32.mrf.mxu0 }
  0xdf   : > { %v429_v32 = vrot.slane %v415_v27, %v421_v25  ;;  %v430_v33 = vcombine.high %v422_v28, %v422_v28  ;;  %v438_v34 = vrot.slane %v422_v28, %v421_v25 }
  0xe0   : > { %v324_v38 = vpop.f32.mrf.mxu0 }
  0xe1   : > { %v445_v35 = vrot.slane %v429_v32, %v421_v25  ;;  %v452_v36 = vrot.slane %v430_v33, %v421_v25  ;;  %v460_v37 = vcombine.high %v438_v34, %v438_v34  ;;  %v467_v39 = vrot.slane %v438_v34, %v1606_v29 }
  0xe2   : > { %v431_v44 = vcombine.high %v429_v32, %v429_v32 }
  0xe3   : > { %v471_v40 = vrot.slane %v452_v36, %v1606_v29  ;;  %v475_v41 = vrot.slane %v460_v37, %v1606_v29  ;;  %v504_v42 = vadd.f32 %v467_v39, %v324_v38  ;;  %v505_v43 = vadd.f32 %v1608_v31, %v467_v39 }
  0xe4   : > { %v462_v45 = vcombine.high %v452_v36, %v452_v36  ;;  %v483_v46 = vrot.slane %v445_v35, %v1606_v29  ;;  %v459_v51 = vrot.slane %v431_v44, %v421_v25  ;;  %v461_v55 = vcombine.high %v445_v35, %v445_v35 }
  0xe5   : > { %1397 = vtanh.f32 %v504_v42  ;;  %v506_v47 = vadd.f32 %v471_v40, %v324_v38  ;;  %v507_v48 = vadd.f32 %v1608_v31, %v471_v40  ;;  %v508_v49 = vadd.f32 %v475_v41, %v324_v38 }
  0xe6   : > { %1399 = vtanh.f32 %v505_v43  ;;  %v509_v50 = vadd.f32 %v1608_v31, %v475_v41  ;;  %v479_v52 = vrot.slane %v462_v45, %v1606_v29  ;;  %v512_v53 = vadd.f32 %v483_v46, %v324_v38 }
  0xe7   : > { %1401 = vtanh.f32 %v506_v47  ;;  %v513_v54 = vadd.f32 %v1608_v31, %v483_v46  ;;  %v487_v56 = vrot.slane %v459_v51, %v1606_v29  ;;  %v463_v59 = vcombine.high %v459_v51, %v459_v51 }
  0xe8   : > { %1403 = vtanh.f32 %v507_v48  ;;  %v510_v57 = vadd.f32 %v479_v52, %v324_v38  ;;  %v511_v58 = vadd.f32 %v1608_v31, %v479_v52  ;;  %v491_v60 = vrot.slane %v461_v55, %v1606_v29 }
  0xe9   : > { %1405 = vtanh.f32 %v508_v49  ;;  %v514_v62 = vadd.f32 %v487_v56, %v324_v38  ;;  %v515_v3 = vadd.f32 %v1608_v31, %v487_v56  ;;  %v495_v5 = vrot.slane %v463_v59, %v1606_v29 }
  0xea   : > { %1407 = vtanh.f32 %v509_v50  ;;  %v516_v6 = vadd.f32 %v491_v60, %v324_v38  ;;  %v517_v14 = vadd.f32 %v1608_v31, %v491_v60 }
  0xeb   : > { %1409 = vtanh.f32 %v512_v53  ;;  %v518_v20 = vadd.f32 %v495_v5, %v324_v38  ;;  %v519_v26 = vadd.f32 %v1608_v31, %v495_v5 }
  0xec   : > { %1411 = vtanh.f32 %v513_v54 }
  0xed   : > { %1413 = vtanh.f32 %v510_v57 }
  0xee   : > { %1415 = vtanh.f32 %v511_v58 }
  0xef   : > { %1417 = vtanh.f32 %v514_v62 }
  0xf0   : > { %1419 = vtanh.f32 %v515_v3 }
  0xf1   : > { %1421 = vtanh.f32 %v516_v6 }
  0xf2   : > { %v1398_v63 = vpop.eup %1397  ;;  %1423 = vtanh.f32 %v517_v14 }
  0xf3   : > { %v1400_v0 = vpop.eup %1399  ;;  %v543_v1 = vmul.f32 %v1398_v63, %v1625_v61  ;;  %1425 = vtanh.f32 %v518_v20 }
  0xf4   : > { %v1402_v4 = vpop.eup %1401  ;;  %v544_v10 = vmul.f32 %v1400_v0, %v1625_v61  ;;  %1427 = vtanh.f32 %v519_v26 }
  0xf5   : > { %v1404_v7 = vpop.eup %1403  ;;  %v560_v8 = vsel %vm559_vm2, %v543_v1, 0.0  ;;  %v545_v9 = vmul.f32 %v1402_v4, %v1625_v61 }
  0xf6   : > { %v1406_v11 = vpop.eup %1405  ;;  %561 = vadd.xlane.f32.xlu0 %v560_v8  ;;  %v546_v13 = vmul.f32 %v1404_v7, %v1625_v61  ;;  %v564_v16 = vsel %vm563_vm3, %v544_v10, 0.0 }
  0xf7   : > { %v567_v12 = vsel %vm559_vm2, %v545_v9, 0.0  ;;  %v1408_v15 = vpop.eup %1407  ;;  %v547_v17 = vmul.f32 %v1406_v11, %v1625_v61 }
  0xf8   : > { %568 = vadd.xlane.f32.xlu1 %v567_v12  ;;  %v1410_v21 = vpop.eup %1409  ;;  %v570_v23 = vsel %vm563_vm3, %v546_v13, 0.0  ;;  %v548_v25 = vmul.f32 %v1408_v15, %v1625_v61 }
  0xf9   : > { %v1412_v27 = vpop.eup %1411  ;;  %v573_v28 = vsel %vm559_vm2, %v547_v17, 0.0  ;;  %v551_v30 = vmul.f32 %v1410_v21, %v1625_v61 }
  0xfa   : > { %565 = vadd.xlane.f32.xlu0 %v564_v16  ;;  %v1414_v32 = vpop.eup %1413  ;;  %v576_v33 = vsel %vm563_vm3, %v548_v25, 0.0  ;;  %v552_v34 = vmul.f32 %v1412_v27, %v1625_v61 }
  0xfb   : > { %v1416_v35 = vpop.eup %1415  ;;  %v585_v36 = vsel %vm559_vm2, %v551_v30, 0.0  ;;  %v549_v31 = vmul.f32 %v1414_v32, %v1625_v61 }
  0xfc   : > { %571 = vadd.xlane.f32.xlu1 %v570_v23  ;;  %v1418_v37 = vpop.eup %1417  ;;  %v588_v38 = vsel %vm563_vm3, %v552_v34, 0.0  ;;  %v550_v39 = vmul.f32 %v1416_v35, %v1625_v61 }
  0xfd   : > { %v1420_v40 = vpop.eup %1419  ;;  %v579_v41 = vsel %vm559_vm2, %v549_v31, 0.0  ;;  %v553_v42 = vmul.f32 %v1418_v37, %v1625_v61 }
  0xfe   : > { %574 = vadd.xlane.f32.xlu0 %v573_v28  ;;  %v1422_v43 = vpop.eup %1421  ;;  %v582_v44 = vsel %vm563_vm3, %v550_v39, 0.0  ;;  %v554_v45 = vmul.f32 %v1420_v40, %v1625_v61 }
  0xff   : > { %v1424_v46 = vpop.eup %1423  ;;  %v591_v47 = vsel %vm559_vm2, %v553_v42, 0.0  ;;  %v555_v48 = vmul.f32 %v1422_v43, %v1625_v61 }
 0x100   : > { %577 = vadd.xlane.f32.xlu1 %v576_v33  ;;  %v1426_v49 = vpop.eup %1425  ;;  %v594_v50 = vsel %vm563_vm3, %v554_v45, 0.0  ;;  %v556_v51 = vmul.f32 %v1424_v46, %v1625_v61 }
 0x101   : > { %v1428_v52 = vpop.eup %1427  ;;  %v597_v53 = vsel %vm559_vm2, %v555_v48, 0.0  ;;  %v557_v54 = vmul.f32 %v1426_v49, %v1625_v61 }
 0x102   : > { %586 = vadd.xlane.f32.xlu0 %v585_v36  ;;  %v600_v55 = vsel %vm563_vm3, %v556_v51, 0.0  ;;  %v558_v56 = vmul.f32 %v1428_v52, %v1625_v61  ;;  %v626_v61 = vand.u32 127, %v419_v22  ;;  %v1474_v52 = vmov 0  }
 0x103   : > { %v603_v57 = vsel %vm559_vm2, %v557_v54, 0.0  ;;  %1396 = vset.pattern.permute.xlu0 %v1474_v52  ;;  %1395 = vset.pattern.permute.xlu1 %v1474_v52 }
 0x104   : > { %589 = vadd.xlane.f32.xlu1 %v588_v38  ;;  %v606_v58 = vsel %vm563_vm3, %v558_v56, 0.0  ;;  %v631_v4 = vadd.s32 4294967288, %v626_v61  ;;  %v1688_v9 = vsub.s32 %v626_v61, %v1602_v24 }
 0x106   : > { %580 = vadd.xlane.f32.xlu0 %v579_v41  ;;  %v1683_v7 = vsub.s32 %v631_v4, %v1602_v24  ;;  %v731_v4 = vsub.s32 2, %v1602_v24 }
 0x108   : > { %583 = vadd.xlane.f32.xlu1 %v582_v44 }
 0x10a   : > { %592 = vadd.xlane.f32.xlu0 %v591_v47 }
 0x10c   : > { %595 = vadd.xlane.f32.xlu1 %v594_v50 }
 0x10e   : > { %598 = vadd.xlane.f32.xlu0 %v597_v53  ;;  %v727_v53 = vsub.s32 1, %v1602_v24 }
 0x110   : > { %601 = vadd.xlane.f32.xlu1 %v600_v55 }
 0x112   : > { %604 = vadd.xlane.f32.xlu0 %v603_v57  ;;  %v743_v57 = vsub.s32 5, %v1602_v24 }
 0x114   : > { %607 = vadd.xlane.f32.xlu1 %v606_v58 }
 0x17f   : > { %v1663_v59 = vpop.xlane.xlu0 %561 }
 0x180   : > { %v630_v17 = vrot.slane %v1663_v59, %v1688_v9 }
 0x181   : > { %v1665_v60 = vpop.xlane.xlu1 %568 }
 0x182   : > { %v641_v12 = vrot.slane %v1665_v60, %v1688_v9 }
 0x183   : > { %v1667_v62 = vpop.xlane.xlu0 %565 }
 0x184   : > { %v635_v13 = vrot.slane %v1667_v62, %v1683_v7 }
 0x185   : > { %v1669_v63 = vpop.xlane.xlu1 %571 }
 0x186   : > { %v645_v10 = vrot.slane %v1669_v63, %v1683_v7  ;;  %v637_v26 = vsel %vm636_vm4, %v635_v13, %v630_v17 }
 0x187   : > { %v1671_v0 = vpop.xlane.xlu0 %574 }
 0x188   : > { %v650_v15 = vrot.slane %v1671_v0, %v1688_v9  ;;  %v646_v20 = vsel %vm636_vm4, %v645_v10, %v641_v12 }
 0x189   : > { %v1673_v1 = vpop.xlane.xlu1 %577  ;;  %v702_v30 = vsel %vm701_vm5, %v646_v20, %v637_v26 }
 0x18a   : > { %v654_v22 = vrot.slane %v1673_v1, %v1683_v7 }
 0x18b   : > { %v1676_v3 = vpop.xlane.xlu0 %586 }
 0x18c   : > { %v655_v23 = vsel %vm636_vm4, %v654_v22, %v650_v15  ;;  %v668_v31 = vrot.slane %v1676_v3, %v1688_v9  ;;  %v747_v22 = vsub.s32 6, %v1602_v24 }
 0x18d   : > { %v1678_v5 = vpop.xlane.xlu1 %589  ;;  %v704_v34 = vsel %vm703_vm6, %v655_v23, %v702_v30 }
 0x18e   : > { %v672_v32 = vrot.slane %v1678_v5, %v1683_v7 }
 0x18f   : > { %v1680_v6 = vpop.xlane.xlu0 %580 }
 0x190   : > { %v659_v21 = vrot.slane %v1680_v6, %v1688_v9  ;;  %v673_v41 = vsel %vm636_vm4, %v672_v32, %v668_v31 }
 0x191   : > { %v1685_v8 = vpop.xlane.xlu1 %583 }
 0x192   : > { %v663_v14 = vrot.slane %v1685_v8, %v1683_v7 }
 0x193   : > { %v1694_v11 = vpop.xlane.xlu0 %592 }
 0x194   : > { %v664_v27 = vsel %vm636_vm4, %v663_v14, %v659_v21  ;;  %v677_v35 = vrot.slane %v1694_v11, %v1688_v9  ;;  %v735_v21 = vsub.s32 3, %v1602_v24 }
 0x195   : > { %v1704_v16 = vpop.xlane.xlu1 %595  ;;  %v706_v37 = vsel %vm705_vm7, %v664_v27, %v704_v34 }
 0x196   : > { %v681_v28 = vrot.slane %v1704_v16, %v1683_v7  ;;  %v708_v46 = vsel %vm707_vm8, %v673_v41, %v706_v37 }
 0x197   : > { %v1712_v25 = vpop.xlane.xlu0 %598 }
 0x198   : > { %v686_v38 = vrot.slane %v1712_v25, %v1688_v9  ;;  %v682_v40 = vsel %vm636_vm4, %v681_v28, %v677_v35 }
 0x199   : > { %v1721_v33 = vpop.xlane.xlu1 %601  ;;  %v710_v47 = vsel %vm709_vm9, %v682_v40, %v708_v46 }
 0x19a   : > { %v690_v36 = vrot.slane %v1721_v33, %v1683_v7 }
 0x19b   : > { %v1733_v39 = vpop.xlane.xlu0 %604 }
 0x19c   : > { %v691_v43 = vsel %vm636_vm4, %v690_v36, %v686_v38  ;;  %v695_v44 = vrot.slane %v1733_v39, %v1688_v9 }
 0x19d   : > { %v1737_v42 = vpop.xlane.xlu1 %607  ;;  %v712_v49 = vsel %vm711_vm10, %v691_v43, %v710_v47 }
 0x19e   : > { %v699_v45 = vrot.slane %v1737_v42, %v1683_v7 }
 0x1a0   : > { %v700_v48 = vsel %vm636_vm4, %v699_v45, %v695_v44 }
 0x1a1   : > { %v714_v50 = vsel %vm713_vm11, %v700_v48, %v712_v49 }
 0x1a2   : > { %v717_v51 = vsel %vm716_vm12, %v714_v50, -inf }
 0x1a3   : > { %718 = vmax.xlane.f32.xlu0 %v717_v51 }
 0x22c   : > { %v719_v54 = vpop.xlane.xlu0 %718 }
 0x22d   : > { %v724_v55 = vrot.slane %v719_v54, %v1606_v29  ;;  %v728_v56 = vrot.slane %v719_v54, %v727_v53  ;;  %v1762_v12 = vrot.slane %v719_v54, %v743_v57  ;;  %v732_v15 = vrot.slane %v719_v54, %v731_v4 }
 0x22e   : > { %v736_v30 = vrot.slane %v719_v54, %v735_v21 }
 0x22f   : > { %v761_v58 = vsub.f32 %v1663_v59, %v724_v55  ;;  %v762_v61 = vsub.f32 %v1667_v62, %v724_v55  ;;  %v763_v10 = vsub.f32 %v1665_v60, %v728_v56  ;;  %v764_v17 = vsub.f32 %v1669_v63, %v728_v56 }
 0x230   : > { %v751_v62 = vsub.s32 7, %v1602_v24  ;;  %v748_v60 = vrot.slane %v719_v54, %v747_v22  ;;  %v771_v20 = vsub.f32 %v1694_v11, %v1762_v12  ;;  %v765_v23 = vsub.f32 %v1671_v0, %v732_v15 }
 0x231   : > { %v777_v13 = vmul.f32 1.442695, %v761_v58  ;;  %v779_v14 = vmul.f32 1.442695, %v762_v61  ;;  %v781_v59 = vmul.f32 1.442695, %v763_v10  ;;  %v766_v32 = vsub.f32 %v1673_v1, %v732_v15 }
 0x232   : > { %v783_v26 = vmul.f32 1.442695, %v764_v17  ;;  %v752_v63 = vrot.slane %v719_v54, %v751_v62  ;;  %v773_v27 = vsub.f32 %v1712_v25, %v748_v60  ;;  %v797_v28 = vmul.f32 1.442695, %v771_v20 }
 0x233   : > { %1429 = vpow2.f32 %v777_v13  ;;  %v785_v34 = vmul.f32 1.442695, %v765_v23  ;;  %v739_v0 = vsub.s32 4, %v1602_v24  ;;  %v767_v36 = vsub.f32 %v1680_v6, %v736_v30 }
 0x234   : > { %1431 = vpow2.f32 %v779_v14  ;;  %v775_v11 = vsub.f32 %v1733_v39, %v752_v63  ;;  %v801_v35 = vmul.f32 1.442695, %v773_v27  ;;  %v787_v31 = vmul.f32 1.442695, %v766_v32 }
 0x235   : > { %1433 = vpow2.f32 %v781_v59  ;;  %v740_v1 = vrot.slane %v719_v54, %v739_v0  ;;  %v768_v39 = vsub.f32 %v1685_v8, %v736_v30  ;;  %v789_v40 = vmul.f32 1.442695, %v767_v36 }
 0x236   : > { %1435 = vpow2.f32 %v783_v26  ;;  %v805_v38 = vmul.f32 1.442695, %v775_v11  ;;  %v774_v51 = vsub.f32 %v1721_v33, %v748_v60 }
 0x237   : > { %1437 = vpow2.f32 %v797_v28  ;;  %v769_v41 = vsub.f32 %v1676_v3, %v740_v1  ;;  %v791_v43 = vmul.f32 1.442695, %v768_v39  ;;  %v770_v46 = vsub.f32 %v1678_v5, %v740_v1 }
 0x238   : > { %1439 = vpow2.f32 %v785_v34  ;;  %v772_v3 = vsub.f32 %v1704_v16, %v1762_v12  ;;  %v776_v16 = vsub.f32 %v1737_v42, %v752_v63  ;;  %v803_v55 = vmul.f32 1.442695, %v774_v51 }
 0x239   : > { %1441 = vpow2.f32 %v801_v35  ;;  %v793_v8 = vmul.f32 1.442695, %v769_v41  ;;  %v795_v49 = vmul.f32 1.442695, %v770_v46 }
 0x23a   : > { %1443 = vpow2.f32 %v787_v31  ;;  %v799_v52 = vmul.f32 1.442695, %v772_v3  ;;  %v807_v58 = vmul.f32 1.442695, %v776_v16 }
 0x23b   : > { %1445 = vpow2.f32 %v805_v38 }
 0x23c   : > { %1447 = vpow2.f32 %v789_v40 }
 0x23d   : > { %1449 = vpow2.f32 %v791_v43 }
 0x23e   : > { %1451 = vpow2.f32 %v793_v8 }
 0x23f   : > { %1453 = vpow2.f32 %v795_v49 }
 0x240   : > { %v1783_v37 = vpop.eup %1429  ;;  %1455 = vpow2.f32 %v799_v52 }
 0x241   : > { %v1785_v25 = vpop.eup %1431  ;;  %826 = vperm.xlu1 %1395, %v1783_v37   ;;  %1457 = vpow2.f32 %v803_v55 }
 0x242   : > { %829 = vperm.xlu0 %1396, %v1785_v25   ;;  %v1792_v6 = vpop.eup %1433  ;;  %1459 = vpow2.f32 %v807_v58 }
 0x243   : > { %v1796_v44 = vpop.eup %1435 }
 0x244   : > { %v1799_v45 = vpop.eup %1437 }
 0x245   : > { %832 = vperm.xlu1 %1395, %v1792_v6   ;;  %v1803_v47 = vpop.eup %1439 }
 0x246   : > { %856 = vperm.xlu0 %1396, %v1799_v45   ;;  %v1806_v48 = vpop.eup %1441 }
 0x247   : > { %v1811_v50 = vpop.eup %1443 }
 0x248   : > { %v1814_v5 = vpop.eup %1445 }
 0x249   : > { %835 = vperm.xlu1 %1395, %v1796_v44   ;;  %v1818_v54 = vpop.eup %1447 }
 0x24a   : > { %862 = vperm.xlu0 %1396, %v1806_v48   ;;  %v1822_v56 = vpop.eup %1449 }
 0x24b   : > { %v1825_v61 = vpop.eup %1451 }
 0x24c   : > { %v1828_v33 = vpop.eup %1453 }
 0x24d   : > { %838 = vperm.xlu1 %1395, %v1803_v47   ;;  %v1831_v10 = vpop.eup %1455 }
 0x24e   : > { %868 = vperm.xlu0 %1396, %v1814_v5   ;;  %v1834_v42 = vpop.eup %1457 }
 0x24f   : > { %v1837_v12 = vpop.eup %1459 }
 0x251   : > { %841 = vperm.xlu1 %1395, %v1811_v50  }
 0x255   : > { %844 = vperm.xlu1 %1395, %v1818_v54  }
 0x259   : > { %847 = vperm.xlu1 %1395, %v1822_v56  }
 0x25d   : > { %850 = vperm.xlu1 %1395, %v1825_v61  }
 0x261   : > { %853 = vperm.xlu1 %1395, %v1828_v33  }
 0x265   : > { %859 = vperm.xlu1 %1395, %v1831_v10  }
 0x269   : > { %865 = vperm.xlu1 %1395, %v1834_v42  }
 0x26d   : > { %871 = vperm.xlu1 %1395, %v1837_v12  }
 0x2bc   : > { %v827_v13 = vpop.permute.xlu1 %826 }
 0x2bd   : > { %v830_v20 = vpop.permute.xlu0 %829  ;;  %v876_v35 = vrot.slane %v827_v13, %v1688_v9 }
 0x2be   : > { %v880_v11 = vrot.slane %v830_v20, %v1683_v7 }
 0x2c0   : > { %v833_v14 = vpop.permute.xlu1 %832  ;;  %v881_v3 = vsel %vm636_vm4, %v880_v11, %v876_v35 }
 0x2c1   : > { %v857_v63 = vpop.permute.xlu0 %856  ;;  %v885_v36 = vrot.slane %v833_v14, %v1688_v9 }
 0x2c2   : > { %v921_v49 = vrot.slane %v857_v63, %v1688_v9 }
 0x2c4   : > { %v836_v15 = vpop.permute.xlu1 %835 }
 0x2c5   : > { %v889_v28 = vrot.slane %v836_v15, %v1683_v7  ;;  %v863_v30 = vpop.permute.xlu0 %862 }
 0x2c6   : > { %v930_v16 = vrot.slane %v863_v30, %v1688_v9 }
 0x2c7   : > { %v890_v39 = vsel %vm636_vm4, %v889_v28, %v885_v36 }
 0x2c8   : > { %v839_v17 = vpop.permute.xlu1 %838  ;;  %v945_v55 = vsel %vm701_vm5, %v890_v39, %v881_v3 }
 0x2c9   : > { %v894_v38 = vrot.slane %v839_v17, %v1688_v9  ;;  %v869_v58 = vpop.permute.xlu0 %868 }
 0x2ca   : > { %v939_v20 = vrot.slane %v869_v58, %v1688_v9 }
 0x2cc   : > { %v842_v59 = vpop.permute.xlu1 %841 }
 0x2cd   : > { %v898_v32 = vrot.slane %v842_v59, %v1683_v7 }
 0x2cf   : > { %v899_v43 = vsel %vm636_vm4, %v898_v32, %v894_v38 }
 0x2d0   : > { %v845_v60 = vpop.permute.xlu1 %844  ;;  %v946_v14 = vsel %vm703_vm6, %v899_v43, %v945_v55 }
 0x2d1   : > { %v903_v40 = vrot.slane %v845_v60, %v1688_v9 }
 0x2d4   : > { %v848_v23 = vpop.permute.xlu1 %847 }
 0x2d5   : > { %v907_v31 = vrot.slane %v848_v23, %v1683_v7 }
 0x2d7   : > { %v908_v51 = vsel %vm636_vm4, %v907_v31, %v903_v40 }
 0x2d8   : > { %v851_v26 = vpop.permute.xlu1 %850  ;;  %v947_v17 = vsel %vm705_vm7, %v908_v51, %v946_v14 }
 0x2d9   : > { %v912_v46 = vrot.slane %v851_v26, %v1688_v9 }
 0x2dc   : > { %v854_v27 = vpop.permute.xlu1 %853 }
 0x2dd   : > { %v916_v1 = vrot.slane %v854_v27, %v1683_v7 }
 0x2df   : > { %v917_v13 = vsel %vm636_vm4, %v916_v1, %v912_v46 }
 0x2e0   : > { %v860_v34 = vpop.permute.xlu1 %859  ;;  %v948_v23 = vsel %vm707_vm8, %v917_v13, %v947_v17 }
 0x2e1   : > { %v925_v41 = vrot.slane %v860_v34, %v1683_v7 }
 0x2e3   : > { %v926_v15 = vsel %vm636_vm4, %v925_v41, %v921_v49 }
 0x2e4   : > { %v866_v8 = vpop.permute.xlu1 %865  ;;  %v949_v63 = vsel %vm709_vm9, %v926_v15, %v948_v23 }
 0x2e5   : > { %v934_v52 = vrot.slane %v866_v8, %v1683_v7 }
 0x2e7   : > { %v935_v59 = vsel %vm636_vm4, %v934_v52, %v930_v16 }
 0x2e8   : > { %v872_v60 = vpop.permute.xlu1 %871  ;;  %v950_v28 = vsel %vm711_vm10, %v935_v59, %v949_v63 }
 0x2e9   : > { %v943_v26 = vrot.slane %v872_v60, %v1683_v7 }
 0x2eb   : > { %v944_v27 = vsel %vm636_vm4, %v943_v26, %v939_v20 }
 0x2ec   : > { %v951_v30 = vsel %vm713_vm11, %v944_v27, %v950_v28 }
 0x2ed   : > { %v953_v32 = vsel %vm716_vm12, %v951_v30, 0.0 }
 0x2ee   : > { %954 = vadd.xlane.f32.xlu0 %v953_v32 }
 0x377   : > { %v955_v34 = vpop.xlane.xlu0 %954 }
 0x378   : > { %1461 = vrcp.f32 %v955_v34 }
 0x385   : > { %v1462_v11 = vpop.eup %1461 }
 0x386   : > { %v977_v35 = vrot.slane %v1462_v11, %v739_v0  ;;  %v961_v36 = vrot.slane %v1462_v11, %v1606_v29  ;;  %v989_v1 = vrot.slane %v1462_v11, %v751_v62  ;;  %v965_v41 = vrot.slane %v1462_v11, %v727_v53 }
 0x388   : > { %v1006_v31 = vmul.f32 %v1825_v61, %v977_v35  ;;  %v998_v38 = vmul.f32 %v1783_v37, %v961_v36  ;;  %v1012_v39 = vmul.f32 %v1814_v5, %v989_v1  ;;  %v999_v40 = vmul.f32 %v1785_v25, %v961_v36 }
 0x389   : > { %v1000_v29 = vmul.f32 %v1792_v6, %v965_v41  ;;  %v1001_v0 = vmul.f32 %v1796_v44, %v965_v41  ;;  %v969_v37 = vrot.slane %v1462_v11, %v731_v4  ;;  %v973_v25 = vrot.slane %v1462_v11, %v735_v21 }
 0x38a   : > { %1055 = vperm.xlu0 %1396, %v1006_v31   ;;  %1031 = vperm.xlu1 %1395, %v998_v38   ;;  %v1007_v44 = vmul.f32 %v1828_v33, %v977_v35  ;;  %v981_v4 = vrot.slane %v1462_v11, %v743_v57  ;;  %v985_v21 = vrot.slane %v1462_v11, %v747_v22 }
 0x38b   : > { %v1002_v62 = vmul.f32 %v1803_v47, %v969_v37  ;;  %v1003_v5 = vmul.f32 %v1811_v50, %v969_v37  ;;  %v1004_v53 = vmul.f32 %v1818_v54, %v973_v25  ;;  %v1005_v6 = vmul.f32 %v1822_v56, %v973_v25 }
 0x38c   : > { %v1008_v47 = vmul.f32 %v1799_v45, %v981_v4  ;;  %v1009_v50 = vmul.f32 %v1831_v10, %v981_v4  ;;  %v1010_v54 = vmul.f32 %v1806_v48, %v985_v21  ;;  %v1011_v56 = vmul.f32 %v1834_v42, %v985_v21 }
 0x38d   : > { %v1013_v61 = vmul.f32 %v1837_v12, %v989_v1 }
 0x38e   : > { %1073 = vperm.xlu0 %1396, %v1012_v39   ;;  %1034 = vperm.xlu1 %1395, %v999_v40  }
 0x392   : > { %1037 = vperm.xlu1 %1395, %v1000_v29  }
 0x396   : > { %1040 = vperm.xlu1 %1395, %v1001_v0  }
 0x39a   : > { %1043 = vperm.xlu1 %1395, %v1002_v62  }
 0x39e   : > { %1046 = vperm.xlu1 %1395, %v1003_v5  }
 0x3a2   : > { %1049 = vperm.xlu1 %1395, %v1004_v53  }
 0x3a6   : > { %1052 = vperm.xlu1 %1395, %v1005_v6  }
 0x3aa   : > { %1058 = vperm.xlu1 %1395, %v1007_v44  }
 0x3ae   : > { %1061 = vperm.xlu1 %1395, %v1008_v47  }
 0x3b2   : > { %1064 = vperm.xlu1 %1395, %v1009_v50  }
 0x3b6   : > { %1067 = vperm.xlu1 %1395, %v1010_v54  }
 0x3ba   : > { %1070 = vperm.xlu1 %1395, %v1011_v56  }
 0x3be   : > { %1076 = vperm.xlu1 %1395, %v1013_v61  }
 0x405   : > { %v1032_v57 = vpop.permute.xlu1 %1031  ;;  %v1056_v3 = vpop.permute.xlu0 %1055 }
 0x406   : > { %v1081_v55 = vrot.slane %v1032_v57, %v1688_v9  ;;  %v1117_v15 = vrot.slane %v1056_v3, %v1688_v9 }
 0x409   : > { %v1035_v24 = vpop.permute.xlu1 %1034  ;;  %v1074_v63 = vpop.permute.xlu0 %1073 }
 0x40a   : > { %v1085_v2 = vrot.slane %v1035_v24, %v1683_v7  ;;  %v1144_v31 = vrot.slane %v1074_v63, %v1688_v9 }
 0x40c   : > { %v1086_v60 = vsel %vm636_vm4, %v1085_v2, %v1081_v55 }
 0x40d   : > { %v1038_v22 = vpop.permute.xlu1 %1037 }
 0x40e   : > { %v1090_v18 = vrot.slane %v1038_v22, %v1688_v9 }
 0x411   : > { %v1041_v45 = vpop.permute.xlu1 %1040 }
 0x412   : > { %v1094_v12 = vrot.slane %v1041_v45, %v1683_v7 }
 0x414   : > { %v1095_v58 = vsel %vm636_vm4, %v1094_v12, %v1090_v18 }
 0x415   : > { %v1044_v33 = vpop.permute.xlu1 %1043  ;;  %v1150_v27 = vsel %vm701_vm5, %v1095_v58, %v1086_v60 }
 0x416   : > { %v1099_v52 = vrot.slane %v1044_v33, %v1688_v9 }
 0x419   : > { %v1047_v48 = vpop.permute.xlu1 %1046 }
 0x41a   : > { %v1103_v19 = vrot.slane %v1047_v48, %v1683_v7 }
 0x41c   : > { %v1104_v17 = vsel %vm636_vm4, %v1103_v19, %v1099_v52 }
 0x41d   : > { %v1050_v10 = vpop.permute.xlu1 %1049  ;;  %v1151_v32 = vsel %vm703_vm6, %v1104_v17, %v1150_v27 }
 0x41e   : > { %v1108_v13 = vrot.slane %v1050_v10, %v1688_v9 }
 0x421   : > { %v1053_v43 = vpop.permute.xlu1 %1052 }
 0x422   : > { %v1112_v51 = vrot.slane %v1053_v43, %v1683_v7 }
 0x424   : > { %v1113_v20 = vsel %vm636_vm4, %v1112_v51, %v1108_v13 }
 0x425   : > { %v1059_v42 = vpop.permute.xlu1 %1058  ;;  %v1152_v11 = vsel %vm705_vm7, %v1113_v20, %v1151_v32 }
 0x426   : > { %v1121_v16 = vrot.slane %v1059_v42, %v1683_v7 }
 0x428   : > { %v1122_v28 = vsel %vm636_vm4, %v1121_v16, %v1117_v15 }
 0x429   : > { %v1062_v46 = vpop.permute.xlu1 %1061  ;;  %v1153_v38 = vsel %vm707_vm8, %v1122_v28, %v1152_v11 }
 0x42a   : > { %v1126_v23 = vrot.slane %v1062_v46, %v1688_v9 }
 0x42d   : > { %v1065_v8 = vpop.permute.xlu1 %1064 }
 0x42e   : > { %v1130_v14 = vrot.slane %v1065_v8, %v1683_v7 }
 0x430   : > { %v1131_v34 = vsel %vm636_vm4, %v1130_v14, %v1126_v23 }
 0x431   : > { %v1068_v49 = vpop.permute.xlu1 %1067  ;;  %v1154_v39 = vsel %vm709_vm9, %v1131_v34, %v1153_v38 }
 0x432   : > { %v1135_v30 = vrot.slane %v1068_v49, %v1688_v9 }
 0x435   : > { %v1071_v59 = vpop.permute.xlu1 %1070 }
 0x436   : > { %v1139_v26 = vrot.slane %v1071_v59, %v1683_v7 }
 0x438   : > { %v1140_v35 = vsel %vm636_vm4, %v1139_v26, %v1135_v30 }
 0x439   : > { %v1077_v36 = vpop.permute.xlu1 %1076  ;;  %v1155_v40 = vsel %vm711_vm10, %v1140_v35, %v1154_v39 }
 0x43a   : > { %v1148_v1 = vrot.slane %v1077_v36, %v1683_v7 }
 0x43c   : > { %v1149_v41 = vsel %vm636_vm4, %v1148_v1, %v1144_v31 }
 0x43d   : > { %v1156_v29 = vsel %vm713_vm11, %v1149_v41, %v1155_v40 }
 0x43e   : > { %1381 = vmatmul.mubr.msk.f32.vlgmr.msra.gmra.mxu0 %vm716_vm12, %v1156_v29 }
 0x4fe   : > { %v1228_v9 = vpop.f32.mrf.mxu0 }
 0x4ff   : > { %1232 = vst.msk [vmem:[%s239_s17] sm:$0xff] %vm251_vm1, %v1228_v9 }
 0x500   : > { %v1382_v0 = vpop.f32.mrf.mxu0 }
 0x501 PF: > { %s15_s18 = sadd.s32 1, %s1469_s18  }
 0x502   : > { %p12_p4 = scmp.ge.s32.totalorder %s15_s18, 4  }
 0x504   :  { %14 = sbr.rel (!%p12_p4) target bundleno = 1 (0x1), region = 73 }

// kernel: mwan_forward.28
= control target key start
LH: loop header
LB: loop body
LE: loop exit
PB: predicated region body
PF: predicated region fallthrough
CT: control target
= control target key end

     0   :  { %s1129_s15 = smov 0   ;;  %s1313_s0 = inlined_call_operand.vmem [shape: f32[2,8,64], index: 0, kind: input, shape index: {}, may-alias: {0,1}]   ;;  %s1314_s1 = inlined_call_operand.vmem [shape: f32[2,8,64], index: 1, kind: input, shape index: {}, may-alias: {0,1}]   ;;  %s1315_s2 = inlined_call_operand.vmem [shape: f32[64,32], index: 2, kind: input, shape index: {}]   ;;  %s1316_s3 = inlined_call_operand.vmem [shape: f32[1,32], index: 3, kind: input, shape index: {}]   ;;  %s1317_s4 = inlined_call_operand.vmem [shape: f32[2,8,64], index: 4, kind: output, shape index: {}]  }
   0x1 LB: > { %s956_s16 = sadd.s32 4294967295, %s1098_s15   ;;  %p960_p0 = scmp.ge.s32.totalorder %s1098_s15, 1  ;;  %s1098_s15 = sphi %s1129_s15, %s14_s15  }
   0x2   : > { %p170_p1 = scmp.lt.s32.totalorder %s1098_s15, 3 }
   0x4   : > { %p171_p2 = pnand %p960_p0, %p170_p1 }
   0x5   : > { %p198_p3 = scmp.lt.s32.totalorder (!%p171_p2), %s956_s16, 1 }
   0x6   : > { %174 = sbr.rel (%p171_p2) target bundleno = 1212 (0x4bc), region = 36 }
   0xb   : > { %v317_v0 = vld [vmem:[%s1315_s2 + $0x38] sm:$0xff]  ;;  %v316_v1 = vld [vmem:[%s1315_s2 + $0x30] sm:$0xff]  ;;  %v217_v2 = vlaneseq  ;;  %v1100_v3 = vmov 1966171168   ;;  %v315_v5 = vld [vmem:[%s1315_s2 + $0x28] sm:$0xff]  ;;  %s1319_s16 = smov (!%p198_p3, %s956_s16), 1 }
   0xc   : > { %994 = vmatprep.subr.mxu0 %v317_v0  ;;  %1027 = vmatprep.subr.mxu1 %v317_v0  ;;  %v215_v4 = vunpack.c.l.s4 %v1100_v3  ;;  %v314_v8 = vld [vmem:[%s1315_s2 + $0x20] sm:$0xff]  ;;  %s1152_s25 = sshll.u32 %s1319_s16, 3  ;;  %v313_v10 = vld [vmem:[%s1315_s2 + $0x18] sm:$0xff]  ;;  %v312_v15 = vld [vmem:[%s1315_s2 + $0x10] sm:$0xff]  ;;  %vm318_vm0 = vcmask 523264   ;;  %vm471_vm1 = vcmask 261120  }
   0xd   : > { %995 = vmatpush3.msra.mxu0 %v317_v0  ;;  %1035 = vmatpush3.msra.mxu1 %v317_v0  ;;  %v1147_v6 = vshrl.u32 %v217_v2, 7  ;;  %s201_s28 = scalar_lea.vmem %s1313_s0, %s1152_s25  ;;  %s205_s7 = scalar_lea.vmem %s1314_s1, %s1152_s25  ;;  %v311_v19 = vld [vmem:[%s1315_s2 + $0x8] sm:$0xff]  ;;  %v310_v24 = vld [vmem:[%s1315_s2] sm:$0xff]  ;;  %vm538_vm2 = vcmask 1041409   ;;  %vm540_vm3 = vcmask 1042434   ;;  %vm542_vm4 = vcmask 1043459  }
   0xe   : > { %996 = vmatprep.subr.mxu0 %v316_v1  ;;  %1028 = vmatprep.subr.mxu1 %v316_v1  ;;  %v216_v7 = vunpack.c.0.s8 %v215_v4  ;;  %v210_v11 = vld [vmem:[%s201_s28] sm:$0xff]  ;;  %vm544_vm5 = vcmask 1044484   ;;  %vm546_vm6 = vcmask 1045509   ;;  %vm548_vm7 = vcmask 1046534   ;;  %s209_s19 = scalar_lea.vmem %s1317_s4, %s1152_s25 }
   0xf   : > { %997 = vmatpush3.msra.mxu0 %v316_v1  ;;  %1036 = vmatpush3.msra.mxu1 %v316_v1  ;;  %v213_v12 = vcombine.high %v210_v11, %v210_v11  ;;  %v1167_v14 = vsub.s32 0, %v1147_v6  ;;  %v1175_v20 = vld [vmem:[%s205_s7] sm:$0xff]  ;;  %vm550_vm8 = vcmask 1047559   ;;  %vm553_vm9 = vcmask 64512  }
  0x10   : > { %998 = vmatprep.subr.mxu0 %v315_v5  ;;  %1029 = vmatprep.subr.mxu1 %v315_v5  ;;  %v219_v9 = vsub.s32 %v216_v7, %v1147_v6  ;;  %v972_v54 = vld [vmem:[%s1316_s3] ss:$0 sm:$0xff]  ;;  %vm1103_vm10 = vmmov 0  }
  0x11   : > { %999 = vmatpush3.msra.mxu0 %v315_v5  ;;  %1037 = vmatpush3.msra.mxu1 %v315_v5 }
  0x12   : > { %1000 = vmatprep.subr.mxu0 %v314_v8  ;;  %v220_v13 = vrot.slane %v210_v11, %v219_v9  ;;  %1030 = vmatprep.subr.mxu1 %v314_v8  ;;  %v227_v16 = vrot.slane %v213_v12, %v219_v9 }
  0x13   : > { %1001 = vmatpush3.msra.mxu0 %v314_v8  ;;  %1038 = vmatpush3.msra.mxu1 %v314_v8 }
  0x14   : > { %1002 = vmatprep.subr.mxu0 %v313_v10  ;;  %v228_v17 = vcombine.high %v220_v13, %v220_v13  ;;  %v236_v18 = vrot.slane %v220_v13, %v219_v9  ;;  %1031 = vmatprep.subr.mxu1 %v313_v10  ;;  %v243_v25 = vrot.slane %v227_v16, %v219_v9 }
  0x15   : > { %1003 = vmatpush3.msra.mxu0 %v313_v10  ;;  %1039 = vmatpush3.msra.mxu1 %v313_v10  ;;  %v229_v26 = vcombine.high %v227_v16, %v227_v16 }
  0x16   : > { %1004 = vmatprep.subr.mxu0 %v312_v15  ;;  %v258_v21 = vcombine.high %v236_v18, %v236_v18  ;;  %v265_v22 = vrot.slane %v236_v18, %v1167_v14  ;;  %v250_v23 = vrot.slane %v228_v17, %v219_v9  ;;  %1032 = vmatprep.subr.mxu1 %v312_v15  ;;  %v505_v18 = vand.u32 127, %v217_v2 }
  0x17   : > { %1005 = vmatpush3.msra.mxu0 %v312_v15  ;;  %1040 = vmatpush3.msra.mxu1 %v312_v15  ;;  %v281_v31 = vrot.slane %v243_v25, %v1167_v14  ;;  %v257_v32 = vrot.slane %v229_v26, %v219_v9  ;;  %v259_v33 = vcombine.high %v243_v25, %v243_v25 }
  0x18   : > { %1006 = vmatprep.subr.mxu0 %v311_v19  ;;  %v302_v27 = vmul.f32 %v265_v22, %v1175_v20  ;;  %v269_v28 = vrot.slane %v250_v23, %v1167_v14  ;;  %v273_v29 = vrot.slane %v258_v21, %v1167_v14  ;;  %v260_v30 = vcombine.high %v250_v23, %v250_v23 }
  0x19   : > { %1007 = vmatpush3.msra.mxu0 %v311_v19  ;;  %1033 = vmatprep.subr.mxu1 %v311_v19  ;;  %v289_v37 = vrot.slane %v259_v33, %v1167_v14  ;;  %v285_v39 = vrot.slane %v257_v32, %v1167_v14  ;;  %v261_v40 = vcombine.high %v257_v32, %v257_v32 }
  0x1a   : > { %1008 = vmatprep.subr.mxu0 %v310_v24  ;;  %1010 = vmatprep.mubr.msk.f32.mxu0 %vm318_vm0, %v302_v27  ;;  %v303_v34 = vmul.f32 %v269_v28, %v1175_v20  ;;  %v304_v35 = vmul.f32 %v273_v29, %v1175_v20  ;;  %v277_v36 = vrot.slane %v260_v30, %v1167_v14 }
  0x1b   : > { %1009 = vmatpush3.msra.mxu0 %v310_v24  ;;  %1041 = vmatpush3.msra.mxu1 %v311_v19  ;;  %v306_v41 = vmul.f32 %v281_v31, %v1175_v20  ;;  %v308_v42 = vmul.f32 %v289_v37, %v1175_v20  ;;  %v293_v43 = vrot.slane %v261_v40, %v1167_v14 }
  0x1c   : > { %1011 = vmatmul.mubr.msk.f32.vlgmr.msra.gmra.mxu0 %vm318_vm0, %v303_v34  ;;  %v305_v38 = vmul.f32 %v277_v36, %v1175_v20  ;;  %1034 = vmatprep.subr.mxu1 %v310_v24  ;;  %v307_v44 = vmul.f32 %v285_v39, %v1175_v20  ;;  %v1217_v21 = vsub.s32 %v505_v18, %v1147_v6 }
  0x1d   : > { %1013 = vmatprep.mubr.msk.f32.mxu0 %vm318_vm0, %v304_v35  ;;  %1042 = vmatpush3.msra.mxu1 %v310_v24  ;;  %v309_v45 = vmul.f32 %v293_v43, %v1175_v20 }
  0x1e   : > { %1019 = vmatprep.mubr.msk.f32.mxu1 %vm318_vm0, %v308_v42 }
  0x1f   : > { %1020 = vmatmul.mubr.msk.f32.vlgmr.msra.gmra.mxu1 %vm318_vm0, %v309_v45  ;;  %v564_v45 = vsub.s32 1, %v1147_v6 }
  0x20   : > { %1014 = vmatmul.mubr.msk.f32.gmra.mxu0 %vm318_vm0, %v305_v38 }
  0x21   : > { %1016 = vmatprep.mubr.msk.f32.mxu0 %vm318_vm0, %v306_v41 }
  0x24   : > { %1017 = vmatmul.mubr.msk.f32.gmra.mxu0 %vm318_vm0, %v307_v44  ;;  %v1101_v44 = vmov 0  }
  0x25   : > { %1056 = vset.pattern.permute.xlu0 %v1101_v44  ;;  %1055 = vset.pattern.permute.xlu1 %v1101_v44 }
  0xdc   : > { %v1012_v46 = vpop.f32.mrf.mxu0 }
  0xdd   : > { %1058 = vtanh.f32 %v1012_v46  ;;  %v568_v46 = vsub.s32 2, %v1147_v6 }
  0xde   : > { %v409_v47 = vpop.f32.mrf.mxu0 }
  0xdf   : > { %1060 = vtanh.f32 %v409_v47  ;;  %v1021_v50 = vpop.f32.mrf.mxu1  ;;  %v572_v47 = vsub.s32 3, %v1147_v6 }
  0xe0   : > { %v1015_v48 = vpop.f32.mrf.mxu0 }
  0xe1   : > { %1062 = vtanh.f32 %v1015_v48  ;;  %v439_v52 = vpop.f32.mrf.mxu1 }
  0xe2   : > { %v419_v49 = vpop.f32.mrf.mxu0 }
  0xe3   : > { %1064 = vtanh.f32 %v419_v49 }
  0xe4   : > { %v1018_v51 = vpop.f32.mrf.mxu0 }
  0xe5   : > { %1066 = vtanh.f32 %v1018_v51 }
  0xe6   : > { %v429_v53 = vpop.f32.mrf.mxu0  ;;  %1068 = vtanh.f32 %v439_v52  ;;  %v576_v52 = vsub.s32 4, %v1147_v6 }
  0xe7   : > { %1070 = vtanh.f32 %v429_v53 }
  0xe8   : > { %1072 = vtanh.f32 %v1021_v50 }
  0xea   : > { %v1059_v55 = vpop.eup %1058 }
  0xeb   : > { %v464_v56 = vmul.f32 %v1059_v55, %v972_v54 }
  0xec   : > { %v1061_v57 = vpop.eup %1060 }
  0xed   : > { %v475_v58 = vsel %vm471_vm1, %v464_v56, 0.0  ;;  %v463_v59 = vmul.f32 %v1061_v57, %v972_v54 }
  0xee   : > { %v1063_v60 = vpop.eup %1062  ;;  %476 = vadd.xlane.f32.xlu0 %v475_v58 }
  0xef   : > { %v466_v61 = vmul.f32 %v1063_v60, %v972_v54  ;;  %v472_v63 = vsel %vm471_vm1, %v463_v59, 0.0  ;;  %v580_v59 = vsub.s32 5, %v1147_v6 }
  0xf0   : > { %v1065_v62 = vpop.eup %1064 }
  0xf1   : > { %v481_v0 = vsel %vm471_vm1, %v466_v61, 0.0  ;;  %v465_v1 = vmul.f32 %v1065_v62, %v972_v54 }
  0xf2   : > { %v1067_v3 = vpop.eup %1066  ;;  %473 = vadd.xlane.f32.xlu0 %v472_v63  ;;  %482 = vadd.xlane.f32.xlu1 %v481_v0  ;;  %v584_v63 = vsub.s32 6, %v1147_v6 }
  0xf3   : > { %v1069_v4 = vpop.eup %1068  ;;  %v478_v7 = vsel %vm471_vm1, %v465_v1, 0.0  ;;  %v468_v9 = vmul.f32 %v1067_v3, %v972_v54 }
  0xf4   : > { %v1071_v5 = vpop.eup %1070  ;;  %v469_v10 = vmul.f32 %v1069_v4, %v972_v54  ;;  %v588_v4 = vsub.s32 7, %v1147_v6 }
  0xf5   : > { %v467_v8 = vmul.f32 %v1071_v5, %v972_v54  ;;  %v1073_v11 = vpop.eup %1072  ;;  %v487_v13 = vsel %vm471_vm1, %v468_v9, 0.0 }
  0xf6   : > { %479 = vadd.xlane.f32.xlu1 %v478_v7  ;;  %v490_v15 = vsel %vm471_vm1, %v469_v10, 0.0  ;;  %v470_v16 = vmul.f32 %v1073_v11, %v972_v54 }
  0xf7   : > { %v484_v12 = vsel %vm471_vm1, %v467_v8, 0.0 }
  0xf8   : > { %485 = vadd.xlane.f32.xlu0 %v484_v12  ;;  %v493_v17 = vsel %vm471_vm1, %v470_v16, 0.0 }
  0xfa   : > { %488 = vadd.xlane.f32.xlu1 %v487_v13 }
  0xfc   : > { %491 = vadd.xlane.f32.xlu0 %v490_v15 }
  0xfe   : > { %494 = vadd.xlane.f32.xlu1 %v493_v17 }
 0x177   : > { %v477_v19 = vpop.xlane.xlu0 %476 }
 0x178   : > { %v513_v25 = vrot.slane %v477_v19, %v1217_v21 }
 0x17b   : > { %v474_v22 = vpop.xlane.xlu0 %473  ;;  %v483_v23 = vpop.xlane.xlu1 %482 }
 0x17c   : > { %v509_v24 = vrot.slane %v474_v22, %v1217_v21  ;;  %v521_v2 = vrot.slane %v483_v23, %v1217_v21 }
 0x17e   : > { %v539_v28 = vsel %vm538_vm2, %v513_v25, %v509_v24 }
 0x17f   : > { %v480_v26 = vpop.xlane.xlu1 %479 }
 0x180   : > { %v517_v27 = vrot.slane %v480_v26, %v1217_v21 }
 0x181   : > { %v486_v29 = vpop.xlane.xlu0 %485 }
 0x182   : > { %v541_v30 = vsel %vm540_vm3, %v517_v27, %v539_v28  ;;  %v525_v31 = vrot.slane %v486_v29, %v1217_v21 }
 0x183   : > { %v543_v32 = vsel %vm542_vm4, %v521_v2, %v541_v30  ;;  %v489_v33 = vpop.xlane.xlu1 %488 }
 0x184   : > { %v545_v34 = vsel %vm544_vm5, %v525_v31, %v543_v32  ;;  %v529_v35 = vrot.slane %v489_v33, %v1217_v21 }
 0x185   : > { %v492_v36 = vpop.xlane.xlu0 %491 }
 0x186   : > { %v533_v37 = vrot.slane %v492_v36, %v1217_v21  ;;  %v547_v38 = vsel %vm546_vm6, %v529_v35, %v545_v34 }
 0x187   : > { %v495_v39 = vpop.xlane.xlu1 %494 }
 0x188   : > { %v537_v40 = vrot.slane %v495_v39, %v1217_v21  ;;  %v549_v41 = vsel %vm548_vm7, %v533_v37, %v547_v38 }
 0x18a   : > { %v551_v42 = vsel %vm550_vm8, %v537_v40, %v549_v41 }
 0x18b   : > { %v554_v43 = vsel %vm553_vm9, %v551_v42, -inf }
 0x18c   : > { %555 = vmax.xlane.f32.xlu0 %v554_v43 }
 0x215   : > { %v556_v48 = vpop.xlane.xlu0 %555 }
 0x216   : > { %v561_v49 = vrot.slane %v556_v48, %v1167_v14  ;;  %v565_v50 = vrot.slane %v556_v48, %v564_v45  ;;  %v569_v51 = vrot.slane %v556_v48, %v568_v46  ;;  %v573_v53 = vrot.slane %v556_v48, %v572_v47 }
 0x217   : > { %v577_v60 = vrot.slane %v556_v48, %v576_v52  ;;  %v581_v0 = vrot.slane %v556_v48, %v580_v59  ;;  %v585_v5 = vrot.slane %v556_v48, %v584_v63  ;;  %v589_v9 = vrot.slane %v556_v48, %v588_v4 }
 0x218   : > { %v598_v54 = vsub.f32 %v474_v22, %v561_v49  ;;  %v599_v55 = vsub.f32 %v477_v19, %v565_v50  ;;  %v600_v56 = vsub.f32 %v480_v26, %v569_v51  ;;  %v601_v61 = vsub.f32 %v483_v23, %v573_v53 }
 0x219   : > { %v602_v1 = vsub.f32 %v486_v29, %v577_v60  ;;  %v603_v7 = vsub.f32 %v489_v33, %v581_v0  ;;  %v604_v10 = vsub.f32 %v492_v36, %v585_v5  ;;  %v605_v15 = vsub.f32 %v495_v39, %v589_v9 }
 0x21a   : > { %v606_v57 = vmul.f32 1.442695, %v598_v54  ;;  %v608_v58 = vmul.f32 1.442695, %v599_v55  ;;  %v610_v62 = vmul.f32 1.442695, %v600_v56 }
 0x21b   : > { %v612_v3 = vmul.f32 1.442695, %v601_v61  ;;  %v614_v8 = vmul.f32 1.442695, %v602_v1  ;;  %v616_v11 = vmul.f32 1.442695, %v603_v7 }
 0x21c   : > { %1074 = vpow2.f32 %v606_v57  ;;  %v618_v16 = vmul.f32 1.442695, %v604_v10  ;;  %v620_v18 = vmul.f32 1.442695, %v605_v15  ;;  %v1102_v7 = vmov 0.0  }
 0x21d   : > { %1076 = vpow2.f32 %v608_v58  ;;  %1022 = vmatprep.subr.mxu1 %v1102_v7  ;;  %1024 = vmatprep.mubr.msk.f32.mxu1 %vm1103_vm10, %v1102_v7 }
 0x21e   : > { %1078 = vpow2.f32 %v610_v62  ;;  %1023 = vmatpush3.msra.mxu1 %v1175_v20 }
 0x21f   : > { %1080 = vpow2.f32 %v612_v3 }
 0x220   : > { %1082 = vpow2.f32 %v614_v8 }
 0x221   : > { %1084 = vpow2.f32 %v616_v11 }
 0x222   : > { %1086 = vpow2.f32 %v618_v16 }
 0x223   : > { %1088 = vpow2.f32 %v620_v18 }
 0x229   : > { %v1075_v12 = vpop.eup %1074 }
 0x22a   : > { %v1077_v13 = vpop.eup %1076  ;;  %631 = vperm.xlu1 %1055, %v1075_v12  }
 0x22b   : > { %634 = vperm.xlu0 %1056, %v1077_v13   ;;  %v1079_v17 = vpop.eup %1078 }
 0x22c   : > { %v1081_v19 = vpop.eup %1080 }
 0x22d   : > { %v1083_v22 = vpop.eup %1082 }
 0x22e   : > { %637 = vperm.xlu1 %1055, %v1079_v17   ;;  %v1085_v23 = vpop.eup %1084 }
 0x22f   : > { %v1087_v24 = vpop.eup %1086 }
 0x230   : > { %v1089_v25 = vpop.eup %1088 }
 0x232   : > { %640 = vperm.xlu1 %1055, %v1081_v19  }
 0x236   : > { %643 = vperm.xlu1 %1055, %v1083_v22  }
 0x23a   : > { %646 = vperm.xlu1 %1055, %v1085_v23  }
 0x23e   : > { %649 = vperm.xlu1 %1055, %v1087_v24  }
 0x242   : > { %652 = vperm.xlu1 %1055, %v1089_v25  }
 0x2a5   : > { %v632_v26 = vpop.permute.xlu1 %631 }
 0x2a6   : > { %v635_v29 = vpop.permute.xlu0 %634  ;;  %v657_v32 = vrot.slane %v632_v26, %v1217_v21 }
 0x2a7   : > { %v661_v31 = vrot.slane %v635_v29, %v1217_v21 }
 0x2a9   : > { %v638_v27 = vpop.permute.xlu1 %637  ;;  %v686_v37 = vsel %vm538_vm2, %v661_v31, %v657_v32 }
 0x2aa   : > { %v665_v33 = vrot.slane %v638_v27, %v1217_v21 }
 0x2ac   : > { %v687_v39 = vsel %vm540_vm3, %v665_v33, %v686_v37 }
 0x2ad   : > { %v641_v28 = vpop.permute.xlu1 %640 }
 0x2ae   : > { %v669_v34 = vrot.slane %v641_v28, %v1217_v21 }
 0x2b0   : > { %v688_v41 = vsel %vm542_vm4, %v669_v34, %v687_v39 }
 0x2b1   : > { %v644_v2 = vpop.permute.xlu1 %643 }
 0x2b2   : > { %v673_v35 = vrot.slane %v644_v2, %v1217_v21 }
 0x2b4   : > { %v689_v42 = vsel %vm544_vm5, %v673_v35, %v688_v41 }
 0x2b5   : > { %v647_v30 = vpop.permute.xlu1 %646 }
 0x2b6   : > { %v677_v38 = vrot.slane %v647_v30, %v1217_v21 }
 0x2b8   : > { %v690_v44 = vsel %vm546_vm6, %v677_v38, %v689_v42 }
 0x2b9   : > { %v650_v36 = vpop.permute.xlu1 %649 }
 0x2ba   : > { %v681_v40 = vrot.slane %v650_v36, %v1217_v21 }
 0x2bc   : > { %v691_v49 = vsel %vm548_vm7, %v681_v40, %v690_v44 }
 0x2bd   : > { %v653_v43 = vpop.permute.xlu1 %652 }
 0x2be   : > { %v685_v48 = vrot.slane %v653_v43, %v1217_v21 }
 0x2c0   : > { %v692_v50 = vsel %vm550_vm8, %v685_v48, %v691_v49 }
 0x2c1   : > { %v694_v51 = vsel %vm553_vm9, %v692_v50, 0.0 }
 0x2c2   : > { %695 = vadd.xlane.f32.xlu1 %v694_v51 }
 0x34b   : > { %v696_v53 = vpop.xlane.xlu1 %695 }
 0x34c   : > { %1090 = vrcp.f32 %v696_v53 }
 0x359   : > { %v1091_v54 = vpop.eup %1090 }
 0x35a   : > { %v702_v55 = vrot.slane %v1091_v54, %v1167_v14  ;;  %v706_v57 = vrot.slane %v1091_v54, %v564_v45  ;;  %v710_v60 = vrot.slane %v1091_v54, %v568_v46  ;;  %v714_v62 = vrot.slane %v1091_v54, %v572_v47 }
 0x35b   : > { %v718_v1 = vrot.slane %v1091_v54, %v576_v52  ;;  %v722_v45 = vrot.slane %v1091_v54, %v580_v59  ;;  %v726_v46 = vrot.slane %v1091_v54, %v584_v63  ;;  %v730_v47 = vrot.slane %v1091_v54, %v588_v4 }
 0x35c   : > { %v739_v56 = vmul.f32 %v1075_v12, %v702_v55  ;;  %v740_v58 = vmul.f32 %v1077_v13, %v706_v57  ;;  %v741_v61 = vmul.f32 %v1079_v17, %v710_v60  ;;  %v742_v0 = vmul.f32 %v1081_v19, %v714_v62 }
 0x35d   : > { %v743_v14 = vmul.f32 %v1083_v22, %v718_v1  ;;  %v744_v3 = vmul.f32 %v1085_v23, %v722_v45  ;;  %v745_v5 = vmul.f32 %v1087_v24, %v726_v46  ;;  %v746_v52 = vmul.f32 %v1089_v25, %v730_v47 }
 0x35e   : > { %756 = vperm.xlu0 %1056, %v739_v56  }
 0x362   : > { %759 = vperm.xlu0 %1056, %v740_v58  }
 0x366   : > { %762 = vperm.xlu0 %1056, %v741_v61  }
 0x36a   : > { %765 = vperm.xlu0 %1056, %v742_v0  }
 0x36e   : > { %768 = vperm.xlu0 %1056, %v743_v14  }
 0x372   : > { %771 = vperm.xlu0 %1056, %v744_v3  }
 0x376   : > { %774 = vperm.xlu0 %1056, %v745_v5  }
 0x37a   : > { %777 = vperm.xlu0 %1056, %v746_v52  }
 0x3d9   : > { %v757_v59 = vpop.permute.xlu0 %756 }
 0x3da   : > { %v782_v4 = vrot.slane %v757_v59, %v1217_v21 }
 0x3dd   : > { %v760_v8 = vpop.permute.xlu0 %759 }
 0x3de   : > { %v786_v12 = vrot.slane %v760_v8, %v1217_v21 }
 0x3e0   : > { %v811_v16 = vsel %vm538_vm2, %v786_v12, %v782_v4 }
 0x3e1   : > { %v763_v9 = vpop.permute.xlu0 %762 }
 0x3e2   : > { %v790_v6 = vrot.slane %v763_v9, %v1217_v21 }
 0x3e4   : > { %v812_v18 = vsel %vm540_vm3, %v790_v6, %v811_v16 }
 0x3e5   : > { %v766_v10 = vpop.permute.xlu0 %765 }
 0x3e6   : > { %v794_v13 = vrot.slane %v766_v10, %v1217_v21 }
 0x3e8   : > { %v813_v22 = vsel %vm542_vm4, %v794_v13, %v812_v18 }
 0x3e9   : > { %v769_v11 = vpop.permute.xlu0 %768 }
 0x3ea   : > { %v798_v20 = vrot.slane %v769_v11, %v1217_v21 }
 0x3ec   : > { %v814_v23 = vsel %vm544_vm5, %v798_v20, %v813_v22 }
 0x3ed   : > { %v772_v63 = vpop.permute.xlu0 %771 }
 0x3ee   : > { %v802_v17 = vrot.slane %v772_v63, %v1217_v21 }
 0x3f0   : > { %v815_v25 = vsel %vm546_vm6, %v802_v17, %v814_v23 }
 0x3f1   : > { %v775_v15 = vpop.permute.xlu0 %774 }
 0x3f2   : > { %v806_v19 = vrot.slane %v775_v15, %v1217_v21 }
 0x3f4   : > { %v816_v27 = vsel %vm548_vm7, %v806_v19, %v815_v25 }
 0x3f5   : > { %v778_v24 = vpop.permute.xlu0 %777 }
 0x3f6   : > { %v810_v26 = vrot.slane %v778_v24, %v1217_v21 }
 0x3f8   : > { %v817_v28 = vsel %vm550_vm8, %v810_v26, %v816_v27 }
 0x3f9   : > { %1025 = vmatmul.mubr.msk.f32.vlgmr.msra.gmra.mxu1 %vm553_vm9, %v817_v28 }
 0x4b9   : > { %v886_v2 = vpop.f32.mrf.mxu1 }
 0x4ba   : > { %890 = vst.msk [vmem:[%s209_s19] sm:$0xff] %vm318_vm0, %v886_v2 }
 0x4bb   : > { %v1026_v29 = vpop.f32.mrf.mxu1 }
 0x4bc PF: > { %s14_s15 = sadd.s32 1, %s1098_s15  }
 0x4bd   : > { %p11_p4 = scmp.ge.s32.totalorder %s14_s15, 4  }
 0x4bf   :  { %13 = sbr.rel (!%p11_p4) target bundleno = 1 (0x1), region = 69 }

// kernel: mwan_forward.27
= control target key start
LH: loop header
LB: loop body
LE: loop exit
PB: predicated region body
PF: predicated region fallthrough
CT: control target
= control target key end

     0   :  { %s1529_s18 = smov 0   ;;  %s1981_s0 = inlined_call_operand.vmem [shape: f32[2,8,64], index: 0, kind: input, shape index: {}]   ;;  %s1982_s1 = inlined_call_operand.vmem [shape: f32[2,10,64], index: 1, kind: input, shape index: {}]   ;;  %s1983_s2 = inlined_call_operand.vmem [shape: f32[64,32], index: 2, kind: input, shape index: {}, may-alias: {2,3}]   ;;  %s1984_s3 = inlined_call_operand.vmem [shape: f32[64,32], index: 3, kind: input, shape index: {}, may-alias: {2,3}]   ;;  %s1985_s4 = inlined_call_operand.vmem [shape: f32[1,32], index: 4, kind: input, shape index: {}]   ;;  %s1986_s5 = inlined_call_operand.vmem [shape: f32[2,8,64], index: 5, kind: output, shape index: {}]  }
   0x1 LB: > { %s1322_s19 = sadd.s32 4294967295, %s1493_s18   ;;  %p1326_p0 = scmp.ge.s32.totalorder %s1493_s18, 1  ;;  %s1493_s18 = sphi %s1529_s18, %s15_s18  }
   0x2   : > { %p196_p1 = scmp.lt.s32.totalorder %s1493_s18, 3 }
   0x4   : > { %p197_p2 = pnand %p1326_p0, %p196_p1 }
   0x5   : > { %p1540_p3 = scmp.lt.s32.totalorder (!%p197_p2), %s1322_s19, 1 }
   0x6   : > { %200 = sbr.rel (%p197_p2) target bundleno = 1283 (0x503), region = 40 }
   0xb   : > { %v340_v0 = vld [vmem:[%s1984_s3 + $0x38] sm:$0xff]  ;;  %v1495_v1 = vmov 0.0   ;;  %v339_v2 = vld [vmem:[%s1984_s3 + $0x30] sm:$0xff]  ;;  %vm1496_vm0 = vmmov 0   ;;  %v338_v5 = vld [vmem:[%s1984_s3 + $0x28] sm:$0xff]  ;;  %s1989_s19 = smov (!%p1540_p3, %s1322_s19), 1  ;;  %v419_v22 = vlaneseq }
   0xc   : > { %1381 = vmatprep.subr.mxu1 %v1495_v1  ;;  %v250_v3 = vld [vmem:[%s1983_s2 + $0x38] sm:$0xff]  ;;  %v249_v4 = vld [vmem:[%s1983_s2 + $0x30] sm:$0xff]  ;;  %1397 = vmatprep.mubr.msk.f32.mxu1 %vm1496_vm0, %v1495_v1  ;;  %v248_v6 = vld [vmem:[%s1983_s2 + $0x28] sm:$0xff]  ;;  %s1327_s16 = sshll.u32 %s1989_s19, 3  ;;  %s1339_s23 = sshll.u32 %s1989_s19, 4  ;;  %vm251_vm1 = vcmask 523264  }
   0xd   : > { %1382 = vmatpush3.msra.mxu1 %v340_v0  ;;  %1362 = vmatprep.subr.mxu0 %v250_v3  ;;  %v337_v7 = vld [vmem:[%s1984_s3 + $0x20] sm:$0xff]  ;;  %v336_v9 = vld [vmem:[%s1984_s3 + $0x18] sm:$0xff]  ;;  %v335_v11 = vld [vmem:[%s1984_s3 + $0x10] sm:$0xff]  ;;  %s230_s28 = scalar_lea.vmem %s1981_s0, %s1327_s16  ;;  %s235_s8 = scalar_lea.vmem %s1982_s1, %s1339_s23  ;;  %v1497_v20 = vmov 1966171168   ;;  %v1626_v24 = vshrl.u32 %v419_v22, 7 }
   0xe   : > { %1383 = vmatprep.subr.mxu1 %v1495_v1  ;;  %1363 = vmatpush3.msra.mxu0 %v250_v3  ;;  %v247_v8 = vld [vmem:[%s1983_s2 + $0x20] sm:$0xff]  ;;  %v246_v10 = vld [vmem:[%s1983_s2 + $0x18] sm:$0xff]  ;;  %v245_v12 = vld [vmem:[%s1983_s2 + $0x10] sm:$0xff]  ;;  %v417_v21 = vunpack.c.l.s4 %v1497_v20  ;;  %vm583_vm2 = vcmask 261120   ;;  %vm587_vm3 = vcmask 254976   ;;  %vm660_vm4 = vcmask 130112   ;;  %s239_s20 = scalar_lea.vmem %s1986_s5, %s1327_s16 }
   0xf   : > { %1384 = vmatpush3.msra.mxu1 %v339_v2  ;;  %1364 = vmatprep.subr.mxu0 %v249_v4  ;;  %v334_v13 = vld [vmem:[%s1984_s3 + $0x8] sm:$0xff]  ;;  %v333_v15 = vld [vmem:[%s1984_s3] sm:$0xff]  ;;  %v1632_v34 = vsub.s32 0, %v1626_v24  ;;  %vm725_vm5 = vcmask 1041409   ;;  %vm727_vm6 = vcmask 1042434   ;;  %vm729_vm7 = vcmask 1043459  }
  0x10   : > { %1385 = vmatprep.subr.mxu1 %v1495_v1  ;;  %1365 = vmatpush3.msra.mxu0 %v249_v4  ;;  %v244_v14 = vld [vmem:[%s1983_s2 + $0x8] sm:$0xff]  ;;  %v243_v16 = vld [vmem:[%s1983_s2] sm:$0xff]  ;;  %v418_v23 = vunpack.c.0.s8 %v417_v21  ;;  %vm731_vm8 = vcmask 1044484   ;;  %vm733_vm9 = vcmask 1045509   ;;  %vm735_vm10 = vcmask 1046534  }
  0x11   : > { %1386 = vmatpush3.msra.mxu1 %v338_v5  ;;  %1366 = vmatprep.subr.mxu0 %v248_v6  ;;  %v240_v17 = vld [vmem:[%s230_s28] sm:$0xff]  ;;  %v1615_v19 = vld [vmem:[%s235_s8 + $0x8] sm:$0x3]  ;;  %vm737_vm11 = vcmask 1047559   ;;  %vm740_vm12 = vcmask 80896   ;;  %vm1183_vm13 = vcmask 1041408  }
  0x12   : > { %1387 = vmatprep.subr.mxu1 %v1495_v1  ;;  %1367 = vmatpush3.msra.mxu0 %v248_v6  ;;  %v1613_v18 = vld [vmem:[%s235_s8] sm:$0xff]  ;;  %v421_v25 = vsub.s32 %v418_v23, %v1626_v24 }
  0x13   : > { %1388 = vmatpush3.msra.mxu1 %v337_v7  ;;  %1368 = vmatprep.subr.mxu0 %v247_v8  ;;  %v1655_v5 = vld [vmem:[%s1985_s4] ss:$0 sm:$0xff] }
  0x14   : > { %1389 = vmatprep.subr.mxu1 %v1495_v1  ;;  %1369 = vmatpush3.msra.mxu0 %v247_v8 }
  0x15   : > { %1390 = vmatpush3.msra.mxu1 %v336_v9  ;;  %1370 = vmatprep.subr.mxu0 %v246_v10 }
  0x16   : > { %1391 = vmatprep.subr.mxu1 %v1495_v1  ;;  %1371 = vmatpush3.msra.mxu0 %v246_v10 }
  0x17   : > { %1392 = vmatpush3.msra.mxu1 %v335_v11  ;;  %1372 = vmatprep.subr.mxu0 %v245_v12 }
  0x18   : > { %1393 = vmatprep.subr.mxu1 %v1495_v1  ;;  %1373 = vmatpush3.msra.mxu0 %v245_v12 }
  0x19   : > { %1394 = vmatpush3.msra.mxu1 %v334_v13  ;;  %1374 = vmatprep.subr.mxu0 %v244_v14 }
  0x1a   : > { %1395 = vmatprep.subr.mxu1 %v1495_v1  ;;  %1375 = vmatpush3.msra.mxu0 %v244_v14 }
  0x1b   : > { %1396 = vmatpush3.msra.mxu1 %v333_v15  ;;  %1376 = vmatprep.subr.mxu0 %v243_v16 }
  0x1c   : > { %1398 = vmatmul.mubr.msk.f32.vlgmr.msra.gmra.mxu1 %vm251_vm1, %v240_v17  ;;  %1377 = vmatpush3.msra.mxu0 %v243_v16 }
  0x1d   : > { %1378 = vmatprep.mubr.msk.f32.mxu0 %vm251_vm1, %v1613_v18  ;;  %1400 = vmatprep.subr.mxu0 %v1495_v1 }
  0x1e   : > { %1379 = vmatmul.mubr.msk.f32.vlgmr.msra.gmra.mxu0 %vm251_vm1, %v1615_v19 }
  0x1f   : > { %1404 = vmatprep.mubr.msk.f32.mxu0 %vm1496_vm0, %v1495_v1  ;;  %1401 = vmatpush3.msk.msra.mxu0 %vm1183_vm13, %v1615_v19 }
  0x20   : > { %1402 = vmatprep.subr.mxu0 %v1495_v1 }
  0x21   : > { %1403 = vmatpush3.msra.mxu0 %v1613_v18 }
  0xdc   : > { %v410_v26 = vpop.f32.mrf.mxu1 }
  0xdd   : > { %v415_v27 = vcombine.high %v410_v26, %v410_v26  ;;  %v422_v28 = vrot.slane %v410_v26, %v421_v25 }
  0xde   : > { %v1399_v29 = vpop.f32.mrf.mxu1  ;;  %v1629_v33 = vpop.f32.mrf.mxu0 }
  0xdf   : > { %v429_v30 = vrot.slane %v415_v27, %v421_v25  ;;  %v430_v31 = vcombine.high %v422_v28, %v422_v28  ;;  %v438_v32 = vrot.slane %v422_v28, %v421_v25 }
  0xe0   : > { %v1634_v42 = vpop.f32.mrf.mxu0 }
  0xe1   : > { %v445_v35 = vrot.slane %v429_v30, %v421_v25  ;;  %v452_v36 = vrot.slane %v430_v31, %v421_v25  ;;  %v460_v37 = vcombine.high %v438_v32, %v438_v32  ;;  %v472_v38 = vmul.f32 -1.0, %v438_v32 }
  0xe2   : > { %v431_v39 = vcombine.high %v429_v30, %v429_v30 }
  0xe3   : > { %v462_v40 = vcombine.high %v452_v36, %v452_v36  ;;  %v473_v41 = vmul.f32 -1.0, %v452_v36  ;;  %v474_v43 = vmul.f32 -1.0, %v460_v37  ;;  %v476_v44 = vmul.f32 -1.0, %v445_v35 }
  0xe4   : > { %v491_v45 = vrot.slane %v472_v38, %v1632_v34  ;;  %v459_v49 = vrot.slane %v431_v39, %v421_v25  ;;  %v461_v57 = vcombine.high %v445_v35, %v445_v35 }
  0xe5   : > { %v495_v46 = vrot.slane %v473_v41, %v1632_v34  ;;  %v499_v47 = vrot.slane %v474_v43, %v1632_v34  ;;  %v475_v50 = vmul.f32 -1.0, %v462_v40  ;;  %v507_v51 = vrot.slane %v476_v44, %v1632_v34 }
  0xe6   : > { %v528_v48 = vadd.f32 %v491_v45, %v1634_v42  ;;  %v529_v53 = vadd.f32 %v1629_v33, %v491_v45  ;;  %v477_v58 = vmul.f32 -1.0, %v459_v49  ;;  %v463_v62 = vcombine.high %v459_v49, %v459_v49 }
  0xe7   : > { %v530_v52 = vadd.f32 %v495_v46, %v1634_v42  ;;  %v531_v54 = vadd.f32 %v1629_v33, %v495_v46  ;;  %v532_v55 = vadd.f32 %v499_v47, %v1634_v42  ;;  %v533_v56 = vadd.f32 %v1629_v33, %v499_v47 }
  0xe8   : > { %1421 = vtanh.f32 %v528_v48  ;;  %v503_v59 = vrot.slane %v475_v50, %v1632_v34  ;;  %v536_v60 = vadd.f32 %v507_v51, %v1634_v42  ;;  %v537_v61 = vadd.f32 %v1629_v33, %v507_v51 }
  0xe9   : > { %1423 = vtanh.f32 %v530_v52  ;;  %v478_v63 = vmul.f32 -1.0, %v461_v57  ;;  %v511_v0 = vrot.slane %v477_v58, %v1632_v34  ;;  %v479_v4 = vmul.f32 -1.0, %v463_v62 }
  0xea   : > { %1425 = vtanh.f32 %v529_v53  ;;  %v534_v2 = vadd.f32 %v503_v59, %v1634_v42  ;;  %v535_v3 = vadd.f32 %v1629_v33, %v503_v59 }
  0xeb   : > { %1427 = vtanh.f32 %v531_v54  ;;  %v515_v6 = vrot.slane %v478_v63, %v1632_v34  ;;  %v538_v7 = vadd.f32 %v511_v0, %v1634_v42  ;;  %v539_v10 = vadd.f32 %v1629_v33, %v511_v0 }
  0xec   : > { %1429 = vtanh.f32 %v532_v55  ;;  %v519_v12 = vrot.slane %v479_v4, %v1632_v34 }
  0xed   : > { %1431 = vtanh.f32 %v533_v56  ;;  %v540_v16 = vadd.f32 %v515_v6, %v1634_v42  ;;  %v541_v26 = vadd.f32 %v1629_v33, %v515_v6 }
  0xee   : > { %1433 = vtanh.f32 %v536_v60  ;;  %v542_v30 = vadd.f32 %v519_v12, %v1634_v42  ;;  %v543_v36 = vadd.f32 %v1629_v33, %v519_v12 }
  0xef   : > { %1435 = vtanh.f32 %v537_v61 }
  0xf0   : > { %1437 = vtanh.f32 %v534_v2 }
  0xf1   : > { %1439 = vtanh.f32 %v535_v3 }
  0xf2   : > { %1441 = vtanh.f32 %v538_v7 }
  0xf3   : > { %1443 = vtanh.f32 %v539_v10 }
  0xf4   : > { %1445 = vtanh.f32 %v540_v16 }
  0xf5   : > { %v1422_v8 = vpop.eup %1421  ;;  %1447 = vtanh.f32 %v541_v26 }
  0xf6   : > { %v567_v9 = vmul.f32 %v1422_v8, %v1655_v5  ;;  %v1424_v11 = vpop.eup %1423  ;;  %1449 = vtanh.f32 %v542_v30 }
  0xf7   : > { %v1426_v13 = vpop.eup %1425  ;;  %v569_v15 = vmul.f32 %v1424_v11, %v1655_v5  ;;  %1451 = vtanh.f32 %v543_v36 }
  0xf8   : > { %v584_v14 = vsel %vm583_vm2, %v567_v9, 0.0  ;;  %v1428_v17 = vpop.eup %1427  ;;  %v568_v20 = vmul.f32 %v1426_v13, %v1655_v5 }
  0xf9   : > { %585 = vadd.xlane.f32.xlu0 %v584_v14  ;;  %v1430_v21 = vpop.eup %1429  ;;  %v591_v23 = vsel %vm583_vm2, %v569_v15, 0.0  ;;  %v570_v25 = vmul.f32 %v1428_v17, %v1655_v5 }
  0xfa   : > { %v1432_v27 = vpop.eup %1431  ;;  %592 = vadd.xlane.f32.xlu1 %v591_v23  ;;  %v588_v28 = vsel %vm587_vm3, %v568_v20, 0.0  ;;  %v571_v29 = vmul.f32 %v1430_v21, %v1655_v5 }
  0xfb   : > { %v1434_v31 = vpop.eup %1433  ;;  %v594_v32 = vsel %vm587_vm3, %v570_v25, 0.0  ;;  %v572_v35 = vmul.f32 %v1432_v27, %v1655_v5 }
  0xfc   : > { %v1436_v37 = vpop.eup %1435  ;;  %v597_v38 = vsel %vm583_vm2, %v571_v29, 0.0  ;;  %v575_v39 = vmul.f32 %v1434_v31, %v1655_v5 }
  0xfd   : > { %589 = vadd.xlane.f32.xlu0 %v588_v28  ;;  %v1438_v40 = vpop.eup %1437  ;;  %v600_v41 = vsel %vm587_vm3, %v572_v35, 0.0  ;;  %v576_v42 = vmul.f32 %v1436_v37, %v1655_v5 }
  0xfe   : > { %595 = vadd.xlane.f32.xlu1 %v594_v32  ;;  %v1440_v43 = vpop.eup %1439  ;;  %v609_v44 = vsel %vm583_vm2, %v575_v39, 0.0  ;;  %v573_v33 = vmul.f32 %v1438_v40, %v1655_v5 }
  0xff   : > { %v1442_v45 = vpop.eup %1441  ;;  %v612_v46 = vsel %vm587_vm3, %v576_v42, 0.0  ;;  %v574_v47 = vmul.f32 %v1440_v43, %v1655_v5 }
 0x100   : > { %v1444_v48 = vpop.eup %1443  ;;  %v603_v49 = vsel %vm583_vm2, %v573_v33, 0.0  ;;  %v577_v50 = vmul.f32 %v1442_v45, %v1655_v5 }
 0x101   : > { %598 = vadd.xlane.f32.xlu0 %v597_v38  ;;  %v1446_v51 = vpop.eup %1445  ;;  %v606_v52 = vsel %vm587_vm3, %v574_v47, 0.0  ;;  %v578_v53 = vmul.f32 %v1444_v48, %v1655_v5 }
 0x102   : > { %601 = vadd.xlane.f32.xlu1 %v600_v41  ;;  %v1448_v54 = vpop.eup %1447  ;;  %v615_v55 = vsel %vm583_vm2, %v577_v50, 0.0  ;;  %v579_v56 = vmul.f32 %v1446_v51, %v1655_v5 }
 0x103   : > { %v1450_v57 = vpop.eup %1449  ;;  %v618_v58 = vsel %vm587_vm3, %v578_v53, 0.0  ;;  %v580_v59 = vmul.f32 %v1448_v54, %v1655_v5 }
 0x104   : > { %v1452_v60 = vpop.eup %1451  ;;  %v621_v61 = vsel %vm583_vm2, %v579_v56, 0.0  ;;  %v581_v62 = vmul.f32 %v1450_v57, %v1655_v5 }
 0x105   : > { %610 = vadd.xlane.f32.xlu0 %v609_v44  ;;  %v624_v63 = vsel %vm587_vm3, %v580_v59, 0.0  ;;  %v582_v0 = vmul.f32 %v1452_v60, %v1655_v5  ;;  %v650_v5 = vand.u32 127, %v419_v22  ;;  %v1498_v60 = vmov 0  }
 0x106   : > { %613 = vadd.xlane.f32.xlu1 %v612_v46  ;;  %v627_v2 = vsel %vm583_vm2, %v581_v62, 0.0  ;;  %1420 = vset.pattern.permute.xlu0 %v1498_v60 }
 0x107   : > { %v630_v3 = vsel %vm587_vm3, %v582_v0, 0.0  ;;  %v655_v12 = vadd.s32 4294967288, %v650_v5  ;;  %v1722_v17 = vsub.s32 %v650_v5, %v1626_v24  ;;  %1419 = vset.pattern.permute.xlu1 %v1498_v60 }
 0x109   : > { %604 = vadd.xlane.f32.xlu0 %v603_v49  ;;  %v1717_v15 = vsub.s32 %v655_v12, %v1626_v24  ;;  %v755_v12 = vsub.s32 2, %v1626_v24 }
 0x10a   : > { %607 = vadd.xlane.f32.xlu1 %v606_v52 }
 0x10d   : > { %616 = vadd.xlane.f32.xlu0 %v615_v55 }
 0x10e   : > { %619 = vadd.xlane.f32.xlu1 %v618_v58 }
 0x111   : > { %622 = vadd.xlane.f32.xlu0 %v621_v61  ;;  %v751_v61 = vsub.s32 1, %v1626_v24 }
 0x112   : > { %625 = vadd.xlane.f32.xlu1 %v624_v63 }
 0x115   : > { %628 = vadd.xlane.f32.xlu0 %v627_v2  ;;  %v767_v2 = vsub.s32 5, %v1626_v24 }
 0x116   : > { %631 = vadd.xlane.f32.xlu1 %v630_v3 }
 0x182   : > { %v1697_v4 = vpop.xlane.xlu0 %585 }
 0x183   : > { %v1699_v6 = vpop.xlane.xlu1 %592  ;;  %v654_v29 = vrot.slane %v1697_v4, %v1722_v17 }
 0x184   : > { %v665_v23 = vrot.slane %v1699_v6, %v1722_v17 }
 0x186   : > { %v1701_v7 = vpop.xlane.xlu0 %589 }
 0x187   : > { %v1703_v8 = vpop.xlane.xlu1 %595  ;;  %v659_v25 = vrot.slane %v1701_v7, %v1717_v15 }
 0x188   : > { %v669_v20 = vrot.slane %v1703_v8, %v1717_v15 }
 0x189   : > { %v661_v36 = vsel %vm660_vm4, %v659_v25, %v654_v29 }
 0x18a   : > { %v1705_v9 = vpop.xlane.xlu0 %598  ;;  %v670_v30 = vsel %vm660_vm4, %v669_v20, %v665_v23 }
 0x18b   : > { %v1707_v10 = vpop.xlane.xlu1 %601  ;;  %v674_v27 = vrot.slane %v1705_v9, %v1722_v17  ;;  %v726_v39 = vsel %vm725_vm5, %v670_v30, %v661_v36 }
 0x18c   : > { %v678_v22 = vrot.slane %v1707_v10, %v1717_v15 }
 0x18e   : > { %v1710_v11 = vpop.xlane.xlu0 %610  ;;  %v679_v32 = vsel %vm660_vm4, %v678_v22, %v674_v27  ;;  %v771_v22 = vsub.s32 6, %v1626_v24 }
 0x18f   : > { %v1712_v13 = vpop.xlane.xlu1 %613  ;;  %v728_v42 = vsel %vm727_vm6, %v679_v32, %v726_v39  ;;  %v692_v33 = vrot.slane %v1710_v11, %v1722_v17 }
 0x190   : > { %v696_v40 = vrot.slane %v1712_v13, %v1717_v15 }
 0x192   : > { %v1714_v14 = vpop.xlane.xlu0 %604  ;;  %v697_v49 = vsel %vm660_vm4, %v696_v40, %v692_v33 }
 0x193   : > { %v1719_v16 = vpop.xlane.xlu1 %607  ;;  %v683_v31 = vrot.slane %v1714_v14, %v1722_v17 }
 0x194   : > { %v687_v26 = vrot.slane %v1719_v16, %v1717_v15 }
 0x196   : > { %v1728_v21 = vpop.xlane.xlu0 %616  ;;  %v688_v37 = vsel %vm660_vm4, %v687_v26, %v683_v31  ;;  %v759_v31 = vsub.s32 3, %v1626_v24 }
 0x197   : > { %v1738_v28 = vpop.xlane.xlu1 %619  ;;  %v701_v43 = vrot.slane %v1728_v21, %v1722_v17  ;;  %v730_v45 = vsel %vm729_vm7, %v688_v37, %v728_v42 }
 0x198   : > { %v705_v38 = vrot.slane %v1738_v28, %v1717_v15  ;;  %v732_v54 = vsel %vm731_vm8, %v697_v49, %v730_v45 }
 0x19a   : > { %v1746_v35 = vpop.xlane.xlu0 %622  ;;  %v706_v48 = vsel %vm660_vm4, %v705_v38, %v701_v43 }
 0x19b   : > { %v1755_v41 = vpop.xlane.xlu1 %625  ;;  %v710_v46 = vrot.slane %v1746_v35, %v1722_v17  ;;  %v734_v55 = vsel %vm733_vm9, %v706_v48, %v732_v54 }
 0x19c   : > { %v714_v44 = vrot.slane %v1755_v41, %v1717_v15 }
 0x19e   : > { %v1767_v47 = vpop.xlane.xlu0 %628  ;;  %v715_v51 = vsel %vm660_vm4, %v714_v44, %v710_v46 }
 0x19f   : > { %v1771_v50 = vpop.xlane.xlu1 %631  ;;  %v719_v52 = vrot.slane %v1767_v47, %v1722_v17  ;;  %v736_v57 = vsel %vm735_vm10, %v715_v51, %v734_v55 }
 0x1a0   : > { %v723_v53 = vrot.slane %v1771_v50, %v1717_v15 }
 0x1a2   : > { %v724_v56 = vsel %vm660_vm4, %v723_v53, %v719_v52 }
 0x1a3   : > { %v738_v58 = vsel %vm737_vm11, %v724_v56, %v736_v57 }
 0x1a4   : > { %v741_v59 = vsel %vm740_vm12, %v738_v58, -inf }
 0x1a5   : > { %742 = vmax.xlane.f32.xlu0 %v741_v59 }
 0x22e   : > { %v743_v62 = vpop.xlane.xlu0 %742 }
 0x22f   : > { %v748_v63 = vrot.slane %v743_v62, %v1632_v34  ;;  %v752_v0 = vrot.slane %v743_v62, %v751_v61  ;;  %v1796_v23 = vrot.slane %v743_v62, %v767_v2  ;;  %v756_v27 = vrot.slane %v743_v62, %v755_v12 }
 0x230   : > { %v760_v39 = vrot.slane %v743_v62, %v759_v31 }
 0x231   : > { %v785_v3 = vsub.f32 %v1697_v4, %v748_v63  ;;  %v786_v5 = vsub.f32 %v1701_v7, %v748_v63  ;;  %v787_v20 = vsub.f32 %v1699_v6, %v752_v0  ;;  %v788_v29 = vsub.f32 %v1703_v8, %v752_v0 }
 0x232   : > { %v775_v7 = vsub.s32 7, %v1626_v24  ;;  %v772_v6 = vrot.slane %v743_v62, %v771_v22  ;;  %v795_v30 = vsub.f32 %v1728_v21, %v1796_v23  ;;  %v789_v32 = vsub.f32 %v1705_v9, %v756_v27 }
 0x233   : > { %v801_v25 = vmul.f32 1.442695, %v785_v3  ;;  %v803_v26 = vmul.f32 1.442695, %v786_v5  ;;  %v805_v4 = vmul.f32 1.442695, %v787_v20  ;;  %v790_v40 = vsub.f32 %v1707_v10, %v756_v27 }
 0x234   : > { %v807_v36 = vmul.f32 1.442695, %v788_v29  ;;  %v776_v8 = vrot.slane %v743_v62, %v775_v7  ;;  %v797_v37 = vsub.f32 %v1746_v35, %v772_v6  ;;  %v821_v38 = vmul.f32 1.442695, %v795_v30 }
 0x235   : > { %1453 = vpow2.f32 %v801_v25  ;;  %v809_v42 = vmul.f32 1.442695, %v789_v32  ;;  %v763_v9 = vsub.s32 4, %v1626_v24  ;;  %v791_v44 = vsub.f32 %v1714_v14, %v760_v39 }
 0x236   : > { %1455 = vpow2.f32 %v803_v26  ;;  %v799_v21 = vsub.f32 %v1767_v47, %v776_v8  ;;  %v825_v43 = vmul.f32 1.442695, %v797_v37  ;;  %v811_v33 = vmul.f32 1.442695, %v790_v40 }
 0x237   : > { %1457 = vpow2.f32 %v805_v4  ;;  %v764_v10 = vrot.slane %v743_v62, %v763_v9  ;;  %v792_v47 = vsub.f32 %v1719_v16, %v760_v39  ;;  %v813_v48 = vmul.f32 1.442695, %v791_v44 }
 0x238   : > { %1459 = vpow2.f32 %v807_v36  ;;  %v829_v46 = vmul.f32 1.442695, %v799_v21  ;;  %v798_v59 = vsub.f32 %v1755_v41, %v772_v6 }
 0x239   : > { %1461 = vpow2.f32 %v821_v38  ;;  %v793_v49 = vsub.f32 %v1710_v11, %v764_v10  ;;  %v815_v51 = vmul.f32 1.442695, %v792_v47  ;;  %v794_v54 = vsub.f32 %v1712_v13, %v764_v10 }
 0x23a   : > { %1463 = vpow2.f32 %v809_v42  ;;  %v796_v11 = vsub.f32 %v1738_v28, %v1796_v23  ;;  %v800_v28 = vsub.f32 %v1771_v50, %v776_v8  ;;  %v827_v63 = vmul.f32 1.442695, %v798_v59 }
 0x23b   : > { %1465 = vpow2.f32 %v825_v43  ;;  %v817_v16 = vmul.f32 1.442695, %v793_v49  ;;  %v819_v57 = vmul.f32 1.442695, %v794_v54 }
 0x23c   : > { %1467 = vpow2.f32 %v811_v33  ;;  %v823_v60 = vmul.f32 1.442695, %v796_v11  ;;  %v831_v3 = vmul.f32 1.442695, %v800_v28 }
 0x23d   : > { %1469 = vpow2.f32 %v829_v46 }
 0x23e   : > { %1471 = vpow2.f32 %v813_v48 }
 0x23f   : > { %1473 = vpow2.f32 %v815_v51 }
 0x240   : > { %1475 = vpow2.f32 %v817_v16 }
 0x241   : > { %1477 = vpow2.f32 %v819_v57 }
 0x242   : > { %v1817_v45 = vpop.eup %1453  ;;  %1479 = vpow2.f32 %v823_v60 }
 0x243   : > { %v1819_v35 = vpop.eup %1455  ;;  %850 = vperm.xlu1 %1419, %v1817_v45   ;;  %1481 = vpow2.f32 %v827_v63 }
 0x244   : > { %853 = vperm.xlu0 %1420, %v1819_v35   ;;  %v1826_v14 = vpop.eup %1457  ;;  %1483 = vpow2.f32 %v831_v3 }
 0x245   : > { %v1830_v52 = vpop.eup %1459 }
 0x246   : > { %v1833_v53 = vpop.eup %1461 }
 0x247   : > { %856 = vperm.xlu1 %1419, %v1826_v14   ;;  %v1837_v55 = vpop.eup %1463 }
 0x248   : > { %880 = vperm.xlu0 %1420, %v1833_v53   ;;  %v1840_v56 = vpop.eup %1465 }
 0x249   : > { %v1845_v58 = vpop.eup %1467 }
 0x24a   : > { %v1848_v13 = vpop.eup %1469 }
 0x24b   : > { %859 = vperm.xlu1 %1419, %v1830_v52   ;;  %v1852_v62 = vpop.eup %1471 }
 0x24c   : > { %886 = vperm.xlu0 %1420, %v1840_v56   ;;  %v1856_v0 = vpop.eup %1473 }
 0x24d   : > { %v1859_v5 = vpop.eup %1475 }
 0x24e   : > { %v1862_v41 = vpop.eup %1477 }
 0x24f   : > { %862 = vperm.xlu1 %1419, %v1837_v55   ;;  %v1865_v20 = vpop.eup %1479 }
 0x250   : > { %892 = vperm.xlu0 %1420, %v1848_v13   ;;  %v1868_v50 = vpop.eup %1481 }
 0x251   : > { %v1871_v23 = vpop.eup %1483 }
 0x253   : > { %865 = vperm.xlu1 %1419, %v1845_v58  }
 0x257   : > { %868 = vperm.xlu1 %1419, %v1852_v62  }
 0x25b   : > { %871 = vperm.xlu1 %1419, %v1856_v0  }
 0x25f   : > { %874 = vperm.xlu1 %1419, %v1859_v5  }
 0x263   : > { %877 = vperm.xlu1 %1419, %v1862_v41  }
 0x267   : > { %883 = vperm.xlu1 %1419, %v1865_v20  }
 0x26b   : > { %889 = vperm.xlu1 %1419, %v1868_v50  }
 0x26f   : > { %895 = vperm.xlu1 %1419, %v1871_v23  }
 0x2be   : > { %v851_v25 = vpop.permute.xlu1 %850 }
 0x2bf   : > { %v854_v30 = vpop.permute.xlu0 %853  ;;  %v900_v43 = vrot.slane %v851_v25, %v1722_v17 }
 0x2c0   : > { %v904_v21 = vrot.slane %v854_v30, %v1717_v15 }
 0x2c2   : > { %v857_v26 = vpop.permute.xlu1 %856  ;;  %v905_v11 = vsel %vm660_vm4, %v904_v21, %v900_v43 }
 0x2c3   : > { %v881_v8 = vpop.permute.xlu0 %880  ;;  %v909_v44 = vrot.slane %v857_v26, %v1722_v17 }
 0x2c4   : > { %v945_v57 = vrot.slane %v881_v8, %v1722_v17 }
 0x2c6   : > { %v860_v27 = vpop.permute.xlu1 %859 }
 0x2c7   : > { %v913_v38 = vrot.slane %v860_v27, %v1717_v15  ;;  %v887_v39 = vpop.permute.xlu0 %886 }
 0x2c8   : > { %v954_v28 = vrot.slane %v887_v39, %v1722_v17 }
 0x2c9   : > { %v914_v47 = vsel %vm660_vm4, %v913_v38, %v909_v44 }
 0x2ca   : > { %v863_v29 = vpop.permute.xlu1 %862  ;;  %v969_v63 = vsel %vm725_vm5, %v914_v47, %v905_v11 }
 0x2cb   : > { %v918_v46 = vrot.slane %v863_v29, %v1722_v17  ;;  %v893_v3 = vpop.permute.xlu0 %892 }
 0x2cc   : > { %v963_v30 = vrot.slane %v893_v3, %v1722_v17 }
 0x2ce   : > { %v866_v4 = vpop.permute.xlu1 %865 }
 0x2cf   : > { %v922_v40 = vrot.slane %v866_v4, %v1717_v15 }
 0x2d1   : > { %v923_v51 = vsel %vm660_vm4, %v922_v40, %v918_v46 }
 0x2d2   : > { %v869_v6 = vpop.permute.xlu1 %868  ;;  %v970_v26 = vsel %vm727_vm6, %v923_v51, %v969_v63 }
 0x2d3   : > { %v927_v48 = vrot.slane %v869_v6, %v1722_v17 }
 0x2d6   : > { %v872_v32 = vpop.permute.xlu1 %871 }
 0x2d7   : > { %v931_v33 = vrot.slane %v872_v32, %v1717_v15 }
 0x2d9   : > { %v932_v59 = vsel %vm660_vm4, %v931_v33, %v927_v48 }
 0x2da   : > { %v875_v36 = vpop.permute.xlu1 %874  ;;  %v971_v29 = vsel %vm729_vm7, %v932_v59, %v970_v26 }
 0x2db   : > { %v936_v54 = vrot.slane %v875_v36, %v1722_v17 }
 0x2de   : > { %v878_v37 = vpop.permute.xlu1 %877 }
 0x2df   : > { %v940_v10 = vrot.slane %v878_v37, %v1717_v15 }
 0x2e1   : > { %v941_v25 = vsel %vm660_vm4, %v940_v10, %v936_v54 }
 0x2e2   : > { %v884_v42 = vpop.permute.xlu1 %883  ;;  %v972_v32 = vsel %vm731_vm8, %v941_v25, %v971_v29 }
 0x2e3   : > { %v949_v49 = vrot.slane %v884_v42, %v1717_v15 }
 0x2e5   : > { %v950_v27 = vsel %vm660_vm4, %v949_v49, %v945_v57 }
 0x2e6   : > { %v890_v16 = vpop.permute.xlu1 %889  ;;  %v973_v8 = vsel %vm733_vm9, %v950_v27, %v972_v32 }
 0x2e7   : > { %v958_v60 = vrot.slane %v890_v16, %v1717_v15 }
 0x2e9   : > { %v959_v4 = vsel %vm660_vm4, %v958_v60, %v954_v28 }
 0x2ea   : > { %v896_v6 = vpop.permute.xlu1 %895  ;;  %v974_v38 = vsel %vm735_vm10, %v959_v4, %v973_v8 }
 0x2eb   : > { %v967_v36 = vrot.slane %v896_v6, %v1717_v15 }
 0x2ed   : > { %v968_v37 = vsel %vm660_vm4, %v967_v36, %v963_v30 }
 0x2ee   : > { %v975_v39 = vsel %vm737_vm11, %v968_v37, %v974_v38 }
 0x2ef   : > { %v977_v40 = vsel %vm740_vm12, %v975_v39, 0.0 }
 0x2f0   : > { %978 = vadd.xlane.f32.xlu0 %v977_v40 }
 0x379   : > { %v979_v42 = vpop.xlane.xlu0 %978 }
 0x37a   : > { %1485 = vrcp.f32 %v979_v42 }
 0x387   : > { %v1486_v21 = vpop.eup %1485 }
 0x388   : > { %v1001_v43 = vrot.slane %v1486_v21, %v763_v9  ;;  %v985_v44 = vrot.slane %v1486_v21, %v1632_v34  ;;  %v1013_v10 = vrot.slane %v1486_v21, %v775_v7  ;;  %v989_v49 = vrot.slane %v1486_v21, %v751_v61 }
 0x38a   : > { %v1030_v33 = vmul.f32 %v1859_v5, %v1001_v43  ;;  %v1022_v46 = vmul.f32 %v1817_v45, %v985_v44  ;;  %v1036_v47 = vmul.f32 %v1848_v13, %v1013_v10  ;;  %v1023_v48 = vmul.f32 %v1819_v35, %v985_v44 }
 0x38b   : > { %v1024_v34 = vmul.f32 %v1826_v14, %v989_v49  ;;  %v1025_v9 = vmul.f32 %v1830_v52, %v989_v49  ;;  %v993_v45 = vrot.slane %v1486_v21, %v755_v12  ;;  %v997_v35 = vrot.slane %v1486_v21, %v759_v31 }
 0x38c   : > { %1079 = vperm.xlu0 %1420, %v1030_v33   ;;  %1055 = vperm.xlu1 %1419, %v1022_v46   ;;  %v1031_v52 = vmul.f32 %v1862_v41, %v1001_v43  ;;  %v1005_v12 = vrot.slane %v1486_v21, %v767_v2  ;;  %v1009_v31 = vrot.slane %v1486_v21, %v771_v22 }
 0x38d   : > { %v1026_v7 = vmul.f32 %v1837_v55, %v993_v45  ;;  %v1027_v13 = vmul.f32 %v1845_v58, %v993_v45  ;;  %v1028_v61 = vmul.f32 %v1852_v62, %v997_v35  ;;  %v1029_v14 = vmul.f32 %v1856_v0, %v997_v35 }
 0x38e   : > { %v1032_v55 = vmul.f32 %v1833_v53, %v1005_v12  ;;  %v1033_v58 = vmul.f32 %v1865_v20, %v1005_v12  ;;  %v1034_v62 = vmul.f32 %v1840_v56, %v1009_v31  ;;  %v1035_v0 = vmul.f32 %v1868_v50, %v1009_v31 }
 0x38f   : > { %v1037_v5 = vmul.f32 %v1871_v23, %v1013_v10 }
 0x390   : > { %1097 = vperm.xlu0 %1420, %v1036_v47   ;;  %1058 = vperm.xlu1 %1419, %v1023_v48  }
 0x394   : > { %1061 = vperm.xlu1 %1419, %v1024_v34  }
 0x398   : > { %1064 = vperm.xlu1 %1419, %v1025_v9  }
 0x39c   : > { %1067 = vperm.xlu1 %1419, %v1026_v7  }
 0x3a0   : > { %1070 = vperm.xlu1 %1419, %v1027_v13  }
 0x3a4   : > { %1073 = vperm.xlu1 %1419, %v1028_v61  }
 0x3a8   : > { %1076 = vperm.xlu1 %1419, %v1029_v14  }
 0x3ac   : > { %1082 = vperm.xlu1 %1419, %v1031_v52  }
 0x3b0   : > { %1085 = vperm.xlu1 %1419, %v1032_v55  }
 0x3b4   : > { %1088 = vperm.xlu1 %1419, %v1033_v58  }
 0x3b8   : > { %1091 = vperm.xlu1 %1419, %v1034_v62  }
 0x3bc   : > { %1094 = vperm.xlu1 %1419, %v1035_v0  }
 0x3c0   : > { %1100 = vperm.xlu1 %1419, %v1037_v5  }
 0x407   : > { %v1056_v2 = vpop.permute.xlu1 %1055  ;;  %v1080_v11 = vpop.permute.xlu0 %1079 }
 0x408   : > { %v1105_v63 = vrot.slane %v1056_v2, %v1722_v17  ;;  %v1141_v27 = vrot.slane %v1080_v11, %v1722_v17 }
 0x40b   : > { %v1059_v24 = vpop.permute.xlu1 %1058  ;;  %v1098_v8 = vpop.permute.xlu0 %1097 }
 0x40c   : > { %v1109_v1 = vrot.slane %v1059_v24, %v1717_v15  ;;  %v1168_v33 = vrot.slane %v1098_v8, %v1722_v17 }
 0x40e   : > { %v1110_v6 = vsel %vm660_vm4, %v1109_v1, %v1105_v63 }
 0x40f   : > { %v1062_v22 = vpop.permute.xlu1 %1061 }
 0x410   : > { %v1114_v18 = vrot.slane %v1062_v22, %v1722_v17 }
 0x413   : > { %v1065_v53 = vpop.permute.xlu1 %1064 }
 0x414   : > { %v1118_v23 = vrot.slane %v1065_v53, %v1717_v15 }
 0x416   : > { %v1119_v3 = vsel %vm660_vm4, %v1118_v23, %v1114_v18 }
 0x417   : > { %v1068_v41 = vpop.permute.xlu1 %1067  ;;  %v1174_v37 = vsel %vm725_vm5, %v1119_v3, %v1110_v6 }
 0x418   : > { %v1123_v60 = vrot.slane %v1068_v41, %v1722_v17 }
 0x41b   : > { %v1071_v56 = vpop.permute.xlu1 %1070 }
 0x41c   : > { %v1127_v19 = vrot.slane %v1071_v56, %v1717_v15 }
 0x41e   : > { %v1128_v29 = vsel %vm660_vm4, %v1127_v19, %v1123_v60 }
 0x41f   : > { %v1074_v20 = vpop.permute.xlu1 %1073  ;;  %v1175_v40 = vsel %vm727_vm6, %v1128_v29, %v1174_v37 }
 0x420   : > { %v1132_v25 = vrot.slane %v1074_v20, %v1722_v17 }
 0x423   : > { %v1077_v51 = vpop.permute.xlu1 %1076 }
 0x424   : > { %v1136_v59 = vrot.slane %v1077_v51, %v1717_v15 }
 0x426   : > { %v1137_v30 = vsel %vm660_vm4, %v1136_v59, %v1132_v25 }
 0x427   : > { %v1083_v50 = vpop.permute.xlu1 %1082  ;;  %v1176_v21 = vsel %vm729_vm7, %v1137_v30, %v1175_v40 }
 0x428   : > { %v1145_v28 = vrot.slane %v1083_v50, %v1717_v15 }
 0x42a   : > { %v1146_v38 = vsel %vm660_vm4, %v1145_v28, %v1141_v27 }
 0x42b   : > { %v1086_v54 = vpop.permute.xlu1 %1085  ;;  %v1177_v46 = vsel %vm731_vm8, %v1146_v38, %v1176_v21 }
 0x42c   : > { %v1150_v32 = vrot.slane %v1086_v54, %v1722_v17 }
 0x42f   : > { %v1089_v16 = vpop.permute.xlu1 %1088 }
 0x430   : > { %v1154_v26 = vrot.slane %v1089_v16, %v1717_v15 }
 0x432   : > { %v1155_v42 = vsel %vm660_vm4, %v1154_v26, %v1150_v32 }
 0x433   : > { %v1092_v57 = vpop.permute.xlu1 %1091  ;;  %v1178_v47 = vsel %vm733_vm9, %v1155_v42, %v1177_v46 }
 0x434   : > { %v1159_v39 = vrot.slane %v1092_v57, %v1722_v17 }
 0x437   : > { %v1095_v4 = vpop.permute.xlu1 %1094 }
 0x438   : > { %v1163_v36 = vrot.slane %v1095_v4, %v1717_v15 }
 0x43a   : > { %v1164_v43 = vsel %vm660_vm4, %v1163_v36, %v1159_v39 }
 0x43b   : > { %v1101_v44 = vpop.permute.xlu1 %1100  ;;  %v1179_v48 = vsel %vm735_vm10, %v1164_v43, %v1178_v47 }
 0x43c   : > { %v1172_v10 = vrot.slane %v1101_v44, %v1717_v15 }
 0x43e   : > { %v1173_v49 = vsel %vm660_vm4, %v1172_v10, %v1168_v33 }
 0x43f   : > { %v1180_v34 = vsel %vm737_vm11, %v1173_v49, %v1179_v48 }
 0x440   : > { %1405 = vmatmul.mubr.msk.f32.vlgmr.msra.gmra.mxu0 %vm740_vm12, %v1180_v34 }
 0x500   : > { %v1252_v17 = vpop.f32.mrf.mxu0 }
 0x501   : > { %1256 = vst.msk [vmem:[%s239_s20] sm:$0xff] %vm251_vm1, %v1252_v17 }
 0x502   : > { %v1406_v9 = vpop.f32.mrf.mxu0 }
 0x503 PF: > { %s15_s18 = sadd.s32 1, %s1493_s18  }
 0x504   : > { %p12_p4 = scmp.ge.s32.totalorder %s15_s18, 4  }
 0x506   :  { %14 = sbr.rel (!%p12_p4) target bundleno = 1 (0x1), region = 73 }

// kernel: mwan_forward.26
= control target key start
LH: loop header
LB: loop body
LE: loop exit
PB: predicated region body
PF: predicated region fallthrough
CT: control target
= control target key end

     0   :  { %s2339_s15 = smov 0   ;;  %s2911_s0 = inlined_call_operand.vmem [shape: f32[2,8,64], index: 0, kind: input, shape index: {}]   ;;  %s2912_s1 = inlined_call_operand.vmem [shape: f32[2,10,64], index: 1, kind: input, shape index: {}]   ;;  %s2913_s2 = inlined_call_operand.vmem [shape: f32[64,32], index: 2, kind: input, shape index: {}]   ;;  %s2914_s3 = inlined_call_operand.vmem [shape: f32[1,32], index: 3, kind: input, shape index: {}]   ;;  %s2915_s4 = inlined_call_operand.vmem [shape: f32[2,8,64], index: 4, kind: output, shape index: {}]  }
   0x1 LB: > { %s2129_s16 = sadd.s32 4294967295, %s2307_s15   ;;  %p2133_p0 = scmp.ge.s32.totalorder %s2307_s15, 1  ;;  %s2307_s15 = sphi %s2339_s15, %s14_s15  }
   0x2   : > { %p171_p1 = scmp.lt.s32.totalorder %s2307_s15, 3 }
   0x4   : > { %p172_p2 = pnand %p2133_p0, %p171_p1 }
   0x5   : > { %p200_p3 = scmp.lt.s32.totalorder (!%p172_p2), %s2129_s16, 1 }
   0x6   : > { %175 = sbr.rel (%p172_p2) target bundleno = 1301 (0x515), region = 36 }
   0xb   : > { %v537_v0 = vld [vmem:[%s2913_s2 + $0x38] sm:$0xff]  ;;  %v536_v1 = vld [vmem:[%s2913_s2 + $0x30] sm:$0xff]  ;;  %v221_v2 = vlaneseq  ;;  %v2309_v3 = vmov 1966171168   ;;  %v535_v5 = vld [vmem:[%s2913_s2 + $0x28] sm:$0xff]  ;;  %s2917_s16 = smov (!%p200_p3, %s2129_s16), 1 }
   0xc   : > { %2175 = vmatprep.subr.mxu0 %v537_v0  ;;  %2213 = vmatprep.subr.mxu1 %v537_v0  ;;  %v219_v4 = vunpack.c.l.s4 %v2309_v3  ;;  %v2310_v8 = vmov 1983009808   ;;  %v534_v10 = vld [vmem:[%s2913_s2 + $0x20] sm:$0xff]  ;;  %s2134_s25 = sshll.u32 %s2917_s16, 3  ;;  %s2153_s26 = sshll.u32 %s2917_s16, 4  ;;  %v533_v12 = vld [vmem:[%s2913_s2 + $0x18] sm:$0xff] }
   0xd   : > { %2176 = vmatpush3.msra.mxu0 %v537_v0  ;;  %2221 = vmatpush3.msra.mxu1 %v537_v0  ;;  %v2359_v6 = vshrl.u32 %v221_v2, 7  ;;  %v340_v9 = vunpack.c.l.s4 %v2310_v8  ;;  %s203_s29 = scalar_lea.vmem %s2911_s0, %s2134_s25  ;;  %s2378_s8 = scalar_lea.vmem %s2912_s1, %s2153_s26  ;;  %v532_v18 = vld [vmem:[%s2913_s2 + $0x10] sm:$0xff]  ;;  %v531_v22 = vld [vmem:[%s2913_s2 + $0x8] sm:$0xff]  ;;  %v530_v28 = vld [vmem:[%s2913_s2] sm:$0xff]  ;;  %vm708_vm0 = vcmask 523264   ;;  %vm1393_vm1 = vcmask 254976  }
   0xe   : > { %2177 = vmatprep.subr.mxu0 %v536_v1  ;;  %2214 = vmatprep.subr.mxu1 %v536_v1  ;;  %v220_v7 = vunpack.c.0.s8 %v219_v4  ;;  %v213_v13 = vld [vmem:[%s203_s29] sm:$0xff]  ;;  %v2393_v24 = vld [vmem:[%s2378_s8 + $0x8] sm:$0x3]  ;;  %vm1389_vm2 = vcmask 261120   ;;  %vm1466_vm3 = vcmask 130112   ;;  %vm1531_vm4 = vcmask 1041409   ;;  %s212_s21 = scalar_lea.vmem %s2915_s4, %s2134_s25 }
   0xf   : > { %2178 = vmatpush3.msra.mxu0 %v536_v1  ;;  %2222 = vmatpush3.msra.mxu1 %v536_v1  ;;  %v2381_v15 = vsub.s32 0, %v2359_v6  ;;  %v341_v16 = vunpack.c.0.s8 %v340_v9  ;;  %v217_v17 = vcombine.high %v213_v13, %v213_v13  ;;  %v2390_v23 = vld [vmem:[%s2378_s8] sm:$0xff]  ;;  %vm1533_vm5 = vcmask 1042434  }
  0x10   : > { %2179 = vmatprep.subr.mxu0 %v535_v5  ;;  %2215 = vmatprep.subr.mxu1 %v535_v5  ;;  %v223_v11 = vsub.s32 %v220_v7, %v2359_v6  ;;  %vm1535_vm6 = vcmask 1043459   ;;  %vm1537_vm7 = vcmask 1044484   ;;  %vm1539_vm8 = vcmask 1045509  }
  0x11   : > { %2180 = vmatpush3.msra.mxu0 %v535_v5  ;;  %2223 = vmatpush3.msra.mxu1 %v535_v5  ;;  %v2397_v26 = vsub.s32 %v341_v16, %v2359_v6  ;;  %vm1541_vm9 = vcmask 1046534   ;;  %vm1543_vm10 = vcmask 1047559   ;;  %vm1546_vm11 = vcmask 80896  }
  0x12   : > { %2181 = vmatprep.subr.mxu0 %v534_v10  ;;  %2216 = vmatprep.subr.mxu1 %v534_v10  ;;  %v224_v14 = vrot.slane %v213_v13, %v223_v11  ;;  %v231_v21 = vrot.slane %v217_v17, %v223_v11  ;;  %vm1989_vm12 = vcmask 1041408   ;;  %vm2313_vm13 = vmmov 0  }
  0x13   : > { %2182 = vmatpush3.msra.mxu0 %v534_v10  ;;  %2224 = vmatpush3.msra.mxu1 %v534_v10 }
  0x14   : > { %2183 = vmatprep.subr.mxu0 %v533_v12  ;;  %2217 = vmatprep.subr.mxu1 %v533_v12  ;;  %v232_v19 = vcombine.high %v224_v14, %v224_v14  ;;  %v240_v20 = vrot.slane %v224_v14, %v223_v11  ;;  %v233_v30 = vcombine.high %v231_v21, %v231_v21 }
  0x15   : > { %2184 = vmatpush3.msra.mxu0 %v533_v12  ;;  %2225 = vmatpush3.msra.mxu1 %v533_v12  ;;  %v247_v31 = vrot.slane %v231_v21, %v223_v11 }
  0x16   : > { %2185 = vmatprep.subr.mxu0 %v532_v18  ;;  %2218 = vmatprep.subr.mxu1 %v532_v18  ;;  %v269_v25 = vrot.slane %v240_v20, %v2381_v15  ;;  %v2399_v27 = vrot.slane %v232_v19, %v223_v11  ;;  %v262_v29 = vcombine.high %v240_v20, %v240_v20 }
  0x17   : > { %2186 = vmatpush3.msra.mxu0 %v532_v18  ;;  %2226 = vmatpush3.msra.mxu1 %v532_v18  ;;  %v2408_v35 = vrot.slane %v233_v30, %v223_v11  ;;  %v263_v36 = vcombine.high %v247_v31, %v247_v31  ;;  %v285_v37 = vrot.slane %v247_v31, %v2381_v15 }
  0x18   : > { %2187 = vmatprep.subr.mxu0 %v531_v22  ;;  %2219 = vmatprep.subr.mxu1 %v531_v22  ;;  %v306_v32 = vmul.f32 %v269_v25, %v2390_v23  ;;  %v307_v33 = vmul.f32 %v269_v25, %v2393_v24  ;;  %v273_v34 = vrot.slane %v2399_v27, %v2381_v15 }
  0x19   : > { %2188 = vmatpush3.msra.mxu0 %v531_v22  ;;  %2227 = vmatpush3.msra.mxu1 %v531_v22  ;;  %v265_v42 = vcombine.high %v2408_v35, %v2408_v35  ;;  %v289_v43 = vrot.slane %v2408_v35, %v2381_v15  ;;  %v2419_v44 = vmul.f32 %v285_v37, %v2390_v23 }
  0x1a   : > { %2189 = vmatprep.subr.mxu0 %v530_v28  ;;  %v338_v38 = vcombine.high %v306_v32, %v306_v32  ;;  %v345_v39 = vrot.slane %v306_v32, %v2397_v26  ;;  %v308_v40 = vmul.f32 %v273_v34, %v2390_v23  ;;  %v361_v41 = vrot.slane %v307_v33, %v2397_v26 }
  0x1b   : > { %2190 = vmatpush3.msra.mxu0 %v530_v28  ;;  %2220 = vmatprep.subr.mxu1 %v530_v28  ;;  %v315_v49 = vmul.f32 %v285_v37, %v2393_v24  ;;  %v316_v50 = vmul.f32 %v289_v43, %v2390_v23  ;;  %v317_v51 = vmul.f32 %v289_v43, %v2393_v24 }
  0x1c   : > { %v352_v45 = vrot.slane %v338_v38, %v2397_v26  ;;  %v353_v46 = vcombine.high %v345_v39, %v345_v39  ;;  %v362_v47 = vcombine.high %v308_v40, %v308_v40  ;;  %v369_v48 = vrot.slane %v308_v40, %v2397_v26  ;;  %2228 = vmatpush3.msra.mxu1 %v530_v28 }
  0x1d   : > { %v277_v52 = vrot.slane %v262_v29, %v2381_v15  ;;  %v457_v58 = vrot.slane %v315_v49, %v2397_v26  ;;  %v458_v59 = vcombine.high %v316_v50, %v316_v50  ;;  %v465_v60 = vrot.slane %v316_v50, %v2397_v26 }
  0x1e   : > { %v354_v53 = vcombine.high %v352_v45, %v352_v45  ;;  %v538_v54 = vcombine.low %v345_v39, %v353_v46  ;;  %v376_v55 = vrot.slane %v362_v47, %v2397_v26  ;;  %v377_v56 = vcombine.high %v369_v48, %v369_v48 }
  0x1f   : > { %v555_v57 = vcombine.low %v361_v41, %v369_v48  ;;  %v309_v0 = vmul.f32 %v273_v34, %v2393_v24  ;;  %v472_v3 = vrot.slane %v458_v59, %v2397_v26  ;;  %v473_v4 = vcombine.high %v465_v60, %v465_v60 }
  0x20   : > { %v539_v61 = vcombine.low %v352_v45, %v354_v53  ;;  %v546_v62 = vrot.slane %v538_v54, %v2397_v26  ;;  %v556_v63 = vcombine.low %v377_v56, %v376_v55  ;;  %v640_v5 = vcombine.low %v457_v58, %v465_v60 }
  0x21   : > { %v563_v1 = vrot.slane %v555_v57, %v2397_v26  ;;  %v310_v9 = vmul.f32 %v277_v52, %v2390_v23  ;;  %v378_v10 = vcombine.high %v376_v55, %v376_v55  ;;  %v474_v11 = vcombine.high %v472_v3, %v472_v3 }
  0x22   : > { %v553_v7 = vrot.slane %v539_v61, %v2397_v26  ;;  %v570_v8 = vrot.slane %v556_v63, %v2397_v26  ;;  %v641_v12 = vcombine.low %v473_v4, %v472_v3  ;;  %v648_v13 = vrot.slane %v640_v5, %v2397_v26 }
  0x23   : > { %v385_v14 = vrot.slane %v309_v0, %v2397_v26  ;;  %v393_v18 = vrot.slane %v310_v9, %v2397_v26  ;;  %v293_v19 = vrot.slane %v263_v36, %v2381_v15  ;;  %v481_v22 = vrot.slane %v317_v51, %v2397_v26 }
  0x24   : > { %v554_v16 = vcombine.low %v546_v62, %v553_v7  ;;  %v571_v17 = vcombine.low %v563_v1, %v570_v8  ;;  %v655_v20 = vrot.slane %v641_v12, %v2397_v26  ;;  %v264_v25 = vcombine.high %v2399_v27, %v2399_v27 }
  0x25   : > { %v572_v21 = vcombine.low %v378_v10, %v385_v14  ;;  %v401_v28 = vcombine.high %v393_v18, %v393_v18  ;;  %v318_v29 = vmul.f32 %v293_v19, %v2390_v23  ;;  %v311_v30 = vmul.f32 %v277_v52, %v2393_v24 }
  0x26   : > { %2191 = vmatprep.mubr.msk.f32.mxu0 %vm708_vm0, %v554_v16  ;;  %v386_v31 = vcombine.high %v310_v9, %v310_v9  ;;  %v656_v32 = vcombine.low %v648_v13, %v655_v20  ;;  %v657_v34 = vcombine.low %v474_v11, %v481_v22  ;;  %v281_v35 = vrot.slane %v264_v25, %v2381_v15 }
  0x27   : > { %2192 = vmatmul.mubr.msk.f32.vlgmr.msra.gmra.mxu0 %vm708_vm0, %v571_v17  ;;  %v580_v33 = vrot.slane %v572_v21, %v2397_v26  ;;  %v573_v36 = vcombine.low %v393_v18, %v401_v28  ;;  %v489_v37 = vrot.slane %v318_v29, %v2397_v26  ;;  %v409_v38 = vrot.slane %v311_v30, %v2397_v26 }
  0x28   : > { %v400_v27 = vrot.slane %v386_v31, %v2397_v26  ;;  %2200 = vmatprep.mubr.msk.f32.mxu1 %vm708_vm0, %v656_v32  ;;  %v665_v39 = vrot.slane %v657_v34, %v2397_v26  ;;  %v312_v40 = vmul.f32 %v281_v35, %v2390_v23  ;;  %v297_v41 = vrot.slane %v265_v42, %v2381_v15 }
  0x29   : > { %v319_v43 = vmul.f32 %v293_v19, %v2393_v24  ;;  %v587_v45 = vrot.slane %v573_v36, %v2397_v26  ;;  %v497_v46 = vcombine.high %v489_v37, %v489_v37  ;;  %v482_v48 = vcombine.high %v318_v29, %v318_v29 }
  0x2a   : > { %v402_v47 = vcombine.high %v400_v27, %v400_v27  ;;  %v417_v49 = vrot.slane %v312_v40, %v2397_v26  ;;  %v320_v50 = vmul.f32 %v297_v41, %v2390_v23  ;;  %v313_v52 = vmul.f32 %v281_v35, %v2393_v24 }
  0x2b   : > { %v505_v51 = vrot.slane %v319_v43, %v2397_v26  ;;  %v588_v53 = vcombine.low %v580_v33, %v587_v45  ;;  %v658_v54 = vcombine.low %v489_v37, %v497_v46  ;;  %v496_v42 = vrot.slane %v482_v48, %v2397_v26 }
  0x2c   : > { %v589_v55 = vcombine.low %v400_v27, %v402_v47  ;;  %v590_v56 = vcombine.low %v409_v38, %v417_v49  ;;  %v513_v57 = vrot.slane %v320_v50, %v2397_v26  ;;  %v410_v58 = vcombine.high %v312_v40, %v312_v40 }
  0x2d   : > { %v425_v59 = vcombine.high %v417_v49, %v417_v49  ;;  %2194 = vmatprep.mubr.msk.f32.mxu0 %vm708_vm0, %v588_v53  ;;  %v672_v60 = vrot.slane %v658_v54, %v2397_v26  ;;  %v498_v61 = vcombine.high %v496_v42, %v496_v42  ;;  %v433_v62 = vrot.slane %v313_v52, %v2397_v26 }
  0x2e   : > { %v597_v23 = vrot.slane %v589_v55, %v2397_v26  ;;  %v604_v63 = vrot.slane %v590_v56, %v2397_v26  ;;  %v675_v0 = vcombine.low %v505_v51, %v513_v57  ;;  %v424_v1 = vrot.slane %v410_v58, %v2397_v26 }
  0x2f   : > { %v321_v3 = vmul.f32 %v297_v41, %v2393_v24  ;;  %v673_v4 = vcombine.low %v665_v39, %v672_v60  ;;  %v674_v5 = vcombine.low %v496_v42, %v498_v61  ;;  %v506_v7 = vcombine.high %v320_v50, %v320_v50  ;;  %v2148_v41 = vld [vmem:[%s2914_s3] ss:$0 sm:$0xff] }
  0x30   : > { %v521_v8 = vcombine.high %v513_v57, %v513_v57  ;;  %v605_v9 = vcombine.low %v597_v23, %v604_v63  ;;  %v689_v10 = vrot.slane %v675_v0, %v2397_v26  ;;  %v426_v11 = vcombine.high %v424_v1, %v424_v1 }
  0x31   : > { %v606_v12 = vcombine.low %v425_v59, %v424_v1  ;;  %2201 = vmatmul.mubr.msk.f32.vlgmr.msra.gmra.mxu1 %vm708_vm0, %v673_v4  ;;  %v682_v13 = vrot.slane %v674_v5, %v2397_v26  ;;  %v520_v14 = vrot.slane %v506_v7, %v2397_v26  ;;  %v529_v16 = vrot.slane %v321_v3, %v2397_v26 }
  0x32   : > { %v434_v24 = vcombine.high %v2419_v44, %v2419_v44  ;;  %2195 = vmatmul.mubr.msk.f32.gmra.mxu0 %vm708_vm0, %v605_v9  ;;  %v607_v17 = vcombine.low %v426_v11, %v433_v62  ;;  %v441_v19 = vrot.slane %v2419_v44, %v2397_v26  ;;  %v2498_v46 = vrot.slane %v2148_v41, %v2397_v26 }
  0x33   : > { %v614_v18 = vrot.slane %v606_v12, %v2397_v26  ;;  %v690_v20 = vcombine.low %v682_v13, %v689_v10  ;;  %v522_v21 = vcombine.high %v520_v14, %v520_v14  ;;  %v691_v22 = vcombine.low %v521_v8, %v520_v14 }
  0x34   : > { %v448_v25 = vrot.slane %v434_v24, %v2397_v26  ;;  %v621_v28 = vrot.slane %v607_v17, %v2397_v26  ;;  %v449_v29 = vcombine.high %v441_v19, %v441_v19  ;;  %v1080_v47 = vcombine.high %v2148_v41, %v2148_v41 }
  0x35   : > { %2203 = vmatprep.mubr.msk.f32.mxu1 %vm708_vm0, %v690_v20  ;;  %v692_v30 = vcombine.low %v522_v21, %v529_v16  ;;  %v699_v31 = vrot.slane %v691_v22, %v2397_v26  ;;  %v2506_v55 = vcombine.high %v2498_v46, %v2498_v46 }
  0x36   : > { %v450_v32 = vcombine.high %v448_v25, %v448_v25  ;;  %v622_v33 = vcombine.low %v614_v18, %v621_v28  ;;  %v623_v34 = vcombine.low %v441_v19, %v449_v29  ;;  %v2502_v54 = vrot.slane %v1080_v47, %v2397_v26 }
  0x37   : > { %v706_v35 = vrot.slane %v692_v30, %v2397_v26 }
  0x38   : > { %v624_v36 = vcombine.low %v448_v25, %v450_v32  ;;  %2197 = vmatprep.mubr.msk.f32.mxu0 %vm708_vm0, %v622_v33  ;;  %v631_v44 = vrot.slane %v623_v34, %v2397_v26  ;;  %v2515_v62 = vcombine.high %v2502_v54, %v2502_v54 }
  0x39   : > { %v707_v37 = vcombine.low %v699_v31, %v706_v35 }
  0x3a   : > { %v638_v27 = vrot.slane %v624_v36, %v2397_v26 }
  0x3b   : > { %2204 = vmatmul.mubr.msk.f32.gmra.mxu1 %vm708_vm0, %v707_v37 }
  0x3c   : > { %v639_v38 = vcombine.low %v631_v44, %v638_v27 }
  0x3e   : > { %2198 = vmatmul.mubr.msk.f32.gmra.mxu0 %vm708_vm0, %v639_v38 }
  0xe7   : > { %v2193_v39 = vpop.f32.mrf.mxu0 }
  0xe8   : > { %2245 = vtanh.f32 %v2193_v39 }
  0xe9   : > { %v795_v40 = vpop.f32.mrf.mxu0 }
  0xea   : > { %2247 = vtanh.f32 %v795_v40 }
  0xf1   : > { %v2202_v43 = vpop.f32.mrf.mxu1 }
  0xf2   : > { %2249 = vtanh.f32 %v2202_v43  ;;  %v2196_v45 = vpop.f32.mrf.mxu0 }
  0xf3   : > { %2251 = vtanh.f32 %v2196_v45  ;;  %v825_v48 = vpop.f32.mrf.mxu1 }
  0xf4   : > { %2253 = vtanh.f32 %v825_v48  ;;  %v805_v50 = vpop.f32.mrf.mxu0 }
  0xf5   : > { %v2246_v49 = vpop.eup %2245  ;;  %2255 = vtanh.f32 %v805_v50 }
  0xf6   : > { %v888_v51 = vrot.slane %v2246_v49, %v2397_v26  ;;  %v881_v52 = vcombine.high %v2246_v49, %v2246_v49 }
  0xf7   : > { %v2248_v53 = vpop.eup %2247 }
  0xf8   : > { %v1105_v42 = vmul.f32 %v2498_v46, %v888_v51  ;;  %v896_v56 = vcombine.high %v888_v51, %v888_v51  ;;  %v864_v57 = vcombine.high %v2248_v53, %v2248_v53  ;;  %v871_v58 = vrot.slane %v2248_v53, %v2397_v26 }
  0xf9   : > { %v895_v59 = vrot.slane %v881_v52, %v2397_v26 }
  0xfa   : > { %v1204_v60 = vrot.slane %v1105_v42, %v2397_v26  ;;  %v878_v23 = vrot.slane %v864_v57, %v2397_v26  ;;  %v879_v61 = vcombine.high %v871_v58, %v871_v58  ;;  %v1106_v63 = vmul.f32 %v2498_v46, %v896_v56 }
  0xfb   : > { %v1107_v0 = vmul.f32 %v2506_v55, %v895_v59  ;;  %v2205_v1 = vpop.f32.mrf.mxu1  ;;  %v1101_v5 = vmul.f32 %v2498_v46, %v871_v58  ;;  %v897_v9 = vcombine.high %v895_v59, %v895_v59 }
  0xfc   : > { %v1394_v3 = vsel %vm1393_vm1, %v1204_v60, 0.0  ;;  %v880_v4 = vcombine.high %v878_v23, %v878_v23  ;;  %v1102_v7 = vmul.f32 %v2506_v55, %v879_v61  ;;  %v1103_v8 = vmul.f32 %v2502_v54, %v878_v23 }
  0xfd   : > { %1395 = vadd.xlane.f32.xlu0 %v1394_v3  ;;  %2257 = vtanh.f32 %v2205_v1  ;;  %v835_v11 = vpop.f32.mrf.mxu1  ;;  %v1205_v14 = vcombine.low %v1106_v63, %v1107_v0  ;;  %v2529_v20 = vmul.f32 %v2502_v54, %v897_v9 }
  0xfe   : > { %v2199_v10 = vpop.f32.mrf.mxu0  ;;  %v1104_v12 = vmul.f32 %v2515_v62, %v880_v4  ;;  %v1181_v13 = vcombine.low %v1101_v5, %v1102_v7 }
  0xff   : > { %2259 = vtanh.f32 %v2199_v10  ;;  %v2524_v16 = vpop.eup %2249  ;;  %v2534_v29 = vrot.slane %v1205_v14, %v2397_v26 }
 0x100   : > { %2261 = vtanh.f32 %v835_v11  ;;  %v815_v24 = vpop.f32.mrf.mxu0  ;;  %v1182_v17 = vcombine.low %v1103_v8, %v1104_v12  ;;  %v2252_v18 = vpop.eup %2251  ;;  %v990_v19 = vrot.slane %v2524_v16, %v2397_v26  ;;  %v1189_v22 = vrot.slane %v1181_v13, %v2397_v26 }
 0x101   : > { %2263 = vtanh.f32 %v815_v24  ;;  %v2254_v21 = vpop.eup %2253  ;;  %v915_v28 = vcombine.high %v2252_v18, %v2252_v18  ;;  %v922_v34 = vrot.slane %v2252_v18, %v2397_v26  ;;  %v983_v47 = vcombine.high %v2524_v16, %v2524_v16 }
 0x102   : > { %v1196_v25 = vrot.slane %v1182_v17, %v2397_v26  ;;  %v2256_v30 = vpop.eup %2255  ;;  %v973_v31 = vrot.slane %v2254_v21, %v2397_v26  ;;  %v998_v32 = vcombine.high %v990_v19, %v990_v19  ;;  %v966_v33 = vcombine.high %v2254_v21, %v2254_v21 }
 0x103   : > { %v2539_v36 = vrot.slane %v915_v28, %v2397_v26  ;;  %v905_v44 = vrot.slane %v2256_v30, %v2397_v26  ;;  %v898_v37 = vcombine.high %v2256_v30, %v2256_v30  ;;  %v1129_v59 = vmul.f32 %v2515_v62, %v990_v19 }
 0x104   : > { %v1197_v35 = vcombine.low %v1189_v22, %v1196_v25  ;;  %v1125_v27 = vmul.f32 %v2498_v46, %v973_v31  ;;  %v981_v38 = vcombine.high %v973_v31, %v973_v31  ;;  %v1130_v39 = vmul.f32 %v2498_v46, %v998_v32 }
 0x105   : > { %v980_v40 = vrot.slane %v966_v33, %v2397_v26  ;;  %v1115_v43 = vmul.f32 %v2498_v46, %v2539_v36  ;;  %v913_v45 = vcombine.high %v905_v44, %v905_v44  ;;  %v912_v56 = vrot.slane %v898_v37, %v2397_v26 }
 0x106   : > { %v1390_v41 = vsel %vm1389_vm2, %v1197_v35, 0.0  ;;  %v1300_v48 = vrot.slane %v1125_v27, %v2397_v26  ;;  %v1324_v49 = vrot.slane %v1130_v39, %v2397_v26  ;;  %v1126_v51 = vmul.f32 %v2498_v46, %v981_v38 }
 0x107   : > { %1391 = vadd.xlane.f32.xlu0 %v1390_v41  ;;  %v982_v50 = vcombine.high %v980_v40, %v980_v40  ;;  %v1252_v52 = vrot.slane %v1115_v43, %v2397_v26  ;;  %v1127_v53 = vmul.f32 %v2506_v55, %v980_v40  ;;  %v1110_v42 = vmul.f32 %v2498_v46, %v913_v45 }
 0x108   : > { %v1418_v57 = vsel %vm1393_vm1, %v1300_v48, 0.0  ;;  %v930_v60 = vcombine.high %v922_v34, %v922_v34  ;;  %v1424_v23 = vsel %vm1393_vm1, %v1324_v49, 0.0  ;;  %v931_v61 = vcombine.high %v2539_v36, %v2539_v36 }
 0x109   : > { %v1128_v58 = vmul.f32 %v2502_v54, %v982_v50  ;;  %1419 = vadd.xlane.f32.xlu1 %v1418_v57  ;;  %v1301_v63 = vcombine.low %v1126_v51, %v1127_v53  ;;  %v914_v0 = vcombine.high %v912_v56, %v912_v56  ;;  %v1111_v4 = vmul.f32 %v2498_v46, %v912_v56 }
 0x10a   : > { %v2563_v1 = vpop.eup %2257  ;;  %v1113_v5 = vmul.f32 %v2502_v54, %v922_v34  ;;  %v1114_v7 = vmul.f32 %v2515_v62, %v930_v60  ;;  %v1406_v9 = vsel %vm1393_vm1, %v1252_v52, 0.0  ;;  %v1228_v10 = vrot.slane %v1110_v42, %v2397_v26 }
 0x10b   : > { %v1302_v3 = vcombine.low %v1128_v58, %v1129_v59  ;;  %v1112_v11 = vmul.f32 %v2506_v55, %v914_v0  ;;  %v1109_v12 = vmul.f32 %v2515_v62, %v905_v44  ;;  %v1309_v14 = vrot.slane %v1301_v63, %v2397_v26 }
 0x10c   : > { %v2260_v8 = vpop.eup %2259  ;;  %v1230_v24 = vcombine.low %v1113_v5, %v1114_v7  ;;  %v997_v17 = vrot.slane %v983_v47, %v2397_v26  ;;  %v1400_v38 = vsel %vm1393_vm1, %v1228_v10, 0.0  ;;  %v1116_v41 = vmul.f32 %v2498_v46, %v931_v61 }
 0x10d   : > { %v2262_v13 = vpop.eup %2261  ;;  %v1316_v16 = vrot.slane %v1302_v3, %v2397_v26  ;;  %1425 = vadd.xlane.f32.xlu1 %v1424_v23  ;;  %v1229_v19 = vcombine.low %v1111_v4, %v1112_v11  ;;  %v1206_v21 = vcombine.low %v2529_v20, %v1109_v12  ;;  %v949_v63 = vcombine.high %v2260_v8, %v2260_v8 }
 0x10e   : > { %v2264_v18 = vpop.eup %2263  ;;  %v1007_v22 = vrot.slane %v2262_v13, %v2397_v26  ;;  %v1000_v25 = vcombine.high %v2262_v13, %v2262_v13  ;;  %v1244_v30 = vrot.slane %v1230_v24, %v2397_v26  ;;  %v999_v31 = vcombine.high %v997_v17, %v997_v17 }
 0x10f   : > { %v1317_v28 = vcombine.low %v1309_v14, %v1316_v16  ;;  %v1131_v32 = vmul.f32 %v2498_v46, %v997_v17  ;;  %v1237_v33 = vrot.slane %v1229_v19, %v2397_v26  ;;  %v1220_v34 = vrot.slane %v1206_v21, %v2397_v26 }
 0x110   : > { %v1015_v35 = vcombine.high %v1007_v22, %v1007_v22  ;;  %v1133_v36 = vmul.f32 %v2502_v54, %v1007_v22  ;;  %v1132_v20 = vmul.f32 %v2506_v55, %v999_v31  ;;  %v1014_v37 = vrot.slane %v1000_v25, %v2397_v26 }
 0x111   : > { %v1421_v44 = vsel %vm1389_vm2, %v1317_v28, 0.0  ;;  %v932_v27 = vcombine.high %v2264_v18, %v2264_v18  ;;  %1407 = vadd.xlane.f32.xlu1 %v1406_v9  ;;  %v1245_v39 = vcombine.low %v1237_v33, %v1244_v30  ;;  %v1221_v43 = vcombine.low %v2534_v29, %v1220_v34 }
 0x112   : > { %1422 = vadd.xlane.f32.xlu0 %v1421_v44  ;;  %v1134_v40 = vmul.f32 %v2515_v62, %v1015_v35  ;;  %v1325_v45 = vcombine.low %v1131_v32, %v1132_v20  ;;  %v1135_v47 = vmul.f32 %v2498_v46, %v1014_v37  ;;  %v939_v48 = vrot.slane %v2264_v18, %v2397_v26 }
 0x113   : > { %v1403_v49 = vsel %vm1389_vm2, %v1245_v39, 0.0  ;;  %v1016_v51 = vcombine.high %v1014_v37, %v1014_v37  ;;  %v946_v52 = vrot.slane %v932_v27, %v2397_v26  ;;  %v1397_v60 = vsel %vm1389_vm2, %v1221_v43, 0.0 }
 0x114   : > { %v1326_v50 = vcombine.low %v1133_v36, %v1134_v40  ;;  %v1333_v53 = vrot.slane %v1325_v45, %v2397_v26  ;;  %v1348_v42 = vrot.slane %v1135_v47, %v2397_v26  ;;  %v947_v56 = vcombine.high %v939_v48, %v939_v48 }
 0x115   : > { %v1117_v57 = vmul.f32 %v2506_v55, %v939_v48  ;;  %1401 = vadd.xlane.f32.xlu1 %v1400_v38  ;;  %v1119_v58 = vmul.f32 %v2515_v62, %v946_v52  ;;  %v948_v59 = vcombine.high %v946_v52, %v946_v52  ;;  %v956_v4 = vrot.slane %v2260_v8, %v2397_v26 }
 0x116   : > { %1404 = vadd.xlane.f32.xlu0 %v1403_v49  ;;  %v1340_v29 = vrot.slane %v1326_v50, %v2397_v26  ;;  %v1118_v23 = vmul.f32 %v2502_v54, %v947_v56  ;;  %v1017_v5 = vcombine.high %v2563_v1, %v2563_v1  ;;  %v963_v10 = vrot.slane %v949_v63, %v2397_v26 }
 0x117   : > { %v1253_v61 = vcombine.low %v1116_v41, %v1117_v57  ;;  %v1120_v3 = vmul.f32 %v2498_v46, %v948_v59  ;;  %v1024_v11 = vrot.slane %v2563_v1, %v2397_v26  ;;  %v1430_v13 = vsel %vm1393_vm1, %v1348_v42, 0.0 }
 0x118   : > { %v1341_v0 = vcombine.low %v1333_v53, %v1340_v29  ;;  %v1254_v7 = vcombine.low %v1118_v23, %v1119_v58  ;;  %v964_v14 = vcombine.high %v956_v4, %v956_v4  ;;  %v1121_v16 = vmul.f32 %v2498_v46, %v956_v4 }
 0x119   : > { %v1261_v9 = vrot.slane %v1253_v61, %v2397_v26  ;;  %1398 = vadd.xlane.f32.xlu1 %v1397_v60  ;;  %v965_v24 = vcombine.high %v963_v10, %v963_v10  ;;  %v1123_v17 = vmul.f32 %v2502_v54, %v963_v10  ;;  %v1031_v18 = vrot.slane %v1017_v5, %v2397_v26 }
 0x11a   : > { %v1427_v12 = vsel %vm1389_vm2, %v1341_v0, 0.0  ;;  %v1268_v8 = vrot.slane %v1254_v7, %v2397_v26  ;;  %v1276_v19 = vrot.slane %v1120_v3, %v2397_v26  ;;  %v1122_v1 = vmul.f32 %v2506_v55, %v964_v14 }
 0x11b   : > { %1428 = vadd.xlane.f32.xlu0 %v1427_v12  ;;  %v1032_v21 = vcombine.high %v1024_v11, %v1024_v11  ;;  %v1136_v22 = vmul.f32 %v2498_v46, %v1016_v51  ;;  %v1124_v28 = vmul.f32 %v2515_v62, %v965_v24  ;;  %v1033_v30 = vcombine.high %v1031_v18, %v1031_v18 }
 0x11c   : > { %v1269_v25 = vcombine.low %v1261_v9, %v1268_v8  ;;  %v1137_v31 = vmul.f32 %v2506_v55, %v1024_v11  ;;  %v1277_v32 = vcombine.low %v1121_v16, %v1122_v1  ;;  %v1139_v34 = vmul.f32 %v2515_v62, %v1031_v18 }
 0x11d   : > { %1431 = vadd.xlane.f32.xlu1 %v1430_v13  ;;  %v1138_v33 = vmul.f32 %v2502_v54, %v1032_v21  ;;  %v1278_v36 = vcombine.low %v1123_v17, %v1124_v28  ;;  %v1140_v44 = vmul.f32 %v2498_v46, %v1033_v30  ;;  %v1412_v38 = vsel %vm1393_vm1, %v1276_v19, 0.0 }
 0x11e   : > { %v1409_v35 = vsel %vm1389_vm2, %v1269_v25, 0.0  ;;  %v1349_v20 = vcombine.low %v1136_v22, %v1137_v31  ;;  %v1285_v37 = vrot.slane %v1277_v32, %v2397_v26  ;;  %v1456_v52 = vand.u32 127, %v221_v2 }
 0x11f   : > { %1410 = vadd.xlane.f32.xlu0 %v1409_v35  ;;  %v1350_v27 = vcombine.low %v1138_v33, %v1139_v34  ;;  %v1292_v55 = vrot.slane %v1278_v36, %v2397_v26  ;;  %v1372_v39 = vrot.slane %v1140_v44, %v2397_v26 }
 0x120   : > { %v1357_v54 = vrot.slane %v1349_v20, %v2397_v26  ;;  %v1461_v56 = vadd.s32 4294967288, %v1456_v52  ;;  %v2650_v57 = vsub.s32 %v1456_v52, %v2359_v6  ;;  %v1577_v52 = vsub.s32 6, %v2359_v6 }
 0x121   : > { %1413 = vadd.xlane.f32.xlu1 %v1412_v38  ;;  %v1364_v62 = vrot.slane %v1350_v27, %v2397_v26  ;;  %v1293_v40 = vcombine.low %v1285_v37, %v1292_v55  ;;  %v1436_v46 = vsel %vm1393_vm1, %v1372_v39, 0.0  ;;  %v2311_v38 = vmov 0  }
 0x122   : > { %v2657_v59 = vsub.s32 %v1461_v56, %v2359_v6  ;;  %2243 = vset.pattern.permute.xlu0 %v2311_v38  ;;  %2242 = vset.pattern.permute.xlu1 %v2311_v38  ;;  %v1557_v55 = vsub.s32 1, %v2359_v6 }
 0x123   : > { %v1415_v41 = vsel %vm1389_vm2, %v1293_v40, 0.0  ;;  %v1365_v43 = vcombine.low %v1357_v54, %v1364_v62  ;;  %v1573_v40 = vsub.s32 5, %v2359_v6 }
 0x124   : > { %1416 = vadd.xlane.f32.xlu0 %v1415_v41 }
 0x125   : > { %1437 = vadd.xlane.f32.xlu1 %v1436_v46  ;;  %v1433_v45 = vsel %vm1389_vm2, %v1365_v43, 0.0  ;;  %v1561_v43 = vsub.s32 2, %v2359_v6 }
 0x128   : > { %1434 = vadd.xlane.f32.xlu0 %v1433_v45 }
 0x186   : > { %v2632_v47 = vpop.xlane.xlu0 %1395 }
 0x187   : > { %v1465_v63 = vrot.slane %v2632_v47, %v2657_v59 }
 0x190   : > { %v2636_v49 = vpop.xlane.xlu0 %1391 }
 0x191   : > { %v1460_v2 = vrot.slane %v2636_v49, %v2650_v57 }
 0x192   : > { %v2634_v48 = vpop.xlane.xlu1 %1419 }
 0x193   : > { %v1467_v5 = vsel %vm1466_vm3, %v1465_v63, %v1460_v2  ;;  %v1502_v18 = vrot.slane %v2634_v48, %v2657_v59 }
 0x196   : > { %v2638_v50 = vpop.xlane.xlu1 %1425 }
 0x197   : > { %v1511_v22 = vrot.slane %v2638_v50, %v2657_v59 }
 0x19a   : > { %v2640_v26 = vpop.xlane.xlu1 %1407 }
 0x19b   : > { %v2642_v51 = vpop.xlane.xlu0 %1422  ;;  %v1484_v9 = vrot.slane %v2640_v26, %v2657_v59 }
 0x19c   : > { %v1507_v16 = vrot.slane %v2642_v51, %v2650_v57 }
 0x19e   : > { %v2645_v53 = vpop.xlane.xlu1 %1401  ;;  %v1512_v31 = vsel %vm1466_vm3, %v1511_v22, %v1507_v16 }
 0x19f   : > { %v2647_v42 = vpop.xlane.xlu0 %1404  ;;  %v1475_v23 = vrot.slane %v2645_v53, %v2657_v59 }
 0x1a0   : > { %v1480_v4 = vrot.slane %v2647_v42, %v2650_v57 }
 0x1a2   : > { %v2652_v29 = vpop.xlane.xlu1 %1398  ;;  %v1485_v13 = vsel %vm1466_vm3, %v1484_v9, %v1480_v4  ;;  %v1565_v4 = vsub.s32 3, %v2359_v6 }
 0x1a3   : > { %v1471_v60 = vrot.slane %v2652_v29, %v2650_v57 }
 0x1a4   : > { %v2654_v58 = vpop.xlane.xlu0 %1428 }
 0x1a5   : > { %v1476_v0 = vsel %vm1466_vm3, %v1475_v23, %v1471_v60  ;;  %v1516_v25 = vrot.slane %v2654_v58, %v2650_v57 }
 0x1a6   : > { %v2665_v61 = vpop.xlane.xlu1 %1431  ;;  %v1532_v10 = vsel %vm1531_vm4, %v1476_v0, %v1467_v5 }
 0x1a7   : > { %v1534_v8 = vsel %vm1533_vm5, %v1485_v13, %v1532_v10  ;;  %v1520_v19 = vrot.slane %v2665_v61, %v2657_v59 }
 0x1a8   : > { %v2670_v3 = vpop.xlane.xlu0 %1410 }
 0x1a9   : > { %v1489_v11 = vrot.slane %v2670_v3, %v2650_v57  ;;  %v1521_v35 = vsel %vm1466_vm3, %v1520_v19, %v1516_v25 }
 0x1aa   : > { %v2675_v7 = vpop.xlane.xlu1 %1413 }
 0x1ab   : > { %v1493_v12 = vrot.slane %v2675_v7, %v2657_v59 }
 0x1ad   : > { %v1494_v14 = vsel %vm1466_vm3, %v1493_v12, %v1489_v11  ;;  %v2689_v24 = vpop.xlane.xlu0 %1416 }
 0x1ae   : > { %v2691_v17 = vpop.xlane.xlu1 %1437  ;;  %v1536_v1 = vsel %vm1535_vm6, %v1494_v14, %v1534_v8  ;;  %v1498_v21 = vrot.slane %v2689_v24, %v2650_v57 }
 0x1af   : > { %v1529_v30 = vrot.slane %v2691_v17, %v2657_v59 }
 0x1b0   : > { %v1503_v28 = vsel %vm1466_vm3, %v1502_v18, %v1498_v21 }
 0x1b1   : > { %v1435_v32 = vpop.xlane.xlu0 %1434  ;;  %v1538_v33 = vsel %vm1537_vm7, %v1503_v28, %v1536_v1 }
 0x1b2   : > { %v1525_v34 = vrot.slane %v1435_v32, %v2650_v57  ;;  %v1540_v36 = vsel %vm1539_vm8, %v1512_v31, %v1538_v33 }
 0x1b3   : > { %v1542_v44 = vsel %vm1541_vm9, %v1521_v35, %v1540_v36 }
 0x1b4   : > { %v1530_v20 = vsel %vm1466_vm3, %v1529_v30, %v1525_v34 }
 0x1b5   : > { %v1544_v37 = vsel %vm1543_vm10, %v1530_v20, %v1542_v44 }
 0x1b6   : > { %v1547_v27 = vsel %vm1546_vm11, %v1544_v37, -inf }
 0x1b7   : > { %1548 = vmax.xlane.f32.xlu0 %v1547_v27 }
 0x240   : > { %v1549_v39 = vpop.xlane.xlu0 %1548 }
 0x241   : > { %v1554_v54 = vrot.slane %v1549_v39, %v2381_v15  ;;  %v1558_v62 = vrot.slane %v1549_v39, %v1557_v55  ;;  %v2728_v56 = vrot.slane %v1549_v39, %v1573_v40  ;;  %v1562_v23 = vrot.slane %v1549_v39, %v1561_v43 }
 0x242   : > { %v1566_v12 = vrot.slane %v1549_v39, %v1565_v4 }
 0x243   : > { %v1591_v41 = vsub.f32 %v2636_v49, %v1554_v54  ;;  %v1592_v46 = vsub.f32 %v2632_v47, %v1554_v54  ;;  %v1593_v45 = vsub.f32 %v2652_v29, %v1558_v62  ;;  %v1594_v63 = vsub.f32 %v2645_v53, %v1558_v62 }
 0x244   : > { %v1581_v47 = vsub.s32 7, %v2359_v6  ;;  %v1578_v29 = vrot.slane %v1549_v39, %v1577_v52  ;;  %v1601_v0 = vsub.f32 %v2642_v51, %v2728_v56  ;;  %v1595_v5 = vsub.f32 %v2647_v42, %v1562_v23 }
 0x245   : > { %v1607_v60 = vmul.f32 1.442695, %v1591_v41  ;;  %v1609_v2 = vmul.f32 1.442695, %v1592_v46  ;;  %v1611_v49 = vmul.f32 1.442695, %v1593_v45  ;;  %v1596_v13 = vsub.f32 %v2640_v26, %v1562_v23 }
 0x246   : > { %v1613_v9 = vmul.f32 1.442695, %v1594_v63  ;;  %v1582_v53 = vrot.slane %v1549_v39, %v1581_v47  ;;  %v1603_v10 = vsub.f32 %v2654_v58, %v1578_v29  ;;  %v1627_v11 = vmul.f32 1.442695, %v1601_v0 }
 0x247   : > { %2265 = vpow2.f32 %v1607_v60  ;;  %v1615_v14 = vmul.f32 1.442695, %v1595_v5  ;;  %v1569_v42 = vsub.s32 4, %v2359_v6  ;;  %v1597_v8 = vsub.f32 %v2670_v3, %v1566_v12 }
 0x248   : > { %2267 = vpow2.f32 %v1609_v2  ;;  %v1605_v51 = vsub.f32 %v1435_v32, %v1582_v53  ;;  %v1631_v16 = vmul.f32 1.442695, %v1603_v10  ;;  %v1617_v18 = vmul.f32 1.442695, %v1596_v13 }
 0x249   : > { %2269 = vpow2.f32 %v1611_v49  ;;  %v1570_v26 = vrot.slane %v1549_v39, %v1569_v42  ;;  %v1598_v21 = vsub.f32 %v2675_v7, %v1566_v12  ;;  %v1619_v22 = vmul.f32 1.442695, %v1597_v8 }
 0x24a   : > { %2271 = vpow2.f32 %v1613_v9  ;;  %v1635_v1 = vmul.f32 1.442695, %v1605_v51  ;;  %v1604_v44 = vsub.f32 %v2665_v61, %v1578_v29 }
 0x24b   : > { %2273 = vpow2.f32 %v1627_v11  ;;  %v1599_v25 = vsub.f32 %v2689_v24, %v1570_v26  ;;  %v1621_v28 = vmul.f32 1.442695, %v1598_v21  ;;  %v1600_v32 = vsub.f32 %v2634_v48, %v1570_v26 }
 0x24c   : > { %2275 = vpow2.f32 %v1615_v14  ;;  %v1602_v24 = vsub.f32 %v2638_v50, %v2728_v56  ;;  %v1606_v50 = vsub.f32 %v2691_v17, %v1582_v53  ;;  %v1633_v27 = vmul.f32 1.442695, %v1604_v44 }
 0x24d   : > { %2277 = vpow2.f32 %v1631_v16  ;;  %v1623_v7 = vmul.f32 1.442695, %v1599_v25  ;;  %v1625_v35 = vmul.f32 1.442695, %v1600_v32 }
 0x24e   : > { %2279 = vpow2.f32 %v1617_v18  ;;  %v1629_v20 = vmul.f32 1.442695, %v1602_v24  ;;  %v1637_v39 = vmul.f32 1.442695, %v1606_v50 }
 0x24f   : > { %2281 = vpow2.f32 %v1635_v1 }
 0x250   : > { %2283 = vpow2.f32 %v1619_v22 }
 0x251   : > { %2285 = vpow2.f32 %v1621_v28 }
 0x252   : > { %2287 = vpow2.f32 %v1623_v7 }
 0x253   : > { %2289 = vpow2.f32 %v1625_v35 }
 0x254   : > { %v2748_v19 = vpop.eup %2265  ;;  %2291 = vpow2.f32 %v1629_v20 }
 0x255   : > { %v2750_v58 = vpop.eup %2267  ;;  %1656 = vperm.xlu1 %2242, %v2748_v19   ;;  %2293 = vpow2.f32 %v1633_v27 }
 0x256   : > { %1659 = vperm.xlu0 %2243, %v2750_v58   ;;  %v2757_v3 = vpop.eup %2269  ;;  %2295 = vpow2.f32 %v1637_v39 }
 0x257   : > { %v2761_v30 = vpop.eup %2271 }
 0x258   : > { %v2764_v31 = vpop.eup %2273 }
 0x259   : > { %1662 = vperm.xlu1 %2242, %v2757_v3   ;;  %v2768_v33 = vpop.eup %2275 }
 0x25a   : > { %1686 = vperm.xlu0 %2243, %v2764_v31   ;;  %v2771_v34 = vpop.eup %2277 }
 0x25b   : > { %v2776_v36 = vpop.eup %2279 }
 0x25c   : > { %v2779_v48 = vpop.eup %2281 }
 0x25d   : > { %1665 = vperm.xlu1 %2242, %v2761_v30   ;;  %v2783_v37 = vpop.eup %2283 }
 0x25e   : > { %1692 = vperm.xlu0 %2243, %v2771_v34   ;;  %v2787_v38 = vpop.eup %2285 }
 0x25f   : > { %v2790_v54 = vpop.eup %2287 }
 0x260   : > { %v2793_v61 = vpop.eup %2289 }
 0x261   : > { %1668 = vperm.xlu1 %2242, %v2768_v33   ;;  %v2796_v62 = vpop.eup %2291 }
 0x262   : > { %1698 = vperm.xlu0 %2243, %v2779_v48   ;;  %v2799_v17 = vpop.eup %2293 }
 0x263   : > { %v2802_v41 = vpop.eup %2295 }
 0x265   : > { %1671 = vperm.xlu1 %2242, %v2776_v36  }
 0x269   : > { %1674 = vperm.xlu1 %2242, %v2783_v37  }
 0x26d   : > { %1677 = vperm.xlu1 %2242, %v2787_v38  }
 0x271   : > { %1680 = vperm.xlu1 %2242, %v2790_v54  }
 0x275   : > { %1683 = vperm.xlu1 %2242, %v2793_v61  }
 0x279   : > { %1689 = vperm.xlu1 %2242, %v2796_v62  }
 0x27d   : > { %1695 = vperm.xlu1 %2242, %v2799_v17  }
 0x281   : > { %1701 = vperm.xlu1 %2242, %v2802_v41  }
 0x2d0   : > { %v1657_v46 = vpop.permute.xlu1 %1656 }
 0x2d1   : > { %v1660_v63 = vpop.permute.xlu0 %1659  ;;  %v1706_v13 = vrot.slane %v1657_v46, %v2650_v57 }
 0x2d2   : > { %v1710_v12 = vrot.slane %v1660_v63, %v2657_v59 }
 0x2d4   : > { %v1663_v45 = vpop.permute.xlu1 %1662  ;;  %v1711_v28 = vsel %vm1466_vm3, %v1710_v12, %v1706_v13 }
 0x2d5   : > { %v1687_v0 = vpop.permute.xlu0 %1686  ;;  %v1715_v14 = vrot.slane %v1663_v45, %v2650_v57 }
 0x2d6   : > { %v1751_v32 = vrot.slane %v1687_v0, %v2650_v57 }
 0x2d8   : > { %v1666_v56 = vpop.permute.xlu1 %1665 }
 0x2d9   : > { %v1719_v9 = vrot.slane %v1666_v56, %v2657_v59  ;;  %v1693_v53 = vpop.permute.xlu0 %1692 }
 0x2da   : > { %v1760_v35 = vrot.slane %v1693_v53, %v2650_v57 }
 0x2db   : > { %v1720_v18 = vsel %vm1466_vm3, %v1719_v9, %v1715_v14 }
 0x2dc   : > { %v1669_v60 = vpop.permute.xlu1 %1668  ;;  %v1775_v44 = vsel %vm1531_vm4, %v1720_v18, %v1711_v28 }
 0x2dd   : > { %v1724_v16 = vrot.slane %v1669_v60, %v2650_v57  ;;  %v1699_v20 = vpop.permute.xlu0 %1698 }
 0x2de   : > { %v1769_v60 = vrot.slane %v1699_v20, %v2650_v57 }
 0x2e0   : > { %v1672_v2 = vpop.permute.xlu1 %1671 }
 0x2e1   : > { %v1728_v10 = vrot.slane %v1672_v2, %v2657_v59 }
 0x2e3   : > { %v1729_v21 = vsel %vm1466_vm3, %v1728_v10, %v1724_v16 }
 0x2e4   : > { %v1675_v23 = vpop.permute.xlu1 %1674  ;;  %v1776_v27 = vsel %vm1533_vm5, %v1729_v21, %v1775_v44 }
 0x2e5   : > { %v1733_v1 = vrot.slane %v1675_v23, %v2650_v57 }
 0x2e8   : > { %v1678_v49 = vpop.permute.xlu1 %1677 }
 0x2e9   : > { %v1737_v51 = vrot.slane %v1678_v49, %v2657_v59 }
 0x2eb   : > { %v1738_v7 = vsel %vm1466_vm3, %v1737_v51, %v1733_v1 }
 0x2ec   : > { %v1681_v29 = vpop.permute.xlu1 %1680  ;;  %v1777_v46 = vsel %vm1535_vm6, %v1738_v7, %v1776_v27 }
 0x2ed   : > { %v1742_v22 = vrot.slane %v1681_v29, %v2650_v57 }
 0x2f0   : > { %v1684_v5 = vpop.permute.xlu1 %1683 }
 0x2f1   : > { %v1746_v8 = vrot.slane %v1684_v5, %v2657_v59 }
 0x2f3   : > { %v1747_v50 = vsel %vm1466_vm3, %v1746_v8, %v1742_v22 }
 0x2f4   : > { %v1690_v11 = vpop.permute.xlu1 %1689  ;;  %v1778_v2 = vsel %vm1537_vm7, %v1747_v50, %v1777_v46 }
 0x2f5   : > { %v1755_v26 = vrot.slane %v1690_v11, %v2657_v59 }
 0x2f7   : > { %v1756_v39 = vsel %vm1466_vm3, %v1755_v26, %v1751_v32 }
 0x2f8   : > { %v1696_v25 = vpop.permute.xlu1 %1695  ;;  %v1779_v63 = vsel %vm1539_vm8, %v1756_v39, %v1778_v2 }
 0x2f9   : > { %v1764_v24 = vrot.slane %v1696_v25, %v2657_v59 }
 0x2fb   : > { %v1765_v45 = vsel %vm1466_vm3, %v1764_v24, %v1760_v35 }
 0x2fc   : > { %v1702_v56 = vpop.permute.xlu1 %1701  ;;  %v1780_v29 = vsel %vm1541_vm9, %v1765_v45, %v1779_v63 }
 0x2fd   : > { %v1773_v23 = vrot.slane %v1702_v56, %v2657_v59 }
 0x2ff   : > { %v1774_v49 = vsel %vm1466_vm3, %v1773_v23, %v1769_v60 }
 0x300   : > { %v1781_v0 = vsel %vm1543_vm10, %v1774_v49, %v1780_v29 }
 0x301   : > { %v1783_v5 = vsel %vm1546_vm11, %v1781_v0, 0.0 }
 0x302   : > { %1784 = vadd.xlane.f32.xlu0 %v1783_v5 }
 0x38b   : > { %v1785_v9 = vpop.xlane.xlu0 %1784 }
 0x38c   : > { %2297 = vrcp.f32 %v1785_v9 }
 0x399   : > { %v2298_v53 = vpop.eup %2297 }
 0x39a   : > { %v1807_v10 = vrot.slane %v2298_v53, %v1569_v42  ;;  %v1791_v11 = vrot.slane %v2298_v53, %v2381_v15  ;;  %v1819_v14 = vrot.slane %v2298_v53, %v1581_v47  ;;  %v1795_v8 = vrot.slane %v2298_v53, %v1557_v55 }
 0x39c   : > { %v1836_v12 = vmul.f32 %v2790_v54, %v1807_v10  ;;  %v1828_v13 = vmul.f32 %v2748_v19, %v1791_v11  ;;  %v1842_v51 = vmul.f32 %v2779_v48, %v1819_v14  ;;  %v1829_v16 = vmul.f32 %v2750_v58, %v1791_v11 }
 0x39d   : > { %v1830_v15 = vmul.f32 %v2757_v3, %v1795_v8  ;;  %v1831_v42 = vmul.f32 %v2761_v30, %v1795_v8  ;;  %v1799_v19 = vrot.slane %v2298_v53, %v1561_v43  ;;  %v1803_v58 = vrot.slane %v2298_v53, %v1565_v4 }
 0x39e   : > { %1885 = vperm.xlu0 %2243, %v1836_v12   ;;  %1861 = vperm.xlu1 %2242, %v1828_v13   ;;  %v1837_v30 = vmul.f32 %v2793_v61, %v1807_v10  ;;  %v1811_v43 = vrot.slane %v2298_v53, %v1573_v40  ;;  %v2299_v40 = vld [vmem:[%s2378_s8 + $0x8] sm:$0x3]  ;;  %v2300_v61 = vld [vmem:[%s2378_s8] sm:$0xff] }
 0x39f   : > { %v1832_v47 = vmul.f32 %v2768_v33, %v1799_v19  ;;  %v1833_v48 = vmul.f32 %v2776_v36, %v1799_v19  ;;  %v1834_v55 = vmul.f32 %v2783_v37, %v1803_v58  ;;  %v1835_v3 = vmul.f32 %v2787_v38, %v1803_v58 }
 0x3a0   : > { %v1838_v33 = vmul.f32 %v2764_v31, %v1811_v43  ;;  %v1839_v4 = vmul.f32 %v2796_v62, %v1811_v43  ;;  %v1815_v36 = vrot.slane %v2298_v53, %v1577_v52  ;;  %v2312_v37 = vmov 0.0  }
 0x3a1   : > { %2206 = vmatprep.subr.mxu1 %v2312_v37  ;;  %v1843_v31 = vmul.f32 %v2802_v41, %v1819_v14  ;;  %2210 = vmatprep.mubr.msk.f32.mxu1 %vm2313_vm13, %v2312_v37 }
 0x3a2   : > { %1903 = vperm.xlu0 %2243, %v1842_v51   ;;  %1864 = vperm.xlu1 %2242, %v1829_v16   ;;  %v1840_v38 = vmul.f32 %v2771_v34, %v1815_v36  ;;  %v1841_v54 = vmul.f32 %v2799_v17, %v1815_v36 }
 0x3a3   : > { %2207 = vmatpush3.msk.msra.mxu1 %vm1989_vm12, %v2299_v40 }
 0x3a4   : > { %2208 = vmatprep.subr.mxu1 %v2312_v37 }
 0x3a5   : > { %2209 = vmatpush3.msra.mxu1 %v2300_v61 }
 0x3a6   : > { %1867 = vperm.xlu1 %2242, %v1830_v15  }
 0x3aa   : > { %1870 = vperm.xlu1 %2242, %v1831_v42  }
 0x3ae   : > { %1873 = vperm.xlu1 %2242, %v1832_v47  }
 0x3b2   : > { %1876 = vperm.xlu1 %2242, %v1833_v48  }
 0x3b6   : > { %1879 = vperm.xlu1 %2242, %v1834_v55  }
 0x3ba   : > { %1882 = vperm.xlu1 %2242, %v1835_v3  }
 0x3be   : > { %1888 = vperm.xlu1 %2242, %v1837_v30  }
 0x3c2   : > { %1891 = vperm.xlu1 %2242, %v1838_v33  }
 0x3c6   : > { %1894 = vperm.xlu1 %2242, %v1839_v4  }
 0x3ca   : > { %1897 = vperm.xlu1 %2242, %v1840_v38  }
 0x3ce   : > { %1900 = vperm.xlu1 %2242, %v1841_v54  }
 0x3d2   : > { %1906 = vperm.xlu1 %2242, %v1843_v31  }
 0x419   : > { %v1862_v6 = vpop.permute.xlu1 %1861  ;;  %v1886_v32 = vpop.permute.xlu0 %1885 }
 0x41a   : > { %v1911_v27 = vrot.slane %v1862_v6, %v2650_v57  ;;  %v1947_v56 = vrot.slane %v1886_v32, %v2650_v57 }
 0x41d   : > { %v1865_v52 = vpop.permute.xlu1 %1864  ;;  %v1904_v0 = vpop.permute.xlu0 %1903 }
 0x41e   : > { %v1915_v24 = vrot.slane %v1865_v52, %v2657_v59  ;;  %v1974_v51 = vrot.slane %v1904_v0, %v2650_v57 }
 0x420   : > { %v1916_v23 = vsel %vm1466_vm3, %v1915_v24, %v1911_v27 }
 0x421   : > { %v1868_v62 = vpop.permute.xlu1 %1867 }
 0x422   : > { %v1920_v35 = vrot.slane %v1868_v62, %v2650_v57 }
 0x425   : > { %v1871_v18 = vpop.permute.xlu1 %1870 }
 0x426   : > { %v1924_v28 = vrot.slane %v1871_v18, %v2657_v59 }
 0x428   : > { %v1925_v39 = vsel %vm1466_vm3, %v1924_v28, %v1920_v35 }
 0x429   : > { %v1874_v34 = vpop.permute.xlu1 %1873  ;;  %v1980_v5 = vsel %vm1531_vm4, %v1925_v39, %v1916_v23 }
 0x42a   : > { %v1929_v20 = vrot.slane %v1874_v34, %v2650_v57 }
 0x42d   : > { %v1877_v1 = vpop.permute.xlu1 %1876 }
 0x42e   : > { %v1933_v41 = vrot.slane %v1877_v1, %v2657_v59 }
 0x430   : > { %v1934_v60 = vsel %vm1466_vm3, %v1933_v41, %v1929_v20 }
 0x431   : > { %v1880_v26 = vpop.permute.xlu1 %1879  ;;  %v1981_v10 = vsel %vm1533_vm5, %v1934_v60, %v1980_v5 }
 0x432   : > { %v1938_v46 = vrot.slane %v1880_v26, %v2650_v57 }
 0x435   : > { %v1883_v17 = vpop.permute.xlu1 %1882 }
 0x436   : > { %v1942_v44 = vrot.slane %v1883_v17, %v2657_v59 }
 0x438   : > { %v1943_v63 = vsel %vm1466_vm3, %v1942_v44, %v1938_v46 }
 0x439   : > { %v1889_v21 = vpop.permute.xlu1 %1888  ;;  %v1982_v12 = vsel %vm1535_vm6, %v1943_v63, %v1981_v10 }
 0x43a   : > { %v1951_v50 = vrot.slane %v1889_v21, %v2657_v59 }
 0x43c   : > { %v1952_v9 = vsel %vm1466_vm3, %v1951_v50, %v1947_v56 }
 0x43d   : > { %v1892_v22 = vpop.permute.xlu1 %1891  ;;  %v1983_v16 = vsel %vm1537_vm7, %v1952_v9, %v1982_v12 }
 0x43e   : > { %v1956_v49 = vrot.slane %v1892_v22, %v2650_v57 }
 0x441   : > { %v1895_v25 = vpop.permute.xlu1 %1894 }
 0x442   : > { %v1960_v45 = vrot.slane %v1895_v25, %v2657_v59 }
 0x444   : > { %v1961_v11 = vsel %vm1466_vm3, %v1960_v45, %v1956_v49 }
 0x445   : > { %v1898_v7 = vpop.permute.xlu1 %1897  ;;  %v1984_v15 = vsel %vm1539_vm8, %v1961_v11, %v1983_v16 }
 0x446   : > { %v1965_v53 = vrot.slane %v1898_v7, %v2650_v57 }
 0x449   : > { %v1901_v2 = vpop.permute.xlu1 %1900 }
 0x44a   : > { %v1969_v29 = vrot.slane %v1901_v2, %v2657_v59 }
 0x44c   : > { %v1970_v13 = vsel %vm1466_vm3, %v1969_v29, %v1965_v53 }
 0x44d   : > { %v1907_v14 = vpop.permute.xlu1 %1906  ;;  %v1985_v42 = vsel %vm1541_vm9, %v1970_v13, %v1984_v15 }
 0x44e   : > { %v1978_v8 = vrot.slane %v1907_v14, %v2657_v59 }
 0x450   : > { %v1979_v19 = vsel %vm1466_vm3, %v1978_v8, %v1974_v51 }
 0x451   : > { %v1986_v47 = vsel %vm1543_vm10, %v1979_v19, %v1985_v42 }
 0x452   : > { %2211 = vmatmul.mubr.msk.f32.vlgmr.msra.gmra.mxu1 %vm1546_vm11, %v1986_v47 }
 0x512   : > { %v2059_v57 = vpop.f32.mrf.mxu1 }
 0x513   : > { %2063 = vst.msk [vmem:[%s212_s21] sm:$0xff] %vm708_vm0, %v2059_v57 }
 0x514   : > { %v2212_v48 = vpop.f32.mrf.mxu1 }
 0x515 PF: > { %s14_s15 = sadd.s32 1, %s2307_s15  }
 0x516   : > { %p11_p4 = scmp.ge.s32.totalorder %s14_s15, 4  }
 0x518   :  { %13 = sbr.rel (!%p11_p4) target bundleno = 1 (0x1), region = 69 }

// kernel: mwan_forward.35
= control target key start
LH: loop header
LB: loop body
LE: loop exit
PB: predicated region body
PF: predicated region fallthrough
CT: control target
= control target key end

     0   :  { %v131_v0 = vmov 0.0   ;;  %vm132_vm0 = vmmov 0   ;;  %vm20_vm1 = vcmask 523264   ;;  %vm94_vm2 = vcmask 254976   ;;  %s178_s1 = inlined_call_operand.vmem [shape: f32[64,32], index: 1, kind: input, shape index: {}]   ;;  %s179_s0 = inlined_call_operand.vmem [shape: f32[2,64], index: 0, kind: input, shape index: {}]   ;;  %s180_s2 = inlined_call_operand.vmem [shape: f32[2,32], index: 2, kind: output, shape index: {}]  }
   0x1   :  { %110 = vmatprep.subr.mxu0 %v131_v0  ;;  %v19_v1 = vld [vmem:[%s178_s1 + $0x38] sm:$0xff]  ;;  %v18_v2 = vld [vmem:[%s178_s1 + $0x30] sm:$0xff]  ;;  %126 = vmatprep.mubr.msk.f32.mxu0 %vm132_vm0, %v131_v0  ;;  %v17_v3 = vld [vmem:[%s178_s1 + $0x28] sm:$0xff] }
   0x2   :  { %111 = vmatpush3.msra.mxu0 %v19_v1  ;;  %v16_v4 = vld [vmem:[%s178_s1 + $0x20] sm:$0xff]  ;;  %v15_v5 = vld [vmem:[%s178_s1 + $0x18] sm:$0xff]  ;;  %v14_v6 = vld [vmem:[%s178_s1 + $0x10] sm:$0xff] }
   0x3   :  { %112 = vmatprep.subr.mxu0 %v131_v0  ;;  %v13_v7 = vld [vmem:[%s178_s1 + $0x8] sm:$0xff]  ;;  %v12_v8 = vld [vmem:[%s178_s1] sm:$0xff] }
   0x4   :  { %113 = vmatpush3.msra.mxu0 %v18_v2  ;;  %v11_v9 = vld [vmem:[%s179_s0] sm:$0x3] }
   0x5   :  { %114 = vmatprep.subr.mxu0 %v131_v0 }
   0x6   :  { %115 = vmatpush3.msra.mxu0 %v17_v3 }
   0x7   :  { %116 = vmatprep.subr.mxu0 %v131_v0 }
   0x8   :  { %117 = vmatpush3.msra.mxu0 %v16_v4 }
   0x9   :  { %118 = vmatprep.subr.mxu0 %v131_v0 }
   0xa   :  { %119 = vmatpush3.msra.mxu0 %v15_v5 }
   0xb   :  { %120 = vmatprep.subr.mxu0 %v131_v0 }
   0xc   :  { %121 = vmatpush3.msra.mxu0 %v14_v6 }
   0xd   :  { %122 = vmatprep.subr.mxu0 %v131_v0 }
   0xe   :  { %123 = vmatpush3.msra.mxu0 %v13_v7 }
   0xf   :  { %124 = vmatprep.subr.mxu0 %v131_v0 }
  0x10   :  { %125 = vmatpush3.msra.mxu0 %v12_v8 }
  0x11   :  { %127 = vmatmul.mubr.msk.f32.vlgmr.msra.gmra.mxu0 %vm20_vm1, %v11_v9 }
  0xd1   :  { %v90_v10 = vpop.f32.mrf.mxu0 }
  0xd2   :  { %95 = vst.msk [vmem:[%s180_s2] sm:$0x3] %vm94_vm2, %v90_v10 }
  0xd3   :  { %v128_v11 = vpop.f32.mrf.mxu0 }

// kernel: mwan_forward.34
= control target key start
LH: loop header
LB: loop body
LE: loop exit
PB: predicated region body
PF: predicated region fallthrough
CT: control target
= control target key end

     0   :  { %s630_s18 = smov 0   ;;  %s738_s0 = inlined_call_operand.vmem [shape: f32[2,8,64], index: 0, kind: input, shape index: {}]   ;;  %s739_s1 = inlined_call_operand.vmem [shape: f32[2,1,88], index: 1, kind: input, shape index: {}]   ;;  %s740_s2 = inlined_call_operand.vmem [shape: f32[64,32], index: 2, kind: input, shape index: {}]   ;;  %s741_s3 = inlined_call_operand.vmem [shape: f32[88,32], index: 3, kind: input, shape index: {}]   ;;  %s742_s4 = inlined_call_operand.vmem [shape: f32[1,32], index: 4, kind: input, shape index: {}]   ;;  %s743_s5 = inlined_call_operand.vmem [shape: f32[2,1,64], index: 5, kind: output, shape index: {}]  }
   0x1 LB: > { %s500_s19 = sadd.s32 4294967295, %s596_s18   ;;  %p504_p0 = scmp.ge.s32.totalorder %s596_s18, 1  ;;  %s596_s18 = sphi %s630_s18, %s15_s18  }
   0x2   : > { %p194_p1 = scmp.lt.s32.totalorder %s596_s18, 3 }
   0x4   : > { %p195_p2 = pnand %p504_p0, %p194_p1 }
   0x5   : > { %p222_p3 = scmp.lt.s32.totalorder (!%p195_p2), %s500_s19, 1 }
   0x6   : > { %198 = sbr.rel (%p195_p2) target bundleno = 446 (0x1be), region = 40 }
   0xb   : > { %v252_v0 = vld [vmem:[%s741_s3 + $0x50] sm:$0xff]  ;;  %v598_v1 = vmov 0.0   ;;  %v251_v2 = vld [vmem:[%s741_s3 + $0x48] sm:$0xff]  ;;  %v241_v3 = vld [vmem:[%s740_s2 + $0x38] sm:$0xff]  ;;  %s745_s19 = smov (!%p222_p3, %s500_s19), 1  ;;  %vm599_vm0 = vmmov 0   ;;  %v327_v22 = vlaneseq }
   0xc   : > { %532 = vmatprep.subr.mxu0 %v598_v1  ;;  %557 = vmatprep.subr.mxu1 %v598_v1  ;;  %v240_v4 = vld [vmem:[%s740_s2 + $0x30] sm:$0xff]  ;;  %v250_v5 = vld [vmem:[%s741_s3 + $0x40] sm:$0xff]  ;;  %v239_v6 = vld [vmem:[%s740_s2 + $0x28] sm:$0xff]  ;;  %s505_s21 = sshll.u32 %s745_s19, 3  ;;  %vm331_vm1 = vcmask 523264   ;;  %s228_s14 = scalar_lea.vmem %s739_s1, %s745_s19  ;;  %vm253_vm2 = vcmask 719872  }
   0xd   : > { %533 = vmatpush3.msra.mxu0 %v252_v0  ;;  %558 = vmatpush3.msra.mxu1 %v241_v3  ;;  %v249_v7 = vld [vmem:[%s741_s3 + $0x38] sm:$0xff]  ;;  %v238_v8 = vld [vmem:[%s740_s2 + $0x20] sm:$0xff]  ;;  %v248_v9 = vld [vmem:[%s741_s3 + $0x30] sm:$0xff]  ;;  %s225_s30 = scalar_lea.vmem %s738_s0, %s505_s21  ;;  %v328_v23 = vshrl.u32 %v327_v22, 7  ;;  %vm413_vm3 = vcmask 261120   ;;  %s231_s23 = scalar_lea.vmem %s743_s5, %s745_s19  ;;  %vm442_vm4 = vcmask 516096  }
   0xe   : > { %534 = vmatprep.subr.mxu0 %v598_v1  ;;  %559 = vmatprep.subr.mxu1 %v598_v1  ;;  %v237_v10 = vld [vmem:[%s740_s2 + $0x18] sm:$0xff]  ;;  %v247_v11 = vld [vmem:[%s741_s3 + $0x28] sm:$0xff]  ;;  %v236_v12 = vld [vmem:[%s740_s2 + $0x10] sm:$0xff] }
   0xf   : > { %535 = vmatpush3.msra.mxu0 %v251_v2  ;;  %560 = vmatpush3.msra.mxu1 %v240_v4  ;;  %v246_v13 = vld [vmem:[%s741_s3 + $0x20] sm:$0xff]  ;;  %v235_v14 = vld [vmem:[%s740_s2 + $0x8] sm:$0xff]  ;;  %v245_v15 = vld [vmem:[%s741_s3 + $0x18] sm:$0xff]  ;;  %v329_v25 = vsub.s32 0, %v328_v23 }
  0x10   : > { %536 = vmatprep.subr.mxu0 %v598_v1  ;;  %561 = vmatprep.subr.mxu1 %v598_v1  ;;  %v234_v16 = vld [vmem:[%s740_s2] sm:$0xff]  ;;  %v244_v17 = vld [vmem:[%s741_s3 + $0x10] sm:$0xff]  ;;  %v243_v19 = vld [vmem:[%s741_s3 + $0x8] sm:$0xff] }
  0x11   : > { %537 = vmatpush3.msra.mxu0 %v250_v5  ;;  %562 = vmatpush3.msra.mxu1 %v239_v6  ;;  %v232_v18 = vld [vmem:[%s225_s30] sm:$0xff] }
  0x12   : > { %538 = vmatprep.subr.mxu0 %v598_v1  ;;  %563 = vmatprep.subr.mxu1 %v598_v1  ;;  %v242_v20 = vld [vmem:[%s741_s3] sm:$0xff] }
  0x13   : > { %539 = vmatpush3.msra.mxu0 %v249_v7  ;;  %564 = vmatpush3.msra.mxu1 %v238_v8  ;;  %v233_v21 = vld [vmem:[%s228_s14] sm:$0x1] }
  0x14   : > { %540 = vmatprep.subr.mxu0 %v598_v1  ;;  %565 = vmatprep.subr.mxu1 %v598_v1  ;;  %v508_v30 = vld [vmem:[%s742_s4] ss:$0 sm:$0xff] }
  0x15   : > { %541 = vmatpush3.msra.mxu0 %v248_v9  ;;  %566 = vmatpush3.msra.mxu1 %v237_v10 }
  0x16   : > { %542 = vmatprep.subr.mxu0 %v598_v1  ;;  %567 = vmatprep.subr.mxu1 %v598_v1 }
  0x17   : > { %543 = vmatpush3.msra.mxu0 %v247_v11  ;;  %568 = vmatpush3.msra.mxu1 %v236_v12 }
  0x18   : > { %544 = vmatprep.subr.mxu0 %v598_v1  ;;  %569 = vmatprep.subr.mxu1 %v598_v1 }
  0x19   : > { %545 = vmatpush3.msra.mxu0 %v246_v13  ;;  %570 = vmatpush3.msra.mxu1 %v235_v14 }
  0x1a   : > { %546 = vmatprep.subr.mxu0 %v598_v1  ;;  %571 = vmatprep.subr.mxu1 %v598_v1 }
  0x1b   : > { %547 = vmatpush3.msra.mxu0 %v245_v15  ;;  %554 = vmatprep.mubr.msk.f32.mxu0 %vm599_vm0, %v598_v1 }
  0x1c   : > { %548 = vmatprep.subr.mxu0 %v598_v1  ;;  %572 = vmatpush3.msra.mxu1 %v234_v16 }
  0x1d   : > { %549 = vmatpush3.msra.mxu0 %v244_v17  ;;  %573 = vmatprep.mubr.msk.f32.mxu1 %vm599_vm0, %v598_v1 }
  0x1e   : > { %550 = vmatprep.subr.mxu0 %v598_v1  ;;  %574 = vmatmul.mubr.msk.f32.vlgmr.msra.gmra.mxu1 %vm331_vm1, %v232_v18 }
  0x1f   : > { %551 = vmatpush3.msra.mxu0 %v243_v19 }
  0x20   : > { %552 = vmatprep.subr.mxu0 %v598_v1 }
  0x21   : > { %553 = vmatpush3.msra.mxu0 %v242_v20 }
  0x22   : > { %555 = vmatmul.mubr.msk.f32.vlgmr.msra.gmra.mxu0 %vm253_vm2, %v233_v21 }
  0xde   : > { %v401_v24 = vpop.f32.mrf.mxu1 }
  0xe0   : > { %v575_v26 = vpop.f32.mrf.mxu1 }
  0xe2   : > { %v323_v27 = vpop.f32.mrf.mxu0 }
  0xe3   : > { %v330_v28 = vrot.slane %v323_v27, %v329_v25 }
  0xe4   : > { %v556_v29 = vpop.f32.mrf.mxu0 }
  0xe5   : > { %v402_v31 = vadd.f32 %v401_v24, %v330_v28 }
  0xe7   : > { %v412_v32 = vmul.f32 %v508_v30, %v402_v31 }
  0xe9   : > { %v414_v33 = vsel %vm413_vm3, %v412_v32, 0.0 }
  0xea   : > { %415 = vadd.xlane.f32.xlu0 %v414_v33 }
 0x173   : > { %v416_v34 = vpop.xlane.xlu0 %415 }
 0x174   : > { %v417_v35 = vrot.slane %v416_v34, 4 }
 0x176   : > { %v418_v36 = vmax.f32 %v416_v34, %v417_v35 }
 0x178   : > { %v419_v37 = vrot.slane %v418_v36, 2 }
 0x17a   : > { %v420_v38 = vmax.f32 %v418_v36, %v419_v37 }
 0x17c   : > { %v421_v39 = vrot.slane %v420_v38, 1 }
 0x17e   : > { %v422_v40 = vmax.f32 %v420_v38, %v421_v39 }
 0x180   : > { %v423_v41 = vsub.f32 %v416_v34, %v422_v40 }
 0x182   : > { %v424_v42 = vmul.f32 1.442695, %v423_v41 }
 0x184   : > { %586 = vpow2.f32 %v424_v42 }
 0x191   : > { %v587_v43 = vpop.eup %586 }
 0x192   : > { %v426_v44 = vrot.slane %v587_v43, 4 }
 0x194   : > { %v427_v45 = vadd.f32 %v587_v43, %v426_v44 }
 0x196   : > { %v428_v46 = vrot.slane %v427_v45, 2 }
 0x198   : > { %v429_v47 = vadd.f32 %v428_v46, %v427_v45 }
 0x19a   : > { %v430_v48 = vrot.slane %v429_v47, 1 }
 0x19c   : > { %v431_v49 = vadd.f32 %v430_v48, %v429_v47 }
 0x19e   : > { %588 = vrcp.f32 %v431_v49 }
 0x1ab   : > { %v589_v50 = vpop.eup %588 }
 0x1ac   : > { %v433_v51 = vmul.f32 %v589_v50, %v587_v43 }
 0x1ae   : > { %v434_v52 = vmul.f32 %v433_v51, %v232_v18 }
 0x1b0   : > { %v435_v53 = vsel %vm331_vm1, %v434_v52, 0.0 }
 0x1b1   : > { %v436_v54 = vrot.slane %v435_v53, 4 }
 0x1b3   : > { %v437_v55 = vadd.f32 %v436_v54, %v435_v53 }
 0x1b5   : > { %v438_v56 = vrot.slane %v437_v55, 2 }
 0x1b7   : > { %v439_v57 = vadd.f32 %v438_v56, %v437_v55 }
 0x1b9   : > { %v440_v58 = vrot.slane %v439_v57, 1 }
 0x1bb   : > { %v441_v59 = vadd.f32 %v440_v58, %v439_v57 }
 0x1bd   : > { %443 = vst.msk [vmem:[%s231_s23] sm:$0x1] %vm442_vm4, %v441_v59 }
 0x1be PF: > { %s15_s18 = sadd.s32 1, %s596_s18  }
 0x1bf   : > { %p12_p4 = scmp.ge.s32.totalorder %s15_s18, 4  }
 0x1c1   :  { %14 = sbr.rel (!%p12_p4) target bundleno = 1 (0x1), region = 73 }

// kernel: mwan_forward.32
= control target key start
LH: loop header
LB: loop body
LE: loop exit
PB: predicated region body
PF: predicated region fallthrough
CT: control target
= control target key end

     0   :  { %vm252_vm0 = vcmask 719872   ;;  %vm480_vm1 = vcmask 254976   ;;  %vm459_vm2 = vcmask 1041408   ;;  %vm460_vm3 = vcmask 519170   ;;  %s1503_s1 = inlined_call_operand.vmem [shape: f32[472,192], index: 1, kind: input, shape index: {}]   ;;  %s1504_s7 = inlined_call_operand.vmem [shape: f32[8,2,32], index: 7, kind: output, shape index: {0}]   ;;  %s1505_s8 = inlined_call_operand.vmem [shape: f32[8,2,32], index: 8, kind: output, shape index: {1}]   ;;  %s1506_s0 = inlined_call_operand.vmem [shape: f32[8,2,472], index: 0, kind: input, shape index: {}]   ;;  %s1507_s3 = inlined_call_operand.vmem [shape: f32[32,96], index: 3, kind: input, shape index: {}]   ;;  %s1508_s4 = inlined_call_operand.vmem [shape: f32[1,96], index: 4, kind: input, shape index: {}]   ;;  %s1509_s5 = inlined_call_operand.vmem [shape: f32[32,96], index: 5, kind: input, shape index: {}]   ;;  %s1510_s6 = inlined_call_operand.vmem [shape: f32[1,96], index: 6, kind: input, shape index: {}]   ;;  %s1511_s2 = inlined_call_operand.vmem [shape: f32[1,192], index: 2, kind: input, shape index: {}]  }
   0x1   :  { %v67_v0 = vld [vmem:[%s1503_s1 + $0xf8] sm:$0xff]  ;;  %v66_v1 = vld [vmem:[%s1503_s1 + $0xf0] sm:$0xff]  ;;  %v65_v2 = vld [vmem:[%s1503_s1 + $0xe8] sm:$0xff] }
   0x2   :  { %257 = vmatprep.subr.mxu0 %v67_v0  ;;  %v64_v3 = vld [vmem:[%s1503_s1 + $0xe0] sm:$0xff]  ;;  %v63_v4 = vld [vmem:[%s1503_s1 + $0xd8] sm:$0xff]  ;;  %v62_v5 = vld [vmem:[%s1503_s1 + $0xd0] sm:$0xff] }
   0x3   :  { %258 = vmatpush1.msra.mxu0 %v66_v1  ;;  %v131_v6 = vld [vmem:[%s1503_s1 + $0x2f8] sm:$0xff]  ;;  %v61_v7 = vld [vmem:[%s1503_s1 + $0xc8] sm:$0xff]  ;;  %v130_v8 = vld [vmem:[%s1503_s1 + $0x2f0] sm:$0xff] }
   0x4   :  { %259 = vmatprep.subr.mxu0 %v65_v2  ;;  %334 = vmatprep.subr.mxu1 %v131_v6  ;;  %v60_v9 = vld [vmem:[%s1503_s1 + $0xc0] sm:$0xff]  ;;  %v129_v10 = vld [vmem:[%s1503_s1 + $0x2e8] sm:$0xff]  ;;  %v59_v12 = vld [vmem:[%s1503_s1 + $0xb8] sm:$0xff] }
   0x5   :  { %260 = vmatpush1.msra.mxu0 %v64_v3  ;;  %335 = vmatpush1.msra.mxu1 %v130_v8  ;;  %v128_v11 = vld [vmem:[%s1503_s1 + $0x2e0] sm:$0xff]  ;;  %v127_v13 = vld [vmem:[%s1503_s1 + $0x2d8] sm:$0xff]  ;;  %v58_v14 = vld [vmem:[%s1503_s1 + $0xb0] sm:$0xff] }
   0x6   :  { %261 = vmatprep.subr.mxu0 %v63_v4  ;;  %336 = vmatprep.subr.mxu1 %v129_v10  ;;  %v126_v15 = vld [vmem:[%s1503_s1 + $0x2d0] sm:$0xff]  ;;  %v125_v16 = vld [vmem:[%s1503_s1 + $0x2c8] sm:$0xff]  ;;  %v124_v18 = vld [vmem:[%s1503_s1 + $0x2c0] sm:$0xff] }
   0x7   :  { %262 = vmatpush1.msra.mxu0 %v62_v5  ;;  %337 = vmatpush1.msra.mxu1 %v128_v11  ;;  %v57_v17 = vld [vmem:[%s1503_s1 + $0xa8] sm:$0xff]  ;;  %v56_v19 = vld [vmem:[%s1503_s1 + $0xa0] sm:$0xff]  ;;  %v123_v20 = vld [vmem:[%s1503_s1 + $0x2b8] sm:$0xff] }
   0x8   :  { %263 = vmatprep.subr.mxu0 %v61_v7  ;;  %338 = vmatprep.subr.mxu1 %v127_v13  ;;  %v55_v21 = vld [vmem:[%s1503_s1 + $0x98] sm:$0xff]  ;;  %v122_v22 = vld [vmem:[%s1503_s1 + $0x2b0] sm:$0xff]  ;;  %v121_v24 = vld [vmem:[%s1503_s1 + $0x2a8] sm:$0xff] }
   0x9   :  { %264 = vmatpush1.msra.mxu0 %v60_v9  ;;  %339 = vmatpush1.msra.mxu1 %v126_v15  ;;  %v54_v23 = vld [vmem:[%s1503_s1 + $0x90] sm:$0xff]  ;;  %v53_v25 = vld [vmem:[%s1503_s1 + $0x88] sm:$0xff]  ;;  %v120_v26 = vld [vmem:[%s1503_s1 + $0x2a0] sm:$0xff]  ;;  %v156_v15 = vlaneseq }
   0xa   :  { %265 = vmatprep.subr.mxu0 %v59_v12  ;;  %340 = vmatprep.subr.mxu1 %v125_v16  ;;  %v52_v27 = vld [vmem:[%s1503_s1 + $0x80] sm:$0xff]  ;;  %v119_v28 = vld [vmem:[%s1503_s1 + $0x298] sm:$0xff]  ;;  %v118_v30 = vld [vmem:[%s1503_s1 + $0x290] sm:$0xff]  ;;  %v916_v16 = vmov 1983009808  }
   0xb   :  { %266 = vmatpush1.msra.mxu0 %v58_v14  ;;  %341 = vmatpush1.msra.mxu1 %v124_v18  ;;  %v51_v29 = vld [vmem:[%s1503_s1 + $0x78] sm:$0xff]  ;;  %v50_v31 = vld [vmem:[%s1503_s1 + $0x70] sm:$0xff]  ;;  %v117_v32 = vld [vmem:[%s1503_s1 + $0x288] sm:$0xff] }
   0xc   :  { %267 = vmatprep.subr.mxu0 %v57_v17  ;;  %342 = vmatprep.subr.mxu1 %v123_v20  ;;  %v49_v33 = vld [vmem:[%s1503_s1 + $0x68] sm:$0xff]  ;;  %v116_v34 = vld [vmem:[%s1503_s1 + $0x280] sm:$0xff]  ;;  %v115_v36 = vld [vmem:[%s1503_s1 + $0x278] sm:$0xff]  ;;  %v179_v17 = vunpack.c.l.s4 %v916_v16 }
   0xd   :  { %268 = vmatpush1.msra.mxu0 %v56_v19  ;;  %343 = vmatpush1.msra.mxu1 %v122_v22  ;;  %v48_v35 = vld [vmem:[%s1503_s1 + $0x60] sm:$0xff]  ;;  %v47_v37 = vld [vmem:[%s1503_s1 + $0x58] sm:$0xff]  ;;  %v114_v38 = vld [vmem:[%s1503_s1 + $0x270] sm:$0xff] }
   0xe   :  { %269 = vmatprep.subr.mxu0 %v55_v21  ;;  %344 = vmatprep.subr.mxu1 %v121_v24  ;;  %v46_v39 = vld [vmem:[%s1503_s1 + $0x50] sm:$0xff]  ;;  %v113_v40 = vld [vmem:[%s1503_s1 + $0x268] sm:$0xff]  ;;  %v112_v42 = vld [vmem:[%s1503_s1 + $0x260] sm:$0xff] }
   0xf   :  { %270 = vmatpush1.msra.mxu0 %v54_v23  ;;  %345 = vmatpush1.msra.mxu1 %v120_v26  ;;  %v45_v41 = vld [vmem:[%s1503_s1 + $0x48] sm:$0xff]  ;;  %v44_v43 = vld [vmem:[%s1503_s1 + $0x40] sm:$0xff]  ;;  %v111_v44 = vld [vmem:[%s1503_s1 + $0x258] sm:$0xff]  ;;  %v1233_v26 = vshrl.u32 %v156_v15, 7 }
  0x10   :  { %271 = vmatprep.subr.mxu0 %v53_v25  ;;  %346 = vmatprep.subr.mxu1 %v119_v28  ;;  %v43_v45 = vld [vmem:[%s1503_s1 + $0x38] sm:$0xff]  ;;  %v110_v46 = vld [vmem:[%s1503_s1 + $0x250] sm:$0xff]  ;;  %v109_v48 = vld [vmem:[%s1503_s1 + $0x248] sm:$0xff] }
  0x11   :  { %272 = vmatpush1.msra.mxu0 %v52_v27  ;;  %347 = vmatpush1.msra.mxu1 %v118_v30  ;;  %v42_v47 = vld [vmem:[%s1503_s1 + $0x30] sm:$0xff]  ;;  %v41_v49 = vld [vmem:[%s1503_s1 + $0x28] sm:$0xff]  ;;  %v108_v50 = vld [vmem:[%s1503_s1 + $0x240] sm:$0xff]  ;;  %v180_v27 = vunpack.c.0.s8 %v179_v17 }
  0x12   :  { %273 = vmatprep.subr.mxu0 %v51_v29  ;;  %348 = vmatprep.subr.mxu1 %v117_v32  ;;  %v40_v51 = vld [vmem:[%s1503_s1 + $0x20] sm:$0xff]  ;;  %v107_v52 = vld [vmem:[%s1503_s1 + $0x238] sm:$0xff]  ;;  %v106_v54 = vld [vmem:[%s1503_s1 + $0x230] sm:$0xff] }
  0x13   :  { %274 = vmatpush1.msra.mxu0 %v50_v31  ;;  %349 = vmatpush1.msra.mxu1 %v116_v34  ;;  %v39_v53 = vld [vmem:[%s1503_s1 + $0x18] sm:$0xff]  ;;  %v38_v55 = vld [vmem:[%s1503_s1 + $0x10] sm:$0xff]  ;;  %v105_v56 = vld [vmem:[%s1503_s1 + $0x228] sm:$0xff] }
  0x14   :  { %275 = vmatprep.subr.mxu0 %v49_v33  ;;  %350 = vmatprep.subr.mxu1 %v115_v36  ;;  %v37_v57 = vld [vmem:[%s1503_s1 + $0x8] sm:$0xff]  ;;  %v104_v58 = vld [vmem:[%s1503_s1 + $0x220] sm:$0xff]  ;;  %v103_v60 = vld [vmem:[%s1503_s1 + $0x218] sm:$0xff]  ;;  %v1260_v36 = vsub.s32 %v180_v27, %v1233_v26 }
  0x15   :  { %276 = vmatpush1.msra.mxu0 %v48_v35  ;;  %351 = vmatpush1.msra.mxu1 %v114_v38  ;;  %v36_v59 = vld [vmem:[%s1503_s1] sm:$0xff]  ;;  %v99_v61 = vld [vmem:[%s1503_s1 + $0x1f8] sm:$0xff]  ;;  %v102_v62 = vld [vmem:[%s1503_s1 + $0x210] sm:$0xff] }
  0x16   :  { %277 = vmatprep.subr.mxu0 %v47_v37  ;;  %352 = vmatprep.subr.mxu1 %v113_v40  ;;  %v98_v63 = vld [vmem:[%s1503_s1 + $0x1f0] sm:$0xff]  ;;  %v101_v0 = vld [vmem:[%s1503_s1 + $0x208] sm:$0xff]  ;;  %v100_v2 = vld [vmem:[%s1503_s1 + $0x200] sm:$0xff] }
  0x17   :  { %278 = vmatpush1.msra.mxu0 %v46_v39  ;;  %353 = vmatpush1.msra.mxu1 %v112_v42  ;;  %v97_v1 = vld [vmem:[%s1503_s1 + $0x1e8] sm:$0xff]  ;;  %v96_v3 = vld [vmem:[%s1503_s1 + $0x1e0] sm:$0xff]  ;;  %v95_v5 = vld [vmem:[%s1503_s1 + $0x1d8] sm:$0xff] }
  0x18   :  { %279 = vmatprep.subr.mxu0 %v45_v41  ;;  %354 = vmatprep.subr.mxu1 %v111_v44  ;;  %v153_v4 = vld [vmem:[%s1503_s1 + $0x3a8] sm:$0xff]  ;;  %v152_v6 = vld [vmem:[%s1503_s1 + $0x3a0] sm:$0xff]  ;;  %v94_v7 = vld [vmem:[%s1503_s1 + $0x1d0] sm:$0xff] }
  0x19   :  { %280 = vmatpush1.msra.mxu0 %v44_v43  ;;  %355 = vmatpush1.msra.mxu1 %v110_v46  ;;  %v151_v8 = vld [vmem:[%s1503_s1 + $0x398] sm:$0xff]  ;;  %v93_v9 = vld [vmem:[%s1503_s1 + $0x1c8] sm:$0xff]  ;;  %v92_v10 = vld [vmem:[%s1503_s1 + $0x1c0] sm:$0xff] }
  0x1a   :  { %281 = vmatprep.subr.mxu0 %v43_v45  ;;  %356 = vmatprep.subr.mxu1 %v109_v48  ;;  %v150_v11 = vld [vmem:[%s1503_s1 + $0x390] sm:$0xff]  ;;  %v91_v12 = vld [vmem:[%s1503_s1 + $0x1b8] sm:$0xff]  ;;  %v149_v14 = vld [vmem:[%s1503_s1 + $0x388] sm:$0xff] }
  0x1b   :  { %282 = vmatpush1.msra.mxu0 %v42_v47  ;;  %357 = vmatpush1.msra.mxu1 %v108_v50  ;;  %v90_v13 = vld [vmem:[%s1503_s1 + $0x1b0] sm:$0xff]  ;;  %v89_v18 = vld [vmem:[%s1503_s1 + $0x1a8] sm:$0xff]  ;;  %v148_v19 = vld [vmem:[%s1503_s1 + $0x380] sm:$0xff] }
  0x1c   :  { %283 = vmatprep.subr.mxu0 %v41_v49  ;;  %358 = vmatprep.subr.mxu1 %v107_v52  ;;  %v147_v20 = vld [vmem:[%s1503_s1 + $0x378] sm:$0xff]  ;;  %v88_v21 = vld [vmem:[%s1503_s1 + $0x1a0] sm:$0xff]  ;;  %v146_v22 = vld [vmem:[%s1503_s1 + $0x370] sm:$0xff] }
  0x1d   :  { %284 = vmatpush1.msra.mxu0 %v40_v51  ;;  %359 = vmatpush1.msra.mxu1 %v106_v54  ;;  %v87_v23 = vld [vmem:[%s1503_s1 + $0x198] sm:$0xff]  ;;  %v145_v24 = vld [vmem:[%s1503_s1 + $0x368] sm:$0xff]  ;;  %v144_v25 = vld [vmem:[%s1503_s1 + $0x360] sm:$0xff] }
  0x1e   :  { %285 = vmatprep.subr.mxu0 %v39_v53  ;;  %360 = vmatprep.subr.mxu1 %v105_v56  ;;  %v86_v28 = vld [vmem:[%s1503_s1 + $0x190] sm:$0xff]  ;;  %v143_v29 = vld [vmem:[%s1503_s1 + $0x358] sm:$0xff]  ;;  %v85_v30 = vld [vmem:[%s1503_s1 + $0x188] sm:$0xff] }
  0x1f   :  { %286 = vmatpush1.msra.mxu0 %v38_v55  ;;  %361 = vmatpush1.msra.mxu1 %v104_v58  ;;  %v84_v31 = vld [vmem:[%s1503_s1 + $0x180] sm:$0xff]  ;;  %v142_v32 = vld [vmem:[%s1503_s1 + $0x350] sm:$0xff]  ;;  %v141_v33 = vld [vmem:[%s1503_s1 + $0x348] sm:$0xff] }
  0x20   :  { %287 = vmatprep.subr.mxu0 %v37_v57  ;;  %362 = vmatprep.subr.mxu1 %v103_v60  ;;  %v872_v34 = vld [vmem:[%s1506_s0] ss:$8 sps:$4 sm:$0xff]   ;;  %v874_v35 = vld [vmem:[%s1506_s0 + $0x10] ss:$8 sps:$4 sm:$0xff]   ;;  %v876_v41 = vld [vmem:[%s1506_s0 + $0x4] ss:$8 sps:$4 sm:$0xff]  }
  0x21   :  { %288 = vmatpush1.msra.mxu0 %v36_v59  ;;  %363 = vmatpush1.msra.mxu1 %v102_v62  ;;  %v83_v37 = vld [vmem:[%s1503_s1 + $0x178] sm:$0xff]  ;;  %v82_v38 = vld [vmem:[%s1503_s1 + $0x170] sm:$0xff]  ;;  %v140_v39 = vld [vmem:[%s1503_s1 + $0x340] sm:$0xff]  ;;  %v1293_v47 = vrot.slane %v872_v34, %v1260_v36  ;;  %v1296_v48 = vrot.slane %v874_v35, %v1260_v36  ;;  %v191_v55 = vrot.slane %v876_v41, %v1260_v36  ;;  %v162_v34 = vsub.s32 1, %v1233_v26 }
  0x22   :  { %289 = vmatprep.subr.mxu0 %v99_v61  ;;  %364 = vmatprep.subr.mxu1 %v101_v0  ;;  %v139_v40 = vld [vmem:[%s1503_s1 + $0x338] sm:$0xff]  ;;  %v81_v43 = vld [vmem:[%s1503_s1 + $0x168] sm:$0xff]  ;;  %v80_v44 = vld [vmem:[%s1503_s1 + $0x160] sm:$0xff] }
  0x23   :  { %290 = vmatpush2.msra.mxu0 %v98_v63  ;;  %365 = vmatpush1.msra.mxu1 %v100_v2  ;;  %v877_v42 = vld [vmem:[%s1506_s0 + $0x14] ss:$8 sps:$4 sm:$0xff]   ;;  %v137_v46 = vld [vmem:[%s1503_s1 + $0x328] sm:$0xff]  ;;  %v136_v52 = vld [vmem:[%s1503_s1 + $0x320] sm:$0xff]  ;;  %v207_v61 = vcombine.high %v1293_v47, %v1296_v48  ;;  %v206_v17 = vcombine.low %v1293_v47, %v1296_v48 }
  0x24   :  { %291 = vmatprep.subr.mxu0 %v97_v1  ;;  %376 = vmatprep.subr.mxu1 %v153_v4  ;;  %v138_v45 = vld [vmem:[%s1503_s1 + $0x330] sm:$0xff]  ;;  %v880_v49 = vld [vmem:[%s1506_s0 + $0x24] ss:$8 sps:$4 sm:$0xff]   ;;  %v79_v51 = vld [vmem:[%s1503_s1 + $0x158] sm:$0xff]  ;;  %v205_v56 = vrot.slane %v877_v42, %v1260_v36 }
  0x25   :  { %292 = vmatpush2.msra.mxu0 %v96_v3  ;;  %377 = vmatpush2.msra.mxu1 %v152_v6  ;;  %v883_v50 = vld [vmem:[%s1506_s0 + $0x34] ss:$8 sps:$4 sm:$0xff]   ;;  %v77_v57 = vld [vmem:[%s1503_s1 + $0x148] sm:$0xff]  ;;  %v76_v59 = vld [vmem:[%s1503_s1 + $0x140] sm:$0xff]  ;;  %v227_v62 = vrot.slane %v880_v49, %v1260_v36 }
  0x26   :  { %293 = vmatprep.subr.mxu0 %v95_v5  ;;  %378 = vmatprep.subr.mxu1 %v151_v8  ;;  %v78_v53 = vld [vmem:[%s1503_s1 + $0x150] sm:$0xff]  ;;  %v135_v54 = vld [vmem:[%s1503_s1 + $0x318] sm:$0xff]  ;;  %v133_v60 = vld [vmem:[%s1503_s1 + $0x308] sm:$0xff]  ;;  %v241_v63 = vrot.slane %v883_v50, %v1260_v36  ;;  %v209_v5 = vcombine.high %v191_v55, %v205_v56 }
  0x27   :  { %294 = vmatpush2.msra.mxu0 %v94_v7  ;;  %379 = vmatpush2.msra.mxu1 %v150_v11  ;;  %v134_v58 = vld [vmem:[%s1503_s1 + $0x310] sm:$0xff]  ;;  %v75_v0 = vld [vmem:[%s1503_s1 + $0x138] sm:$0xff]  ;;  %v878_v1 = vld [vmem:[%s1506_s0 + $0x20] ss:$8 sps:$4 sm:$0xff]   ;;  %v208_v7 = vcombine.low %v191_v55, %v205_v56 }
  0x28   :  { %295 = vmatprep.subr.mxu0 %v93_v9  ;;  %380 = vmatprep.subr.mxu1 %v149_v14  ;;  %v881_v2 = vld [vmem:[%s1506_s0 + $0x30] ss:$8 sps:$4 sm:$0xff]   ;;  %v132_v4 = vld [vmem:[%s1503_s1 + $0x300] sm:$0xff]  ;;  %v73_v6 = vld [vmem:[%s1503_s1 + $0x128] sm:$0xff]  ;;  %v245_v9 = vcombine.high %v227_v62, %v241_v63  ;;  %v220_v11 = vrot.slane %v878_v1, %v1260_v36  ;;  %v244_v15 = vcombine.low %v227_v62, %v241_v63 }
  0x29   :  { %296 = vmatpush2.msra.mxu0 %v92_v10  ;;  %381 = vmatpush2.msra.mxu1 %v148_v19  ;;  %v74_v3 = vld [vmem:[%s1503_s1 + $0x130] sm:$0xff]  ;;  %v72_v8 = vld [vmem:[%s1503_s1 + $0x120] sm:$0xff]  ;;  %v71_v10 = vld [vmem:[%s1503_s1 + $0x118] sm:$0xff] }
  0x2a   :  { %297 = vmatprep.subr.mxu0 %v91_v12  ;;  %382 = vmatprep.subr.mxu1 %v147_v20  ;;  %v234_v12 = vrot.slane %v881_v2, %v1260_v36  ;;  %v69_v14 = vld [vmem:[%s1503_s1 + $0x108] sm:$0xff]  ;;  %v68_v16 = vld [vmem:[%s1503_s1 + $0x100] sm:$0xff]  ;;  %vm1430_vm4 = vmor %vm460_vm3, %vm459_vm2 }
  0x2b   :  { %298 = vmatpush2.msra.mxu0 %v90_v13  ;;  %383 = vmatpush2.msra.mxu1 %v146_v22  ;;  %v70_v13 = vld [vmem:[%s1503_s1 + $0x110] sm:$0xff]  ;;  %v1376_v20 = vld [vmem:[%s1507_s3] sm:$0xff] }
  0x2c   :  { %299 = vmatprep.subr.mxu0 %v89_v18  ;;  %384 = vmatprep.subr.mxu1 %v145_v24  ;;  %v243_v18 = vcombine.high %v220_v11, %v234_v12  ;;  %v242_v19 = vcombine.low %v220_v11, %v234_v12  ;;  %v1386_v22 = vld [vmem:[%s1507_s3 + $0x10] sm:$0xff]  ;;  %v1393_v24 = vld [vmem:[%s1507_s3 + $0x18] sm:$0xff]  ;;  %v1403_v27 = vld [vmem:[%s1509_s5] sm:$0xff] }
  0x2d   :  { %300 = vmatpush2.msra.mxu0 %v88_v21  ;;  %385 = vmatpush2.msra.mxu1 %v144_v25  ;;  %v1381_v21 = vld [vmem:[%s1507_s3 + $0x8] sm:$0xff]  ;;  %v1398_v25 = vld [vmem:[%s1508_s4] ss:$0 sm:$0xff] }
  0x2e   :  { %301 = vmatprep.subr.mxu0 %v87_v23  ;;  %386 = vmatprep.subr.mxu1 %v143_v29  ;;  %v917_v23 = vmov 0.0   ;;  %v1413_v29 = vld [vmem:[%s1509_s5 + $0x10] sm:$0xff] }
  0x2f   :  { %302 = vmatpush2.msra.mxu0 %v86_v28  ;;  %387 = vmatpush2.msra.mxu1 %v142_v32  ;;  %481 = vst.msk [vmem:[#allocation3] sm:$0x3] %vm480_vm1, %v917_v23  ;;  %482 = vst.msk [vmem:[#allocation4] sm:$0x3] %vm480_vm1, %v917_v23  ;;  %v1408_v28 = vld [vmem:[%s1509_s5 + $0x8] sm:$0xff]  ;;  %v158_v32 = vsub.s32 0, %v1233_v26 }
  0x30   :  { %303 = vmatprep.subr.mxu0 %v85_v30  ;;  %388 = vmatprep.subr.mxu1 %v141_v33  ;;  %v1418_v30 = vld [vmem:[%s1509_s5 + $0x18] sm:$0xff]  ;;  %v154_v33 = vld [vmem:[%s1511_s2] sm:$0x3]  ;;  %s1454_s2 = smov 0  }
  0x31   :  { %304 = vmatpush2.msra.mxu0 %v84_v31  ;;  %389 = vmatpush2.msra.mxu1 %v140_v39  ;;  %v1423_v31 = vld [vmem:[%s1510_s6] ss:$0 sm:$0xff] }
  0x32   :  { %305 = vmatprep.subr.mxu0 %v83_v37  ;;  %390 = vmatprep.subr.mxu1 %v139_v40  ;;  %v159_v37 = vrot.slane %v154_v33, %v158_v32 }
  0x33   :  { %306 = vmatpush2.msra.mxu0 %v82_v38  ;;  %391 = vmatpush2.msra.mxu1 %v138_v45  ;;  %v163_v38 = vrot.slane %v154_v33, %v162_v34 }
  0x34   :  { %307 = vmatprep.subr.mxu0 %v81_v43  ;;  %392 = vmatprep.subr.mxu1 %v137_v46 }
  0x35   :  { %308 = vmatpush2.msra.mxu0 %v80_v44  ;;  %393 = vmatpush2.msra.mxu1 %v136_v52 }
  0x36   :  { %309 = vmatprep.subr.mxu0 %v79_v51  ;;  %394 = vmatprep.subr.mxu1 %v135_v54 }
  0x37   :  { %310 = vmatpush2.msra.mxu0 %v78_v53  ;;  %395 = vmatpush2.msra.mxu1 %v134_v58 }
  0x38   :  { %311 = vmatprep.subr.mxu0 %v77_v57  ;;  %396 = vmatprep.subr.mxu1 %v133_v60 }
  0x39   :  { %312 = vmatpush2.msra.mxu0 %v76_v59  ;;  %321 = vmatprep.mubr.f32.mxu0 %v207_v61 }
  0x3a   :  { %313 = vmatprep.subr.mxu0 %v75_v0  ;;  %397 = vmatpush2.msra.mxu1 %v132_v4 }
  0x3b   :  { %314 = vmatpush2.msra.mxu0 %v74_v3  ;;  %798 = vmatprep.mubr.msk.f32.mxu1 %vm252_vm0, %v209_v5 }
  0x3c   :  { %315 = vmatprep.subr.mxu0 %v73_v6  ;;  %399 = vmatmul.mubr.f32.vlgmr.msra.gmra.mxu1 %v208_v7 }
  0x3d   :  { %316 = vmatpush2.msra.mxu0 %v72_v8  ;;  %799 = vmatprep.mubr.msk.f32.mxu1 %vm252_vm0, %v245_v9 }
  0x3e   :  { %317 = vmatprep.subr.mxu0 %v71_v10 }
  0x3f   :  { %318 = vmatpush2.msra.mxu0 %v70_v13 }
  0x40   :  { %319 = vmatprep.subr.mxu0 %v69_v14  ;;  %405 = vmatmul.mubr.f32.gmra.mxu1 %v244_v15 }
  0x41   :  { %320 = vmatpush2.msra.mxu0 %v68_v16 }
  0x42   :  { %322 = vmatmul.mubr.f32.vlgmr.msra.gmra.mxu0 %v206_v17 }
  0x43   :  { %327 = vmatprep.mubr.f32.mxu0 %v243_v18 }
  0x46   :  { %328 = vmatmul.mubr.f32.gmra.mxu0 %v242_v19 }
  0xfc   :  { %v400_v35 = vpop.f32.mrf.mxu1 }
  0xfe   :  { %v402_v40 = vpop.f32.mrf.mxu1 }
 0x100   :  { %v406_v45 = vpop.f32.mrf.mxu1 }
 0x102   :  { %v323_v39 = vpop.f32.mrf.mxu0  ;;  %v408_v53 = vpop.f32.mrf.mxu1 }
 0x103   :  { %v324_v41 = vadd.f32 %v323_v39, %v159_v37 }
 0x104   :  { %v325_v42 = vpop.f32.mrf.mxu0 }
 0x105   :  { %v326_v43 = vadd.f32 %v325_v42, %v163_v38  ;;  %v401_v46 = vadd.f32 %v400_v35, %v324_v41 }
 0x106   :  { %v329_v44 = vpop.f32.mrf.mxu0 }
 0x107   :  { %v403_v47 = vadd.f32 %v402_v40, %v326_v43  ;;  %v330_v48 = vadd.f32 %v329_v44, %v159_v37 }
 0x108   :  { %v331_v49 = vpop.f32.mrf.mxu0 }
 0x109   :  { %v415_v50 = vcombine.low %v401_v46, %v403_v47  ;;  %v416_v51 = vcombine.high %v401_v46, %v403_v47  ;;  %v332_v52 = vadd.f32 %v331_v49, %v163_v38  ;;  %v407_v56 = vadd.f32 %v406_v45, %v330_v48 }
 0x10b   :  { %v423_v54 = vrot.slane %v415_v50, %v1260_v36  ;;  %v430_v55 = vrot.slane %v416_v51, %v1260_v36  ;;  %v409_v57 = vadd.f32 %v408_v53, %v332_v52 }
 0x10d   :  { %v431_v58 = vcombine.high %v423_v54, %v423_v54  ;;  %v432_v59 = vcombine.high %v430_v55, %v430_v55  ;;  %462 = vst.msk [vmem:[#allocation2] sm:$0xf] %vm1430_vm4, %v423_v54  ;;  %464 = vst.msk [vmem:[#allocation2 + $0x8] sm:$0xf] %vm1430_vm4, %v430_v55  ;;  %v433_v60 = vcombine.low %v407_v56, %v409_v57 }
 0x10e   :  { %v434_v61 = vcombine.high %v407_v56, %v409_v57 }
 0x10f   :  { %463 = vst.msk [vmem:[#allocation2 + $0x4] sm:$0xf] %vm1430_vm4, %v431_v58  ;;  %465 = vst.msk [vmem:[#allocation2 + $0xc] sm:$0xf] %vm1430_vm4, %v432_v59  ;;  %v441_v62 = vrot.slane %v433_v60, %v1260_v36 }
 0x110   :  { %v448_v63 = vrot.slane %v434_v61, %v1260_v36 }
 0x111   :  { %v449_v0 = vcombine.high %v441_v62, %v441_v62  ;;  %466 = vst.msk [vmem:[#allocation2 + $0x10] sm:$0xf] %vm1430_vm4, %v441_v62 }
 0x112   :  { %v450_v1 = vcombine.high %v448_v63, %v448_v63  ;;  %468 = vst.msk [vmem:[#allocation2 + $0x18] sm:$0xf] %vm1430_vm4, %v448_v63 }
 0x113   :  { %467 = vst.msk [vmem:[#allocation2 + $0x14] sm:$0xf] %vm1430_vm4, %v449_v0 }
 0x114   :  { %469 = vst.msk [vmem:[#allocation2 + $0x1c] sm:$0xf] %vm1430_vm4, %v450_v1 }
 0x115 LB: > { %v918_v2 = vmov 0.0   ;;  %vm919_vm5 = vmmov 0   ;;  %v493_v3 = vld [vmem:[#allocation3] sm:$0x3]  ;;  %vm500_vm6 = vcmask 261120   ;;  %s920_s5 = smov 64   ;;  %s910_s2 = sphi %s1454_s2, %s488_s2  }
 0x116   : > { %823 = vmatprep.subr.mxu0 %v918_v2  ;;  %831 = vmatprep.mubr.msk.f32.mxu0 %vm919_vm5, %v918_v2  ;;  %s811_s6 = sshll.u32 %s910_s2, 2  ;;  %s921_s11 = smov 96   ;;  %v611_v19 = vrot.slane %v493_v3, %v1260_v36 }
 0x117   : > { %824 = vmatpush3.msra.mxu0 %v1393_v24  ;;  %s491_s10 = scalar_lea.vmem [#allocation2], %s811_s6  ;;  %s922_s12 = smov 32  }
 0x118   : > { %825 = vmatprep.subr.mxu0 %v918_v2  ;;  %s800_s13 = sshll.u32 %s910_s2, 1  ;;  %s488_s2 = sadd.s32 1, %s910_s2  }
 0x119   : > { %826 = vmatpush3.msra.mxu0 %v1386_v22  ;;  %s629_s1 = scalar_lea.vmem %s1504_s7, %s800_s13  ;;  %p485_p0 = scmp.ge.s32.totalorder %s488_s2, 8  }
 0x11a   : > { %827 = vmatprep.subr.mxu0 %v918_v2  ;;  %s1478_s16 = smov (%p485_p0), 0  }
 0x11b   : > { %828 = vmatpush3.msra.mxu0 %v1381_v21  ;;  %v492_v8 = vld [vmem:[%s491_s10] sm:$0xf] }
 0x11c   : > { %829 = vmatprep.subr.mxu0 %v918_v2 }
 0x11d   : > { %830 = vmatpush3.msra.mxu0 %v1376_v20 }
 0x11e   : > { %832 = vmatmul.mubr.msk.f32.vlgmr.msra.gmra.mxu0 %vm500_vm6, %v493_v3 }
 0x1de   : > { %v570_v4 = vpop.f32.mrf.mxu0 }
 0x1df   : > { %v571_v5 = vadd.f32 %v1398_v25, %v570_v4 }
 0x1e0   : > { %v833_v6 = vpop.f32.mrf.mxu0 }
 0x1e1   : > { %v588_v7 = vrot.slane %v571_v5, %v1260_v36  ;;  %v574_v9 = vadd.f32 %v571_v5, %v492_v8 }
 0x1e3   : > { %589 = vrot.lane.b32.xlu0 %v588_v7, %s920_s5  ;;  %v804_v10 = vmul.f32 -1.442695, %v574_v9 }
 0x1e5   : > { %884 = vpow2.f32 %v804_v10 }
 0x1f2   : > { %v885_v11 = vpop.eup %884 }
 0x1f3   : > { %v578_v12 = vadd.f32 1.0, %v885_v11 }
 0x1f5   : > { %886 = vrcp.f32 %v578_v12 }
 0x202   : > { %v887_v13 = vpop.eup %886 }
 0x203   : > { %v599_v32 = vsub.f32 1.0, %v887_v13 }
 0x255   : > { %v590_v14 = vpop.permute.xlu0 %589 }
 0x256   : > { %v592_v15 = vmul.f32 %v887_v13, %v590_v14 }
 0x258   : > { %594 = vrot.lane.b32.xlu0 %v592_v15, %s920_s5 }
 0x2ca   : > { %v595_v16 = vpop.permute.xlu0 %594 }
 0x2cb   : > { %v597_v17 = vadd.f32 %v595_v16, %v492_v8 }
 0x2cd   : > { %888 = vtanh.f32 %v597_v17 }
 0x2da   : > { %v889_v18 = vpop.eup %888 }
 0x2db   : > { %601 = vrot.lane.b32.xlu1 %v889_v18, %s921_s11 }
 0x2df   : > { %612 = vrot.lane.b32.xlu1 %v611_v19, %s922_s12 }
 0x34d   : > { %v602_v23 = vpop.permute.xlu1 %601 }
 0x34e   : > { %v604_v34 = vmul.f32 %v602_v23, %v599_v32 }
 0x351   : > { %v613_v33 = vpop.permute.xlu1 %612 }
 0x352   : > { %v615_v35 = vmul.f32 %v887_v13, %v613_v33 }
 0x354   : > { %v616_v37 = vadd.f32 %v615_v35, %v604_v34 }
 0x356   : > { %v624_v38 = vrot.slane %v616_v37, %v1260_v36 }
 0x358   : > { %625 = vrot.lane.b32.xlu0 %v624_v38, %s921_s11 }
 0x3c7   :  { %487 = sbr.rel (!%p485_p0) target bundleno = 277 (0x115), region = 74 }
 0x3ca   : > { %v626_v39 = vpop.permute.xlu0 %625 }
 0x3cb   : > { %628 = vst.msk [vmem:[#allocation3] sm:$0x3] %vm480_vm1, %v626_v39  ;;  %630 = vst.msk [vmem:[%s629_s1] sm:$0x3] %vm480_vm1, %v626_v39 }
 0x3cc LB: > { %v923_v40 = vmov 0.0   ;;  %vm924_vm7 = vmmov 0   ;;  %v642_v20 = vld [vmem:[#allocation4] sm:$0x3]  ;;  %s637_s7 = ssub.s32 7, %s914_s16  ;;  %s925_s19 = smov 96   ;;  %s914_s16 = sphi %s1478_s16, %s636_s16  }
 0x3cd   : > { %834 = vmatprep.subr.mxu0 %v923_v40  ;;  %842 = vmatprep.mubr.msk.f32.mxu0 %vm924_vm7, %v923_v40  ;;  %s812_s17 = sshll.u32 %s637_s7, 2  ;;  %s926_s20 = smov 32  }
 0x3ce   : > { %835 = vmatpush3.msra.mxu0 %v1418_v30  ;;  %s640_s18 = scalar_lea.vmem [#allocation2], %s812_s17  ;;  %s805_s21 = sshll.u32 %s637_s7, 1 }
 0x3cf   : > { %836 = vmatprep.subr.mxu0 %v923_v40  ;;  %v641_v21 = vld [vmem:[%s640_s18] sm:$0xf]  ;;  %s770_s24 = scalar_lea.vmem %s1505_s8, %s805_s21  ;;  %s636_s16 = sadd.s32 1, %s914_s16  }
 0x3d0   : > { %837 = vmatpush3.msra.mxu0 %v1413_v29  ;;  %755 = vrot.lane.b32.xlu1 %v641_v21, %s925_s19  ;;  %v742_v50 = vrot.slane %v641_v21, 2  ;;  %p633_p1 = scmp.ge.s32.totalorder %s636_s16, 8  }
 0x3d1   : > { %838 = vmatprep.subr.mxu0 %v923_v40 }
 0x3d2   : > { %839 = vmatpush3.msra.mxu0 %v1408_v28 }
 0x3d3   : > { %840 = vmatprep.subr.mxu0 %v923_v40 }
 0x3d4   : > { %841 = vmatpush3.msra.mxu0 %v1403_v27 }
 0x3d5   : > { %843 = vmatmul.mubr.msk.f32.vlgmr.msra.gmra.mxu0 %vm500_vm6, %v642_v20 }
 0x442   : > { %v756_v53 = vpop.permute.xlu1 %755 }
 0x443   : > { %v757_v55 = vrot.slane %v756_v53, 2 }
 0x495   : > { %v719_v22 = vpop.f32.mrf.mxu0 }
 0x496   : > { %v720_v24 = vadd.f32 %v1423_v31, %v719_v22 }
 0x497   : > { %v844_v25 = vpop.f32.mrf.mxu0 }
 0x498   : > { %v730_v41 = vrot.slane %v720_v24, %v1260_v36 }
 0x49a   : > { %731 = vrot.lane.b32.xlu0 %v730_v41, %s925_s19 }
 0x49e   : > { %751 = vrot.lane.b32.xlu0 %v730_v41, %s926_s20 }
 0x50c   : > { %v732_v42 = vpop.permute.xlu0 %731 }
 0x50d   : > { %v734_v43 = vadd.f32 %v732_v42, %v641_v21  ;;  %v744_v51 = vadd.f32 %v742_v50, %v732_v42 }
 0x50f   : > { %v809_v44 = vmul.f32 -1.442695, %v734_v43  ;;  %v810_v52 = vmul.f32 -1.442695, %v744_v51 }
 0x510   : > { %v752_v48 = vpop.permute.xlu0 %751 }
 0x511   : > { %890 = vpow2.f32 %v809_v44 }
 0x51e   : > { %v891_v45 = vpop.eup %890 }
 0x51f   : > { %v738_v46 = vadd.f32 1.0, %v891_v45 }
 0x521   : > { %892 = vrcp.f32 %v738_v46 }
 0x522   : > { %894 = vpow2.f32 %v810_v52 }
 0x52e   : > { %v893_v47 = vpop.eup %892 }
 0x52f   : > { %v754_v49 = vmul.f32 %v893_v47, %v752_v48  ;;  %v895_v26 = vpop.eup %894 }
 0x530   : > { %v748_v54 = vadd.f32 1.0, %v895_v26 }
 0x531   : > { %760 = vrot.lane.b32.xlu1 %v754_v49, %s926_s20 }
 0x532   : > { %896 = vrcp.f32 %v748_v54 }
 0x53f   : > { %v897_v58 = vpop.eup %896 }
 0x540   : > { %v765_v59 = vsub.f32 1.0, %v897_v58  ;;  %v767_v61 = vmul.f32 %v897_v58, %v642_v20 }
 0x5a3   : > { %v761_v56 = vpop.permute.xlu1 %760 }
 0x5a4   : > { %v763_v57 = vadd.f32 %v761_v56, %v757_v55 }
 0x5a6   : > { %898 = vtanh.f32 %v763_v57 }
 0x5b3   : > { %v899_v60 = vpop.eup %898 }
 0x5b4   : > { %v766_v62 = vmul.f32 %v899_v60, %v765_v59  ;;  %635 = sbr.rel (!%p633_p1) target bundleno = 972 (0x3cc), region = 85 }
 0x5b6   : > { %v768_v63 = vadd.f32 %v767_v61, %v766_v62 }
 0x5b8   : > { %769 = vst.msk [vmem:[#allocation4] sm:$0x3] %vm480_vm1, %v768_v63  ;;  %771 = vst.msk [vmem:[%s770_s24] sm:$0x3] %vm480_vm1, %v768_v63 }

// kernel: mwan_forward.21
= control target key start
LH: loop header
LB: loop body
LE: loop exit
PB: predicated region body
PF: predicated region fallthrough
CT: control target
= control target key end

     0   :  { %s271_s9 = smov 0   ;;  %s297_s0 = inlined_call_operand.vmem [shape: f32[6,6,32], index: 0, kind: input, shape index: {}]   ;;  %s298_s1 = inlined_call_operand.vmem [shape: f32[1,32], index: 1, kind: input, shape index: {}]   ;;  %s299_s2 = inlined_call_operand.vmem [shape: f32[6,1,32], index: 2, kind: output, shape index: {}]  }
   0x1 LB: > { %s227_s10 = sadd.s32 4294967295, %s254_s9   ;;  %p231_p0 = scmp.ge.s32.totalorder %s254_s9, 1  ;;  %s254_s9 = sphi %s271_s9, %s12_s9  }
   0x2   : > { %p111_p1 = scmp.lt.s32.totalorder %s254_s9, 7 }
   0x4   : > { %p112_p2 = pnand %p231_p0, %p111_p1 }
   0x5   : > { %p130_p3 = scmp.lt.s32.totalorder (!%p112_p2), %s227_s10, 5 }
   0x6   : > { %115 = sbr.rel (%p112_p2) target bundleno = 232 (0xe8), region = 28 }
   0xb   : > { %s301_s10 = smov (!%p130_p3, %s227_s10), 5  ;;  %v233_v0 = vld [vmem:[%s298_s1] ss:$0 sm:$0xff]  ;;  %vm146_vm0 = vcmask 259072   ;;  %vm150_vm1 = vcmask 1045504   ;;  %vm178_vm2 = vcmask 253952  }
   0xc   : > { %s232_s11 = sshll.u32 %s301_s10, 3  ;;  %s136_s19 = scalar_lea.vmem %s299_s2, %s301_s10 }
   0xd   : > { %s133_s16 = scalar_lea.vmem %s297_s0, %s232_s11 }
   0xe   : > { %v137_v1 = vld [vmem:[%s133_s16] sm:$0x3f] }
   0xf   : > { %v145_v2 = vmul.f32 %v233_v0, %v137_v1 }
  0x11   : > { %v147_v3 = vsel %vm146_vm0, %v145_v2, 0.0 }
  0x12   : > { %148 = vadd.xlane.f32.xlu0 %v147_v3 }
  0x9b   : > { %v149_v4 = vpop.xlane.xlu0 %148 }
  0x9c   : > { %v151_v5 = vsel %vm150_vm1, %v149_v4, -inf }
  0x9d   : > { %v152_v6 = vrot.slane %v151_v5, 4 }
  0x9f   : > { %v153_v7 = vmax.f32 %v151_v5, %v152_v6 }
  0xa1   : > { %v154_v8 = vrot.slane %v153_v7, 2 }
  0xa3   : > { %v155_v9 = vmax.f32 %v153_v7, %v154_v8 }
  0xa5   : > { %v156_v10 = vrot.slane %v155_v9, 1 }
  0xa7   : > { %v157_v11 = vmax.f32 %v155_v9, %v156_v10 }
  0xa9   : > { %v158_v12 = vsub.f32 %v149_v4, %v157_v11 }
  0xab   : > { %v159_v13 = vmul.f32 1.442695, %v158_v12 }
  0xad   : > { %244 = vpow2.f32 %v159_v13 }
  0xba   : > { %v245_v14 = vpop.eup %244 }
  0xbb   : > { %v161_v15 = vsel %vm150_vm1, %v245_v14, 0.0 }
  0xbc   : > { %v162_v16 = vrot.slane %v161_v15, 4 }
  0xbe   : > { %v163_v17 = vadd.f32 %v162_v16, %v161_v15 }
  0xc0   : > { %v164_v18 = vrot.slane %v163_v17, 2 }
  0xc2   : > { %v165_v19 = vadd.f32 %v164_v18, %v163_v17 }
  0xc4   : > { %v166_v20 = vrot.slane %v165_v19, 1 }
  0xc6   : > { %v167_v21 = vadd.f32 %v166_v20, %v165_v19 }
  0xc8   : > { %246 = vrcp.f32 %v167_v21 }
  0xd5   : > { %v247_v22 = vpop.eup %246 }
  0xd6   : > { %v169_v23 = vmul.f32 %v247_v22, %v245_v14 }
  0xd8   : > { %v170_v24 = vmul.f32 %v169_v23, %v137_v1 }
  0xda   : > { %v171_v25 = vsel %vm146_vm0, %v170_v24, 0.0 }
  0xdb   : > { %v172_v26 = vrot.slane %v171_v25, 4 }
  0xdd   : > { %v173_v27 = vadd.f32 %v172_v26, %v171_v25 }
  0xdf   : > { %v174_v28 = vrot.slane %v173_v27, 2 }
  0xe1   : > { %v175_v29 = vadd.f32 %v174_v28, %v173_v27 }
  0xe3   : > { %v176_v30 = vrot.slane %v175_v29, 1 }
  0xe5   : > { %v177_v31 = vadd.f32 %v176_v30, %v175_v29 }
  0xe7   : > { %179 = vst.msk [vmem:[%s136_s19] sm:$0x1] %vm178_vm2, %v177_v31 }
  0xe8 PF: > { %s12_s9 = sadd.s32 1, %s254_s9  }
  0xe9   : > { %p9_p4 = scmp.ge.s32.totalorder %s12_s9, 8  }
  0xeb   :  { %11 = sbr.rel (!%p9_p4) target bundleno = 1 (0x1), region = 58 }

// kernel: mwan_forward.20
= control target key start
LH: loop header
LB: loop body
LE: loop exit
PB: predicated region body
PF: predicated region fallthrough
CT: control target
= control target key end

     0   :  { %vm520_vm0 = vcmask 128000   ;;  %v945_v0 = vmov 0.0   ;;  %v946_v3 = vmov 1983009808   ;;  %v44_v5 = vlaneseq  ;;  %s1190_s7 = inlined_call_operand.vmem [shape: f32[6,6,16], index: 7, kind: output, shape index: {0}]   ;;  %s1191_s8 = inlined_call_operand.vmem [shape: f32[6,6,16], index: 8, kind: output, shape index: {1}]   ;;  %s1192_s1 = inlined_call_operand.vmem [shape: f32[32,96], index: 1, kind: input, shape index: {}]   ;;  %s1193_s0 = inlined_call_operand.vmem [shape: f32[6,6,32], index: 0, kind: input, shape index: {}]   ;;  %s1194_s3 = inlined_call_operand.vmem [shape: f32[16,48], index: 3, kind: input, shape index: {}]   ;;  %s1195_s4 = inlined_call_operand.vmem [shape: f32[1,48], index: 4, kind: input, shape index: {}]   ;;  %s1196_s5 = inlined_call_operand.vmem [shape: f32[16,48], index: 5, kind: input, shape index: {}]   ;;  %s1197_s6 = inlined_call_operand.vmem [shape: f32[1,48], index: 6, kind: input, shape index: {}]   ;;  %s1198_s2 = inlined_call_operand.vmem [shape: f32[1,96], index: 2, kind: input, shape index: {}]  }
   0x1   :  { %834 = vmatprep.subr.mxu0 %v945_v0  ;;  %521 = vst.msk [vmem:[#allocation3] sm:$0x3f] %vm520_vm0, %v945_v0  ;;  %522 = vst.msk [vmem:[#allocation4] sm:$0x3f] %vm520_vm0, %v945_v0  ;;  %v139_v1 = vld [vmem:[%s1192_s1 + $0x18] sm:$0xff]  ;;  %v138_v2 = vld [vmem:[%s1192_s1 + $0x10] sm:$0xff]  ;;  %871 = vmatprep.subr.mxu1 %v945_v0  ;;  %v42_v4 = vunpack.c.l.s4 %v946_v3 }
   0x2   :  { %835 = vmatpush3.msra.mxu0 %v139_v1  ;;  %875 = vmatpush3.msra.mxu1 %v139_v1  ;;  %v28_v6 = vld [vmem:[%s1193_s0] sm:$0x3f]  ;;  %v137_v7 = vld [vmem:[%s1192_s1 + $0x8] sm:$0xff]  ;;  %v45_v11 = vshrl.u32 %v44_v5, 7  ;;  %v31_v14 = vld [vmem:[%s1193_s0 + $0x18] sm:$0x3f] }
   0x3   :  { %836 = vmatprep.subr.mxu0 %v945_v0  ;;  %872 = vmatprep.subr.mxu1 %v945_v0  ;;  %v29_v8 = vld [vmem:[%s1193_s0 + $0x8] sm:$0x3f]  ;;  %v40_v9 = vcombine.high %v28_v6, %v28_v6  ;;  %v43_v10 = vunpack.c.0.s8 %v42_v4  ;;  %v32_v12 = vld [vmem:[%s1193_s0 + $0x20] sm:$0x3f]  ;;  %vm947_vm1 = vmmov 0   ;;  %v88_v21 = vcombine.high %v31_v14, %v31_v14 }
   0x4   :  { %837 = vmatpush3.msra.mxu0 %v138_v2  ;;  %876 = vmatpush3.msra.mxu1 %v138_v2  ;;  %v56_v13 = vcombine.high %v29_v8, %v29_v8  ;;  %v136_v15 = vld [vmem:[%s1192_s1] sm:$0xff]  ;;  %v30_v17 = vld [vmem:[%s1193_s0 + $0x10] sm:$0x3f]  ;;  %v33_v18 = vld [vmem:[%s1193_s0 + $0x28] sm:$0x3f]  ;;  %v104_v19 = vcombine.high %v32_v12, %v32_v12  ;;  %vm223_vm2 = vcmask 261120  }
   0x5   :  { %838 = vmatprep.subr.mxu0 %v945_v0  ;;  %842 = vmatprep.mubr.msk.f32.mxu0 %vm947_vm1, %v945_v0  ;;  %v1041_v16 = vsub.s32 %v43_v10, %v45_v11  ;;  %v72_v20 = vcombine.high %v30_v17, %v30_v17  ;;  %v120_v22 = vcombine.high %v33_v18, %v33_v18  ;;  %v1089_v63 = vld [vmem:[%s1194_s3] sm:$0xff]  ;;  %v1094_v1 = vld [vmem:[%s1194_s3 + $0x8] sm:$0xff]  ;;  %vm507_vm3 = vcmask 783360  }
   0x6   :  { %839 = vmatpush3.msra.mxu0 %v137_v7  ;;  %873 = vmatprep.subr.mxu1 %v945_v0  ;;  %v1099_v2 = vld [vmem:[%s1195_s4] ss:$0 sm:$0xff]  ;;  %v1109_v3 = vld [vmem:[%s1196_s5 + $0x8] sm:$0xff] }
   0x7   :  { %840 = vmatprep.subr.mxu0 %v945_v0  ;;  %v47_v23 = vrot.slane %v28_v6, %v1041_v16  ;;  %v54_v24 = vrot.slane %v40_v9, %v1041_v16  ;;  %v63_v25 = vrot.slane %v29_v8, %v1041_v16  ;;  %877 = vmatpush3.msra.mxu1 %v137_v7  ;;  %v1114_v4 = vld [vmem:[%s1197_s6] ss:$0 sm:$0xff] }
   0x8   :  { %841 = vmatpush3.msra.mxu0 %v136_v15  ;;  %874 = vmatprep.subr.mxu1 %v945_v0  ;;  %v70_v26 = vrot.slane %v56_v13, %v1041_v16  ;;  %v79_v27 = vrot.slane %v30_v17, %v1041_v16  ;;  %v111_v28 = vrot.slane %v32_v12, %v1041_v16  ;;  %v805_v5 = vld [vmem:[%s1198_s2] ss:$0 sm:$0xff]  ;;  %s1146_s2 = smov 0  }
   0x9   :  { %v55_v29 = vcombine.high %v47_v23, %v47_v23  ;;  %v148_v30 = vcombine.low %v54_v24, %v63_v25  ;;  %878 = vmatpush3.msra.mxu1 %v136_v15  ;;  %851 = vmatprep.mubr.msk.f32.mxu1 %vm947_vm1, %v945_v0  ;;  %v71_v31 = vcombine.high %v63_v25, %v63_v25 }
   0xa   :  { %v87_v32 = vcombine.high %v79_v27, %v79_v27  ;;  %v118_v33 = vrot.slane %v104_v19, %v1041_v16  ;;  %v119_v34 = vcombine.high %v111_v28, %v111_v28  ;;  %v127_v35 = vrot.slane %v33_v18, %v1041_v16 }
   0xb   :  { %v147_v36 = vcombine.low %v47_v23, %v55_v29  ;;  %v162_v37 = vrot.slane %v148_v30, %v1041_v16  ;;  %v164_v38 = vcombine.low %v71_v31, %v70_v26  ;;  %v86_v39 = vrot.slane %v72_v20, %v1041_v16 }
   0xc   :  { %v165_v40 = vcombine.low %v79_v27, %v87_v32  ;;  %v198_v41 = vcombine.low %v111_v28, %v119_v34  ;;  %v199_v42 = vcombine.low %v118_v33, %v127_v35  ;;  %v95_v43 = vrot.slane %v31_v14, %v1041_v16 }
   0xd   :  { %v155_v44 = vrot.slane %v147_v36, %v1041_v16  ;;  %v172_v45 = vrot.slane %v164_v38, %v1041_v16  ;;  %v102_v46 = vrot.slane %v88_v21, %v1041_v16  ;;  %v134_v47 = vrot.slane %v120_v22, %v1041_v16 }
   0xe   :  { %v179_v48 = vrot.slane %v165_v40, %v1041_v16  ;;  %v206_v49 = vrot.slane %v198_v41, %v1041_v16  ;;  %v213_v50 = vrot.slane %v199_v42, %v1041_v16  ;;  %v103_v51 = vcombine.high %v95_v43, %v95_v43 }
   0xf   :  { %v163_v52 = vcombine.low %v155_v44, %v162_v37  ;;  %v181_v53 = vcombine.low %v86_v39, %v95_v43  ;;  %v135_v54 = vcombine.high %v127_v35, %v127_v35 }
  0x10   :  { %v214_v55 = vcombine.low %v206_v49, %v213_v50  ;;  %v182_v56 = vcombine.low %v103_v51, %v102_v46  ;;  %v180_v57 = vcombine.low %v172_v45, %v179_v48 }
  0x11   :  { %843 = vmatmul.mubr.msk.f32.vlgmr.msra.gmra.mxu0 %vm223_vm2, %v163_v52  ;;  %v189_v58 = vrot.slane %v181_v53, %v1041_v16  ;;  %v215_v59 = vcombine.low %v135_v54, %v134_v47 }
  0x12   :  { %845 = vmatprep.mubr.msk.f32.mxu0 %vm947_vm1, %v945_v0  ;;  %852 = vmatmul.mubr.msk.f32.vlgmr.msra.gmra.mxu1 %vm223_vm2, %v214_v55  ;;  %v196_v60 = vrot.slane %v182_v56, %v1041_v16 }
  0x13   :  { %854 = vmatprep.mubr.msk.f32.mxu1 %vm947_vm1, %v945_v0  ;;  %v222_v61 = vrot.slane %v215_v59, %v1041_v16 }
  0x14   :  { %v197_v62 = vcombine.low %v189_v58, %v196_v60 }
  0x15   :  { %846 = vmatmul.mubr.msk.f32.gmra.mxu0 %vm223_vm2, %v180_v57 }
  0x16   :  { %848 = vmatprep.mubr.msk.f32.mxu0 %vm947_vm1, %v945_v0  ;;  %855 = vmatmul.mubr.msk.f32.gmra.mxu1 %vm223_vm2, %v222_v61  ;;  %v1104_v0 = vld [vmem:[%s1196_s5] sm:$0xff] }
  0x19   :  { %849 = vmatmul.mubr.msk.f32.gmra.mxu0 %vm223_vm2, %v197_v62 }
  0xd1   :  { %v300_v6 = vpop.f32.mrf.mxu0 }
  0xd2   :  { %v301_v7 = vadd.f32 %v805_v5, %v300_v6  ;;  %v315_v8 = vpop.f32.mrf.mxu1 }
  0xd3   :  { %v844_v9 = vpop.f32.mrf.mxu0  ;;  %v316_v10 = vadd.f32 %v805_v5, %v315_v8 }
  0xd4   :  { %v329_v11 = vcombine.high %v301_v7, %v301_v7  ;;  %v336_v12 = vrot.slane %v301_v7, %v1041_v16  ;;  %v853_v13 = vpop.f32.mrf.mxu1 }
  0xd5   :  { %v305_v14 = vpop.f32.mrf.mxu0  ;;  %v380_v15 = vcombine.high %v316_v10, %v316_v10  ;;  %v387_v17 = vrot.slane %v316_v10, %v1041_v16 }
  0xd6   :  { %v343_v18 = vrot.slane %v329_v11, %v1041_v16  ;;  %v344_v19 = vcombine.high %v336_v12, %v336_v12  ;;  %v306_v20 = vadd.f32 %v805_v5, %v305_v14  ;;  %v320_v21 = vpop.f32.mrf.mxu1 }
  0xd7   :  { %v394_v22 = vrot.slane %v380_v15, %v1041_v16  ;;  %v395_v23 = vcombine.high %v387_v17, %v387_v17  ;;  %v847_v24 = vpop.f32.mrf.mxu0  ;;  %v321_v25 = vadd.f32 %v805_v5, %v320_v21 }
  0xd8   :  { %v405_v26 = vcombine.low %v336_v12, %v344_v19  ;;  %v345_v27 = vcombine.high %v343_v18, %v343_v18  ;;  %v346_v28 = vcombine.high %v306_v20, %v306_v20  ;;  %v856_v29 = vpop.f32.mrf.mxu1  ;;  %v419_v30 = vrot.slane %v343_v18, %v1041_v16 }
  0xd9   :  { %v353_v31 = vrot.slane %v306_v20, %v1041_v16  ;;  %v469_v32 = vcombine.low %v387_v17, %v395_v23  ;;  %v483_v33 = vrot.slane %v394_v22, %v1041_v16  ;;  %v310_v34 = vpop.f32.mrf.mxu0  ;;  %v403_v38 = vrot.slane %v321_v25, %v1041_v16 }
  0xda   :  { %v412_v35 = vrot.slane %v405_v26, %v1041_v16  ;;  %v360_v36 = vrot.slane %v346_v28, %v1041_v16  ;;  %v311_v37 = vadd.f32 %v805_v5, %v310_v34  ;;  %v396_v42 = vcombine.high %v394_v22, %v394_v22 }
  0xdb   :  { %v361_v39 = vcombine.high %v353_v31, %v353_v31  ;;  %v421_v40 = vcombine.low %v345_v27, %v353_v31  ;;  %v476_v41 = vrot.slane %v469_v32, %v1041_v16  ;;  %v850_v43 = vpop.f32.mrf.mxu0  ;;  %v404_v51 = vcombine.high %v403_v38, %v403_v38 }
  0xdc   :  { %v420_v44 = vcombine.low %v412_v35, %v419_v30  ;;  %v362_v45 = vcombine.high %v360_v36, %v360_v36  ;;  %v363_v46 = vcombine.high %v311_v37, %v311_v37  ;;  %v370_v47 = vrot.slane %v311_v37, %v1041_v16 }
  0xdd   :  { %v428_v48 = vrot.slane %v421_v40, %v1041_v16  ;;  %v435_v49 = vrot.slane %v361_v39, %v1041_v16  ;;  %v484_v50 = vcombine.low %v476_v41, %v483_v33  ;;  %v485_v56 = vcombine.low %v396_v42, %v403_v38 }
  0xde   :  { %508 = vst.msk [vmem:[#allocation2] sm:$0x3f] %vm507_vm3, %v420_v44  ;;  %v437_v52 = vcombine.low %v360_v36, %v362_v45  ;;  %v377_v53 = vrot.slane %v363_v46, %v1041_v16  ;;  %v378_v54 = vcombine.high %v370_v47, %v370_v47  ;;  %v499_v57 = vrot.slane %v404_v51, %v1041_v16 }
  0xdf   :  { %v436_v55 = vcombine.low %v428_v48, %v435_v49  ;;  %512 = vst.msk [vmem:[#allocation2 + $0x20] sm:$0x3f] %vm507_vm3, %v484_v50  ;;  %v451_v60 = vrot.slane %v370_v47, %v1041_v16  ;;  %v492_v62 = vrot.slane %v485_v56, %v1041_v16 }
  0xe0   :  { %v379_v58 = vcombine.high %v377_v53, %v377_v53  ;;  %v444_v59 = vrot.slane %v437_v52, %v1041_v16  ;;  %v453_v61 = vcombine.low %v378_v54, %v377_v53 }
  0xe1   :  { %509 = vst.msk [vmem:[#allocation2 + $0x8] sm:$0x3f] %vm507_vm3, %v436_v55  ;;  %v500_v8 = vcombine.low %v492_v62, %v499_v57 }
  0xe2   :  { %v452_v5 = vcombine.low %v444_v59, %v451_v60  ;;  %v460_v6 = vrot.slane %v453_v61, %v1041_v16  ;;  %v467_v7 = vrot.slane %v379_v58, %v1041_v16 }
  0xe3   :  { %513 = vst.msk [vmem:[#allocation2 + $0x28] sm:$0x3f] %vm507_vm3, %v500_v8 }
  0xe4   :  { %v468_v9 = vcombine.low %v460_v6, %v467_v7  ;;  %510 = vst.msk [vmem:[#allocation2 + $0x10] sm:$0x3f] %vm507_vm3, %v452_v5 }
  0xe6   :  { %511 = vst.msk [vmem:[#allocation2 + $0x18] sm:$0x3f] %vm507_vm3, %v468_v9 }
  0xe7 LB: > { %v948_v10 = vmov 0.0   ;;  %vm949_vm4 = vmmov 0   ;;  %v532_v16 = vld [vmem:[#allocation3] sm:$0x3f]  ;;  %vm539_vm5 = vcmask 130048   ;;  %s950_s4 = smov 96   ;;  %s939_s2 = sphi %s1146_s2, %s528_s2  }
  0xe8   : > { %857 = vmatprep.subr.mxu0 %v948_v10  ;;  %861 = vmatprep.mubr.msk.f32.mxu0 %vm949_vm4, %v948_v10  ;;  %s811_s5 = sshll.u32 %s939_s2, 3  ;;  %s951_s14 = smov 32  }
  0xe9   : > { %858 = vmatpush3.msra.mxu0 %v1094_v1  ;;  %s530_s6 = scalar_lea.vmem [#allocation2], %s811_s5  ;;  %s952_s15 = smov 112  }
  0xea   : > { %859 = vmatprep.subr.mxu0 %v948_v10  ;;  %s953_s16 = smov 16   ;;  %s647_s19 = scalar_lea.vmem %s1190_s7, %s811_s5 }
  0xeb   : > { %860 = vmatpush3.msra.mxu0 %v1089_v63  ;;  %s528_s2 = sadd.s32 1, %s939_s2  }
  0xec   : > { %862 = vmatmul.mubr.msk.f32.vlgmr.msra.gmra.mxu0 %vm539_vm5, %v532_v16  ;;  %p525_p0 = scmp.ge.s32.totalorder %s528_s2, 6  }
  0xed   : > { %v531_v14 = vld [vmem:[%s530_s6] sm:$0x3f]  ;;  %s1168_s20 = smov (%p525_p0), 0  }
 0x1ac   : > { %v609_v11 = vpop.f32.mrf.mxu0 }
 0x1ad   : > { %v610_v12 = vadd.f32 %v1099_v2, %v609_v11 }
 0x1ae   : > { %v863_v13 = vpop.f32.mrf.mxu0 }
 0x1af   : > { %621 = vrot.lane.b32.xlu0 %v610_v12, %s950_s4  ;;  %v613_v15 = vadd.f32 %v610_v12, %v531_v14 }
 0x1b1   : > { %v814_v17 = vmul.f32 -1.442695, %v613_v15 }
 0x1b3   : > { %917 = vpow2.f32 %v814_v17 }
 0x1c0   : > { %v918_v18 = vpop.eup %917 }
 0x1c1   : > { %v617_v19 = vadd.f32 1.0, %v918_v18 }
 0x1c3   : > { %919 = vrcp.f32 %v617_v19 }
 0x1d0   : > { %v920_v20 = vpop.eup %919 }
 0x1d1   : > { %v631_v27 = vsub.f32 1.0, %v920_v20 }
 0x221   : > { %v622_v21 = vpop.permute.xlu0 %621 }
 0x222   : > { %v624_v22 = vmul.f32 %v920_v20, %v622_v21 }
 0x224   : > { %626 = vrot.lane.b32.xlu0 %v624_v22, %s951_s14 }
 0x296   : > { %v627_v23 = vpop.permute.xlu0 %626 }
 0x297   : > { %v629_v24 = vadd.f32 %v627_v23, %v531_v14 }
 0x299   : > { %921 = vtanh.f32 %v629_v24 }
 0x2a6   : > { %v922_v25 = vpop.eup %921 }
 0x2a7   : > { %633 = vrot.lane.b32.xlu1 %v922_v25, %s952_s15 }
 0x2ab   : > { %637 = vrot.lane.b32.xlu1 %v532_v16, %s953_s16 }
 0x319   : > { %v634_v26 = vpop.permute.xlu1 %633 }
 0x31a   : > { %v636_v29 = vmul.f32 %v634_v26, %v631_v27 }
 0x31d   : > { %v638_v28 = vpop.permute.xlu1 %637 }
 0x31e   : > { %v640_v30 = vmul.f32 %v920_v20, %v638_v28 }
 0x320   : > { %v641_v31 = vadd.f32 %v640_v30, %v636_v29 }
 0x322   : > { %643 = vrot.lane.b32.xlu0 %v641_v31, %s952_s15 }
 0x391   :  { %527 = sbr.rel (!%p525_p0) target bundleno = 231 (0xe7), region = 74 }
 0x394   : > { %v644_v32 = vpop.permute.xlu0 %643 }
 0x395   : > { %646 = vst.msk [vmem:[#allocation3] sm:$0x3f] %vm520_vm0, %v644_v32  ;;  %648 = vst.msk [vmem:[%s647_s19] sm:$0x3f] %vm520_vm0, %v644_v32 }
 0x396 LB: > { %v954_v33 = vmov 0.0   ;;  %vm955_vm6 = vmmov 0   ;;  %v659_v34 = vld [vmem:[#allocation4] sm:$0x3f]  ;;  %s956_s7 = smov 48   ;;  %s957_s21 = smov 16   ;;  %s943_s20 = sphi %s1168_s20, %s654_s20  }
 0x397   : > { %864 = vmatprep.subr.mxu0 %v954_v33  ;;  %868 = vmatprep.mubr.msk.f32.mxu0 %vm955_vm6, %v954_v33  ;;  %s958_s22 = smov 64   ;;  %s655_s23 = ssub.s32 5, %s943_s20 }
 0x398   : > { %865 = vmatpush3.msra.mxu0 %v1109_v3  ;;  %s1178_s24 = sshll.u32 %s655_s23, 3  ;;  %s959_s1 = smov 32  }
 0x399   : > { %866 = vmatprep.subr.mxu0 %v954_v33  ;;  %s657_s0 = scalar_lea.vmem [#allocation2], %s1178_s24  ;;  %s960_s25 = smov 112  }
 0x39a   : > { %867 = vmatpush3.msra.mxu0 %v1104_v0  ;;  %v658_v35 = vld [vmem:[%s657_s0] sm:$0x3f]  ;;  %s777_s28 = scalar_lea.vmem %s1191_s8, %s1178_s24  ;;  %s654_s20 = sadd.s32 1, %s943_s20  }
 0x39b   : > { %869 = vmatmul.mubr.msk.f32.vlgmr.msra.gmra.mxu0 %vm539_vm5, %v659_v34  ;;  %p651_p1 = scmp.ge.s32.totalorder %s654_s20, 6  }
 0x45b   : > { %v736_v63 = vpop.f32.mrf.mxu0 }
 0x45c   : > { %v737_v1 = vadd.f32 %v1114_v4, %v736_v63 }
 0x45d   : > { %v870_v2 = vpop.f32.mrf.mxu0 }
 0x45e   : > { %741 = vrot.lane.b32.xlu0 %v737_v1, %s956_s7 }
 0x462   : > { %751 = vrot.lane.b32.xlu0 %v737_v1, %s957_s21 }
 0x466   : > { %767 = vrot.lane.b32.xlu0 %v659_v34, %s958_s22 }
 0x4d0   : > { %v742_v36 = vpop.permute.xlu0 %741 }
 0x4d1   : > { %v744_v37 = vadd.f32 %v742_v36, %v658_v35 }
 0x4d3   : > { %v818_v38 = vmul.f32 -1.442695, %v744_v37 }
 0x4d4   : > { %v752_v42 = vpop.permute.xlu0 %751 }
 0x4d5   : > { %923 = vpow2.f32 %v818_v38 }
 0x4d8   : > { %v768_v47 = vpop.permute.xlu0 %767 }
 0x4e2   : > { %v924_v39 = vpop.eup %923 }
 0x4e3   : > { %v748_v40 = vadd.f32 1.0, %v924_v39 }
 0x4e5   : > { %925 = vrcp.f32 %v748_v40 }
 0x4f2   : > { %v926_v41 = vpop.eup %925 }
 0x4f3   : > { %v754_v43 = vmul.f32 %v926_v41, %v752_v42  ;;  %v761_v48 = vsub.f32 1.0, %v926_v41  ;;  %v770_v50 = vmul.f32 %v926_v41, %v768_v47 }
 0x4f5   : > { %756 = vrot.lane.b32.xlu1 %v754_v43, %s959_s1 }
 0x567   : > { %v757_v44 = vpop.permute.xlu1 %756 }
 0x568   : > { %v759_v45 = vadd.f32 %v757_v44, %v658_v35 }
 0x56a   : > { %927 = vtanh.f32 %v759_v45 }
 0x577   : > { %v928_v46 = vpop.eup %927 }
 0x578   : > { %763 = vrot.lane.b32.xlu1 %v928_v46, %s960_s25 }
 0x5ea   : > { %v764_v49 = vpop.permute.xlu1 %763 }
 0x5eb   : > { %v766_v51 = vmul.f32 %v764_v49, %v761_v48 }
 0x5ed   : > { %v771_v52 = vadd.f32 %v770_v50, %v766_v51 }
 0x5ef   : > { %773 = vrot.lane.b32.xlu1 %v771_v52, %s958_s22 }
 0x65e   :  { %653 = sbr.rel (!%p651_p1) target bundleno = 918 (0x396), region = 85 }
 0x661   : > { %v774_v53 = vpop.permute.xlu1 %773 }
 0x662   : > { %776 = vst.msk [vmem:[#allocation4] sm:$0x3f] %vm520_vm0, %v774_v53  ;;  %778 = vst.msk [vmem:[%s777_s28] sm:$0x3f] %vm520_vm0, %v774_v53 }

</bundles_post_ra>
